<compile_context>
chip_gen: v7x
topology: tpu7x:2x2x1
jax: 0.10.0
libtpu: 0.0.40
codegen_flags: <defaults>
</compile_context>

<pallas_src>
import jax
import jax.numpy as jnp
from jax.experimental import pallas as pl
from jax.experimental.pallas import tpu as pltpu


def _round_up(x, m):
    return ((x + m - 1) // m) * m


# ---------------------------------------------------------------------------
# Fused Pallas matmul kernel
# ---------------------------------------------------------------------------
def _make_fused_matmul_kernel(activation):
    def kernel(a_ref, b_ref, s_ref, c_ref, o_ref, acc_ref):
        @pl.when(pl.program_id(2) == 0)
        def _init():
            acc_ref[...] = jnp.zeros_like(acc_ref)

        acc_ref[...] += jnp.dot(
            a_ref[...], b_ref[...], preferred_element_type=jnp.float32
        )

        @pl.when(pl.program_id(2) == pl.num_programs(2) - 1)
        def _finalize():
            y = acc_ref[...] * s_ref[...] + c_ref[...]
            if activation == "relu":
                y = jnp.maximum(y, 0.0)
            elif activation == "sigmoid":
                y = 1.0 / (1.0 + jnp.exp(-y))
            o_ref[...] = y.astype(o_ref.dtype)

    return kernel


# ---------------------------------------------------------------------------
# Tile selection: minimize grid steps first, then padding.
# ---------------------------------------------------------------------------
_TM_CAP, _TK_CAP, _TN_CAP = 256, 2048, 2048


def _pick_tile(dim, base, cap):
    dim_pad = _round_up(dim, base)
    best = None
    for t in range(base, min(cap, dim_pad) + 1, base):
        padded = _round_up(dim_pad, t)
        key = (padded // t, padded, -t)
        if best is None or key < best[0]:
            best = (key, t, padded)
    return best[1], best[2]


def _pick_m_tile(M, want_split):
    # 16-row multiples keep bf16 block tiling happy on all generations.
    tm, M_pad = _pick_tile(M, 16, _TM_CAP)
    if want_split and M_pad // tm < 2 and M_pad >= 32:
        # Ensure >=2 blocks on a "parallel" axis so both v7x TCs get work.
        tm = _round_up((M_pad + 1) // 2, 16)
        M_pad = 2 * tm
    return tm, M_pad


# ---------------------------------------------------------------------------
# Matmul "plan": weight matrix + scale/bias padded & cast once, reused forever.
# ---------------------------------------------------------------------------
def make_matmul_plan(wm, scale, bias):
    K, N = wm.shape
    tk, K_pad = _pick_tile(K, 128, _TK_CAP)
    tn, N_pad = _pick_tile(N, 128, _TN_CAP)
    b_p = jnp.zeros((K_pad, N_pad), jnp.bfloat16).at[:K, :N].set(
        wm.astype(jnp.bfloat16))
    s_p = jnp.zeros((1, N_pad), jnp.float32).at[0, :N].set(scale.astype(jnp.float32))
    c_p = jnp.zeros((1, N_pad), jnp.float32).at[0, :N].set(bias.astype(jnp.float32))
    return dict(b=b_p, s=s_p, c=c_p, tk=tk, tn=tn, K=K, N=N,
                K_pad=K_pad, N_pad=N_pad)


def fused_matmul(a, plan, activation="none", out_dtype=jnp.bfloat16):
    """(M,K) @ prepadded (K_pad,N_pad) bf16 weights, fused scale/bias/act."""
    M, K = a.shape
    assert K == plan["K"]
    K_pad, N_pad, tk, tn = plan["K_pad"], plan["N_pad"], plan["tk"], plan["tn"]
    n_j = N_pad // tn
    tm, M_pad = _pick_m_tile(M, want_split=(n_j == 1))

    a = a.astype(jnp.bfloat16)
    if (M_pad, K_pad) != (M, K):
        a = jnp.pad(a, ((0, M_pad - M), (0, K_pad - K)))

    out = pl.pallas_call(
        _make_fused_matmul_kernel(activation),
        out_shape=jax.ShapeDtypeStruct((M_pad, N_pad), out_dtype),
        grid_spec=pltpu.PrefetchScalarGridSpec(
            num_scalar_prefetch=0,
            grid=(M_pad // tm, n_j, K_pad // tk),
            in_specs=[
                pl.BlockSpec((tm, tk), lambda i, j, k: (i, k)),
                pl.BlockSpec((tk, tn), lambda i, j, k: (k, j)),
                pl.BlockSpec((1, tn), lambda i, j, k: (0, j)),
                pl.BlockSpec((1, tn), lambda i, j, k: (0, j)),
            ],
            out_specs=pl.BlockSpec((tm, tn), lambda i, j, k: (i, j)),
            scratch_shapes=[pltpu.VMEM((tm, tn), jnp.float32)],
        ),
        compiler_params=pltpu.CompilerParams(
            dimension_semantics=("parallel", "parallel", "arbitrary"),
            vmem_limit_bytes=32 * 1024 * 1024,
        ),
    )(a, plan["b"], plan["s"], plan["c"])
    if (M_pad, N_pad) != (M, plan["N"]):
        out = out[:M, :plan["N"]]
    return out


# ---------------------------------------------------------------------------
# Conv / ConvTranspose lowering (NHWC internal layout)
# ---------------------------------------------------------------------------
def im2col_nhwc(x, k, stride, pad_lo, pad_hi):
    # TODO(synk): gather patches inside the kernel (pl.ANY + manual DMA) so the
    # k*k-expanded patch tensor never materializes in HBM.
    B, H, W, C = x.shape
    xp = jnp.pad(x, ((0, 0), (pad_lo, pad_hi), (pad_lo, pad_hi), (0, 0)))
    OH = (H + pad_lo + pad_hi - k) // stride + 1
    OW = (W + pad_lo + pad_hi - k) // stride + 1
    taps = []
    for ky in range(k):
        for kx in range(k):
            taps.append(
                xp[:, ky:ky + stride * OH:stride, kx:kx + stride * OW:stride, :])
    cols = jnp.concatenate(taps, axis=-1)         # (B,OH,OW,k*k*C)  tap-major
    return cols.reshape(B * OH * OW, k * k * C), (B, OH, OW)


def conv2d_nhwc(x, plan, k, stride, pad_lo, pad_hi, activation,
                out_dtype=jnp.bfloat16):
    a, (B, OH, OW) = im2col_nhwc(x, k, stride, pad_lo, pad_hi)
    y = fused_matmul(a, plan, activation, out_dtype)
    return y.reshape(B, OH, OW, plan["N"])


def conv_transpose2d_nhwc(x, plan, k, stride, padding, output_padding, activation,
                          out_dtype=jnp.bfloat16):
    # TODO(synk): sub-pixel decomposition for stride>1 would skip the ~75%
    # zero-stuffed patch entries; zero-stuffing kept for simplicity.
    B, H, W, C = x.shape
    if stride > 1:
        Hz = H + (H - 1) * (stride - 1)
        Wz = W + (W - 1) * (stride - 1)
        xz = jnp.zeros((B, Hz, Wz, C), x.dtype).at[:, ::stride, ::stride, :].set(x)
    else:
        xz = x
    pad_lo = k - 1 - padding
    pad_hi = k - 1 - padding + output_padding
    return conv2d_nhwc(xz, plan, k, 1, pad_lo, pad_hi, activation, out_dtype)


# ---------------------------------------------------------------------------
# Parameters (deterministic init, PyTorch layout) and one-time preprocessing
# ---------------------------------------------------------------------------
def bn_fold(gamma, beta, mean, var, eps=1e-5):
    s = gamma / jnp.sqrt(var + eps)
    return s, beta - mean * s


def init_params(noise_dim, key):
    keys = jax.random.split(key, 20)
    n = lambda i, shape, s=0.05: s * jax.random.normal(keys[i], shape, jnp.float32)

    def bn(i, c):
        ks = jax.random.split(keys[i], 4)
        gamma = 1.0 + 0.05 * jax.random.normal(ks[0], (c,), jnp.float32)
        beta = 0.05 * jax.random.normal(ks[1], (c,), jnp.float32)
        mean = 0.05 * jax.random.normal(ks[2], (c,), jnp.float32)
        var = 1.0 + 0.1 * jnp.abs(jax.random.normal(ks[3], (c,), jnp.float32))
        return gamma, beta, mean, var

    return {
        # Generator
        "g_fc_w": n(0, (noise_dim, 7 * 7 * 256)),      # (in, out), columns (c,h,w)
        "bn1": bn(1, 7 * 7 * 256),
        "ct1_w": n(2, (256, 128, 5, 5)),               # ConvTranspose (Cin,Cout,k,k)
        "bn2": bn(3, 128),
        "ct2_w": n(4, (128, 64, 5, 5)),
        "bn3": bn(5, 64),
        "ct3_w": n(6, (64, 1, 5, 5)),
        # Discriminator
        "d1_w": n(7, (64, 1, 5, 5)), "d1_b": n(8, (64,)),
        "d2_w": n(9, (128, 64, 5, 5)), "d2_b": n(10, (128,)),
        "d_fc_w": n(11, (7 * 7 * 128, 1)), "d_fc_b": n(12, (1,)),
    }


def _conv_weight_matrix(w_conv):
    """(Cout,Cin,k,k) -> (k*k*Cin, Cout) in im2col tap-major/channel-minor order."""
    Cout, Cin, k, _ = w_conv.shape
    return w_conv.transpose(2, 3, 1, 0).reshape(k * k * Cin, Cout)


def _convT_weight_matrix(w_t):
    """ConvTranspose2d (Cin,Cout,k,k) -> equivalent flipped direct-conv matrix."""
    w_conv = jnp.flip(w_t, axis=(2, 3)).transpose(1, 0, 2, 3)   # (Cout,Cin,k,k)
    return _conv_weight_matrix(w_conv)


def prepare_params(p, noise_dim):
    """One-time weight preprocessing (layout permutes, BN fold, pad, bf16)."""
    # Generator FC (+BN1): permute output columns (c,h,w)->(h,w,c) so the FC
    # output reshapes directly to NHWC (no transpose in the forward path).
    s1, b1 = bn_fold(*p["bn1"])
    w = p["g_fc_w"].reshape(noise_dim, 256, 7, 7).transpose(0, 2, 3, 1)
    w = w.reshape(noise_dim, 7 * 7 * 256)
    s1 = s1.reshape(256, 7, 7).transpose(1, 2, 0).reshape(-1)
    b1 = b1.reshape(256, 7, 7).transpose(1, 2, 0).reshape(-1)

    s2, b2 = bn_fold(*p["bn2"])
    s3, b3 = bn_fold(*p["bn3"])

    # Discriminator FC: permute input rows (c,h,w)->(h,w,c) to match NHWC flatten.
    dfc = p["d_fc_w"].reshape(128, 7, 7, 1).transpose(1, 2, 0, 3)
    dfc = dfc.reshape(7 * 7 * 128, 1)

    ones = lambda c: jnp.ones((c,), jnp.float32)
    zeros1 = jnp.zeros((1,), jnp.float32)
    return {
        "g_fc": make_matmul_plan(w, s1, b1),
        "ct1": make_matmul_plan(_convT_weight_matrix(p["ct1_w"]), s2, b2),
        "ct2": make_matmul_plan(_convT_weight_matrix(p["ct2_w"]), s3, b3),
        "ct3": make_matmul_plan(_convT_weight_matrix(p["ct3_w"]), ones(1), zeros1),
        "d1": make_matmul_plan(_conv_weight_matrix(p["d1_w"]), ones(64), p["d1_b"]),
        "d2": make_matmul_plan(_conv_weight_matrix(p["d2_w"]), ones(128), p["d2_b"]),
        "d_fc": make_matmul_plan(dfc, ones(1), p["d_fc_b"]),
    }


# ---------------------------------------------------------------------------
# DCGAN forward
# ---------------------------------------------------------------------------
def generator_fwd(noise, prep):
    B = noise.shape[0]
    x = fused_matmul(noise.astype(jnp.bfloat16), prep["g_fc"], "relu")   # (B,12544)
    x = x.reshape(B, 7, 7, 256)                                          # NHWC
    x = conv_transpose2d_nhwc(x, prep["ct1"], 5, 1, 2, 0, "relu")        # (B,7,7,128)
    x = conv_transpose2d_nhwc(x, prep["ct2"], 5, 2, 2, 1, "relu")        # (B,14,14,64)
    x = conv_transpose2d_nhwc(x, prep["ct3"], 5, 2, 2, 1, "sigmoid")     # (B,28,28,1)
    return x


def discriminator_fwd(x_nhwc, prep):
    B = x_nhwc.shape[0]
    x = conv2d_nhwc(x_nhwc, prep["d1"], 5, 2, 2, 2, "relu")              # (B,14,14,64)
    # Dropout(0.3): identity in eval mode
    x = conv2d_nhwc(x, prep["d2"], 5, 2, 2, 2, "relu")                   # (B,7,7,128)
    x = x.reshape(B, 7 * 7 * 128)                                        # (h,w,c) order
    return fused_matmul(x, prep["d_fc"], "sigmoid", out_dtype=jnp.float32)  # (B,1)


def dcgan_forward(inputs_nchw, prep, noise_dim, noise_key, generator_only=False):
    B = inputs_nchw.shape[0]
    noise = jax.random.normal(noise_key, (B, noise_dim), jnp.float32)
    generated = generator_fwd(noise, prep)                               # (B,28,28,1)
    if generator_only:
        return discriminator_fwd(generated, prep)
    real = inputs_nchw.transpose(0, 2, 3, 1).astype(jnp.bfloat16)        # NCHW->NHWC once
    both = jnp.concatenate([generated, real], axis=0)                    # one disc pass
    out = discriminator_fwd(both, prep)
    return out[:B], out[B:]


if __name__ == "__main__":
    noise_dim = 32
    batch = 2

    key = jax.random.PRNGKey(0)
    k_param, k_input, k_noise = jax.random.split(key, 3)

    params = init_params(noise_dim, k_param)
    prep = prepare_params(params, noise_dim)

    # Discriminator requires 28x28 single-channel images (7*7*128 flatten).
    x = jax.random.normal(k_input, (batch, 1, 28, 28), jnp.float32)

    fwd = jax.jit(lambda img, nk: dcgan_forward(img, prep, noise_dim, nk,
                                                generator_only=False))
    fake_out, real_out = fwd(x, k_noise)
    jax.block_until_ready((fake_out, real_out))

    assert fake_out.shape == (batch, 1) and real_out.shape == (batch, 1)
    assert bool(jnp.all((fake_out >= 0) & (fake_out <= 1)))
    assert bool(jnp.all((real_out >= 0) & (real_out <= 1)))
    print("KERNEL_OK")
</pallas_src>

<mosaic_0001>
module attributes {stable_mosaic.version = 11 : i64} {
  func.func @kernel(%arg0: i32, %arg1: i32, %arg2: i32, %arg3: memref<16x128xbf16, #tpu.memory_space<vmem>>, %arg4: memref<128x1792xbf16, #tpu.memory_space<vmem>>, %arg5: memref<1x1792xf32, #tpu.memory_space<vmem>>, %arg6: memref<1x1792xf32, #tpu.memory_space<vmem>>, %arg7: memref<16x1792xbf16, #tpu.memory_space<vmem>>, %arg8: memref<16x1792xf32, #tpu.memory_space<vmem>>) attributes {dimension_semantics = [#tpu.dimension_semantics<parallel>, #tpu.dimension_semantics<parallel>, #tpu.dimension_semantics<arbitrary>], iteration_bounds = array<i64: 1, 7, 1>, scalar_prefetch = 0 : i64, scratch_operands = 1 : i64, tpu.core_type = #tpu.core_type<tc>, window_params = [{transform_indices = @transform_0, window_bounds = array<i64: 16, 128>}, {transform_indices = @transform_1, window_bounds = array<i64: 128, 1792>}, {transform_indices = @transform_2, window_bounds = array<i64: 1, 1792>}, {transform_indices = @transform_3, window_bounds = array<i64: 1, 1792>}, {transform_indices = @transform_4, window_bounds = array<i64: 16, 1792>}]} {
    %c0_i32 = arith.constant 0 : i32
    %0 = arith.cmpi eq, %arg2, %c0_i32 : i32
    %1 = arith.extui %0 : i1 to i32
    %c0_i32_0 = arith.constant 0 : i32
    %2 = arith.cmpi ne, %1, %c0_i32_0 : i32
    scf.if %2 {
      %cst_10 = arith.constant 0.000000e+00 : f32
      %12 = vector.broadcast %cst_10 : f32 to vector<16x1792xf32>
      %c0_11 = arith.constant 0 : index
      %c0_12 = arith.constant 0 : index
      %13 = vector.load %arg8[%c0_11, %c0_12] : memref<16x1792xf32, #tpu.memory_space<vmem>>, vector<16x1792xf32>
      tpu.vector_store %arg8[%c0_11, %c0_12], %12 {strides = array<i32>} : memref<16x1792xf32, #tpu.memory_space<vmem>>, vector<16x1792xf32>,
    } else {
    }
    %c0 = arith.constant 0 : index
    %c0_1 = arith.constant 0 : index
    %3 = vector.load %arg8[%c0, %c0_1] : memref<16x1792xf32, #tpu.memory_space<vmem>>, vector<16x1792xf32>
    %c0_2 = arith.constant 0 : index
    %c0_3 = arith.constant 0 : index
    %4 = vector.load %arg3[%c0_2, %c0_3] : memref<16x128xbf16, #tpu.memory_space<vmem>>, vector<16x128xbf16>
    %c0_4 = arith.constant 0 : index
    %c0_5 = arith.constant 0 : index
    %5 = vector.load %arg4[%c0_4, %c0_5] : memref<128x1792xbf16, #tpu.memory_space<vmem>>, vector<128x1792xbf16>
    %cst = arith.constant dense<0.000000e+00> : vector<16x1792xf32>
    %6 = tpu.matmul %4, %5, %cst {dimension_numbers = #tpu.dot_dimension_numbers<[1], [0], [0], [1], [0, 0, 1, 1], [], []>} : vector<16x128xbf16>, vector<128x1792xbf16>, vector<16x1792xf32> -> vector<16x1792xf32>
    %7 = arith.addf %3, %6 : vector<16x1792xf32>
    %c0_6 = arith.constant 0 : index
    %c0_7 = arith.constant 0 : index
    %8 = vector.load %arg8[%c0_6, %c0_7] : memref<16x1792xf32, #tpu.memory_space<vmem>>, vector<16x1792xf32>
    tpu.vector_store %arg8[%c0_6, %c0_7], %7 {strides = array<i32>} : memref<16x1792xf32, #tpu.memory_space<vmem>>, vector<16x1792xf32>,
    %c0_i32_8 = arith.constant 0 : i32
    %9 = arith.cmpi eq, %arg2, %c0_i32_8 : i32
    %10 = arith.extui %9 : i1 to i32
    %c0_i32_9 = arith.constant 0 : i32
    %11 = arith.cmpi ne, %10, %c0_i32_9 : i32
    scf.if %11 {
      %c0_10 = arith.constant 0 : index
      %c0_11 = arith.constant 0 : index
      %12 = vector.load %arg8[%c0_10, %c0_11] : memref<16x1792xf32, #tpu.memory_space<vmem>>, vector<16x1792xf32>
      %c0_12 = arith.constant 0 : index
      %c0_13 = arith.constant 0 : index
      %13 = vector.load %arg5[%c0_12, %c0_13] : memref<1x1792xf32, #tpu.memory_space<vmem>>, vector<1x1792xf32>
      %14 = vector.broadcast %13 : vector<1x1792xf32> to vector<16x1792xf32>
      %15 = arith.mulf %12, %14 : vector<16x1792xf32>
      %c0_14 = arith.constant 0 : index
      %c0_15 = arith.constant 0 : index
      %16 = vector.load %arg6[%c0_14, %c0_15] : memref<1x1792xf32, #tpu.memory_space<vmem>>, vector<1x1792xf32>
      %17 = vector.broadcast %16 : vector<1x1792xf32> to vector<16x1792xf32>
      %18 = arith.addf %15, %17 : vector<16x1792xf32>
      %cst_16 = arith.constant 0.000000e+00 : f32
      %19 = vector.broadcast %cst_16 : f32 to vector<16x1792xf32>
      %20 = arith.maximumf %18, %19 : vector<16x1792xf32>
      %21 = arith.truncf %20 : vector<16x1792xf32> to vector<16x1792xbf16>
      %c0_17 = arith.constant 0 : index
      %c0_18 = arith.constant 0 : index
      %22 = vector.load %arg7[%c0_17, %c0_18] : memref<16x1792xbf16, #tpu.memory_space<vmem>>, vector<16x1792xbf16>
      tpu.vector_store %arg7[%c0_17, %c0_18], %21 {strides = array<i32>} : memref<16x1792xbf16, #tpu.memory_space<vmem>>, vector<16x1792xbf16>,
    } else {
    }
    return
  }
  func.func @transform_0(%arg0: i32, %arg1: i32, %arg2: i32) -> (i32, i32) {
    %c0_i32 = arith.constant 0 : i32
    return %arg0, %arg2 : i32, i32
  }
  func.func @transform_1(%arg0: i32, %arg1: i32, %arg2: i32) -> (i32, i32) {
    %c0_i32 = arith.constant 0 : i32
    return %arg2, %arg1 : i32, i32
  }
  func.func @transform_2(%arg0: i32, %arg1: i32, %arg2: i32) -> (i32, i32) {
    %c0_i32 = arith.constant 0 : i32
    %c0_i32_0 = arith.constant 0 : i32
    return %c0_i32, %arg1 : i32, i32
  }
  func.func @transform_3(%arg0: i32, %arg1: i32, %arg2: i32) -> (i32, i32) {
    %c0_i32 = arith.constant 0 : i32
    %c0_i32_0 = arith.constant 0 : i32
    return %c0_i32, %arg1 : i32, i32
  }
  func.func @transform_4(%arg0: i32, %arg1: i32, %arg2: i32) -> (i32, i32) {
    %c0_i32 = arith.constant 0 : i32
    return %arg0, %arg1 : i32, i32
  }
}

module attributes {stable_mosaic.version = 11 : i64} {
  func.func @kernel(%arg0: i32, %arg1: i32, %arg2: i32, %arg3: memref<64x1664xbf16, #tpu.memory_space<vmem>>, %arg4: memref<1664x128xbf16, #tpu.memory_space<vmem>>, %arg5: memref<1x128xf32, #tpu.memory_space<vmem>>, %arg6: memref<1x128xf32, #tpu.memory_space<vmem>>, %arg7: memref<64x128xbf16, #tpu.memory_space<vmem>>, %arg8: memref<64x128xf32, #tpu.memory_space<vmem>>) attributes {dimension_semantics = [#tpu.dimension_semantics<parallel>, #tpu.dimension_semantics<parallel>, #tpu.dimension_semantics<arbitrary>], iteration_bounds = array<i64: 2, 1, 4>, scalar_prefetch = 0 : i64, scratch_operands = 1 : i64, tpu.core_type = #tpu.core_type<tc>, window_params = [{transform_indices = @transform_0, window_bounds = array<i64: 64, 1664>}, {transform_indices = @transform_1, window_bounds = array<i64: 1664, 128>}, {transform_indices = @transform_2, window_bounds = array<i64: 1, 128>}, {transform_indices = @transform_3, window_bounds = array<i64: 1, 128>}, {transform_indices = @transform_4, window_bounds = array<i64: 64, 128>}]} {
    %c0_i32 = arith.constant 0 : i32
    %0 = arith.cmpi eq, %arg2, %c0_i32 : i32
    %1 = arith.extui %0 : i1 to i32
    %c0_i32_0 = arith.constant 0 : i32
    %2 = arith.cmpi ne, %1, %c0_i32_0 : i32
    scf.if %2 {
      %cst_9 = arith.constant 0.000000e+00 : f32
      %12 = vector.broadcast %cst_9 : f32 to vector<64x128xf32>
      %c0_10 = arith.constant 0 : index
      %c0_11 = arith.constant 0 : index
      %13 = vector.load %arg8[%c0_10, %c0_11] : memref<64x128xf32, #tpu.memory_space<vmem>>, vector<64x128xf32>
      tpu.vector_store %arg8[%c0_10, %c0_11], %12 {strides = array<i32>} : memref<64x128xf32, #tpu.memory_space<vmem>>, vector<64x128xf32>,
    } else {
    }
    %c0 = arith.constant 0 : index
    %c0_1 = arith.constant 0 : index
    %3 = vector.load %arg8[%c0, %c0_1] : memref<64x128xf32, #tpu.memory_space<vmem>>, vector<64x128xf32>
    %c0_2 = arith.constant 0 : index
    %c0_3 = arith.constant 0 : index
    %4 = vector.load %arg3[%c0_2, %c0_3] : memref<64x1664xbf16, #tpu.memory_space<vmem>>, vector<64x1664xbf16>
    %c0_4 = arith.constant 0 : index
    %c0_5 = arith.constant 0 : index
    %5 = vector.load %arg4[%c0_4, %c0_5] : memref<1664x128xbf16, #tpu.memory_space<vmem>>, vector<1664x128xbf16>
    %cst = arith.constant dense<0.000000e+00> : vector<64x128xf32>
    %6 = tpu.matmul %4, %5, %cst {dimension_numbers = #tpu.dot_dimension_numbers<[1], [0], [0], [1], [0, 0, 1, 1], [], []>} : vector<64x1664xbf16>, vector<1664x128xbf16>, vector<64x128xf32> -> vector<64x128xf32>
    %7 = arith.addf %3, %6 : vector<64x128xf32>
    %c0_6 = arith.constant 0 : index
    %c0_7 = arith.constant 0 : index
    %8 = vector.load %arg8[%c0_6, %c0_7] : memref<64x128xf32, #tpu.memory_space<vmem>>, vector<64x128xf32>
    tpu.vector_store %arg8[%c0_6, %c0_7], %7 {strides = array<i32>} : memref<64x128xf32, #tpu.memory_space<vmem>>, vector<64x128xf32>,
    %c3_i32 = arith.constant 3 : i32
    %9 = arith.cmpi eq, %arg2, %c3_i32 : i32
    %10 = arith.extui %9 : i1 to i32
    %c0_i32_8 = arith.constant 0 : i32
    %11 = arith.cmpi ne, %10, %c0_i32_8 : i32
    scf.if %11 {
      %c0_9 = arith.constant 0 : index
      %c0_10 = arith.constant 0 : index
      %12 = vector.load %arg8[%c0_9, %c0_10] : memref<64x128xf32, #tpu.memory_space<vmem>>, vector<64x128xf32>
      %c0_11 = arith.constant 0 : index
      %c0_12 = arith.constant 0 : index
      %13 = vector.load %arg5[%c0_11, %c0_12] : memref<1x128xf32, #tpu.memory_space<vmem>>, vector<1x128xf32>
      %14 = vector.broadcast %13 : vector<1x128xf32> to vector<64x128xf32>
      %15 = arith.mulf %12, %14 : vector<64x128xf32>
      %c0_13 = arith.constant 0 : index
      %c0_14 = arith.constant 0 : index
      %16 = vector.load %arg6[%c0_13, %c0_14] : memref<1x128xf32, #tpu.memory_space<vmem>>, vector<1x128xf32>
      %17 = vector.broadcast %16 : vector<1x128xf32> to vector<64x128xf32>
      %18 = arith.addf %15, %17 : vector<64x128xf32>
      %cst_15 = arith.constant 0.000000e+00 : f32
      %19 = vector.broadcast %cst_15 : f32 to vector<64x128xf32>
      %20 = arith.maximumf %18, %19 : vector<64x128xf32>
      %21 = arith.truncf %20 : vector<64x128xf32> to vector<64x128xbf16>
      %c0_16 = arith.constant 0 : index
      %c0_17 = arith.constant 0 : index
      %22 = vector.load %arg7[%c0_16, %c0_17] : memref<64x128xbf16, #tpu.memory_space<vmem>>, vector<64x128xbf16>
      tpu.vector_store %arg7[%c0_16, %c0_17], %21 {strides = array<i32>} : memref<64x128xbf16, #tpu.memory_space<vmem>>, vector<64x128xbf16>,
    } else {
    }
    return
  }
  func.func @transform_0(%arg0: i32, %arg1: i32, %arg2: i32) -> (i32, i32) {
    %c0_i32 = arith.constant 0 : i32
    return %arg0, %arg2 : i32, i32
  }
  func.func @transform_1(%arg0: i32, %arg1: i32, %arg2: i32) -> (i32, i32) {
    %c0_i32 = arith.constant 0 : i32
    return %arg2, %arg1 : i32, i32
  }
  func.func @transform_2(%arg0: i32, %arg1: i32, %arg2: i32) -> (i32, i32) {
    %c0_i32 = arith.constant 0 : i32
    %c0_i32_0 = arith.constant 0 : i32
    return %c0_i32, %arg1 : i32, i32
  }
  func.func @transform_3(%arg0: i32, %arg1: i32, %arg2: i32) -> (i32, i32) {
    %c0_i32 = arith.constant 0 : i32
    %c0_i32_0 = arith.constant 0 : i32
    return %c0_i32, %arg1 : i32, i32
  }
  func.func @transform_4(%arg0: i32, %arg1: i32, %arg2: i32) -> (i32, i32) {
    %c0_i32 = arith.constant 0 : i32
    return %arg0, %arg1 : i32, i32
  }
}

module attributes {stable_mosaic.version = 11 : i64} {
  func.func @kernel(%arg0: i32, %arg1: i32, %arg2: i32, %arg3: memref<208x1664xbf16, #tpu.memory_space<vmem>>, %arg4: memref<1664x128xbf16, #tpu.memory_space<vmem>>, %arg5: memref<1x128xf32, #tpu.memory_space<vmem>>, %arg6: memref<1x128xf32, #tpu.memory_space<vmem>>, %arg7: memref<208x128xbf16, #tpu.memory_space<vmem>>, %arg8: memref<208x128xf32, #tpu.memory_space<vmem>>) attributes {dimension_semantics = [#tpu.dimension_semantics<parallel>, #tpu.dimension_semantics<parallel>, #tpu.dimension_semantics<arbitrary>], iteration_bounds = array<i64: 2, 1, 2>, scalar_prefetch = 0 : i64, scratch_operands = 1 : i64, tpu.core_type = #tpu.core_type<tc>, window_params = [{transform_indices = @transform_0, window_bounds = array<i64: 208, 1664>}, {transform_indices = @transform_1, window_bounds = array<i64: 1664, 128>}, {transform_indices = @transform_2, window_bounds = array<i64: 1, 128>}, {transform_indices = @transform_3, window_bounds = array<i64: 1, 128>}, {transform_indices = @transform_4, window_bounds = array<i64: 208, 128>}]} {
    %c0_i32 = arith.constant 0 : i32
    %0 = arith.cmpi eq, %arg2, %c0_i32 : i32
    %1 = arith.extui %0 : i1 to i32
    %c0_i32_0 = arith.constant 0 : i32
    %2 = arith.cmpi ne, %1, %c0_i32_0 : i32
    scf.if %2 {
      %cst_9 = arith.constant 0.000000e+00 : f32
      %12 = vector.broadcast %cst_9 : f32 to vector<208x128xf32>
      %c0_10 = arith.constant 0 : index
      %c0_11 = arith.constant 0 : index
      %13 = vector.load %arg8[%c0_10, %c0_11] : memref<208x128xf32, #tpu.memory_space<vmem>>, vector<208x128xf32>
      tpu.vector_store %arg8[%c0_10, %c0_11], %12 {strides = array<i32>} : memref<208x128xf32, #tpu.memory_space<vmem>>, vector<208x128xf32>,
    } else {
    }
    %c0 = arith.constant 0 : index
    %c0_1 = arith.constant 0 : index
    %3 = vector.load %arg8[%c0, %c0_1] : memref<208x128xf32, #tpu.memory_space<vmem>>, vector<208x128xf32>
    %c0_2 = arith.constant 0 : index
    %c0_3 = arith.constant 0 : index
    %4 = vector.load %arg3[%c0_2, %c0_3] : memref<208x1664xbf16, #tpu.memory_space<vmem>>, vector<208x1664xbf16>
    %c0_4 = arith.constant 0 : index
    %c0_5 = arith.constant 0 : index
    %5 = vector.load %arg4[%c0_4, %c0_5] : memref<1664x128xbf16, #tpu.memory_space<vmem>>, vector<1664x128xbf16>
    %cst = arith.constant dense<0.000000e+00> : vector<208x128xf32>
    %6 = tpu.matmul %4, %5, %cst {dimension_numbers = #tpu.dot_dimension_numbers<[1], [0], [0], [1], [0, 0, 1, 1], [], []>} : vector<208x1664xbf16>, vector<1664x128xbf16>, vector<208x128xf32> -> vector<208x128xf32>
    %7 = arith.addf %3, %6 : vector<208x128xf32>
    %c0_6 = arith.constant 0 : index
    %c0_7 = arith.constant 0 : index
    %8 = vector.load %arg8[%c0_6, %c0_7] : memref<208x128xf32, #tpu.memory_space<vmem>>, vector<208x128xf32>
    tpu.vector_store %arg8[%c0_6, %c0_7], %7 {strides = array<i32>} : memref<208x128xf32, #tpu.memory_space<vmem>>, vector<208x128xf32>,
    %c1_i32 = arith.constant 1 : i32
    %9 = arith.cmpi eq, %arg2, %c1_i32 : i32
    %10 = arith.extui %9 : i1 to i32
    %c0_i32_8 = arith.constant 0 : i32
    %11 = arith.cmpi ne, %10, %c0_i32_8 : i32
    scf.if %11 {
      %c0_9 = arith.constant 0 : index
      %c0_10 = arith.constant 0 : index
      %12 = vector.load %arg8[%c0_9, %c0_10] : memref<208x128xf32, #tpu.memory_space<vmem>>, vector<208x128xf32>
      %c0_11 = arith.constant 0 : index
      %c0_12 = arith.constant 0 : index
      %13 = vector.load %arg5[%c0_11, %c0_12] : memref<1x128xf32, #tpu.memory_space<vmem>>, vector<1x128xf32>
      %14 = vector.broadcast %13 : vector<1x128xf32> to vector<208x128xf32>
      %15 = arith.mulf %12, %14 : vector<208x128xf32>
      %c0_13 = arith.constant 0 : index
      %c0_14 = arith.constant 0 : index
      %16 = vector.load %arg6[%c0_13, %c0_14] : memref<1x128xf32, #tpu.memory_space<vmem>>, vector<1x128xf32>
      %17 = vector.broadcast %16 : vector<1x128xf32> to vector<208x128xf32>
      %18 = arith.addf %15, %17 : vector<208x128xf32>
      %cst_15 = arith.constant 0.000000e+00 : f32
      %19 = vector.broadcast %cst_15 : f32 to vector<208x128xf32>
      %20 = arith.maximumf %18, %19 : vector<208x128xf32>
      %21 = arith.truncf %20 : vector<208x128xf32> to vector<208x128xbf16>
      %c0_16 = arith.constant 0 : index
      %c0_17 = arith.constant 0 : index
      %22 = vector.load %arg7[%c0_16, %c0_17] : memref<208x128xbf16, #tpu.memory_space<vmem>>, vector<208x128xbf16>
      tpu.vector_store %arg7[%c0_16, %c0_17], %21 {strides = array<i32>} : memref<208x128xbf16, #tpu.memory_space<vmem>>, vector<208x128xbf16>,
    } else {
    }
    return
  }
  func.func @transform_0(%arg0: i32, %arg1: i32, %arg2: i32) -> (i32, i32) {
    %c0_i32 = arith.constant 0 : i32
    return %arg0, %arg2 : i32, i32
  }
  func.func @transform_1(%arg0: i32, %arg1: i32, %arg2: i32) -> (i32, i32) {
    %c0_i32 = arith.constant 0 : i32
    return %arg2, %arg1 : i32, i32
  }
  func.func @transform_2(%arg0: i32, %arg1: i32, %arg2: i32) -> (i32, i32) {
    %c0_i32 = arith.constant 0 : i32
    %c0_i32_0 = arith.constant 0 : i32
    return %c0_i32, %arg1 : i32, i32
  }
  func.func @transform_3(%arg0: i32, %arg1: i32, %arg2: i32) -> (i32, i32) {
    %c0_i32 = arith.constant 0 : i32
    %c0_i32_0 = arith.constant 0 : i32
    return %c0_i32, %arg1 : i32, i32
  }
  func.func @transform_4(%arg0: i32, %arg1: i32, %arg2: i32) -> (i32, i32) {
    %c0_i32 = arith.constant 0 : i32
    return %arg0, %arg1 : i32, i32
  }
}

module attributes {stable_mosaic.version = 11 : i64} {
  func.func @kernel(%arg0: i32, %arg1: i32, %arg2: i32, %arg3: memref<224x1664xbf16, #tpu.memory_space<vmem>>, %arg4: memref<1664x128xbf16, #tpu.memory_space<vmem>>, %arg5: memref<1x128xf32, #tpu.memory_space<vmem>>, %arg6: memref<1x128xf32, #tpu.memory_space<vmem>>, %arg7: memref<224x128xbf16, #tpu.memory_space<vmem>>, %arg8: memref<224x128xf32, #tpu.memory_space<vmem>>) attributes {dimension_semantics = [#tpu.dimension_semantics<parallel>, #tpu.dimension_semantics<parallel>, #tpu.dimension_semantics<arbitrary>], iteration_bounds = array<i64: 7, 1, 1>, scalar_prefetch = 0 : i64, scratch_operands = 1 : i64, tpu.core_type = #tpu.core_type<tc>, window_params = [{transform_indices = @transform_0, window_bounds = array<i64: 224, 1664>}, {transform_indices = @transform_1, window_bounds = array<i64: 1664, 128>}, {transform_indices = @transform_2, window_bounds = array<i64: 1, 128>}, {transform_indices = @transform_3, window_bounds = array<i64: 1, 128>}, {transform_indices = @transform_4, window_bounds = array<i64: 224, 128>}]} {
    %c0_i32 = arith.constant 0 : i32
    %0 = arith.cmpi eq, %arg2, %c0_i32 : i32
    %1 = arith.extui %0 : i1 to i32
    %c0_i32_0 = arith.constant 0 : i32
    %2 = arith.cmpi ne, %1, %c0_i32_0 : i32
    scf.if %2 {
      %cst_10 = arith.constant 0.000000e+00 : f32
      %12 = vector.broadcast %cst_10 : f32 to vector<224x128xf32>
      %c0_11 = arith.constant 0 : index
      %c0_12 = arith.constant 0 : index
      %13 = vector.load %arg8[%c0_11, %c0_12] : memref<224x128xf32, #tpu.memory_space<vmem>>, vector<224x128xf32>
      tpu.vector_store %arg8[%c0_11, %c0_12], %12 {strides = array<i32>} : memref<224x128xf32, #tpu.memory_space<vmem>>, vector<224x128xf32>,
    } else {
    }
    %c0 = arith.constant 0 : index
    %c0_1 = arith.constant 0 : index
    %3 = vector.load %arg8[%c0, %c0_1] : memref<224x128xf32, #tpu.memory_space<vmem>>, vector<224x128xf32>
    %c0_2 = arith.constant 0 : index
    %c0_3 = arith.constant 0 : index
    %4 = vector.load %arg3[%c0_2, %c0_3] : memref<224x1664xbf16, #tpu.memory_space<vmem>>, vector<224x1664xbf16>
    %c0_4 = arith.constant 0 : index
    %c0_5 = arith.constant 0 : index
    %5 = vector.load %arg4[%c0_4, %c0_5] : memref<1664x128xbf16, #tpu.memory_space<vmem>>, vector<1664x128xbf16>
    %cst = arith.constant dense<0.000000e+00> : vector<224x128xf32>
    %6 = tpu.matmul %4, %5, %cst {dimension_numbers = #tpu.dot_dimension_numbers<[1], [0], [0], [1], [0, 0, 1, 1], [], []>} : vector<224x1664xbf16>, vector<1664x128xbf16>, vector<224x128xf32> -> vector<224x128xf32>
    %7 = arith.addf %3, %6 : vector<224x128xf32>
    %c0_6 = arith.constant 0 : index
    %c0_7 = arith.constant 0 : index
    %8 = vector.load %arg8[%c0_6, %c0_7] : memref<224x128xf32, #tpu.memory_space<vmem>>, vector<224x128xf32>
    tpu.vector_store %arg8[%c0_6, %c0_7], %7 {strides = array<i32>} : memref<224x128xf32, #tpu.memory_space<vmem>>, vector<224x128xf32>,
    %c0_i32_8 = arith.constant 0 : i32
    %9 = arith.cmpi eq, %arg2, %c0_i32_8 : i32
    %10 = arith.extui %9 : i1 to i32
    %c0_i32_9 = arith.constant 0 : i32
    %11 = arith.cmpi ne, %10, %c0_i32_9 : i32
    scf.if %11 {
      %c0_10 = arith.constant 0 : index
      %c0_11 = arith.constant 0 : index
      %12 = vector.load %arg8[%c0_10, %c0_11] : memref<224x128xf32, #tpu.memory_space<vmem>>, vector<224x128xf32>
      %c0_12 = arith.constant 0 : index
      %c0_13 = arith.constant 0 : index
      %13 = vector.load %arg5[%c0_12, %c0_13] : memref<1x128xf32, #tpu.memory_space<vmem>>, vector<1x128xf32>
      %14 = vector.broadcast %13 : vector<1x128xf32> to vector<224x128xf32>
      %15 = arith.mulf %12, %14 : vector<224x128xf32>
      %c0_14 = arith.constant 0 : index
      %c0_15 = arith.constant 0 : index
      %16 = vector.load %arg6[%c0_14, %c0_15] : memref<1x128xf32, #tpu.memory_space<vmem>>, vector<1x128xf32>
      %17 = vector.broadcast %16 : vector<1x128xf32> to vector<224x128xf32>
      %18 = arith.addf %15, %17 : vector<224x128xf32>
      %cst_16 = arith.constant 0.000000e+00 : f32
      %19 = vector.broadcast %cst_16 : f32 to vector<224x128xf32>
      %20 = arith.subf %19, %18 : vector<224x128xf32>
      %21 = math.exp %20 : vector<224x128xf32>
      %cst_17 = arith.constant 1.000000e+00 : f32
      %22 = vector.broadcast %cst_17 : f32 to vector<224x128xf32>
      %23 = arith.addf %22, %21 : vector<224x128xf32>
      %cst_18 = arith.constant 1.000000e+00 : f32
      %24 = vector.broadcast %cst_18 : f32 to vector<224x128xf32>
      %25 = arith.divf %24, %23 : vector<224x128xf32>
      %26 = arith.truncf %25 : vector<224x128xf32> to vector<224x128xbf16>
      %c0_19 = arith.constant 0 : index
      %c0_20 = arith.constant 0 : index
      %27 = vector.load %arg7[%c0_19, %c0_20] : memref<224x128xbf16, #tpu.memory_space<vmem>>, vector<224x128xbf16>
      tpu.vector_store %arg7[%c0_19, %c0_20], %26 {strides = array<i32>} : memref<224x128xbf16, #tpu.memory_space<vmem>>, vector<224x128xbf16>,
    } else {
    }
    return
  }
  func.func @transform_0(%arg0: i32, %arg1: i32, %arg2: i32) -> (i32, i32) {
    %c0_i32 = arith.constant 0 : i32
    return %arg0, %arg2 : i32, i32
  }
  func.func @transform_1(%arg0: i32, %arg1: i32, %arg2: i32) -> (i32, i32) {
    %c0_i32 = arith.constant 0 : i32
    return %arg2, %arg1 : i32, i32
  }
  func.func @transform_2(%arg0: i32, %arg1: i32, %arg2: i32) -> (i32, i32) {
    %c0_i32 = arith.constant 0 : i32
    %c0_i32_0 = arith.constant 0 : i32
    return %c0_i32, %arg1 : i32, i32
  }
  func.func @transform_3(%arg0: i32, %arg1: i32, %arg2: i32) -> (i32, i32) {
    %c0_i32 = arith.constant 0 : i32
    %c0_i32_0 = arith.constant 0 : i32
    return %c0_i32, %arg1 : i32, i32
  }
  func.func @transform_4(%arg0: i32, %arg1: i32, %arg2: i32) -> (i32, i32) {
    %c0_i32 = arith.constant 0 : i32
    return %arg0, %arg1 : i32, i32
  }
}

module attributes {stable_mosaic.version = 11 : i64} {
  func.func @kernel(%arg0: i32, %arg1: i32, %arg2: i32, %arg3: memref<208x128xbf16, #tpu.memory_space<vmem>>, %arg4: memref<128x128xbf16, #tpu.memory_space<vmem>>, %arg5: memref<1x128xf32, #tpu.memory_space<vmem>>, %arg6: memref<1x128xf32, #tpu.memory_space<vmem>>, %arg7: memref<208x128xbf16, #tpu.memory_space<vmem>>, %arg8: memref<208x128xf32, #tpu.memory_space<vmem>>) attributes {dimension_semantics = [#tpu.dimension_semantics<parallel>, #tpu.dimension_semantics<parallel>, #tpu.dimension_semantics<arbitrary>], iteration_bounds = array<i64: 4, 1, 1>, scalar_prefetch = 0 : i64, scratch_operands = 1 : i64, tpu.core_type = #tpu.core_type<tc>, window_params = [{transform_indices = @transform_0, window_bounds = array<i64: 208, 128>}, {transform_indices = @transform_1, window_bounds = array<i64: 128, 128>}, {transform_indices = @transform_2, window_bounds = array<i64: 1, 128>}, {transform_indices = @transform_3, window_bounds = array<i64: 1, 128>}, {transform_indices = @transform_4, window_bounds = array<i64: 208, 128>}]} {
    %c0_i32 = arith.constant 0 : i32
    %0 = arith.cmpi eq, %arg2, %c0_i32 : i32
    %1 = arith.extui %0 : i1 to i32
    %c0_i32_0 = arith.constant 0 : i32
    %2 = arith.cmpi ne, %1, %c0_i32_0 : i32
    scf.if %2 {
      %cst_10 = arith.constant 0.000000e+00 : f32
      %12 = vector.broadcast %cst_10 : f32 to vector<208x128xf32>
      %c0_11 = arith.constant 0 : index
      %c0_12 = arith.constant 0 : index
      %13 = vector.load %arg8[%c0_11, %c0_12] : memref<208x128xf32, #tpu.memory_space<vmem>>, vector<208x128xf32>
      tpu.vector_store %arg8[%c0_11, %c0_12], %12 {strides = array<i32>} : memref<208x128xf32, #tpu.memory_space<vmem>>, vector<208x128xf32>,
    } else {
    }
    %c0 = arith.constant 0 : index
    %c0_1 = arith.constant 0 : index
    %3 = vector.load %arg8[%c0, %c0_1] : memref<208x128xf32, #tpu.memory_space<vmem>>, vector<208x128xf32>
    %c0_2 = arith.constant 0 : index
    %c0_3 = arith.constant 0 : index
    %4 = vector.load %arg3[%c0_2, %c0_3] : memref<208x128xbf16, #tpu.memory_space<vmem>>, vector<208x128xbf16>
    %c0_4 = arith.constant 0 : index
    %c0_5 = arith.constant 0 : index
    %5 = vector.load %arg4[%c0_4, %c0_5] : memref<128x128xbf16, #tpu.memory_space<vmem>>, vector<128x128xbf16>
    %cst = arith.constant dense<0.000000e+00> : vector<208x128xf32>
    %6 = tpu.matmul %4, %5, %cst {dimension_numbers = #tpu.dot_dimension_numbers<[1], [0], [0], [1], [0, 0, 1, 1], [], []>} : vector<208x128xbf16>, vector<128x128xbf16>, vector<208x128xf32> -> vector<208x128xf32>
    %7 = arith.addf %3, %6 : vector<208x128xf32>
    %c0_6 = arith.constant 0 : index
    %c0_7 = arith.constant 0 : index
    %8 = vector.load %arg8[%c0_6, %c0_7] : memref<208x128xf32, #tpu.memory_space<vmem>>, vector<208x128xf32>
    tpu.vector_store %arg8[%c0_6, %c0_7], %7 {strides = array<i32>} : memref<208x128xf32, #tpu.memory_space<vmem>>, vector<208x128xf32>,
    %c0_i32_8 = arith.constant 0 : i32
    %9 = arith.cmpi eq, %arg2, %c0_i32_8 : i32
    %10 = arith.extui %9 : i1 to i32
    %c0_i32_9 = arith.constant 0 : i32
    %11 = arith.cmpi ne, %10, %c0_i32_9 : i32
    scf.if %11 {
      %c0_10 = arith.constant 0 : index
      %c0_11 = arith.constant 0 : index
      %12 = vector.load %arg8[%c0_10, %c0_11] : memref<208x128xf32, #tpu.memory_space<vmem>>, vector<208x128xf32>
      %c0_12 = arith.constant 0 : index
      %c0_13 = arith.constant 0 : index
      %13 = vector.load %arg5[%c0_12, %c0_13] : memref<1x128xf32, #tpu.memory_space<vmem>>, vector<1x128xf32>
      %14 = vector.broadcast %13 : vector<1x128xf32> to vector<208x128xf32>
      %15 = arith.mulf %12, %14 : vector<208x128xf32>
      %c0_14 = arith.constant 0 : index
      %c0_15 = arith.constant 0 : index
      %16 = vector.load %arg6[%c0_14, %c0_15] : memref<1x128xf32, #tpu.memory_space<vmem>>, vector<1x128xf32>
      %17 = vector.broadcast %16 : vector<1x128xf32> to vector<208x128xf32>
      %18 = arith.addf %15, %17 : vector<208x128xf32>
      %cst_16 = arith.constant 0.000000e+00 : f32
      %19 = vector.broadcast %cst_16 : f32 to vector<208x128xf32>
      %20 = arith.maximumf %18, %19 : vector<208x128xf32>
      %21 = arith.truncf %20 : vector<208x128xf32> to vector<208x128xbf16>
      %c0_17 = arith.constant 0 : index
      %c0_18 = arith.constant 0 : index
      %22 = vector.load %arg7[%c0_17, %c0_18] : memref<208x128xbf16, #tpu.memory_space<vmem>>, vector<208x128xbf16>
      tpu.vector_store %arg7[%c0_17, %c0_18], %21 {strides = array<i32>} : memref<208x128xbf16, #tpu.memory_space<vmem>>, vector<208x128xbf16>,
    } else {
    }
    return
  }
  func.func @transform_0(%arg0: i32, %arg1: i32, %arg2: i32) -> (i32, i32) {
    %c0_i32 = arith.constant 0 : i32
    return %arg0, %arg2 : i32, i32
  }
  func.func @transform_1(%arg0: i32, %arg1: i32, %arg2: i32) -> (i32, i32) {
    %c0_i32 = arith.constant 0 : i32
    return %arg2, %arg1 : i32, i32
  }
  func.func @transform_2(%arg0: i32, %arg1: i32, %arg2: i32) -> (i32, i32) {
    %c0_i32 = arith.constant 0 : i32
    %c0_i32_0 = arith.constant 0 : i32
    return %c0_i32, %arg1 : i32, i32
  }
  func.func @transform_3(%arg0: i32, %arg1: i32, %arg2: i32) -> (i32, i32) {
    %c0_i32 = arith.constant 0 : i32
    %c0_i32_0 = arith.constant 0 : i32
    return %c0_i32, %arg1 : i32, i32
  }
  func.func @transform_4(%arg0: i32, %arg1: i32, %arg2: i32) -> (i32, i32) {
    %c0_i32 = arith.constant 0 : i32
    return %arg0, %arg1 : i32, i32
  }
}

module attributes {stable_mosaic.version = 11 : i64} {
  func.func @kernel(%arg0: i32, %arg1: i32, %arg2: i32, %arg3: memref<112x1664xbf16, #tpu.memory_space<vmem>>, %arg4: memref<1664x128xbf16, #tpu.memory_space<vmem>>, %arg5: memref<1x128xf32, #tpu.memory_space<vmem>>, %arg6: memref<1x128xf32, #tpu.memory_space<vmem>>, %arg7: memref<112x128xbf16, #tpu.memory_space<vmem>>, %arg8: memref<112x128xf32, #tpu.memory_space<vmem>>) attributes {dimension_semantics = [#tpu.dimension_semantics<parallel>, #tpu.dimension_semantics<parallel>, #tpu.dimension_semantics<arbitrary>], iteration_bounds = array<i64: 2, 1, 1>, scalar_prefetch = 0 : i64, scratch_operands = 1 : i64, tpu.core_type = #tpu.core_type<tc>, window_params = [{transform_indices = @transform_0, window_bounds = array<i64: 112, 1664>}, {transform_indices = @transform_1, window_bounds = array<i64: 1664, 128>}, {transform_indices = @transform_2, window_bounds = array<i64: 1, 128>}, {transform_indices = @transform_3, window_bounds = array<i64: 1, 128>}, {transform_indices = @transform_4, window_bounds = array<i64: 112, 128>}]} {
    %c0_i32 = arith.constant 0 : i32
    %0 = arith.cmpi eq, %arg2, %c0_i32 : i32
    %1 = arith.extui %0 : i1 to i32
    %c0_i32_0 = arith.constant 0 : i32
    %2 = arith.cmpi ne, %1, %c0_i32_0 : i32
    scf.if %2 {
      %cst_10 = arith.constant 0.000000e+00 : f32
      %12 = vector.broadcast %cst_10 : f32 to vector<112x128xf32>
      %c0_11 = arith.constant 0 : index
      %c0_12 = arith.constant 0 : index
      %13 = vector.load %arg8[%c0_11, %c0_12] : memref<112x128xf32, #tpu.memory_space<vmem>>, vector<112x128xf32>
      tpu.vector_store %arg8[%c0_11, %c0_12], %12 {strides = array<i32>} : memref<112x128xf32, #tpu.memory_space<vmem>>, vector<112x128xf32>,
    } else {
    }
    %c0 = arith.constant 0 : index
    %c0_1 = arith.constant 0 : index
    %3 = vector.load %arg8[%c0, %c0_1] : memref<112x128xf32, #tpu.memory_space<vmem>>, vector<112x128xf32>
    %c0_2 = arith.constant 0 : index
    %c0_3 = arith.constant 0 : index
    %4 = vector.load %arg3[%c0_2, %c0_3] : memref<112x1664xbf16, #tpu.memory_space<vmem>>, vector<112x1664xbf16>
    %c0_4 = arith.constant 0 : index
    %c0_5 = arith.constant 0 : index
    %5 = vector.load %arg4[%c0_4, %c0_5] : memref<1664x128xbf16, #tpu.memory_space<vmem>>, vector<1664x128xbf16>
    %cst = arith.constant dense<0.000000e+00> : vector<112x128xf32>
    %6 = tpu.matmul %4, %5, %cst {dimension_numbers = #tpu.dot_dimension_numbers<[1], [0], [0], [1], [0, 0, 1, 1], [], []>} : vector<112x1664xbf16>, vector<1664x128xbf16>, vector<112x128xf32> -> vector<112x128xf32>
    %7 = arith.addf %3, %6 : vector<112x128xf32>
    %c0_6 = arith.constant 0 : index
    %c0_7 = arith.constant 0 : index
    %8 = vector.load %arg8[%c0_6, %c0_7] : memref<112x128xf32, #tpu.memory_space<vmem>>, vector<112x128xf32>
    tpu.vector_store %arg8[%c0_6, %c0_7], %7 {strides = array<i32>} : memref<112x128xf32, #tpu.memory_space<vmem>>, vector<112x128xf32>,
    %c0_i32_8 = arith.constant 0 : i32
    %9 = arith.cmpi eq, %arg2, %c0_i32_8 : i32
    %10 = arith.extui %9 : i1 to i32
    %c0_i32_9 = arith.constant 0 : i32
    %11 = arith.cmpi ne, %10, %c0_i32_9 : i32
    scf.if %11 {
      %c0_10 = arith.constant 0 : index
      %c0_11 = arith.constant 0 : index
      %12 = vector.load %arg8[%c0_10, %c0_11] : memref<112x128xf32, #tpu.memory_space<vmem>>, vector<112x128xf32>
      %c0_12 = arith.constant 0 : index
      %c0_13 = arith.constant 0 : index
      %13 = vector.load %arg5[%c0_12, %c0_13] : memref<1x128xf32, #tpu.memory_space<vmem>>, vector<1x128xf32>
      %14 = vector.broadcast %13 : vector<1x128xf32> to vector<112x128xf32>
      %15 = arith.mulf %12, %14 : vector<112x128xf32>
      %c0_14 = arith.constant 0 : index
      %c0_15 = arith.constant 0 : index
      %16 = vector.load %arg6[%c0_14, %c0_15] : memref<1x128xf32, #tpu.memory_space<vmem>>, vector<1x128xf32>
      %17 = vector.broadcast %16 : vector<1x128xf32> to vector<112x128xf32>
      %18 = arith.addf %15, %17 : vector<112x128xf32>
      %cst_16 = arith.constant 0.000000e+00 : f32
      %19 = vector.broadcast %cst_16 : f32 to vector<112x128xf32>
      %20 = arith.maximumf %18, %19 : vector<112x128xf32>
      %21 = arith.truncf %20 : vector<112x128xf32> to vector<112x128xbf16>
      %c0_17 = arith.constant 0 : index
      %c0_18 = arith.constant 0 : index
      %22 = vector.load %arg7[%c0_17, %c0_18] : memref<112x128xbf16, #tpu.memory_space<vmem>>, vector<112x128xbf16>
      tpu.vector_store %arg7[%c0_17, %c0_18], %21 {strides = array<i32>} : memref<112x128xbf16, #tpu.memory_space<vmem>>, vector<112x128xbf16>,
    } else {
    }
    return
  }
  func.func @transform_0(%arg0: i32, %arg1: i32, %arg2: i32) -> (i32, i32) {
    %c0_i32 = arith.constant 0 : i32
    return %arg0, %arg2 : i32, i32
  }
  func.func @transform_1(%arg0: i32, %arg1: i32, %arg2: i32) -> (i32, i32) {
    %c0_i32 = arith.constant 0 : i32
    return %arg2, %arg1 : i32, i32
  }
  func.func @transform_2(%arg0: i32, %arg1: i32, %arg2: i32) -> (i32, i32) {
    %c0_i32 = arith.constant 0 : i32
    %c0_i32_0 = arith.constant 0 : i32
    return %c0_i32, %arg1 : i32, i32
  }
  func.func @transform_3(%arg0: i32, %arg1: i32, %arg2: i32) -> (i32, i32) {
    %c0_i32 = arith.constant 0 : i32
    %c0_i32_0 = arith.constant 0 : i32
    return %c0_i32, %arg1 : i32, i32
  }
  func.func @transform_4(%arg0: i32, %arg1: i32, %arg2: i32) -> (i32, i32) {
    %c0_i32 = arith.constant 0 : i32
    return %arg0, %arg1 : i32, i32
  }
}

module attributes {stable_mosaic.version = 11 : i64} {
  func.func @kernel(%arg0: i32, %arg1: i32, %arg2: i32, %arg3: memref<16x1664xbf16, #tpu.memory_space<vmem>>, %arg4: memref<1664x128xbf16, #tpu.memory_space<vmem>>, %arg5: memref<1x128xf32, #tpu.memory_space<vmem>>, %arg6: memref<1x128xf32, #tpu.memory_space<vmem>>, %arg7: memref<16x128xf32, #tpu.memory_space<vmem>>, %arg8: memref<16x128xf32, #tpu.memory_space<vmem>>) attributes {dimension_semantics = [#tpu.dimension_semantics<parallel>, #tpu.dimension_semantics<parallel>, #tpu.dimension_semantics<arbitrary>], iteration_bounds = array<i64: 1, 1, 4>, scalar_prefetch = 0 : i64, scratch_operands = 1 : i64, tpu.core_type = #tpu.core_type<tc>, window_params = [{transform_indices = @transform_0, window_bounds = array<i64: 16, 1664>}, {transform_indices = @transform_1, window_bounds = array<i64: 1664, 128>}, {transform_indices = @transform_2, window_bounds = array<i64: 1, 128>}, {transform_indices = @transform_3, window_bounds = array<i64: 1, 128>}, {transform_indices = @transform_4, window_bounds = array<i64: 16, 128>}]} {
    %c0_i32 = arith.constant 0 : i32
    %0 = arith.cmpi eq, %arg2, %c0_i32 : i32
    %1 = arith.extui %0 : i1 to i32
    %c0_i32_0 = arith.constant 0 : i32
    %2 = arith.cmpi ne, %1, %c0_i32_0 : i32
    scf.if %2 {
      %cst_9 = arith.constant 0.000000e+00 : f32
      %12 = vector.broadcast %cst_9 : f32 to vector<16x128xf32>
      %c0_10 = arith.constant 0 : index
      %c0_11 = arith.constant 0 : index
      %13 = vector.load %arg8[%c0_10, %c0_11] : memref<16x128xf32, #tpu.memory_space<vmem>>, vector<16x128xf32>
      tpu.vector_store %arg8[%c0_10, %c0_11], %12 {strides = array<i32>} : memref<16x128xf32, #tpu.memory_space<vmem>>, vector<16x128xf32>,
    } else {
    }
    %c0 = arith.constant 0 : index
    %c0_1 = arith.constant 0 : index
    %3 = vector.load %arg8[%c0, %c0_1] : memref<16x128xf32, #tpu.memory_space<vmem>>, vector<16x128xf32>
    %c0_2 = arith.constant 0 : index
    %c0_3 = arith.constant 0 : index
    %4 = vector.load %arg3[%c0_2, %c0_3] : memref<16x1664xbf16, #tpu.memory_space<vmem>>, vector<16x1664xbf16>
    %c0_4 = arith.constant 0 : index
    %c0_5 = arith.constant 0 : index
    %5 = vector.load %arg4[%c0_4, %c0_5] : memref<1664x128xbf16, #tpu.memory_space<vmem>>, vector<1664x128xbf16>
    %cst = arith.constant dense<0.000000e+00> : vector<16x128xf32>
    %6 = tpu.matmul %4, %5, %cst {dimension_numbers = #tpu.dot_dimension_numbers<[1], [0], [0], [1], [0, 0, 1, 1], [], []>} : vector<16x1664xbf16>, vector<1664x128xbf16>, vector<16x128xf32> -> vector<16x128xf32>
    %7 = arith.addf %3, %6 : vector<16x128xf32>
    %c0_6 = arith.constant 0 : index
    %c0_7 = arith.constant 0 : index
    %8 = vector.load %arg8[%c0_6, %c0_7] : memref<16x128xf32, #tpu.memory_space<vmem>>, vector<16x128xf32>
    tpu.vector_store %arg8[%c0_6, %c0_7], %7 {strides = array<i32>} : memref<16x128xf32, #tpu.memory_space<vmem>>, vector<16x128xf32>,
    %c3_i32 = arith.constant 3 : i32
    %9 = arith.cmpi eq, %arg2, %c3_i32 : i32
    %10 = arith.extui %9 : i1 to i32
    %c0_i32_8 = arith.constant 0 : i32
    %11 = arith.cmpi ne, %10, %c0_i32_8 : i32
    scf.if %11 {
      %c0_9 = arith.constant 0 : index
      %c0_10 = arith.constant 0 : index
      %12 = vector.load %arg8[%c0_9, %c0_10] : memref<16x128xf32, #tpu.memory_space<vmem>>, vector<16x128xf32>
      %c0_11 = arith.constant 0 : index
      %c0_12 = arith.constant 0 : index
      %13 = vector.load %arg5[%c0_11, %c0_12] : memref<1x128xf32, #tpu.memory_space<vmem>>, vector<1x128xf32>
      %14 = vector.broadcast %13 : vector<1x128xf32> to vector<16x128xf32>
      %15 = arith.mulf %12, %14 : vector<16x128xf32>
      %c0_13 = arith.constant 0 : index
      %c0_14 = arith.constant 0 : index
      %16 = vector.load %arg6[%c0_13, %c0_14] : memref<1x128xf32, #tpu.memory_space<vmem>>, vector<1x128xf32>
      %17 = vector.broadcast %16 : vector<1x128xf32> to vector<16x128xf32>
      %18 = arith.addf %15, %17 : vector<16x128xf32>
      %cst_15 = arith.constant 0.000000e+00 : f32
      %19 = vector.broadcast %cst_15 : f32 to vector<16x128xf32>
      %20 = arith.subf %19, %18 : vector<16x128xf32>
      %21 = math.exp %20 : vector<16x128xf32>
      %cst_16 = arith.constant 1.000000e+00 : f32
      %22 = vector.broadcast %cst_16 : f32 to vector<16x128xf32>
      %23 = arith.addf %22, %21 : vector<16x128xf32>
      %cst_17 = arith.constant 1.000000e+00 : f32
      %24 = vector.broadcast %cst_17 : f32 to vector<16x128xf32>
      %25 = arith.divf %24, %23 : vector<16x128xf32>
      %c0_18 = arith.constant 0 : index
      %c0_19 = arith.constant 0 : index
      %26 = vector.load %arg7[%c0_18, %c0_19] : memref<16x128xf32, #tpu.memory_space<vmem>>, vector<16x128xf32>
      tpu.vector_store %arg7[%c0_18, %c0_19], %25 {strides = array<i32>} : memref<16x128xf32, #tpu.memory_space<vmem>>, vector<16x128xf32>,
    } else {
    }
    return
  }
  func.func @transform_0(%arg0: i32, %arg1: i32, %arg2: i32) -> (i32, i32) {
    %c0_i32 = arith.constant 0 : i32
    return %arg0, %arg2 : i32, i32
  }
  func.func @transform_1(%arg0: i32, %arg1: i32, %arg2: i32) -> (i32, i32) {
    %c0_i32 = arith.constant 0 : i32
    return %arg2, %arg1 : i32, i32
  }
  func.func @transform_2(%arg0: i32, %arg1: i32, %arg2: i32) -> (i32, i32) {
    %c0_i32 = arith.constant 0 : i32
    %c0_i32_0 = arith.constant 0 : i32
    return %c0_i32, %arg1 : i32, i32
  }
  func.func @transform_3(%arg0: i32, %arg1: i32, %arg2: i32) -> (i32, i32) {
    %c0_i32 = arith.constant 0 : i32
    %c0_i32_0 = arith.constant 0 : i32
    return %c0_i32, %arg1 : i32, i32
  }
  func.func @transform_4(%arg0: i32, %arg1: i32, %arg2: i32) -> (i32, i32) {
    %c0_i32 = arith.constant 0 : i32
    return %arg0, %arg1 : i32, i32
  }
}

</mosaic_0001>

<bundles_post_ra>
// kernel: _lambda_.7
= control target key start
LH: loop header
LB: loop body
LE: loop exit
PB: predicated region body
PF: predicated region fallthrough
CT: control target
= control target key end

     0   :  { %s2592_s15 = smov 0   ;;  %s2594_s16 = smov 0   ;;  %s3152_s0 = inlined_call_operand.vmem [shape: bf16[16,128], index: 0, kind: input, shape index: {}]   ;;  %s3153_s1 = inlined_call_operand.vmem [shape: bf16[128,12544], index: 1, kind: input, shape index: {}]   ;;  %s3154_s2 = inlined_call_operand.vmem [shape: f32[1,12544], index: 2, kind: input, shape index: {}]   ;;  %s3155_s3 = inlined_call_operand.vmem [shape: f32[1,12544], index: 3, kind: input, shape index: {}]   ;;  %s3156_s4 = inlined_call_operand.vmem [shape: bf16[16,12544], index: 4, kind: output, shape index: {}]  }
   0x1   :  { %s2596_s17 = smov 0   ;;  %s2598_s18 = smov 0  }
   0x2   :  { %s2600_s19 = smov 0  }
   0x3 LB: > { %s29_s20 = sadd.s32 1, %s2560_s18  ;;  %s2160_s21 = sadd.s32 4294967295, %s2564_s19   ;;  %s2564_s19 = sphi %s2600_s19, %s14_s19   ;;  %s2560_s18 = sphi %s2598_s18, %s3161_s18   ;;  %s2556_s17 = sphi %s2596_s17, %s3160_s17   ;;  %s2552_s16 = sphi %s2594_s16, %s3159_s16   ;;  %s2548_s15 = sphi %s2592_s15, %s3158_s15  }
   0x4   : > { %p31_p0 = scmp.ge.s32.totalorder %s29_s20, 7  ;;  %p77_p1 = scmp.ne.s32.totalorder %s2552_s16, %s2548_s15 }
   0x5   : > { %p78_p2 = scmp.eq.s32.totalorder %s2564_s19, 0  ;;  %p161_p4 = scmp.eq.s32.totalorder %s2160_s21, 6 }
   0x6   : > { %s3163_s20 = smov (%p31_p0, %s29_s20), 0  ;;  %s70_s23 = sadd.s32 1, %s2552_s16 }
   0x7   : > { %p79_p3 = por %p78_p2, %p77_p1  ;;  %s66_s22 = ssub.s32 %s2560_s18, %s3163_s20 }
   0x8   : > { %p68_p5 = scmp.eq.s32.totalorder %s66_s22, 0  ;;  %p2627_p6 = por %p161_p4, %p77_p1 }
   0x9   : > { %p2164_p7 = scmp.ge.s32.totalorder %s2564_s19, 7 }
   0xa   : > { %s2632_s25 = scalar_select %p68_p5, %s2552_s16, %s70_s23  }
   0xb   : > { %195 = sbr.rel (%p2164_p7) target bundleno = 79 (0x4f), region = 20 }
  0x12   : > { %198 = sbr.rel (!%p79_p3) target bundleno = 79 (0x4f), region = 24  ;;  %s200_s26 = sand.u32 (%p79_p3), 1, %s2552_s16  }
  0x13   : > { %s2297_s27 = smul.u32 (%p79_p3), 56, %s2560_s18 }
  0x14   : > { %s2313_s28 = smul.u32 (%p79_p3), 896, %s200_s26 }
  0x15   : > { %s2640_s5 = scalar_lea.vmem (%p79_p3), %s3153_s1, %s2297_s27 }
  0x16   : > { %v221_v0 = vld [vmem:[%s2640_s5] sm:$0xff] (%p79_p3)  ;;  %v223_v1 = vld [vmem:[%s2640_s5 + $0x8] sm:$0xff] (%p79_p3)  ;;  %v225_v2 = vld [vmem:[%s2640_s5 + $0x10] sm:$0xff] (%p79_p3)  ;;  %s2645_s6 = scalar_lea.vmem (%p79_p3), [#allocation3], %s2313_s28 }
  0x17   : > { %222 = vst [vmem:[%s2645_s6] sm:$0xff] (%p79_p3), %v221_v0  ;;  %224 = vst [vmem:[%s2645_s6 + $0x8] sm:$0xff] (%p79_p3), %v223_v1  ;;  %v227_v3 = vld [vmem:[%s2640_s5 + $0x18] sm:$0xff] (%p79_p3)  ;;  %v229_v4 = vld [vmem:[%s2640_s5 + $0x20] sm:$0xff] (%p79_p3) }
  0x18   : > { %226 = vst [vmem:[%s2645_s6 + $0x10] sm:$0xff] (%p79_p3), %v225_v2  ;;  %v231_v5 = vld [vmem:[%s2640_s5 + $0x28] sm:$0xff] (%p79_p3)  ;;  %228 = vst [vmem:[%s2645_s6 + $0x18] sm:$0xff] (%p79_p3), %v227_v3  ;;  %v233_v6 = vld [vmem:[%s2640_s5 + $0x30] sm:$0xff] (%p79_p3) }
  0x19   : > { %230 = vst [vmem:[%s2645_s6 + $0x20] sm:$0xff] %v229_v4  ;;  %232 = vst [vmem:[%s2645_s6 + $0x28] sm:$0xff] %v231_v5  ;;  %v235_v7 = vld [vmem:[%s2640_s5 + $0x188] sm:$0xff]  ;;  %v237_v8 = vld [vmem:[%s2640_s5 + $0x190] sm:$0xff] }
  0x1a   : > { %234 = vst [vmem:[%s2645_s6 + $0x30] sm:$0xff] %v233_v6  ;;  %236 = vst [vmem:[%s2645_s6 + $0x38] sm:$0xff] %v235_v7  ;;  %v239_v9 = vld [vmem:[%s2640_s5 + $0x198] sm:$0xff]  ;;  %v241_v10 = vld [vmem:[%s2640_s5 + $0x1a0] sm:$0xff] }
  0x1b   : > { %238 = vst [vmem:[%s2645_s6 + $0x40] sm:$0xff] %v237_v8  ;;  %v243_v11 = vld [vmem:[%s2640_s5 + $0x1a8] sm:$0xff]  ;;  %240 = vst [vmem:[%s2645_s6 + $0x48] sm:$0xff] %v239_v9  ;;  %v245_v12 = vld [vmem:[%s2640_s5 + $0x1b0] sm:$0xff] }
  0x1c   : > { %242 = vst [vmem:[%s2645_s6 + $0x50] sm:$0xff] %v241_v10  ;;  %244 = vst [vmem:[%s2645_s6 + $0x58] sm:$0xff] %v243_v11  ;;  %v247_v13 = vld [vmem:[%s2640_s5 + $0x1b8] sm:$0xff]  ;;  %v249_v14 = vld [vmem:[%s2640_s5 + $0x310] sm:$0xff] }
  0x1d   : > { %246 = vst [vmem:[%s2645_s6 + $0x60] sm:$0xff] %v245_v12  ;;  %248 = vst [vmem:[%s2645_s6 + $0x68] sm:$0xff] %v247_v13  ;;  %v251_v15 = vld [vmem:[%s2640_s5 + $0x318] sm:$0xff]  ;;  %v253_v16 = vld [vmem:[%s2640_s5 + $0x320] sm:$0xff] }
  0x1e   : > { %250 = vst [vmem:[%s2645_s6 + $0x70] sm:$0xff] %v249_v14  ;;  %v255_v17 = vld [vmem:[%s2640_s5 + $0x328] sm:$0xff]  ;;  %252 = vst [vmem:[%s2645_s6 + $0x78] sm:$0xff] %v251_v15  ;;  %v257_v18 = vld [vmem:[%s2640_s5 + $0x330] sm:$0xff] }
  0x1f   : > { %254 = vst [vmem:[%s2645_s6 + $0x80] sm:$0xff] %v253_v16  ;;  %256 = vst [vmem:[%s2645_s6 + $0x88] sm:$0xff] %v255_v17  ;;  %v259_v19 = vld [vmem:[%s2640_s5 + $0x338] sm:$0xff]  ;;  %v261_v20 = vld [vmem:[%s2640_s5 + $0x340] sm:$0xff] }
  0x20   : > { %258 = vst [vmem:[%s2645_s6 + $0x90] sm:$0xff] %v257_v18  ;;  %260 = vst [vmem:[%s2645_s6 + $0x98] sm:$0xff] %v259_v19  ;;  %v263_v21 = vld [vmem:[%s2640_s5 + $0x498] sm:$0xff]  ;;  %v265_v22 = vld [vmem:[%s2640_s5 + $0x4a0] sm:$0xff] }
  0x21   : > { %262 = vst [vmem:[%s2645_s6 + $0xa0] sm:$0xff] %v261_v20  ;;  %v267_v23 = vld [vmem:[%s2640_s5 + $0x4a8] sm:$0xff]  ;;  %264 = vst [vmem:[%s2645_s6 + $0xa8] sm:$0xff] %v263_v21  ;;  %v269_v24 = vld [vmem:[%s2640_s5 + $0x4b0] sm:$0xff] }
  0x22   : > { %266 = vst [vmem:[%s2645_s6 + $0xb0] sm:$0xff] %v265_v22  ;;  %268 = vst [vmem:[%s2645_s6 + $0xb8] sm:$0xff] %v267_v23  ;;  %v271_v25 = vld [vmem:[%s2640_s5 + $0x4b8] sm:$0xff]  ;;  %v273_v26 = vld [vmem:[%s2640_s5 + $0x4c0] sm:$0xff] }
  0x23   : > { %270 = vst [vmem:[%s2645_s6 + $0xc0] sm:$0xff] %v269_v24  ;;  %272 = vst [vmem:[%s2645_s6 + $0xc8] sm:$0xff] %v271_v25  ;;  %v275_v27 = vld [vmem:[%s2640_s5 + $0x4c8] sm:$0xff]  ;;  %v277_v28 = vld [vmem:[%s2640_s5 + $0x620] sm:$0xff] }
  0x24   : > { %274 = vst [vmem:[%s2645_s6 + $0xd0] sm:$0xff] %v273_v26  ;;  %v279_v29 = vld [vmem:[%s2640_s5 + $0x628] sm:$0xff]  ;;  %276 = vst [vmem:[%s2645_s6 + $0xd8] sm:$0xff] %v275_v27  ;;  %v281_v30 = vld [vmem:[%s2640_s5 + $0x630] sm:$0xff] }
  0x25   : > { %278 = vst [vmem:[%s2645_s6 + $0xe0] sm:$0xff] %v277_v28  ;;  %280 = vst [vmem:[%s2645_s6 + $0xe8] sm:$0xff] %v279_v29  ;;  %v283_v31 = vld [vmem:[%s2640_s5 + $0x638] sm:$0xff]  ;;  %v285_v32 = vld [vmem:[%s2640_s5 + $0x640] sm:$0xff] }
  0x26   : > { %282 = vst [vmem:[%s2645_s6 + $0xf0] sm:$0xff] %v281_v30  ;;  %284 = vst [vmem:[%s2645_s6 + $0xf8] sm:$0xff] %v283_v31  ;;  %v287_v33 = vld [vmem:[%s2640_s5 + $0x648] sm:$0xff]  ;;  %v289_v34 = vld [vmem:[%s2640_s5 + $0x650] sm:$0xff] }
  0x27   : > { %286 = vst [vmem:[%s2645_s6 + $0x100] sm:$0xff] %v285_v32  ;;  %v291_v35 = vld [vmem:[%s2640_s5 + $0x7a8] sm:$0xff]  ;;  %288 = vst [vmem:[%s2645_s6 + $0x108] sm:$0xff] %v287_v33  ;;  %v293_v36 = vld [vmem:[%s2640_s5 + $0x7b0] sm:$0xff] }
  0x28   : > { %290 = vst [vmem:[%s2645_s6 + $0x110] sm:$0xff] %v289_v34  ;;  %292 = vst [vmem:[%s2645_s6 + $0x118] sm:$0xff] %v291_v35  ;;  %v295_v37 = vld [vmem:[%s2640_s5 + $0x7b8] sm:$0xff]  ;;  %v297_v38 = vld [vmem:[%s2640_s5 + $0x7c0] sm:$0xff] }
  0x29   : > { %294 = vst [vmem:[%s2645_s6 + $0x120] sm:$0xff] %v293_v36  ;;  %296 = vst [vmem:[%s2645_s6 + $0x128] sm:$0xff] %v295_v37  ;;  %v299_v39 = vld [vmem:[%s2640_s5 + $0x7c8] sm:$0xff]  ;;  %v301_v40 = vld [vmem:[%s2640_s5 + $0x7d0] sm:$0xff] }
  0x2a   : > { %298 = vst [vmem:[%s2645_s6 + $0x130] sm:$0xff] %v297_v38  ;;  %v303_v41 = vld [vmem:[%s2640_s5 + $0x7d8] sm:$0xff]  ;;  %300 = vst [vmem:[%s2645_s6 + $0x138] sm:$0xff] %v299_v39  ;;  %v305_v42 = vld [vmem:[%s2640_s5 + $0x930] sm:$0xff] }
  0x2b   : > { %302 = vst [vmem:[%s2645_s6 + $0x140] sm:$0xff] %v301_v40  ;;  %304 = vst [vmem:[%s2645_s6 + $0x148] sm:$0xff] %v303_v41  ;;  %v307_v43 = vld [vmem:[%s2640_s5 + $0x938] sm:$0xff]  ;;  %v309_v44 = vld [vmem:[%s2640_s5 + $0x940] sm:$0xff] }
  0x2c   : > { %306 = vst [vmem:[%s2645_s6 + $0x150] sm:$0xff] %v305_v42  ;;  %308 = vst [vmem:[%s2645_s6 + $0x158] sm:$0xff] %v307_v43  ;;  %v311_v45 = vld [vmem:[%s2640_s5 + $0x948] sm:$0xff]  ;;  %v313_v46 = vld [vmem:[%s2640_s5 + $0x950] sm:$0xff] }
  0x2d   : > { %310 = vst [vmem:[%s2645_s6 + $0x160] sm:$0xff] %v309_v44  ;;  %v315_v47 = vld [vmem:[%s2640_s5 + $0x958] sm:$0xff]  ;;  %312 = vst [vmem:[%s2645_s6 + $0x168] sm:$0xff] %v311_v45  ;;  %v317_v48 = vld [vmem:[%s2640_s5 + $0x960] sm:$0xff] }
  0x2e   : > { %314 = vst [vmem:[%s2645_s6 + $0x170] sm:$0xff] %v313_v46  ;;  %316 = vst [vmem:[%s2645_s6 + $0x178] sm:$0xff] %v315_v47  ;;  %v319_v49 = vld [vmem:[%s2640_s5 + $0xab8] sm:$0xff]  ;;  %v321_v50 = vld [vmem:[%s2640_s5 + $0xac0] sm:$0xff] }
  0x2f   : > { %318 = vst [vmem:[%s2645_s6 + $0x180] sm:$0xff] %v317_v48  ;;  %320 = vst [vmem:[%s2645_s6 + $0x188] sm:$0xff] %v319_v49  ;;  %v323_v51 = vld [vmem:[%s2640_s5 + $0xac8] sm:$0xff]  ;;  %v325_v52 = vld [vmem:[%s2640_s5 + $0xad0] sm:$0xff] }
  0x30   : > { %322 = vst [vmem:[%s2645_s6 + $0x190] sm:$0xff] %v321_v50  ;;  %v327_v53 = vld [vmem:[%s2640_s5 + $0xad8] sm:$0xff]  ;;  %324 = vst [vmem:[%s2645_s6 + $0x198] sm:$0xff] %v323_v51  ;;  %v329_v54 = vld [vmem:[%s2640_s5 + $0xae0] sm:$0xff] }
  0x31   : > { %326 = vst [vmem:[%s2645_s6 + $0x1a0] sm:$0xff] %v325_v52  ;;  %328 = vst [vmem:[%s2645_s6 + $0x1a8] sm:$0xff] %v327_v53  ;;  %v331_v55 = vld [vmem:[%s2640_s5 + $0xae8] sm:$0xff]  ;;  %v333_v56 = vld [vmem:[%s2640_s5 + $0xc40] sm:$0xff] }
  0x32   : > { %330 = vst [vmem:[%s2645_s6 + $0x1b0] sm:$0xff] %v329_v54  ;;  %332 = vst [vmem:[%s2645_s6 + $0x1b8] sm:$0xff] %v331_v55  ;;  %v335_v57 = vld [vmem:[%s2640_s5 + $0xc48] sm:$0xff]  ;;  %v337_v58 = vld [vmem:[%s2640_s5 + $0xc50] sm:$0xff] }
  0x33   : > { %334 = vst [vmem:[%s2645_s6 + $0x1c0] sm:$0xff] %v333_v56  ;;  %v339_v59 = vld [vmem:[%s2640_s5 + $0xc58] sm:$0xff]  ;;  %336 = vst [vmem:[%s2645_s6 + $0x1c8] sm:$0xff] %v335_v57  ;;  %v341_v60 = vld [vmem:[%s2640_s5 + $0xc60] sm:$0xff] }
  0x34   : > { %338 = vst [vmem:[%s2645_s6 + $0x1d0] sm:$0xff] %v337_v58  ;;  %340 = vst [vmem:[%s2645_s6 + $0x1d8] sm:$0xff] %v339_v59  ;;  %v343_v61 = vld [vmem:[%s2640_s5 + $0xc68] sm:$0xff]  ;;  %v345_v62 = vld [vmem:[%s2640_s5 + $0xc70] sm:$0xff] }
  0x35   : > { %342 = vst [vmem:[%s2645_s6 + $0x1e0] sm:$0xff] %v341_v60  ;;  %344 = vst [vmem:[%s2645_s6 + $0x1e8] sm:$0xff] %v343_v61  ;;  %v347_v63 = vld [vmem:[%s2640_s5 + $0xdc8] sm:$0xff]  ;;  %v349_v0 = vld [vmem:[%s2640_s5 + $0xdd0] sm:$0xff] }
  0x36   : > { %346 = vst [vmem:[%s2645_s6 + $0x1f0] sm:$0xff] %v345_v62  ;;  %v351_v1 = vld [vmem:[%s2640_s5 + $0xdd8] sm:$0xff]  ;;  %348 = vst [vmem:[%s2645_s6 + $0x1f8] sm:$0xff] %v347_v63  ;;  %v353_v2 = vld [vmem:[%s2640_s5 + $0xde0] sm:$0xff] }
  0x37   : > { %350 = vst [vmem:[%s2645_s6 + $0x200] sm:$0xff] %v349_v0  ;;  %352 = vst [vmem:[%s2645_s6 + $0x208] sm:$0xff] %v351_v1  ;;  %v355_v3 = vld [vmem:[%s2640_s5 + $0xde8] sm:$0xff]  ;;  %v357_v4 = vld [vmem:[%s2640_s5 + $0xdf0] sm:$0xff] }
  0x38   : > { %354 = vst [vmem:[%s2645_s6 + $0x210] sm:$0xff] %v353_v2  ;;  %356 = vst [vmem:[%s2645_s6 + $0x218] sm:$0xff] %v355_v3  ;;  %v359_v5 = vld [vmem:[%s2640_s5 + $0xdf8] sm:$0xff]  ;;  %v361_v6 = vld [vmem:[%s2640_s5 + $0xf50] sm:$0xff] }
  0x39   : > { %358 = vst [vmem:[%s2645_s6 + $0x220] sm:$0xff] %v357_v4  ;;  %v363_v7 = vld [vmem:[%s2640_s5 + $0xf58] sm:$0xff]  ;;  %360 = vst [vmem:[%s2645_s6 + $0x228] sm:$0xff] %v359_v5  ;;  %v365_v8 = vld [vmem:[%s2640_s5 + $0xf60] sm:$0xff] }
  0x3a   : > { %362 = vst [vmem:[%s2645_s6 + $0x230] sm:$0xff] %v361_v6  ;;  %364 = vst [vmem:[%s2645_s6 + $0x238] sm:$0xff] %v363_v7  ;;  %v367_v9 = vld [vmem:[%s2640_s5 + $0xf68] sm:$0xff]  ;;  %v369_v10 = vld [vmem:[%s2640_s5 + $0xf70] sm:$0xff] }
  0x3b   : > { %366 = vst [vmem:[%s2645_s6 + $0x240] sm:$0xff] %v365_v8  ;;  %368 = vst [vmem:[%s2645_s6 + $0x248] sm:$0xff] %v367_v9  ;;  %v371_v11 = vld [vmem:[%s2640_s5 + $0xf78] sm:$0xff]  ;;  %v373_v12 = vld [vmem:[%s2640_s5 + $0xf80] sm:$0xff] }
  0x3c   : > { %370 = vst [vmem:[%s2645_s6 + $0x250] sm:$0xff] %v369_v10  ;;  %v375_v13 = vld [vmem:[%s2640_s5 + $0x10d8] sm:$0xff]  ;;  %372 = vst [vmem:[%s2645_s6 + $0x258] sm:$0xff] %v371_v11  ;;  %v377_v14 = vld [vmem:[%s2640_s5 + $0x10e0] sm:$0xff] }
  0x3d   : > { %374 = vst [vmem:[%s2645_s6 + $0x260] sm:$0xff] %v373_v12  ;;  %376 = vst [vmem:[%s2645_s6 + $0x268] sm:$0xff] %v375_v13  ;;  %v379_v15 = vld [vmem:[%s2640_s5 + $0x10e8] sm:$0xff]  ;;  %v381_v16 = vld [vmem:[%s2640_s5 + $0x10f0] sm:$0xff] }
  0x3e   : > { %378 = vst [vmem:[%s2645_s6 + $0x270] sm:$0xff] %v377_v14  ;;  %380 = vst [vmem:[%s2645_s6 + $0x278] sm:$0xff] %v379_v15  ;;  %v383_v17 = vld [vmem:[%s2640_s5 + $0x10f8] sm:$0xff]  ;;  %v385_v18 = vld [vmem:[%s2640_s5 + $0x1100] sm:$0xff] }
  0x3f   : > { %382 = vst [vmem:[%s2645_s6 + $0x280] sm:$0xff] %v381_v16  ;;  %v387_v19 = vld [vmem:[%s2640_s5 + $0x1108] sm:$0xff]  ;;  %384 = vst [vmem:[%s2645_s6 + $0x288] sm:$0xff] %v383_v17  ;;  %v389_v20 = vld [vmem:[%s2640_s5 + $0x1260] sm:$0xff] }
  0x40   : > { %386 = vst [vmem:[%s2645_s6 + $0x290] sm:$0xff] %v385_v18  ;;  %388 = vst [vmem:[%s2645_s6 + $0x298] sm:$0xff] %v387_v19  ;;  %v391_v21 = vld [vmem:[%s2640_s5 + $0x1268] sm:$0xff]  ;;  %v393_v22 = vld [vmem:[%s2640_s5 + $0x1270] sm:$0xff] }
  0x41   : > { %390 = vst [vmem:[%s2645_s6 + $0x2a0] sm:$0xff] %v389_v20  ;;  %392 = vst [vmem:[%s2645_s6 + $0x2a8] sm:$0xff] %v391_v21  ;;  %v395_v23 = vld [vmem:[%s2640_s5 + $0x1278] sm:$0xff]  ;;  %v397_v24 = vld [vmem:[%s2640_s5 + $0x1280] sm:$0xff] }
  0x42   : > { %394 = vst [vmem:[%s2645_s6 + $0x2b0] sm:$0xff] %v393_v22  ;;  %v399_v25 = vld [vmem:[%s2640_s5 + $0x1288] sm:$0xff]  ;;  %396 = vst [vmem:[%s2645_s6 + $0x2b8] sm:$0xff] %v395_v23  ;;  %v401_v26 = vld [vmem:[%s2640_s5 + $0x1290] sm:$0xff] }
  0x43   : > { %398 = vst [vmem:[%s2645_s6 + $0x2c0] sm:$0xff] %v397_v24  ;;  %400 = vst [vmem:[%s2645_s6 + $0x2c8] sm:$0xff] %v399_v25  ;;  %v403_v27 = vld [vmem:[%s2640_s5 + $0x13e8] sm:$0xff]  ;;  %v405_v28 = vld [vmem:[%s2640_s5 + $0x13f0] sm:$0xff] }
  0x44   : > { %402 = vst [vmem:[%s2645_s6 + $0x2d0] sm:$0xff] %v401_v26  ;;  %404 = vst [vmem:[%s2645_s6 + $0x2d8] sm:$0xff] %v403_v27  ;;  %v407_v29 = vld [vmem:[%s2640_s5 + $0x13f8] sm:$0xff]  ;;  %v409_v30 = vld [vmem:[%s2640_s5 + $0x1400] sm:$0xff] }
  0x45   : > { %406 = vst [vmem:[%s2645_s6 + $0x2e0] sm:$0xff] %v405_v28  ;;  %v411_v31 = vld [vmem:[%s2640_s5 + $0x1408] sm:$0xff]  ;;  %408 = vst [vmem:[%s2645_s6 + $0x2e8] sm:$0xff] %v407_v29  ;;  %v413_v32 = vld [vmem:[%s2640_s5 + $0x1410] sm:$0xff] }
  0x46   : > { %410 = vst [vmem:[%s2645_s6 + $0x2f0] sm:$0xff] %v409_v30  ;;  %412 = vst [vmem:[%s2645_s6 + $0x2f8] sm:$0xff] %v411_v31  ;;  %v415_v33 = vld [vmem:[%s2640_s5 + $0x1418] sm:$0xff]  ;;  %v417_v34 = vld [vmem:[%s2640_s5 + $0x1570] sm:$0xff] }
  0x47   : > { %414 = vst [vmem:[%s2645_s6 + $0x300] sm:$0xff] %v413_v32  ;;  %416 = vst [vmem:[%s2645_s6 + $0x308] sm:$0xff] %v415_v33  ;;  %v419_v35 = vld [vmem:[%s2640_s5 + $0x1578] sm:$0xff]  ;;  %v421_v36 = vld [vmem:[%s2640_s5 + $0x1580] sm:$0xff] }
  0x48   : > { %418 = vst [vmem:[%s2645_s6 + $0x310] sm:$0xff] %v417_v34  ;;  %v423_v37 = vld [vmem:[%s2640_s5 + $0x1588] sm:$0xff]  ;;  %420 = vst [vmem:[%s2645_s6 + $0x318] sm:$0xff] %v419_v35  ;;  %v425_v38 = vld [vmem:[%s2640_s5 + $0x1590] sm:$0xff] }
  0x49   : > { %422 = vst [vmem:[%s2645_s6 + $0x320] sm:$0xff] %v421_v36  ;;  %424 = vst [vmem:[%s2645_s6 + $0x328] sm:$0xff] %v423_v37  ;;  %v427_v39 = vld [vmem:[%s2640_s5 + $0x1598] sm:$0xff]  ;;  %v429_v40 = vld [vmem:[%s2640_s5 + $0x15a0] sm:$0xff] }
  0x4a   : > { %426 = vst [vmem:[%s2645_s6 + $0x330] sm:$0xff] %v425_v38  ;;  %428 = vst [vmem:[%s2645_s6 + $0x338] sm:$0xff] %v427_v39  ;;  %v431_v41 = vld [vmem:[%s2640_s5 + $0x16f8] sm:$0xff]  ;;  %v433_v42 = vld [vmem:[%s2640_s5 + $0x1700] sm:$0xff] }
  0x4b   : > { %430 = vst [vmem:[%s2645_s6 + $0x340] sm:$0xff] %v429_v40  ;;  %v435_v43 = vld [vmem:[%s2640_s5 + $0x1708] sm:$0xff]  ;;  %432 = vst [vmem:[%s2645_s6 + $0x348] sm:$0xff] %v431_v41  ;;  %v437_v44 = vld [vmem:[%s2640_s5 + $0x1710] sm:$0xff] }
  0x4c   : > { %434 = vst [vmem:[%s2645_s6 + $0x350] sm:$0xff] %v433_v42  ;;  %436 = vst [vmem:[%s2645_s6 + $0x358] sm:$0xff] %v435_v43  ;;  %v439_v45 = vld [vmem:[%s2640_s5 + $0x1718] sm:$0xff]  ;;  %v441_v46 = vld [vmem:[%s2640_s5 + $0x1720] sm:$0xff] }
  0x4d   : > { %438 = vst [vmem:[%s2645_s6 + $0x360] sm:$0xff] %v437_v44  ;;  %440 = vst [vmem:[%s2645_s6 + $0x368] sm:$0xff] %v439_v45  ;;  %v443_v47 = vld [vmem:[%s2640_s5 + $0x1728] sm:$0xff] }
  0x4e   : > { %442 = vst [vmem:[%s2645_s6 + $0x370] sm:$0xff] %v441_v46  ;;  %444 = vst [vmem:[%s2645_s6 + $0x378] sm:$0xff] %v443_v47 }
  0x4f PF: > { %p2166_p8 = scmp.ge.s32.totalorder %s2564_s19, 1  ;;  %p465_p9 = scmp.lt.s32.totalorder %s2564_s19, 8 }
  0x51   : > { %p466_p10 = pnand %p2166_p8, %p465_p9 }
  0x52   : > { %s472_s7 = sand.u32 (!%p466_p10), 1, %s2548_s15   ;;  %v2566_v48 = vmov (!%p466_p10), 0   ;;  %v2908_v13 = vld [vmem:[%s3152_s0] sm:$0xff] (!%p466_p10)   ;;  %s523_s12 = smul.u32 (!%p466_p10), 14, %s2556_s17 }
  0x53   : > { %469 = sbr.rel (%p466_p10) target bundleno = 448 (0x1c0), region = 55  ;;  %1308 = vmatprep.mubr.bf16.mxu0 (!%p466_p10), %v2566_v48  ;;  %1351 = vmatprep.mubr.bf16.mxu1 (!%p466_p10), %v2566_v48 }
  0x54   : > { %s2314_s8 = smul.u32 (!%p466_p10), 896, %s472_s7  ;;  %p524_p11 = scmp.lt.s32.totalorder (!%p466_p10), %s523_s12, 97 }
  0x55   : > { %s2315_s27 = smul.u32 (!%p466_p10), 112, %s472_s7 }
  0x56   : > { %s2875_s9 = scalar_lea.vmem (!%p466_p10), [#allocation3], %s2314_s8 }
  0x57   : > { %v2357_v49 = vld [vmem:[%s2875_s9 + $0x4] ss:$56 sps:$4 sm:$0xff] (!%p466_p10)   ;;  %v2359_v50 = vld [vmem:[%s2875_s9] ss:$56 sps:$4 sm:$0xff] (!%p466_p10)   ;;  %v2360_v51 = vld [vmem:[%s2875_s9 + $0x74] ss:$56 sps:$4 sm:$0xff] (!%p466_p10)  }
  0x58   : > { %1276 = vmatprep.subr.bf16.mxu0 (!%p466_p10), %v2357_v49  ;;  %v2362_v52 = vld [vmem:[%s2875_s9 + $0x70] ss:$56 sps:$4 sm:$0xff] (!%p466_p10)   ;;  %v2363_v53 = vld [vmem:[%s2875_s9 + $0xe4] ss:$56 sps:$4 sm:$0xff] (!%p466_p10)   ;;  %v2365_v54 = vld [vmem:[%s2875_s9 + $0xe0] ss:$56 sps:$4 sm:$0xff] (!%p466_p10)  }
  0x59   : > { %1277 = vmatpush1.bf16.msra.mxu0 (!%p466_p10), %v2359_v50  ;;  %v2366_v55 = vld [vmem:[%s2875_s9 + $0x154] ss:$56 sps:$4 sm:$0xff] (!%p466_p10)   ;;  %v2368_v56 = vld [vmem:[%s2875_s9 + $0x150] ss:$56 sps:$4 sm:$0xff] (!%p466_p10)   ;;  %v2369_v59 = vld [vmem:[%s2875_s9 + $0x1c4] ss:$56 sps:$4 sm:$0xff] (!%p466_p10)  }
  0x5a   : > { %1278 = vmatprep.subr.bf16.mxu0 %v2360_v51  ;;  %v2381_v57 = vld [vmem:[%s2875_s9 + $0xc] ss:$56 sps:$4 sm:$0xff]   ;;  %v2383_v58 = vld [vmem:[%s2875_s9 + $0x8] ss:$56 sps:$4 sm:$0xff]   ;;  %v2388_v60 = vld [vmem:[%s2875_s9 + $0x7c] ss:$56 sps:$4 sm:$0xff]  }
  0x5b   : > { %1319 = vmatprep.subr.bf16.mxu1 %v2381_v57  ;;  %v2390_v61 = vld [vmem:[%s2875_s9 + $0x78] ss:$56 sps:$4 sm:$0xff]   ;;  %v2372_v63 = vld [vmem:[%s2875_s9 + $0x234] ss:$56 sps:$4 sm:$0xff]   ;;  %v2396_v1 = vld [vmem:[%s2875_s9 + $0xe8] ss:$56 sps:$4 sm:$0xff]  }
  0x5c   : > { %1320 = vmatpush1.bf16.msra.mxu1 %v2383_v58  ;;  %v2371_v62 = vld [vmem:[%s2875_s9 + $0x1c0] ss:$56 sps:$4 sm:$0xff]   ;;  %v2394_v0 = vld [vmem:[%s2875_s9 + $0xec] ss:$56 sps:$4 sm:$0xff]   ;;  %v2374_v2 = vld [vmem:[%s2875_s9 + $0x230] ss:$56 sps:$4 sm:$0xff]  }
  0x5d   : > { %1279 = vmatpush1.bf16.msra.mxu0 %v2362_v52  ;;  %1321 = vmatprep.subr.bf16.mxu1 %v2388_v60  ;;  %v2400_v3 = vld [vmem:[%s2875_s9 + $0x15c] ss:$56 sps:$4 sm:$0xff]   ;;  %v2402_v5 = vld [vmem:[%s2875_s9 + $0x158] ss:$56 sps:$4 sm:$0xff]   ;;  %v2406_v7 = vld [vmem:[%s2875_s9 + $0x1cc] ss:$56 sps:$4 sm:$0xff]  }
  0x5e   : > { %1280 = vmatprep.subr.bf16.mxu0 %v2363_v53  ;;  %v2375_v4 = vld [vmem:[%s2875_s9 + $0x2a4] ss:$56 sps:$4 sm:$0xff]   ;;  %v2377_v6 = vld [vmem:[%s2875_s9 + $0x2a0] ss:$56 sps:$4 sm:$0xff]   ;;  %v2378_v8 = vld [vmem:[%s2875_s9 + $0x314] ss:$56 sps:$4 sm:$0xff]  }
  0x5f   : > { %v2408_v9 = vld [vmem:[%s2875_s9 + $0x1c8] ss:$56 sps:$4 sm:$0xff]   ;;  %v2412_v11 = vld [vmem:[%s2875_s9 + $0x23c] ss:$56 sps:$4 sm:$0xff]   ;;  %v2414_v14 = vld [vmem:[%s2875_s9 + $0x238] ss:$56 sps:$4 sm:$0xff]  }
  0x60   : > { %1322 = vmatpush1.bf16.msra.mxu1 %v2390_v61  ;;  %v2380_v10 = vld [vmem:[%s2875_s9 + $0x310] ss:$56 sps:$4 sm:$0xff]   ;;  %v2387_v12 = vld [vmem:[%s2875_s9 + $0x14] ss:$56 sps:$4 sm:$0xff]   ;;  %v2393_v17 = vld [vmem:[%s2875_s9 + $0x84] ss:$56 sps:$4 sm:$0xff]  }
  0x61   : > { %1281 = vmatpush1.bf16.msra.mxu0 %v2365_v54  ;;  %1323 = vmatprep.subr.bf16.mxu1 %v2394_v0  ;;  %v2385_v15 = vld [vmem:[%s2875_s9 + $0x10] ss:$56 sps:$4 sm:$0xff]   ;;  %v2418_v16 = vld [vmem:[%s2875_s9 + $0x2ac] ss:$56 sps:$4 sm:$0xff]   ;;  %v2391_v19 = vld [vmem:[%s2875_s9 + $0x80] ss:$56 sps:$4 sm:$0xff]  }
  0x62   : > { %1282 = vmatprep.subr.bf16.mxu0 %v2366_v55  ;;  %v2420_v18 = vld [vmem:[%s2875_s9 + $0x2a8] ss:$56 sps:$4 sm:$0xff]   ;;  %v2424_v20 = vld [vmem:[%s2875_s9 + $0x31c] ss:$56 sps:$4 sm:$0xff]   ;;  %v2426_v22 = vld [vmem:[%s2875_s9 + $0x318] ss:$56 sps:$4 sm:$0xff]  }
  0x63   : > { %v2399_v21 = vld [vmem:[%s2875_s9 + $0xf4] ss:$56 sps:$4 sm:$0xff]   ;;  %v2397_v23 = vld [vmem:[%s2875_s9 + $0xf0] ss:$56 sps:$4 sm:$0xff]   ;;  %v2405_v25 = vld [vmem:[%s2875_s9 + $0x164] ss:$56 sps:$4 sm:$0xff]  }
  0x64   : > { %1324 = vmatpush1.bf16.msra.mxu1 %v2396_v1  ;;  %v2432_v24 = vld [vmem:[%s2875_s9 + $0x1c] ss:$56 sps:$4 sm:$0xff]   ;;  %v2430_v26 = vld [vmem:[%s2875_s9 + $0x18] ss:$56 sps:$4 sm:$0xff]   ;;  %v2438_v28 = vld [vmem:[%s2875_s9 + $0x8c] ss:$56 sps:$4 sm:$0xff]  }
  0x65   : > { %1283 = vmatpush1.bf16.msra.mxu0 %v2368_v56  ;;  %1325 = vmatprep.subr.bf16.mxu1 %v2400_v3  ;;  %v2403_v27 = vld [vmem:[%s2875_s9 + $0x160] ss:$56 sps:$4 sm:$0xff]   ;;  %v2411_v29 = vld [vmem:[%s2875_s9 + $0x1d4] ss:$56 sps:$4 sm:$0xff]   ;;  %v2409_v31 = vld [vmem:[%s2875_s9 + $0x1d0] ss:$56 sps:$4 sm:$0xff]  }
  0x66   : > { %1284 = vmatprep.subr.bf16.mxu0 %v2369_v59  ;;  %v2436_v30 = vld [vmem:[%s2875_s9 + $0x88] ss:$56 sps:$4 sm:$0xff]   ;;  %v2444_v32 = vld [vmem:[%s2875_s9 + $0xfc] ss:$56 sps:$4 sm:$0xff]   ;;  %v2442_v34 = vld [vmem:[%s2875_s9 + $0xf8] ss:$56 sps:$4 sm:$0xff]  }
  0x67   : > { %v2417_v33 = vld [vmem:[%s2875_s9 + $0x244] ss:$56 sps:$4 sm:$0xff]   ;;  %v2415_v35 = vld [vmem:[%s2875_s9 + $0x240] ss:$56 sps:$4 sm:$0xff]   ;;  %v2423_v37 = vld [vmem:[%s2875_s9 + $0x2b4] ss:$56 sps:$4 sm:$0xff]  }
  0x68   : > { %1326 = vmatpush1.bf16.msra.mxu1 %v2402_v5  ;;  %v2450_v36 = vld [vmem:[%s2875_s9 + $0x16c] ss:$56 sps:$4 sm:$0xff]   ;;  %v2448_v38 = vld [vmem:[%s2875_s9 + $0x168] ss:$56 sps:$4 sm:$0xff]   ;;  %v2456_v40 = vld [vmem:[%s2875_s9 + $0x1dc] ss:$56 sps:$4 sm:$0xff]  }
  0x69   : > { %1285 = vmatpush1.bf16.msra.mxu0 %v2371_v62  ;;  %1327 = vmatprep.subr.bf16.mxu1 %v2406_v7  ;;  %v2421_v39 = vld [vmem:[%s2875_s9 + $0x2b0] ss:$56 sps:$4 sm:$0xff]   ;;  %v2429_v41 = vld [vmem:[%s2875_s9 + $0x324] ss:$56 sps:$4 sm:$0xff]   ;;  %v2427_v43 = vld [vmem:[%s2875_s9 + $0x320] ss:$56 sps:$4 sm:$0xff]  }
  0x6a   : > { %1286 = vmatprep.subr.bf16.mxu0 %v2372_v63  ;;  %v2454_v42 = vld [vmem:[%s2875_s9 + $0x1d8] ss:$56 sps:$4 sm:$0xff]   ;;  %v2462_v44 = vld [vmem:[%s2875_s9 + $0x24c] ss:$56 sps:$4 sm:$0xff]   ;;  %v2460_v46 = vld [vmem:[%s2875_s9 + $0x248] ss:$56 sps:$4 sm:$0xff]  }
  0x6b   : > { %v2435_v45 = vld [vmem:[%s2875_s9 + $0x24] ss:$56 sps:$4 sm:$0xff]   ;;  %v2433_v47 = vld [vmem:[%s2875_s9 + $0x20] ss:$56 sps:$4 sm:$0xff]   ;;  %v2441_v50 = vld [vmem:[%s2875_s9 + $0x94] ss:$56 sps:$4 sm:$0xff]  }
  0x6c   : > { %1328 = vmatpush1.bf16.msra.mxu1 %v2408_v9  ;;  %v2468_v49 = vld [vmem:[%s2875_s9 + $0x2bc] ss:$56 sps:$4 sm:$0xff]   ;;  %v2466_v51 = vld [vmem:[%s2875_s9 + $0x2b8] ss:$56 sps:$4 sm:$0xff]   ;;  %v2474_v53 = vld [vmem:[%s2875_s9 + $0x32c] ss:$56 sps:$4 sm:$0xff]  }
  0x6d   : > { %1287 = vmatpush1.bf16.msra.mxu0 %v2374_v2  ;;  %1329 = vmatprep.subr.bf16.mxu1 %v2412_v11  ;;  %v2439_v52 = vld [vmem:[%s2875_s9 + $0x90] ss:$56 sps:$4 sm:$0xff]   ;;  %v2447_v54 = vld [vmem:[%s2875_s9 + $0x104] ss:$56 sps:$4 sm:$0xff]   ;;  %v2445_v56 = vld [vmem:[%s2875_s9 + $0x100] ss:$56 sps:$4 sm:$0xff]  }
  0x6e   : > { %1288 = vmatprep.subr.bf16.mxu0 %v2375_v4  ;;  %v2472_v55 = vld [vmem:[%s2875_s9 + $0x328] ss:$56 sps:$4 sm:$0xff]   ;;  %v2480_v57 = vld [vmem:[%s2875_s9 + $0x2c] ss:$56 sps:$4 sm:$0xff]   ;;  %v2486_v61 = vld [vmem:[%s2875_s9 + $0x9c] ss:$56 sps:$4 sm:$0xff]  }
  0x6f   : > { %v2453_v58 = vld [vmem:[%s2875_s9 + $0x174] ss:$56 sps:$4 sm:$0xff]   ;;  %v2478_v59 = vld [vmem:[%s2875_s9 + $0x28] ss:$56 sps:$4 sm:$0xff]   ;;  %v2459_v62 = vld [vmem:[%s2875_s9 + $0x1e4] ss:$56 sps:$4 sm:$0xff]  }
  0x70   : > { %1330 = vmatpush1.bf16.msra.mxu1 %v2414_v14  ;;  %v2451_v60 = vld [vmem:[%s2875_s9 + $0x170] ss:$56 sps:$4 sm:$0xff]   ;;  %v2457_v0 = vld [vmem:[%s2875_s9 + $0x1e0] ss:$56 sps:$4 sm:$0xff]   ;;  %v2492_v1 = vld [vmem:[%s2875_s9 + $0x10c] ss:$56 sps:$4 sm:$0xff]  }
  0x71   : > { %1289 = vmatpush1.bf16.msra.mxu0 %v2377_v6  ;;  %1331 = vmatprep.subr.bf16.mxu1 %v2418_v16  ;;  %v2484_v63 = vld [vmem:[%s2875_s9 + $0x98] ss:$56 sps:$4 sm:$0xff]   ;;  %v2465_v2 = vld [vmem:[%s2875_s9 + $0x254] ss:$56 sps:$4 sm:$0xff]   ;;  %v2490_v3 = vld [vmem:[%s2875_s9 + $0x108] ss:$56 sps:$4 sm:$0xff]  }
  0x72   : > { %1290 = vmatprep.subr.bf16.mxu0 %v2378_v8  ;;  %v2463_v4 = vld [vmem:[%s2875_s9 + $0x250] ss:$56 sps:$4 sm:$0xff]   ;;  %v2498_v5 = vld [vmem:[%s2875_s9 + $0x17c] ss:$56 sps:$4 sm:$0xff]   ;;  %v2469_v8 = vld [vmem:[%s2875_s9 + $0x2c0] ss:$56 sps:$4 sm:$0xff]  }
  0x73   : > { %v2471_v6 = vld [vmem:[%s2875_s9 + $0x2c4] ss:$56 sps:$4 sm:$0xff]   ;;  %v2496_v7 = vld [vmem:[%s2875_s9 + $0x178] ss:$56 sps:$4 sm:$0xff]   ;;  %v2502_v11 = vld [vmem:[%s2875_s9 + $0x1e8] ss:$56 sps:$4 sm:$0xff]  }
  0x74   : > { %1332 = vmatpush1.bf16.msra.mxu1 %v2420_v18  ;;  %v2504_v9 = vld [vmem:[%s2875_s9 + $0x1ec] ss:$56 sps:$4 sm:$0xff]   ;;  %v2510_v14 = vld [vmem:[%s2875_s9 + $0x25c] ss:$56 sps:$4 sm:$0xff]   ;;  %v2508_v16 = vld [vmem:[%s2875_s9 + $0x258] ss:$56 sps:$4 sm:$0xff]  }
  0x75   : > { %1291 = vmatpush1.bf16.msra.mxu0 %v2380_v10  ;;  %1333 = vmatprep.subr.bf16.mxu1 %v2424_v20  ;;  %v2477_v10 = vld [vmem:[%s2875_s9 + $0x334] ss:$56 sps:$4 sm:$0xff]   ;;  %v2514_v20 = vld [vmem:[%s2875_s9 + $0x2c8] ss:$56 sps:$4 sm:$0xff]   ;;  %s3165_s12 = smov (!%p524_p11, %s523_s12), 97  ;;  %s3055_s28 = scalar_lea.vmem [#allocation4], %s2315_s27 }
  0x76   : > { %1362 = vmatprep.subr.bf16.mxu0 %v2387_v12  ;;  %v2475_v12 = vld [vmem:[%s2875_s9 + $0x330] ss:$56 sps:$4 sm:$0xff]   ;;  %v2516_v18 = vld [vmem:[%s2875_s9 + $0x2cc] ss:$56 sps:$4 sm:$0xff]   ;;  %s526_s21 = scalar_lea.vmem %s3154_s2, %s3165_s12  ;;  %s531_s26 = scalar_lea.vmem %s3155_s3, %s3165_s12 }
  0x77   : > { %s2312_s15 = smul.u32 (%p2627_p6), 56, %s2556_s17 }
  0x78   : > { %1309 = vmatmul.mubr.bf16.vlgmr.msra.gmra.mrb[0].mxu0 %v2908_v13  ;;  %1334 = vmatpush1.bf16.msra.mxu1 %v2426_v22  ;;  %v2522_v22 = vld [vmem:[%s2875_s9 + $0x33c] ss:$56 sps:$4 sm:$0xff]  }
  0x79   : > { %1363 = vmatpush1.bf16.msra.mxu0 %v2385_v15  ;;  %1394 = vmatprep.mubr.bf16.mxu0 %v2566_v48  ;;  %v2483_v15 = vld [vmem:[%s2875_s9 + $0x34] ss:$56 sps:$4 sm:$0xff]   ;;  %s2006_s30 = scalar_lea.vmem (%p2627_p6), %s3156_s4, %s2312_s15 }
  0x7a   : > { %1364 = vmatprep.subr.bf16.mxu0 %v2393_v17  ;;  %1405 = vmatprep.subr.bf16.mxu1 %v2432_v24  ;;  %v2481_v17 = vld [vmem:[%s2875_s9 + $0x30] ss:$56 sps:$4 sm:$0xff]  }
  0x7b   : > { %1352 = vmatmul.mubr.bf16.vlgmr.msra.gmra.mrb[0].mxu1 %v2908_v13  ;;  %v2520_v24 = vld [vmem:[%s2875_s9 + $0x338] ss:$56 sps:$4 sm:$0xff]  }
  0x7c   : > { %1406 = vmatpush1.bf16.msra.mxu1 %v2430_v26  ;;  %1437 = vmatprep.mubr.bf16.mxu1 %v2566_v48  ;;  %v2501_v26 = vld [vmem:[%s2875_s9 + $0x184] ss:$56 sps:$4 sm:$0xff]  }
  0x7d   : > { %1365 = vmatpush1.bf16.msra.mxu0 %v2391_v19  ;;  %1407 = vmatprep.subr.bf16.mxu1 %v2438_v28  ;;  %v2489_v19 = vld [vmem:[%s2875_s9 + $0xa4] ss:$56 sps:$4 sm:$0xff]   ;;  %v2507_v28 = vld [vmem:[%s2875_s9 + $0x1f4] ss:$56 sps:$4 sm:$0xff]  }
  0x7e   : > { %1366 = vmatprep.subr.bf16.mxu0 %v2399_v21  ;;  %v2487_v21 = vld [vmem:[%s2875_s9 + $0xa0] ss:$56 sps:$4 sm:$0xff]  }
  0x80   : > { %1408 = vmatpush1.bf16.msra.mxu1 %v2436_v30  ;;  %v2511_v30 = vld [vmem:[%s2875_s9 + $0x260] ss:$56 sps:$4 sm:$0xff]  }
  0x81   : > { %1367 = vmatpush1.bf16.msra.mxu0 %v2397_v23  ;;  %1409 = vmatprep.subr.bf16.mxu1 %v2444_v32  ;;  %v2495_v23 = vld [vmem:[%s2875_s9 + $0x114] ss:$56 sps:$4 sm:$0xff]   ;;  %v2517_v32 = vld [vmem:[%s2875_s9 + $0x2d0] ss:$56 sps:$4 sm:$0xff]  }
  0x82   : > { %1368 = vmatprep.subr.bf16.mxu0 %v2405_v25  ;;  %v2493_v25 = vld [vmem:[%s2875_s9 + $0x110] ss:$56 sps:$4 sm:$0xff]  }
  0x84   : > { %1410 = vmatpush1.bf16.msra.mxu1 %v2442_v34  ;;  %v2523_v34 = vld [vmem:[%s2875_s9 + $0x340] ss:$56 sps:$4 sm:$0xff]  }
  0x85   : > { %1369 = vmatpush1.bf16.msra.mxu0 %v2403_v27  ;;  %1411 = vmatprep.subr.bf16.mxu1 %v2450_v36  ;;  %v2499_v27 = vld [vmem:[%s2875_s9 + $0x180] ss:$56 sps:$4 sm:$0xff]  }
  0x86   : > { %1370 = vmatprep.subr.bf16.mxu0 %v2411_v29  ;;  %v2513_v29 = vld [vmem:[%s2875_s9 + $0x264] ss:$56 sps:$4 sm:$0xff]  }
  0x88   : > { %1412 = vmatpush1.bf16.msra.mxu1 %v2448_v38  ;;  %v3016_v38 = vld [vmem:[%s526_s21 + $0x8] sm:$0x3f] }
  0x89   : > { %1371 = vmatpush1.bf16.msra.mxu0 %v2409_v31  ;;  %1413 = vmatprep.subr.bf16.mxu1 %v2456_v40  ;;  %v2519_v31 = vld [vmem:[%s2875_s9 + $0x2d4] ss:$56 sps:$4 sm:$0xff]  }
  0x8a   : > { %1372 = vmatprep.subr.bf16.mxu0 %v2417_v33  ;;  %v2525_v33 = vld [vmem:[%s2875_s9 + $0x344] ss:$56 sps:$4 sm:$0xff]  }
  0x8c   : > { %1414 = vmatpush1.bf16.msra.mxu1 %v2454_v42 }
  0x8d   : > { %1373 = vmatpush1.bf16.msra.mxu0 %v2415_v35  ;;  %1415 = vmatprep.subr.bf16.mxu1 %v2462_v44  ;;  %v1668_v35 = vlaneseq }
  0x8e   : > { %1374 = vmatprep.subr.bf16.mxu0 %v2423_v37 }
  0x8f   : > { %v3007_v36 = vshrl.u32 %v1668_v35, 7 }
  0x90   : > { %1416 = vmatpush1.bf16.msra.mxu1 %v2460_v46 }
  0x91   : > { %1375 = vmatpush1.bf16.msra.mxu0 %v2421_v39  ;;  %1417 = vmatprep.subr.bf16.mxu1 %v2468_v49  ;;  %v1678_v37 = vsub.s32 2, %v3007_v36  ;;  %v3018_v39 = vld [vmem:[%s531_s26 + $0x8] sm:$0x3f]  ;;  %v3034_v44 = vsub.s32 0, %v3007_v36  ;;  %v3039_v46 = vsub.s32 1, %v3007_v36 }
  0x92   : > { %1376 = vmatprep.subr.bf16.mxu0 %v2429_v41  ;;  %v1682_v41 = vsub.s32 3, %v3007_v36 }
  0x93   : > { %v3024_v40 = vrot.slane %v3018_v39, %v1678_v37 }
  0x94   : > { %1418 = vmatpush1.bf16.msra.mxu1 %v2466_v51  ;;  %v3028_v42 = vrot.slane %v3016_v38, %v1682_v41 }
  0x95   : > { %1377 = vmatpush1.bf16.msra.mxu0 %v2427_v43  ;;  %1419 = vmatprep.subr.bf16.mxu1 %v2474_v53  ;;  %v3031_v43 = vrot.slane %v3018_v39, %v1682_v41 }
  0x96   : > { %1448 = vmatprep.subr.bf16.mxu0 %v2435_v45  ;;  %v3036_v45 = vld [vmem:[%s526_s21] sm:$0xff] }
  0x97   : > { %v1671_v49 = vrot.slane %v3036_v45, %v3034_v44 }
  0x98   : > { %1395 = vmatmul.mubr.bf16.vlgmr.msra.gmra.mrb[4].mxu0 %v2908_v13  ;;  %1420 = vmatpush1.bf16.msra.mxu1 %v2472_v55 }
  0x99   : > { %1449 = vmatpush1.bf16.msra.mxu0 %v2433_v47  ;;  %1480 = vmatprep.mubr.bf16.mxu0 %v2566_v48  ;;  %v3041_v47 = vld [vmem:[%s531_s26] sm:$0xff] }
  0x9a   : > { %1450 = vmatprep.subr.bf16.mxu0 %v2441_v50  ;;  %1491 = vmatprep.subr.bf16.mxu1 %v2480_v57  ;;  %v1675_v50 = vrot.slane %v3036_v45, %v3039_v46  ;;  %v1773_v51 = vrot.slane %v3041_v47, %v3034_v44  ;;  %v1777_v53 = vrot.slane %v3041_v47, %v3039_v46 }
  0x9b   : > { %1438 = vmatmul.mubr.bf16.vlgmr.msra.gmra.mrb[4].mxu1 %v2908_v13 }
  0x9c   : > { %1492 = vmatpush1.bf16.msra.mxu1 %v2478_v59  ;;  %1523 = vmatprep.mubr.bf16.mxu1 %v2566_v48 }
  0x9d   : > { %1451 = vmatpush1.bf16.msra.mxu0 %v2439_v52  ;;  %1493 = vmatprep.subr.bf16.mxu1 %v2486_v61 }
  0x9e   : > { %1452 = vmatprep.subr.bf16.mxu0 %v2447_v54 }
  0xa0   : > { %1494 = vmatpush1.bf16.msra.mxu1 %v2484_v63 }
  0xa1   : > { %1453 = vmatpush1.bf16.msra.mxu0 %v2445_v56  ;;  %1495 = vmatprep.subr.bf16.mxu1 %v2492_v1 }
  0xa2   : > { %1454 = vmatprep.subr.bf16.mxu0 %v2453_v58 }
  0xa4   : > { %1496 = vmatpush1.bf16.msra.mxu1 %v2490_v3 }
  0xa5   : > { %1455 = vmatpush1.bf16.msra.mxu0 %v2451_v60  ;;  %1497 = vmatprep.subr.bf16.mxu1 %v2498_v5 }
  0xa6   : > { %1456 = vmatprep.subr.bf16.mxu0 %v2459_v62 }
  0xa8   : > { %1498 = vmatpush1.bf16.msra.mxu1 %v2496_v7  ;;  %v1683_v7 = vrot.slane %v3036_v45, %v1682_v41 }
  0xa9   : > { %1457 = vmatpush1.bf16.msra.mxu0 %v2457_v0  ;;  %1499 = vmatprep.subr.bf16.mxu1 %v2504_v9  ;;  %v1781_v9 = vrot.slane %v3041_v47, %v1678_v37 }
  0xaa   : > { %1458 = vmatprep.subr.bf16.mxu0 %v2465_v2 }
  0xac   : > { %1500 = vmatpush1.bf16.msra.mxu1 %v2502_v11  ;;  %v1785_v11 = vrot.slane %v3041_v47, %v1682_v41 }
  0xad   : > { %1459 = vmatpush1.bf16.msra.mxu0 %v2463_v4  ;;  %1501 = vmatprep.subr.bf16.mxu1 %v2510_v14 }
  0xae   : > { %1460 = vmatprep.subr.bf16.mxu0 %v2471_v6  ;;  %v1679_v6 = vrot.slane %v3036_v45, %v1678_v37 }
  0xb0   : > { %1502 = vmatpush1.bf16.msra.mxu1 %v2508_v16 }
  0xb1   : > { %1461 = vmatpush1.bf16.msra.mxu0 %v2469_v8  ;;  %1503 = vmatprep.subr.bf16.mxu1 %v2516_v18 }
  0xb2   : > { %1462 = vmatprep.subr.bf16.mxu0 %v2477_v10 }
  0xb4   : > { %1504 = vmatpush1.bf16.msra.mxu1 %v2514_v20 }
  0xb5   : > { %1463 = vmatpush1.bf16.msra.mxu0 %v2475_v12  ;;  %1505 = vmatprep.subr.bf16.mxu1 %v2522_v22 }
  0xb6   : > { %1534 = vmatprep.subr.bf16.mxu0 %v2483_v15 }
  0xb8   : > { %1481 = vmatmul.mubr.bf16.vlgmr.msra.gmra.mrb[8].mxu0 %v2908_v13  ;;  %1506 = vmatpush1.bf16.msra.mxu1 %v2520_v24 }
  0xb9   : > { %1535 = vmatpush1.bf16.msra.mxu0 %v2481_v17  ;;  %1566 = vmatprep.mubr.bf16.mxu0 %v2566_v48  ;;  %v2505_v48 = vld [vmem:[%s2875_s9 + $0x1f0] ss:$56 sps:$4 sm:$0xff]  }
  0xba   : > { %1536 = vmatprep.subr.bf16.mxu0 %v2489_v19 }
  0xbb   : > { %1524 = vmatmul.mubr.bf16.vlgmr.msra.gmra.mrb[8].mxu1 %v2908_v13 }
  0xbd   : > { %1537 = vmatpush1.bf16.msra.mxu0 %v2487_v21 }
  0xbe   : > { %1538 = vmatprep.subr.bf16.mxu0 %v2495_v23 }
  0xc1   : > { %1539 = vmatpush1.bf16.msra.mxu0 %v2493_v25 }
  0xc2   : > { %1540 = vmatprep.subr.bf16.mxu0 %v2501_v26 }
  0xc5   : > { %1541 = vmatpush1.bf16.msra.mxu0 %v2499_v27 }
  0xc6   : > { %1542 = vmatprep.subr.bf16.mxu0 %v2507_v28 }
  0xc9   : > { %1543 = vmatpush1.bf16.msra.mxu0 %v2505_v48 }
  0xca   : > { %1544 = vmatprep.subr.bf16.mxu0 %v2513_v29  ;;  %v3064_v29 = vsub.s32 4, %v3007_v36 }
  0xcd   : > { %1545 = vmatpush1.bf16.msra.mxu0 %v2511_v30  ;;  %v3067_v30 = vsub.s32 5, %v3007_v36 }
  0xce   : > { %1546 = vmatprep.subr.bf16.mxu0 %v2519_v31  ;;  %v1687_v31 = vrot.slane %v3036_v45, %v3064_v29 }
  0xcf   : > { %v1793_v35 = vrot.slane %v3041_v47, %v3067_v30 }
  0xd1   : > { %1547 = vmatpush1.bf16.msra.mxu0 %v2517_v32  ;;  %v1691_v32 = vrot.slane %v3036_v45, %v3067_v30 }
  0xd2   : > { %1548 = vmatprep.subr.bf16.mxu0 %v2525_v33  ;;  %v1789_v33 = vrot.slane %v3041_v47, %v3064_v29 }
  0xd5   : > { %1549 = vmatpush1.bf16.msra.mxu0 %v2523_v34 }
  0xd8   : > { %1567 = vmatmul.mubr.bf16.vlgmr.msra.gmra.mrb[12].mxu0 %v2908_v13  ;;  %v3021_v13 = vrot.slane %v3016_v38, %v1678_v37 }
 0x14b   : > { %v1310_v52 = vpop.f32.mrb[0].mxu0 }
 0x14c   : > { %v1738_v54 = vmul.f32 %v1671_v49, %v1310_v52  ;;  %v1312_v55 = vpop.f32.mrb[1].mxu0 }
 0x14d   : > { %v1739_v56 = vmul.f32 %v1675_v50, %v1312_v55  ;;  %v1314_v57 = vpop.f32.mrb[2].mxu0 }
 0x14e   : > { %v1840_v58 = vadd.f32 %v1773_v51, %v1738_v54  ;;  %v1752_v59 = vmul.f32 %v1671_v49, %v1314_v57  ;;  %v1316_v60 = vpop.f32.mrb[3].mxu0  ;;  %v1353_v10 = vpop.f32.mrb[0].mxu1 }
 0x14f   : > { %v1841_v61 = vadd.f32 %v1777_v53, %v1739_v56  ;;  %v1753_v62 = vmul.f32 %v1675_v50, %v1316_v60  ;;  %v1740_v12 = vmul.f32 %v1679_v6, %v1353_v10  ;;  %v1355_v14 = vpop.f32.mrb[1].mxu1  ;;  %v1694_v56 = vsub.s32 6, %v3007_v36 }
 0x150   : > { %v1868_v63 = vmax.f32 %v1840_v58, 0.0  ;;  %v1854_v0 = vadd.f32 %v1773_v51, %v1752_v59  ;;  %v1741_v15 = vmul.f32 %v1683_v7, %v1355_v14  ;;  %v1357_v16 = vpop.f32.mrb[2].mxu1  ;;  %v1698_v59 = vsub.s32 7, %v3007_v36 }
 0x151   : > { %v1869_v1 = vmax.f32 %v1841_v61, 0.0  ;;  %v1855_v2 = vadd.f32 %v1777_v53, %v1753_v62  ;;  %v1842_v17 = vadd.f32 %v1781_v9, %v1740_v12  ;;  %v1754_v18 = vmul.f32 %v1679_v6, %v1357_v16  ;;  %v1359_v19 = vpop.f32.mrb[3].mxu1 }
 0x152   : > { %v1882_v3 = vmax.f32 %v1854_v0, 0.0  ;;  %v1843_v20 = vadd.f32 %v1785_v11, %v1741_v15  ;;  %v1755_v21 = vmul.f32 %v1683_v7, %v1359_v19  ;;  %v1801_v6 = vrot.slane %v3041_v47, %v1698_v59 }
 0x153   : > { %v2298_v4 = vpack.c.bf16 %v1869_v1, %v1868_v63  ;;  %v1883_v5 = vmax.f32 %v1855_v2, 0.0  ;;  %v1870_v22 = vmax.f32 %v1842_v17, 0.0  ;;  %v1856_v23 = vadd.f32 %v1781_v9, %v1754_v18 }
 0x154   : > { %v1871_v24 = vmax.f32 %v1843_v20, 0.0  ;;  %v1857_v25 = vadd.f32 %v1785_v11, %v1755_v21  ;;  %v1695_v1 = vrot.slane %v3036_v45, %v1694_v56  ;;  %v1699_v2 = vrot.slane %v3036_v45, %v1698_v59 }
 0x155   : > { %1980 = vst [vmem:[%s3055_s28] sm:$0xff] %v2298_v4  ;;  %v2305_v8 = vpack.c.bf16 %v1883_v5, %v1882_v3  ;;  %v1884_v26 = vmax.f32 %v1856_v23, 0.0  ;;  %v1797_v4 = vrot.slane %v3041_v47, %v1694_v56  ;;  %v1707_v23 = vrot.slane %v3016_v38, %v3039_v46 }
 0x156   : > { %v2299_v27 = vpack.c.bf16 %v1871_v24, %v1870_v22  ;;  %v1885_v28 = vmax.f32 %v1857_v25, 0.0  ;;  %v1703_v22 = vrot.slane %v3016_v38, %v3034_v44  ;;  %v1805_v24 = vrot.slane %v3018_v39, %v3034_v44 }
 0x157   : > { %1987 = vst [vmem:[%s3055_s28 + $0x38] sm:$0xff] %v2305_v8 }
 0x158   : > { %1981 = vst [vmem:[%s3055_s28 + $0x8] sm:$0xff] %v2299_v27  ;;  %v2306_v48 = vpack.c.bf16 %v1885_v28, %v1884_v26  ;;  %v1809_v26 = vrot.slane %v3018_v39, %v3039_v46 }
 0x15a   : > { %1988 = vst [vmem:[%s3055_s28 + $0x40] sm:$0xff] %v2306_v48 }
 0x16b   : > { %v1396_v34 = vpop.f32.mrb[4].mxu0 }
 0x16c   : > { %v1742_v37 = vmul.f32 %v1687_v31, %v1396_v34  ;;  %v1398_v41 = vpop.f32.mrb[5].mxu0 }
 0x16d   : > { %v1743_v49 = vmul.f32 %v1691_v32, %v1398_v41  ;;  %v1400_v50 = vpop.f32.mrb[6].mxu0 }
 0x16e   : > { %v1844_v51 = vadd.f32 %v1789_v33, %v1742_v37  ;;  %v1756_v52 = vmul.f32 %v1687_v31, %v1400_v50  ;;  %v1402_v53 = vpop.f32.mrb[7].mxu0  ;;  %v1439_v5 = vpop.f32.mrb[4].mxu1 }
 0x16f   : > { %v1845_v54 = vadd.f32 %v1793_v35, %v1743_v49  ;;  %v1757_v55 = vmul.f32 %v1691_v32, %v1402_v53  ;;  %v1744_v7 = vmul.f32 %v1695_v1, %v1439_v5  ;;  %v1441_v36 = vpop.f32.mrb[5].mxu1 }
 0x170   : > { %v1872_v57 = vmax.f32 %v1844_v51, 0.0  ;;  %v1858_v58 = vadd.f32 %v1789_v33, %v1756_v52  ;;  %v1745_v8 = vmul.f32 %v1699_v2, %v1441_v36  ;;  %v1443_v9 = vpop.f32.mrb[6].mxu1  ;;  %v1723_v36 = vrot.slane %v3016_v38, %v3067_v30 }
 0x171   : > { %v1873_v60 = vmax.f32 %v1845_v54, 0.0  ;;  %v1859_v61 = vadd.f32 %v1793_v35, %v1757_v55  ;;  %v1846_v10 = vadd.f32 %v1797_v4, %v1744_v7  ;;  %v1758_v11 = vmul.f32 %v1695_v1, %v1443_v9  ;;  %v1445_v12 = vpop.f32.mrb[7].mxu1 }
 0x172   : > { %v1886_v62 = vmax.f32 %v1858_v58, 0.0  ;;  %v1847_v14 = vadd.f32 %v1801_v6, %v1745_v8  ;;  %v1759_v15 = vmul.f32 %v1699_v2, %v1445_v12 }
 0x173   : > { %v2300_v63 = vpack.c.bf16 %v1873_v60, %v1872_v57  ;;  %v1887_v0 = vmax.f32 %v1859_v61, 0.0  ;;  %v1874_v45 = vmax.f32 %v1846_v10, 0.0  ;;  %v1860_v16 = vadd.f32 %v1797_v4, %v1758_v11 }
 0x174   : > { %v1875_v17 = vmax.f32 %v1847_v14, 0.0  ;;  %v1861_v18 = vadd.f32 %v1801_v6, %v1759_v15 }
 0x175   : > { %1982 = vst [vmem:[%s3055_s28 + $0x10] sm:$0xff] %v2300_v63  ;;  %v2307_v3 = vpack.c.bf16 %v1887_v0, %v1886_v62  ;;  %v1888_v19 = vmax.f32 %v1860_v16, 0.0 }
 0x176   : > { %v2301_v20 = vpack.c.bf16 %v1875_v17, %v1874_v45  ;;  %v1889_v21 = vmax.f32 %v1861_v18, 0.0 }
 0x177   : > { %1989 = vst [vmem:[%s3055_s28 + $0x48] sm:$0xff] %v2307_v3 }
 0x178   : > { %1983 = vst [vmem:[%s3055_s28 + $0x18] sm:$0xff] %v2301_v20  ;;  %v2308_v47 = vpack.c.bf16 %v1889_v21, %v1888_v19 }
 0x17a   : > { %1990 = vst [vmem:[%s3055_s28 + $0x50] sm:$0xff] %v2308_v47  ;;  %v2021_v47 = vld [vmem:[%s3055_s28 + $0x8] sm:$0xff] (%p2627_p6) }
 0x17b   : > { %2022 = vst [vmem:[%s2006_s30 + $0x8] sm:$0xff] (%p2627_p6), %v2021_v47 }
 0x18b   : > { %v1482_v25 = vpop.f32.mrb[8].mxu0 }
 0x18c   : > { %v1746_v27 = vmul.f32 %v1703_v22, %v1482_v25  ;;  %v1484_v28 = vpop.f32.mrb[9].mxu0 }
 0x18d   : > { %v1747_v48 = vmul.f32 %v1707_v23, %v1484_v28  ;;  %v1486_v31 = vpop.f32.mrb[10].mxu0  ;;  %v2035_v28 = vld [vmem:[%s3055_s28 + $0x40] sm:$0xff] (%p2627_p6) }
 0x18e   : > { %v1848_v32 = vadd.f32 %v1805_v24, %v1746_v27  ;;  %v1760_v33 = vmul.f32 %v1703_v22, %v1486_v31  ;;  %v1488_v34 = vpop.f32.mrb[11].mxu0  ;;  %v1525_v54 = vpop.f32.mrb[8].mxu1  ;;  %v2023_v22 = vld [vmem:[%s3055_s28 + $0x10] sm:$0xff] (%p2627_p6)  ;;  %v2033_v27 = vld [vmem:[%s3055_s28 + $0x38] sm:$0xff] (%p2627_p6)  ;;  %2036 = vst [vmem:[%s2006_s30 + $0x190] sm:$0xff] (%p2627_p6), %v2035_v28 }
 0x18f   : > { %v1849_v35 = vadd.f32 %v1809_v26, %v1747_v48  ;;  %v1761_v37 = vmul.f32 %v1707_v23, %v1488_v34  ;;  %v1748_v55 = vmul.f32 %v3021_v13, %v1525_v54  ;;  %v1527_v56 = vpop.f32.mrb[9].mxu1  ;;  %v2025_v23 = vld [vmem:[%s3055_s28 + $0x18] sm:$0xff] (%p2627_p6)  ;;  %2024 = vst [vmem:[%s2006_s30 + $0x10] sm:$0xff] (%p2627_p6), %v2023_v22  ;;  %2034 = vst [vmem:[%s2006_s30 + $0x188] sm:$0xff] (%p2627_p6), %v2033_v27  ;;  %v2037_v48 = vld [vmem:[%s3055_s28 + $0x48] sm:$0xff] (%p2627_p6) }
 0x190   : > { %v1876_v41 = vmax.f32 %v1848_v32, 0.0  ;;  %v1862_v49 = vadd.f32 %v1805_v24, %v1760_v33  ;;  %v1749_v57 = vmul.f32 %v3028_v42, %v1527_v56  ;;  %v1529_v58 = vpop.f32.mrb[10].mxu1  ;;  %2026 = vst [vmem:[%s2006_s30 + $0x18] sm:$0xff] (%p2627_p6), %v2025_v23  ;;  %v2039_v31 = vld [vmem:[%s3055_s28 + $0x50] sm:$0xff] (%p2627_p6)  ;;  %2038 = vst [vmem:[%s2006_s30 + $0x198] sm:$0xff] (%p2627_p6), %v2037_v48 }
 0x191   : > { %v1877_v50 = vmax.f32 %v1849_v35, 0.0  ;;  %v1863_v51 = vadd.f32 %v1809_v26, %v1761_v37  ;;  %v1850_v59 = vadd.f32 %v3024_v40, %v1748_v55  ;;  %v1762_v60 = vmul.f32 %v3021_v13, %v1529_v58  ;;  %v1531_v61 = vpop.f32.mrb[11].mxu1  ;;  %2040 = vst [vmem:[%s2006_s30 + $0x1a0] sm:$0xff] (%p2627_p6), %v2039_v31 }
 0x192   : > { %v1890_v44 = vmax.f32 %v1862_v49, 0.0  ;;  %v1851_v62 = vadd.f32 %v3031_v43, %v1749_v57  ;;  %v1763_v63 = vmul.f32 %v3028_v42, %v1531_v61  ;;  %v1719_v13 = vrot.slane %v3016_v38, %v3064_v29 }
 0x193   : > { %v2302_v52 = vpack.c.bf16 %v1877_v50, %v1876_v41  ;;  %v1891_v53 = vmax.f32 %v1863_v51, 0.0  ;;  %v1878_v0 = vmax.f32 %v1850_v59, 0.0  ;;  %v1864_v1 = vadd.f32 %v3024_v40, %v1762_v60 }
 0x194   : > { %v1879_v2 = vmax.f32 %v1851_v62, 0.0  ;;  %v1865_v3 = vadd.f32 %v3031_v43, %v1763_v63  ;;  %v1821_v42 = vrot.slane %v3018_v39, %v3064_v29  ;;  %v1825_v40 = vrot.slane %v3018_v39, %v3067_v30  ;;  %v2019_v30 = vld [vmem:[%s3055_s28] sm:$0xff] (%p2627_p6) }
 0x195   : > { %1984 = vst [vmem:[%s3055_s28 + $0x20] sm:$0xff] %v2302_v52  ;;  %v2309_v46 = vpack.c.bf16 %v1891_v53, %v1890_v44  ;;  %v1892_v4 = vmax.f32 %v1864_v1, 0.0  ;;  %2020 = vst [vmem:[%s2006_s30] sm:$0xff] (%p2627_p6), %v2019_v30 }
 0x196   : > { %v2303_v5 = vpack.c.bf16 %v1879_v2, %v1878_v0  ;;  %v1893_v6 = vmax.f32 %v1865_v3, 0.0 }
 0x197   : > { %1991 = vst [vmem:[%s3055_s28 + $0x58] sm:$0xff] %v2309_v46 }
 0x198   : > { %1985 = vst [vmem:[%s3055_s28 + $0x28] sm:$0xff] %v2303_v5  ;;  %v2310_v7 = vpack.c.bf16 %v1893_v6, %v1892_v4 }
 0x19a   : > { %1992 = vst [vmem:[%s3055_s28 + $0x60] sm:$0xff] %v2310_v7 }
 0x19c   : > { %v2027_v24 = vld [vmem:[%s3055_s28 + $0x20] sm:$0xff] (%p2627_p6) }
 0x19d   : > { %2028 = vst [vmem:[%s2006_s30 + $0x20] sm:$0xff] (%p2627_p6), %v2027_v24 }
 0x19e   : > { %v2041_v32 = vld [vmem:[%s3055_s28 + $0x58] sm:$0xff] (%p2627_p6) }
 0x19f   : > { %v2029_v25 = vld [vmem:[%s3055_s28 + $0x28] sm:$0xff] (%p2627_p6)  ;;  %2042 = vst [vmem:[%s2006_s30 + $0x1a8] sm:$0xff] (%p2627_p6), %v2041_v32 }
 0x1a0   : > { %2030 = vst [vmem:[%s2006_s30 + $0x28] sm:$0xff] (%p2627_p6), %v2029_v25 }
 0x1a1   : > { %v2043_v33 = vld [vmem:[%s3055_s28 + $0x60] sm:$0xff] (%p2627_p6) }
 0x1a2   : > { %2044 = vst [vmem:[%s2006_s30 + $0x1b0] sm:$0xff] (%p2627_p6), %v2043_v33 }
 0x1ab   : > { %v1568_v8 = vpop.f32.mrb[12].mxu0 }
 0x1ac   : > { %v1750_v43 = vmul.f32 %v1719_v13, %v1568_v8  ;;  %v1570_v9 = vpop.f32.mrb[13].mxu0 }
 0x1ad   : > { %v1751_v10 = vmul.f32 %v1723_v36, %v1570_v9  ;;  %v1572_v11 = vpop.f32.mrb[14].mxu0 }
 0x1ae   : > { %v1852_v12 = vadd.f32 %v1821_v42, %v1750_v43  ;;  %v1764_v14 = vmul.f32 %v1719_v13, %v1572_v11  ;;  %v1574_v15 = vpop.f32.mrb[15].mxu0 }
 0x1af   : > { %v1853_v45 = vadd.f32 %v1825_v40, %v1751_v10  ;;  %v1765_v16 = vmul.f32 %v1723_v36, %v1574_v15 }
 0x1b0   : > { %v1880_v17 = vmax.f32 %v1852_v12, 0.0  ;;  %v1866_v38 = vadd.f32 %v1821_v42, %v1764_v14 }
 0x1b1   : > { %v1881_v18 = vmax.f32 %v1853_v45, 0.0  ;;  %v1867_v19 = vadd.f32 %v1825_v40, %v1765_v16  ;;  %2000 = sbr.rel (!%p2627_p6) target bundleno = 448 (0x1c0), region = 71 }
 0x1b2   : > { %v1894_v29 = vmax.f32 %v1866_v38, 0.0 }
 0x1b3   : > { %v2304_v20 = vpack.c.bf16 %v1881_v18, %v1880_v17  ;;  %v1895_v21 = vmax.f32 %v1867_v19, 0.0 }
 0x1b5   : > { %1986 = vst [vmem:[%s3055_s28 + $0x30] sm:$0xff] %v2304_v20  ;;  %v2311_v39 = vpack.c.bf16 %v1895_v21, %v1894_v29 }
 0x1b7   : > { %1993 = vst [vmem:[%s3055_s28 + $0x68] sm:$0xff] %v2311_v39 }
 0x1bc   : > { %v2031_v26 = vld [vmem:[%s3055_s28 + $0x30] sm:$0xff] }
 0x1bd   : > { %2032 = vst [vmem:[%s2006_s30 + $0x30] sm:$0xff] %v2031_v26 }
 0x1be   : > { %v2045_v34 = vld [vmem:[%s3055_s28 + $0x68] sm:$0xff] }
 0x1bf   : > { %2046 = vst [vmem:[%s2006_s30 + $0x1b8] sm:$0xff] %v2045_v34 }
 0x1c0 PF: > { %s14_s19 = sadd.s32 1, %s2564_s19   ;;  %s3158_s15 = smov %s2552_s16 }
 0x1c1   : > { %p11_p12 = scmp.ge.s32.totalorder %s14_s19, 9   ;;  %s3159_s16 = smov %s2632_s25 }
 0x1c2   : > { %s3160_s17 = smov %s2560_s18  ;;  %s3161_s18 = smov %s3163_s20 }
 0x1c3   :  { %13 = sbr.rel (!%p11_p12) target bundleno = 3 (0x3), region = 134 }

// kernel: _lambda_.8
= control target key start
LH: loop header
LB: loop body
LE: loop exit
PB: predicated region body
PF: predicated region fallthrough
CT: control target
= control target key end

     0   :  { %s3144_s15 = smov 0   ;;  %s3146_s16 = smov 0   ;;  %s3532_s0 = inlined_call_operand.vmem [shape: bf16[128,6656], index: 0, kind: input, shape index: {}]   ;;  %s3533_s1 = inlined_call_operand.vmem [shape: bf16[6656,128], index: 1, kind: input, shape index: {}]   ;;  %s3534_s2 = inlined_call_operand.vmem [shape: f32[1,128], index: 2, kind: input, shape index: {}]   ;;  %s3535_s3 = inlined_call_operand.vmem [shape: f32[1,128], index: 3, kind: input, shape index: {}]   ;;  %s3536_s4 = inlined_call_operand.vmem [shape: bf16[128,128], index: 4, kind: output, shape index: {}]  }
   0x1   :  { %s3148_s17 = smov 0   ;;  %s3150_s18 = smov 0  }
   0x2   :  { %s3152_s19 = smov 0   ;;  %s3154_s20 = smov 0  }
   0x3   :  { %s3156_s21 = smov 0  }
   0x4 LB: > { %s26_s22 = sadd.s32 1, %s3108_s19  ;;  %s33_s23 = sadd.s32 1, %s3112_s20  ;;  %s3116_s21 = sphi %s3156_s21, %s14_s21   ;;  %s3112_s20 = sphi %s3154_s20, %s3542_s20   ;;  %s3108_s19 = sphi %s3152_s19, %s3541_s19   ;;  %s3104_s18 = sphi %s3150_s18, %s3540_s18   ;;  %s3100_s17 = sphi %s3148_s17, %s3539_s17   ;;  %s3096_s16 = sphi %s3146_s16, %s3538_s16   ;;  %s3092_s15 = sphi %s3144_s15, %s3537_s15  }
   0x5   : > { %p27_p0 = scmp.ge.s32.totalorder %s26_s22, 4  ;;  %p49_p1 = scmp.ne.s32.totalorder %s3096_s16, %s3092_s15 }
   0x6   : > { %p50_p2 = scmp.eq.s32.totalorder %s3116_s21, 0  ;;  %s42_s27 = sadd.s32 1, %s3096_s16 }
   0x7   : > { %s3544_s22 = smov (%p27_p0, %s26_s22), 0  ;;  %s3546_s23 = smov (!%p27_p0, %s33_s23), %s3112_s20 }
   0x8   : > { %p51_p3 = por %p50_p2, %p49_p1  ;;  %p35_p4 = scmp.ge.s32.totalorder %s3546_s23, 2 }
   0x9   : > { %s38_s24 = ssub.s32 %s3108_s19, %s3544_s22  ;;  %p2305_p6 = scmp.ge.s32.totalorder %s3116_s21, 8 }
   0xa   : > { %s3548_s23 = smov (%p35_p4, %s3546_s23), 0 }
   0xb   : > { %s37_s25 = ssub.s32 %s3112_s20, %s3548_s23  ;;  %195 = sbr.rel (%p2305_p6) target bundleno = 56 (0x38), region = 24 }
   0xc   : > { %s39_s26 = sor.u32 %s38_s24, %s37_s25 }
   0xd   : > { %p40_p5 = scmp.eq.s32.totalorder %s39_s26, 0 }
   0xf   : > { %s3195_s28 = scalar_select %p40_p5, %s3096_s16, %s42_s27  }
  0x12   : > { %198 = sbr.rel (!%p51_p3) target bundleno = 56 (0x38), region = 28  ;;  %s200_s29 = sand.u32 (%p51_p3), 1, %s3096_s16  }
  0x13   : > { %s204_s30 = smul.u32 (%p51_p3), 13, %s3108_s19 }
  0x14   : > { %s2822_s5 = smul.u32 (%p51_p3), 416, %s200_s29 }
  0x15   : > { %s2823_s6 = smul.u32 (%p51_p3), 416, %s3112_s20 }
  0x16   : > { %s3209_s12 = scalar_lea.vmem (%p51_p3), [#allocation3], %s2822_s5 }
  0x17   : > { %s206_s7 = sadd.s32 (%p51_p3), %s2823_s6, %s204_s30 }
  0x18   : > { %s2308_s8 = sshll.u32 (%p51_p3), %s206_s7, 2 }
  0x19   : > { %s3204_s11 = scalar_lea.vmem %s3532_s0, %s2308_s8 }
  0x1a   : > { %v223_v0 = vld [vmem:[%s3204_s11] sm:$0xff]  ;;  %v225_v1 = vld [vmem:[%s3204_s11 + $0x8] sm:$0xff]  ;;  %v227_v2 = vld [vmem:[%s3204_s11 + $0x10] sm:$0xff] }
  0x1b   : > { %224 = vst [vmem:[%s3209_s12] sm:$0xff] %v223_v0  ;;  %226 = vst [vmem:[%s3209_s12 + $0x8] sm:$0xff] %v225_v1  ;;  %v229_v3 = vld [vmem:[%s3204_s11 + $0x18] sm:$0xff]  ;;  %v231_v4 = vld [vmem:[%s3204_s11 + $0x20] sm:$0xff] }
  0x1c   : > { %228 = vst [vmem:[%s3209_s12 + $0x10] sm:$0xff] %v227_v2  ;;  %v233_v5 = vld [vmem:[%s3204_s11 + $0x28] sm:$0xff]  ;;  %230 = vst [vmem:[%s3209_s12 + $0x18] sm:$0xff] %v229_v3  ;;  %v235_v6 = vld [vmem:[%s3204_s11 + $0xd0] sm:$0xff] }
  0x1d   : > { %232 = vst [vmem:[%s3209_s12 + $0x20] sm:$0xff] %v231_v4  ;;  %234 = vst [vmem:[%s3209_s12 + $0x28] sm:$0xff] %v233_v5  ;;  %v237_v7 = vld [vmem:[%s3204_s11 + $0xd8] sm:$0xff]  ;;  %v239_v8 = vld [vmem:[%s3204_s11 + $0xe0] sm:$0xff] }
  0x1e   : > { %236 = vst [vmem:[%s3209_s12 + $0x34] sm:$0xff] %v235_v6  ;;  %238 = vst [vmem:[%s3209_s12 + $0x3c] sm:$0xff] %v237_v7  ;;  %v241_v9 = vld [vmem:[%s3204_s11 + $0xe8] sm:$0xff]  ;;  %v243_v10 = vld [vmem:[%s3204_s11 + $0xf0] sm:$0xff] }
  0x1f   : > { %240 = vst [vmem:[%s3209_s12 + $0x44] sm:$0xff] %v239_v8  ;;  %v245_v11 = vld [vmem:[%s3204_s11 + $0xf8] sm:$0xff]  ;;  %242 = vst [vmem:[%s3209_s12 + $0x4c] sm:$0xff] %v241_v9  ;;  %v247_v12 = vld [vmem:[%s3204_s11 + $0x1a0] sm:$0xff] }
  0x20   : > { %244 = vst [vmem:[%s3209_s12 + $0x54] sm:$0xff] %v243_v10  ;;  %246 = vst [vmem:[%s3209_s12 + $0x5c] sm:$0xff] %v245_v11  ;;  %v249_v13 = vld [vmem:[%s3204_s11 + $0x1a8] sm:$0xff]  ;;  %v251_v14 = vld [vmem:[%s3204_s11 + $0x1b0] sm:$0xff] }
  0x21   : > { %248 = vst [vmem:[%s3209_s12 + $0x68] sm:$0xff] %v247_v12  ;;  %250 = vst [vmem:[%s3209_s12 + $0x70] sm:$0xff] %v249_v13  ;;  %v253_v15 = vld [vmem:[%s3204_s11 + $0x1b8] sm:$0xff]  ;;  %v255_v16 = vld [vmem:[%s3204_s11 + $0x1c0] sm:$0xff] }
  0x22   : > { %252 = vst [vmem:[%s3209_s12 + $0x78] sm:$0xff] %v251_v14  ;;  %v257_v17 = vld [vmem:[%s3204_s11 + $0x1c8] sm:$0xff]  ;;  %254 = vst [vmem:[%s3209_s12 + $0x80] sm:$0xff] %v253_v15  ;;  %v259_v18 = vld [vmem:[%s3204_s11 + $0x270] sm:$0xff] }
  0x23   : > { %256 = vst [vmem:[%s3209_s12 + $0x88] sm:$0xff] %v255_v16  ;;  %258 = vst [vmem:[%s3209_s12 + $0x90] sm:$0xff] %v257_v17  ;;  %v261_v19 = vld [vmem:[%s3204_s11 + $0x278] sm:$0xff]  ;;  %v263_v20 = vld [vmem:[%s3204_s11 + $0x280] sm:$0xff] }
  0x24   : > { %260 = vst [vmem:[%s3209_s12 + $0x9c] sm:$0xff] %v259_v18  ;;  %262 = vst [vmem:[%s3209_s12 + $0xa4] sm:$0xff] %v261_v19  ;;  %v265_v21 = vld [vmem:[%s3204_s11 + $0x288] sm:$0xff]  ;;  %v267_v22 = vld [vmem:[%s3204_s11 + $0x290] sm:$0xff] }
  0x25   : > { %264 = vst [vmem:[%s3209_s12 + $0xac] sm:$0xff] %v263_v20  ;;  %v269_v23 = vld [vmem:[%s3204_s11 + $0x298] sm:$0xff]  ;;  %266 = vst [vmem:[%s3209_s12 + $0xb4] sm:$0xff] %v265_v21  ;;  %v271_v24 = vld [vmem:[%s3204_s11 + $0x340] sm:$0xff] }
  0x26   : > { %268 = vst [vmem:[%s3209_s12 + $0xbc] sm:$0xff] %v267_v22  ;;  %270 = vst [vmem:[%s3209_s12 + $0xc4] sm:$0xff] %v269_v23  ;;  %v273_v25 = vld [vmem:[%s3204_s11 + $0x348] sm:$0xff]  ;;  %v275_v26 = vld [vmem:[%s3204_s11 + $0x350] sm:$0xff] }
  0x27   : > { %272 = vst [vmem:[%s3209_s12 + $0xd0] sm:$0xff] %v271_v24  ;;  %274 = vst [vmem:[%s3209_s12 + $0xd8] sm:$0xff] %v273_v25  ;;  %v277_v27 = vld [vmem:[%s3204_s11 + $0x358] sm:$0xff]  ;;  %v279_v28 = vld [vmem:[%s3204_s11 + $0x360] sm:$0xff] }
  0x28   : > { %276 = vst [vmem:[%s3209_s12 + $0xe0] sm:$0xff] %v275_v26  ;;  %v281_v29 = vld [vmem:[%s3204_s11 + $0x368] sm:$0xff]  ;;  %278 = vst [vmem:[%s3209_s12 + $0xe8] sm:$0xff] %v277_v27  ;;  %v283_v30 = vld [vmem:[%s3204_s11 + $0x410] sm:$0xff] }
  0x29   : > { %280 = vst [vmem:[%s3209_s12 + $0xf0] sm:$0xff] %v279_v28  ;;  %282 = vst [vmem:[%s3209_s12 + $0xf8] sm:$0xff] %v281_v29  ;;  %v285_v31 = vld [vmem:[%s3204_s11 + $0x418] sm:$0xff]  ;;  %v287_v32 = vld [vmem:[%s3204_s11 + $0x420] sm:$0xff] }
  0x2a   : > { %284 = vst [vmem:[%s3209_s12 + $0x104] sm:$0xff] %v283_v30  ;;  %286 = vst [vmem:[%s3209_s12 + $0x10c] sm:$0xff] %v285_v31  ;;  %v289_v33 = vld [vmem:[%s3204_s11 + $0x428] sm:$0xff]  ;;  %v291_v34 = vld [vmem:[%s3204_s11 + $0x430] sm:$0xff] }
  0x2b   : > { %288 = vst [vmem:[%s3209_s12 + $0x114] sm:$0xff] %v287_v32  ;;  %v293_v35 = vld [vmem:[%s3204_s11 + $0x438] sm:$0xff]  ;;  %290 = vst [vmem:[%s3209_s12 + $0x11c] sm:$0xff] %v289_v33  ;;  %v295_v36 = vld [vmem:[%s3204_s11 + $0x4e0] sm:$0xff] }
  0x2c   : > { %292 = vst [vmem:[%s3209_s12 + $0x124] sm:$0xff] %v291_v34  ;;  %294 = vst [vmem:[%s3209_s12 + $0x12c] sm:$0xff] %v293_v35  ;;  %v297_v37 = vld [vmem:[%s3204_s11 + $0x4e8] sm:$0xff]  ;;  %v299_v38 = vld [vmem:[%s3204_s11 + $0x4f0] sm:$0xff] }
  0x2d   : > { %296 = vst [vmem:[%s3209_s12 + $0x138] sm:$0xff] %v295_v36  ;;  %298 = vst [vmem:[%s3209_s12 + $0x140] sm:$0xff] %v297_v37  ;;  %v301_v39 = vld [vmem:[%s3204_s11 + $0x4f8] sm:$0xff]  ;;  %v303_v40 = vld [vmem:[%s3204_s11 + $0x500] sm:$0xff] }
  0x2e   : > { %300 = vst [vmem:[%s3209_s12 + $0x148] sm:$0xff] %v299_v38  ;;  %v305_v41 = vld [vmem:[%s3204_s11 + $0x508] sm:$0xff]  ;;  %302 = vst [vmem:[%s3209_s12 + $0x150] sm:$0xff] %v301_v39  ;;  %v307_v42 = vld [vmem:[%s3204_s11 + $0x5b0] sm:$0xff] }
  0x2f   : > { %304 = vst [vmem:[%s3209_s12 + $0x158] sm:$0xff] %v303_v40  ;;  %306 = vst [vmem:[%s3209_s12 + $0x160] sm:$0xff] %v305_v41  ;;  %v309_v43 = vld [vmem:[%s3204_s11 + $0x5b8] sm:$0xff]  ;;  %v311_v44 = vld [vmem:[%s3204_s11 + $0x5c0] sm:$0xff] }
  0x30   : > { %308 = vst [vmem:[%s3209_s12 + $0x16c] sm:$0xff] %v307_v42  ;;  %310 = vst [vmem:[%s3209_s12 + $0x174] sm:$0xff] %v309_v43  ;;  %v313_v45 = vld [vmem:[%s3204_s11 + $0x5c8] sm:$0xff]  ;;  %v315_v46 = vld [vmem:[%s3204_s11 + $0x5d0] sm:$0xff] }
  0x31   : > { %312 = vst [vmem:[%s3209_s12 + $0x17c] sm:$0xff] %v311_v44  ;;  %v317_v47 = vld [vmem:[%s3204_s11 + $0x5d8] sm:$0xff]  ;;  %314 = vst [vmem:[%s3209_s12 + $0x184] sm:$0xff] %v313_v45  ;;  %v2309_v48 = vld [vmem:[%s3204_s11 + $0x30] sm:$0xf] }
  0x32   : > { %316 = vst [vmem:[%s3209_s12 + $0x18c] sm:$0xff] %v315_v46  ;;  %318 = vst [vmem:[%s3209_s12 + $0x194] sm:$0xff] %v317_v47  ;;  %v2311_v49 = vld [vmem:[%s3204_s11 + $0x100] sm:$0xf]  ;;  %v2313_v50 = vld [vmem:[%s3204_s11 + $0x1d0] sm:$0xf] }
  0x33   : > { %2310 = vst [vmem:[%s3209_s12 + $0x30] sm:$0xf] %v2309_v48  ;;  %2312 = vst [vmem:[%s3209_s12 + $0x64] sm:$0xf] %v2311_v49  ;;  %v2315_v51 = vld [vmem:[%s3204_s11 + $0x2a0] sm:$0xf] }
  0x34   : > { %2314 = vst [vmem:[%s3209_s12 + $0x98] sm:$0xf] %v2313_v50  ;;  %v2317_v52 = vld [vmem:[%s3204_s11 + $0x370] sm:$0xf]  ;;  %v2319_v53 = vld [vmem:[%s3204_s11 + $0x440] sm:$0xf] }
  0x35   : > { %2316 = vst [vmem:[%s3209_s12 + $0xcc] sm:$0xf] %v2315_v51  ;;  %2318 = vst [vmem:[%s3209_s12 + $0x100] sm:$0xf] %v2317_v52  ;;  %v2321_v54 = vld [vmem:[%s3204_s11 + $0x510] sm:$0xf] }
  0x36   : > { %2320 = vst [vmem:[%s3209_s12 + $0x134] sm:$0xf] %v2319_v53  ;;  %v2323_v55 = vld [vmem:[%s3204_s11 + $0x5e0] sm:$0xf]  ;;  %2322 = vst [vmem:[%s3209_s12 + $0x168] sm:$0xf] %v2321_v54 }
  0x37   : > { %2324 = vst [vmem:[%s3209_s12 + $0x19c] sm:$0xf] %v2323_v55 }
  0x38 PF: > { %p2325_p7 = scmp.ge.s32.totalorder %s3116_s21, 1  ;;  %p358_p8 = scmp.lt.s32.totalorder %s3116_s21, 9 }
  0x3a   : > { %p359_p9 = pnand %p2325_p7, %p358_p8 }
  0x3b   : > { %s365_s13 = sand.u32 (!%p359_p9), 1, %s3092_s15   ;;  %s409_s14 = smul.u32 (!%p359_p9), 208, %s3100_s17 }
  0x3c   : > { %362 = sbr.rel (%p359_p9) target bundleno = 445 (0x1bd), region = 58  ;;  %s2327_s25 = sshll.u32 (!%p359_p9), %s3104_s18, 3 }
  0x3d   : > { %s2824_s24 = smul.u32 (!%p359_p9), 416, %s365_s13  ;;  %p410_p10 = scmp.lt.s32.totalorder (!%p359_p9), %s409_s14, 831 }
  0x3e   : > { %p425_p11 = scmp.lt.s32.totalorder (!%p359_p9), %s2327_s25, 15  ;;  %p2329_p12 = scmp.ne.s32.totalorder (!%p359_p9), %s3100_s17, 0 }
  0x3f   : > { %s3335_s15 = scalar_lea.vmem (!%p359_p9), [#allocation3], %s2824_s24 }
  0x43   : > { %s3550_s14 = smov (!%p410_p10, %s409_s14), 831  ;;  %s3552_s25 = smov (!%p425_p11, %s2327_s25), 15 }
  0x44   : > { %s2326_s26 = sshll.u32 %s3550_s14, 2  ;;  %s2328_s5 = sshll.u32 %s3552_s25, 2  ;;  %v3118_v56 = vmov (!%p2329_p12), 0.0  }
  0x45   : > { %s3328_s30 = scalar_lea.vmem %s3533_s1, %s2326_s26  ;;  %s3333_s8 = scalar_lea.vmem %s3536_s4, %s2328_s5  ;;  %438 = vst [vmem:[#allocation2] sm:$0xff] (!%p2329_p12), %v3118_v56  ;;  %439 = vst [vmem:[#allocation2 + $0x8] sm:$0xff] (!%p2329_p12), %v3118_v56 }
  0x46   : > { %437 = sbr.rel (%p2329_p12) target bundleno = 77 (0x4d), region = 66  ;;  %440 = vst [vmem:[#allocation2 + $0x10] sm:$0xff] (!%p2329_p12), %v3118_v56  ;;  %441 = vst [vmem:[#allocation2 + $0x18] sm:$0xff] (!%p2329_p12), %v3118_v56 }
  0x47   : > { %442 = vst [vmem:[#allocation2 + $0x20] sm:$0xff] (!%p2329_p12), %v3118_v56  ;;  %443 = vst [vmem:[#allocation2 + $0x28] sm:$0xff] (!%p2329_p12), %v3118_v56 }
  0x48   : > { %444 = vst [vmem:[#allocation2 + $0x30] sm:$0xff] (!%p2329_p12), %v3118_v56  ;;  %445 = vst [vmem:[#allocation2 + $0x38] sm:$0xff] (!%p2329_p12), %v3118_v56 }
  0x4d PF: > { %v2882_v57 = vld [vmem:[%s3328_s30 + $0x40] sm:$0xff]   ;;  %v2886_v61 = vld [vmem:[%s3328_s30 + $0x48] sm:$0xff]   ;;  %v2890_v1 = vld [vmem:[%s3328_s30 + $0x50] sm:$0xff]   ;;  %p2486_p13 = scmp.ne.s32.totalorder %s3100_s17, 3 }
  0x4e   : > { %v2883_v58 = vld [vmem:[%s3328_s30 + $0xc0] sm:$0xff]   ;;  %2530 = vmatprep.subr.bf16.mxu0 %v2882_v57  ;;  %v2887_v62 = vld [vmem:[%s3328_s30 + $0xc8] sm:$0xff]   ;;  %v2891_v2 = vld [vmem:[%s3328_s30 + $0xd0] sm:$0xff]  }
  0x4f   : > { %v2884_v59 = vld [vmem:[%s3328_s30] sm:$0xff]   ;;  %2570 = vmatprep.subr.bf16.mxu1 %v2883_v58  ;;  %v2888_v63 = vld [vmem:[%s3328_s30 + $0x8] sm:$0xff]   ;;  %v2892_v3 = vld [vmem:[%s3328_s30 + $0x10] sm:$0xff]  }
  0x50   : > { %v2885_v60 = vld [vmem:[%s3328_s30 + $0x80] sm:$0xff]   ;;  %2531 = vmatpush3.bf16.msra.mxu0 %v2884_v59  ;;  %v2889_v0 = vld [vmem:[%s3328_s30 + $0x88] sm:$0xff]   ;;  %v2893_v4 = vld [vmem:[%s3328_s30 + $0x90] sm:$0xff]  }
  0x51   : > { %2571 = vmatpush3.bf16.msra.mxu1 %v2885_v60  ;;  %2532 = vmatprep.subr.bf16.mxu0 %v2886_v61  ;;  %v2894_v5 = vld [vmem:[%s3328_s30 + $0x58] sm:$0xff]   ;;  %v2898_v9 = vld [vmem:[%s3328_s30 + $0x60] sm:$0xff]   ;;  %v2902_v13 = vld [vmem:[%s3328_s30 + $0x68] sm:$0xff]  }
  0x52   : > { %2572 = vmatprep.subr.bf16.mxu1 %v2887_v62  ;;  %v2895_v6 = vld [vmem:[%s3328_s30 + $0xd8] sm:$0xff]   ;;  %v2899_v10 = vld [vmem:[%s3328_s30 + $0xe0] sm:$0xff]   ;;  %v2903_v14 = vld [vmem:[%s3328_s30 + $0xe8] sm:$0xff]  }
  0x53   : > { %v2896_v7 = vld [vmem:[%s3328_s30 + $0x18] sm:$0xff]   ;;  %v2900_v11 = vld [vmem:[%s3328_s30 + $0x20] sm:$0xff]   ;;  %v2904_v15 = vld [vmem:[%s3328_s30 + $0x28] sm:$0xff]  }
  0x54   : > { %2533 = vmatpush3.bf16.msra.mxu0 %v2888_v63  ;;  %v2897_v8 = vld [vmem:[%s3328_s30 + $0x98] sm:$0xff]   ;;  %v2901_v12 = vld [vmem:[%s3328_s30 + $0xa0] sm:$0xff]   ;;  %v2905_v16 = vld [vmem:[%s3328_s30 + $0xa8] sm:$0xff]  }
  0x55   : > { %2573 = vmatpush3.bf16.msra.mxu1 %v2889_v0  ;;  %2534 = vmatprep.subr.bf16.mxu0 %v2890_v1  ;;  %v2906_v17 = vld [vmem:[%s3328_s30 + $0x70] sm:$0xff]   ;;  %v2910_v21 = vld [vmem:[%s3328_s30 + $0x78] sm:$0xff]   ;;  %v2919_v28 = vld [vmem:[%s3335_s15 + $0xc] ss:$52 sps:$4 sm:$0xff]  }
  0x56   : > { %2574 = vmatprep.subr.bf16.mxu1 %v2891_v2  ;;  %v2907_v18 = vld [vmem:[%s3328_s30 + $0xf0] sm:$0xff]   ;;  %v2911_v22 = vld [vmem:[%s3328_s30 + $0xf8] sm:$0xff]   ;;  %v2920_v29 = vld [vmem:[%s3328_s30 + $0x140] sm:$0xff]   ;;  %1703 = vmatprep.mubr.bf16.mxu1 %v2919_v28 }
  0x57   : > { %v2908_v19 = vld [vmem:[%s3328_s30 + $0x30] sm:$0xff]   ;;  %v2912_v23 = vld [vmem:[%s3328_s30 + $0x38] sm:$0xff]   ;;  %v2921_v30 = vld [vmem:[%s3328_s30 + $0x1c0] sm:$0xff]  }
  0x58   : > { %2535 = vmatpush3.bf16.msra.mxu0 %v2892_v3  ;;  %v2909_v20 = vld [vmem:[%s3328_s30 + $0xb0] sm:$0xff]   ;;  %v2913_v24 = vld [vmem:[%s3328_s30 + $0xb8] sm:$0xff]   ;;  %v2922_v31 = vld [vmem:[%s3328_s30 + $0x100] sm:$0xff]  }
  0x59   : > { %2575 = vmatpush3.bf16.msra.mxu1 %v2893_v4  ;;  %2536 = vmatprep.subr.bf16.mxu0 %v2894_v5  ;;  %v2914_v25 = vld [vmem:[%s3335_s15] ss:$52 sps:$4 sm:$0xff]   ;;  %v2916_v26 = vld [vmem:[%s3335_s15 + $0x4] ss:$52 sps:$4 sm:$0xff]   ;;  %v2917_v27 = vld [vmem:[%s3335_s15 + $0x8] ss:$52 sps:$4 sm:$0xff]  }
  0x5a   : > { %2576 = vmatprep.subr.bf16.mxu1 %v2895_v6  ;;  %1638 = vmatprep.mubr.bf16.mxu0 %v2916_v26  ;;  %v2923_v32 = vld [vmem:[%s3328_s30 + $0x180] sm:$0xff]   ;;  %v2924_v33 = vld [vmem:[%s3328_s30 + $0x148] sm:$0xff]   ;;  %v2934_v41 = vld [vmem:[%s3328_s30 + $0x150] sm:$0xff]  }
  0x5b   : > { %v2925_v34 = vld [vmem:[%s3328_s30 + $0x1c8] sm:$0xff]   ;;  %v2933_v40 = vld [vmem:[%s3335_s15 + $0x70] ss:$52 sps:$4 sm:$0xff]   ;;  %v2938_v45 = vld [vmem:[%s3328_s30 + $0x158] sm:$0xff]  }
  0x5c   : > { %2537 = vmatpush3.bf16.msra.mxu0 %v2896_v7  ;;  %v2926_v35 = vld [vmem:[%s3328_s30 + $0x108] sm:$0xff]   ;;  %v2935_v42 = vld [vmem:[%s3328_s30 + $0x1d0] sm:$0xff]   ;;  %v2939_v46 = vld [vmem:[%s3328_s30 + $0x1d8] sm:$0xff]  }
  0x5d   : > { %2577 = vmatpush3.bf16.msra.mxu1 %v2897_v8  ;;  %2538 = vmatprep.subr.bf16.mxu0 %v2898_v9  ;;  %v2927_v36 = vld [vmem:[%s3328_s30 + $0x188] sm:$0xff]   ;;  %v2936_v43 = vld [vmem:[%s3328_s30 + $0x110] sm:$0xff]   ;;  %v2940_v47 = vld [vmem:[%s3328_s30 + $0x118] sm:$0xff]  }
  0x5e   : > { %2578 = vmatprep.subr.bf16.mxu1 %v2899_v10  ;;  %v2928_v37 = vld [vmem:[%s3335_s15 + $0x6c] ss:$52 sps:$4 sm:$0xff]   ;;  %v2930_v38 = vld [vmem:[%s3335_s15 + $0x74] ss:$52 sps:$4 sm:$0xff]   ;;  %v2941_v48 = vld [vmem:[%s3328_s30 + $0x198] sm:$0xff]  }
  0x5f   : > { %v2932_v39 = vld [vmem:[%s3335_s15 + $0x68] ss:$52 sps:$4 sm:$0xff]   ;;  %v2937_v44 = vld [vmem:[%s3328_s30 + $0x190] sm:$0xff]   ;;  %v2947_v52 = vld [vmem:[%s3335_s15 + $0xd8] ss:$52 sps:$4 sm:$0xff]  }
  0x60   : > { %2539 = vmatpush3.bf16.msra.mxu0 %v2900_v11  ;;  %v2942_v49 = vld [vmem:[%s3335_s15 + $0xd4] ss:$52 sps:$4 sm:$0xff]   ;;  %v2944_v50 = vld [vmem:[%s3335_s15 + $0xdc] ss:$52 sps:$4 sm:$0xff]   ;;  %v2948_v53 = vld [vmem:[%s3328_s30 + $0x160] sm:$0xff]  }
  0x61   : > { %2579 = vmatpush3.bf16.msra.mxu1 %v2901_v12  ;;  %2540 = vmatprep.subr.bf16.mxu0 %v2902_v13  ;;  %v2946_v51 = vld [vmem:[%s3335_s15 + $0xd0] ss:$52 sps:$4 sm:$0xff]   ;;  %v2952_v57 = vld [vmem:[%s3328_s30 + $0x168] sm:$0xff]   ;;  %v2961_v0 = vld [vmem:[%s3335_s15 + $0x140] ss:$52 sps:$4 sm:$0xff]  }
  0x62   : > { %2580 = vmatprep.subr.bf16.mxu1 %v2903_v14  ;;  %v2949_v54 = vld [vmem:[%s3328_s30 + $0x1e0] sm:$0xff]   ;;  %v2953_v58 = vld [vmem:[%s3328_s30 + $0x1e8] sm:$0xff]   ;;  %v2956_v61 = vld [vmem:[%s3335_s15 + $0x13c] ss:$52 sps:$4 sm:$0xff]  }
  0x63   : > { %v2950_v55 = vld [vmem:[%s3328_s30 + $0x120] sm:$0xff]   ;;  %v2954_v59 = vld [vmem:[%s3328_s30 + $0x128] sm:$0xff]   ;;  %v2962_v1 = vld [vmem:[%s3328_s30 + $0x170] sm:$0xff]  }
  0x64   : > { %2541 = vmatpush3.bf16.msra.mxu0 %v2904_v15  ;;  %v2951_v56 = vld [vmem:[%s3328_s30 + $0x1a0] sm:$0xff]   ;;  %v2955_v60 = vld [vmem:[%s3328_s30 + $0x1a8] sm:$0xff]   ;;  %v2963_v2 = vld [vmem:[%s3328_s30 + $0x1f0] sm:$0xff]  }
  0x65   : > { %2581 = vmatpush3.bf16.msra.mxu1 %v2905_v16  ;;  %2542 = vmatprep.subr.bf16.mxu0 %v2906_v17  ;;  %v2958_v62 = vld [vmem:[%s3335_s15 + $0x144] ss:$52 sps:$4 sm:$0xff]   ;;  %v2964_v3 = vld [vmem:[%s3328_s30 + $0x130] sm:$0xff]   ;;  %v2980_v17 = vld [vmem:[%s3328_s30 + $0x248] sm:$0xff]  }
  0x66   : > { %2582 = vmatprep.subr.bf16.mxu1 %v2907_v18  ;;  %v2960_v63 = vld [vmem:[%s3335_s15 + $0x138] ss:$52 sps:$4 sm:$0xff]   ;;  %v2965_v4 = vld [vmem:[%s3328_s30 + $0x1b0] sm:$0xff]   ;;  %v2976_v13 = vld [vmem:[%s3328_s30 + $0x240] sm:$0xff]  }
  0x67   : > { %v2966_v5 = vld [vmem:[%s3328_s30 + $0x178] sm:$0xff]   ;;  %v2970_v9 = vld [vmem:[%s3335_s15 + $0x10] ss:$52 sps:$4 sm:$0xff]   ;;  %v2972_v10 = vld [vmem:[%s3335_s15 + $0x14] ss:$52 sps:$4 sm:$0xff]  }
  0x68   : > { %2543 = vmatpush3.bf16.msra.mxu0 %v2908_v19  ;;  %v2967_v6 = vld [vmem:[%s3328_s30 + $0x1f8] sm:$0xff]   ;;  %v2977_v14 = vld [vmem:[%s3328_s30 + $0x2c0] sm:$0xff]   ;;  %v2981_v18 = vld [vmem:[%s3328_s30 + $0x2c8] sm:$0xff]  }
  0x69   : > { %2583 = vmatpush3.bf16.msra.mxu1 %v2909_v20  ;;  %2544 = vmatprep.subr.bf16.mxu0 %v2910_v21  ;;  %v2968_v7 = vld [vmem:[%s3328_s30 + $0x138] sm:$0xff]   ;;  %v2978_v15 = vld [vmem:[%s3328_s30 + $0x200] sm:$0xff]   ;;  %v2982_v19 = vld [vmem:[%s3328_s30 + $0x208] sm:$0xff]  }
  0x6a   : > { %2584 = vmatprep.subr.bf16.mxu1 %v2911_v22  ;;  %v2969_v8 = vld [vmem:[%s3328_s30 + $0x1b8] sm:$0xff]   ;;  %v2979_v16 = vld [vmem:[%s3328_s30 + $0x280] sm:$0xff]   ;;  %v2983_v20 = vld [vmem:[%s3328_s30 + $0x288] sm:$0xff]  }
  0x6b   : > { %v2973_v11 = vld [vmem:[%s3335_s15 + $0x18] ss:$52 sps:$4 sm:$0xff]   ;;  %v2975_v12 = vld [vmem:[%s3335_s15 + $0x1c] ss:$52 sps:$4 sm:$0xff]  }
  0x6c   : > { %2545 = vmatpush3.bf16.msra.mxu0 %v2912_v23  ;;  %v2984_v21 = vld [vmem:[%s3335_s15 + $0x7c] ss:$52 sps:$4 sm:$0xff]   ;;  %v2986_v22 = vld [vmem:[%s3335_s15 + $0x84] ss:$52 sps:$4 sm:$0xff]  }
  0x6d   : > { %2585 = vmatpush3.bf16.msra.mxu1 %v2913_v24  ;;  %2610 = vmatprep.subr.bf16.mxu0 %v2920_v29  ;;  %v2988_v23 = vld [vmem:[%s3335_s15 + $0x78] ss:$52 sps:$4 sm:$0xff]   ;;  %v2989_v24 = vld [vmem:[%s3335_s15 + $0x80] ss:$52 sps:$4 sm:$0xff]  }
  0x6e   : > { %2650 = vmatprep.subr.bf16.mxu1 %v2921_v30  ;;  %v2991_v26 = vld [vmem:[%s3328_s30 + $0x2d0] sm:$0xff]   ;;  %v2994_v29 = vld [vmem:[%s3328_s30 + $0x258] sm:$0xff]  }
  0x6f   : > { %1639 = vmatmul.mubr.bf16.vlgmr.msra.gmra.mrb[0].mxu0 %v2914_v25  ;;  %v2990_v25 = vld [vmem:[%s3328_s30 + $0x250] sm:$0xff]   ;;  %v2995_v30 = vld [vmem:[%s3328_s30 + $0x2d8] sm:$0xff]  }
  0x70   : > { %1704 = vmatmul.mubr.bf16.vlgmr.msra.gmra.mrb[0].mxu1 %v2917_v27  ;;  %2611 = vmatpush3.bf16.msra.mxu0 %v2922_v31  ;;  %v2992_v27 = vld [vmem:[%s3328_s30 + $0x210] sm:$0xff]   ;;  %v2996_v31 = vld [vmem:[%s3328_s30 + $0x218] sm:$0xff]  }
  0x71   : > { %2651 = vmatpush3.bf16.msra.mxu1 %v2923_v32  ;;  %2612 = vmatprep.subr.bf16.mxu0 %v2924_v33  ;;  %v2993_v28 = vld [vmem:[%s3328_s30 + $0x290] sm:$0xff]   ;;  %v2997_v32 = vld [vmem:[%s3328_s30 + $0x298] sm:$0xff]  }
  0x72   : > { %2652 = vmatprep.subr.bf16.mxu1 %v2925_v34  ;;  %1646 = vmatprep.mubr.bf16.mxu0 %v2928_v37  ;;  %v2998_v33 = vld [vmem:[%s3335_s15 + $0xe4] ss:$52 sps:$4 sm:$0xff]   ;;  %v3000_v34 = vld [vmem:[%s3335_s15 + $0xec] ss:$52 sps:$4 sm:$0xff]  }
  0x73   : > { %1711 = vmatprep.mubr.bf16.mxu1 %v2930_v38  ;;  %v3004_v37 = vld [vmem:[%s3328_s30 + $0x260] sm:$0xff]  }
  0x74   : > { %2613 = vmatpush3.bf16.msra.mxu0 %v2926_v35  ;;  %v3002_v35 = vld [vmem:[%s3335_s15 + $0xe0] ss:$52 sps:$4 sm:$0xff]  }
  0x75   : > { %2653 = vmatpush3.bf16.msra.mxu1 %v2927_v36  ;;  %2614 = vmatprep.subr.bf16.mxu0 %v2934_v41  ;;  %v3003_v36 = vld [vmem:[%s3335_s15 + $0xe8] ss:$52 sps:$4 sm:$0xff]   ;;  %v3005_v38 = vld [vmem:[%s3328_s30 + $0x2e0] sm:$0xff]  }
  0x76   : > { %2654 = vmatprep.subr.bf16.mxu1 %v2935_v42  ;;  %v3008_v41 = vld [vmem:[%s3328_s30 + $0x268] sm:$0xff]  }
  0x77   : > { %1647 = vmatmul.mubr.bf16.gmra.mrb[4].mxu0 %v2932_v39  ;;  %v3006_v39 = vld [vmem:[%s3328_s30 + $0x220] sm:$0xff]   ;;  %v3009_v42 = vld [vmem:[%s3328_s30 + $0x2e8] sm:$0xff]  }
  0x78   : > { %1712 = vmatmul.mubr.bf16.gmra.mrb[4].mxu1 %v2933_v40  ;;  %2615 = vmatpush3.bf16.msra.mxu0 %v2936_v43  ;;  %v3007_v40 = vld [vmem:[%s3328_s30 + $0x2a0] sm:$0xff]   ;;  %v3010_v43 = vld [vmem:[%s3328_s30 + $0x228] sm:$0xff]  }
  0x79   : > { %2655 = vmatpush3.bf16.msra.mxu1 %v2937_v44  ;;  %2616 = vmatprep.subr.bf16.mxu0 %v2938_v45  ;;  %v3011_v44 = vld [vmem:[%s3328_s30 + $0x2a8] sm:$0xff]  }
  0x7a   : > { %2656 = vmatprep.subr.bf16.mxu1 %v2939_v46  ;;  %1654 = vmatprep.mubr.bf16.mxu0 %v2942_v49  ;;  %v3012_v45 = vld [vmem:[%s3335_s15 + $0x14c] ss:$52 sps:$4 sm:$0xff]   ;;  %v3014_v46 = vld [vmem:[%s3335_s15 + $0x154] ss:$52 sps:$4 sm:$0xff]  }
  0x7b   : > { %1719 = vmatprep.mubr.bf16.mxu1 %v2944_v50  ;;  %v3018_v49 = vld [vmem:[%s3328_s30 + $0x270] sm:$0xff]  }
  0x7c   : > { %2617 = vmatpush3.bf16.msra.mxu0 %v2940_v47  ;;  %v3016_v47 = vld [vmem:[%s3335_s15 + $0x148] ss:$52 sps:$4 sm:$0xff]   ;;  %v3019_v50 = vld [vmem:[%s3328_s30 + $0x2f0] sm:$0xff]  }
  0x7d   : > { %2657 = vmatpush3.bf16.msra.mxu1 %v2941_v48  ;;  %2618 = vmatprep.subr.bf16.mxu0 %v2948_v53  ;;  %v3017_v48 = vld [vmem:[%s3335_s15 + $0x150] ss:$52 sps:$4 sm:$0xff]   ;;  %v3022_v53 = vld [vmem:[%s3328_s30 + $0x278] sm:$0xff]  }
  0x7e   : > { %2658 = vmatprep.subr.bf16.mxu1 %v2949_v54  ;;  %v3023_v54 = vld [vmem:[%s3328_s30 + $0x2f8] sm:$0xff]  }
  0x7f   : > { %1655 = vmatmul.mubr.bf16.gmra.mrb[8].mxu0 %v2946_v51  ;;  %v3020_v51 = vld [vmem:[%s3328_s30 + $0x230] sm:$0xff]  }
  0x80   : > { %1720 = vmatmul.mubr.bf16.gmra.mrb[8].mxu1 %v2947_v52  ;;  %2619 = vmatpush3.bf16.msra.mxu0 %v2950_v55  ;;  %v3021_v52 = vld [vmem:[%s3328_s30 + $0x2b0] sm:$0xff]   ;;  %v3024_v55 = vld [vmem:[%s3328_s30 + $0x238] sm:$0xff]  }
  0x81   : > { %2659 = vmatpush3.bf16.msra.mxu1 %v2951_v56  ;;  %2620 = vmatprep.subr.bf16.mxu0 %v2952_v57  ;;  %v3025_v56 = vld [vmem:[%s3328_s30 + $0x2b8] sm:$0xff]   ;;  %v3026_v57 = vld [vmem:[%s3335_s15 + $0x20] ss:$52 sps:$4 sm:$0xff]  }
  0x82   : > { %2660 = vmatprep.subr.bf16.mxu1 %v2953_v58  ;;  %1662 = vmatprep.mubr.bf16.mxu0 %v2956_v61  ;;  %v3028_v58 = vld [vmem:[%s3335_s15 + $0x24] ss:$52 sps:$4 sm:$0xff]  }
  0x83   : > { %1727 = vmatprep.mubr.bf16.mxu1 %v2958_v62  ;;  %v3032_v61 = vld [vmem:[%s3328_s30 + $0x300] sm:$0xff]   ;;  %v3033_v62 = vld [vmem:[%s3328_s30 + $0x308] sm:$0xff]  }
  0x84   : > { %2621 = vmatpush3.bf16.msra.mxu0 %v2954_v59  ;;  %v3029_v59 = vld [vmem:[%s3335_s15 + $0x28] ss:$52 sps:$4 sm:$0xff]  }
  0x85   : > { %2661 = vmatpush3.bf16.msra.mxu1 %v2955_v60  ;;  %2622 = vmatprep.subr.bf16.mxu0 %v2962_v1  ;;  %v3031_v60 = vld [vmem:[%s3335_s15 + $0x2c] ss:$52 sps:$4 sm:$0xff]   ;;  %v3038_v1 = vld [vmem:[%s3335_s15 + $0x88] ss:$52 sps:$4 sm:$0xff]  }
  0x86   : > { %2662 = vmatprep.subr.bf16.mxu1 %v2963_v2  ;;  %v3040_v2 = vld [vmem:[%s3328_s30 + $0x310] sm:$0xff]  }
  0x87   : > { %1663 = vmatmul.mubr.bf16.gmra.mrb[12].mxu0 %v2960_v63  ;;  %v3034_v63 = vld [vmem:[%s3335_s15 + $0x8c] ss:$52 sps:$4 sm:$0xff]  }
  0x88   : > { %1728 = vmatmul.mubr.bf16.gmra.mrb[12].mxu1 %v2961_v0  ;;  %2623 = vmatpush3.bf16.msra.mxu0 %v2964_v3  ;;  %v3036_v0 = vld [vmem:[%s3335_s15 + $0x94] ss:$52 sps:$4 sm:$0xff]   ;;  %v3039_v3 = vld [vmem:[%s3335_s15 + $0x90] ss:$52 sps:$4 sm:$0xff]  }
  0x89   : > { %2663 = vmatpush3.bf16.msra.mxu1 %v2965_v4  ;;  %2624 = vmatprep.subr.bf16.mxu0 %v2966_v5  ;;  %v3042_v4 = vld [vmem:[%s3335_s15 + $0xf4] ss:$52 sps:$4 sm:$0xff]   ;;  %v3041_v5 = vld [vmem:[%s3328_s30 + $0x318] sm:$0xff]  }
  0x8a   : > { %2664 = vmatprep.subr.bf16.mxu1 %v2967_v6  ;;  %1768 = vmatprep.mubr.bf16.mxu0 %v2972_v10  ;;  %v3044_v6 = vld [vmem:[%s3335_s15 + $0xfc] ss:$52 sps:$4 sm:$0xff]  }
  0x8b   : > { %1833 = vmatprep.mubr.bf16.mxu1 %v2975_v12  ;;  %v3050_v10 = vld [vmem:[%s3335_s15 + $0x15c] ss:$52 sps:$4 sm:$0xff]   ;;  %v3049_v12 = vld [vmem:[%s3328_s30 + $0x328] sm:$0xff]  }
  0x8c   : > { %2625 = vmatpush3.bf16.msra.mxu0 %v2968_v7  ;;  %v3048_v7 = vld [vmem:[%s3328_s30 + $0x320] sm:$0xff]  }
  0x8d   : > { %2665 = vmatpush3.bf16.msra.mxu1 %v2969_v8  ;;  %2690 = vmatprep.subr.bf16.mxu0 %v2976_v13  ;;  %v3046_v8 = vld [vmem:[%s3335_s15 + $0xf0] ss:$52 sps:$4 sm:$0xff]  }
  0x8e   : > { %2730 = vmatprep.subr.bf16.mxu1 %v2977_v14  ;;  %v3056_v13 = vld [vmem:[%s3328_s30 + $0x330] sm:$0xff]   ;;  %v3054_v14 = vld [vmem:[%s3335_s15 + $0x158] ss:$52 sps:$4 sm:$0xff]  }
  0x8f   : > { %1769 = vmatmul.mubr.bf16.vlgmr.msra.gmra.mrb[16].mxu0 %v2970_v9  ;;  %v3047_v9 = vld [vmem:[%s3335_s15 + $0xf8] ss:$52 sps:$4 sm:$0xff]  }
  0x90   : > { %1834 = vmatmul.mubr.bf16.vlgmr.msra.gmra.mrb[16].mxu1 %v2973_v11  ;;  %2691 = vmatpush3.bf16.msra.mxu0 %v2978_v15  ;;  %v3052_v11 = vld [vmem:[%s3335_s15 + $0x164] ss:$52 sps:$4 sm:$0xff]   ;;  %v3055_v15 = vld [vmem:[%s3335_s15 + $0x160] ss:$52 sps:$4 sm:$0xff]  }
  0x91   : > { %2731 = vmatpush3.bf16.msra.mxu1 %v2979_v16  ;;  %2692 = vmatprep.subr.bf16.mxu0 %v2980_v17  ;;  %v3058_v16 = vld [vmem:[%s3335_s15 + $0x30] ss:$52 sps:$4 sm:$0xff]   ;;  %v3059_v17 = vld [vmem:[%s3335_s15 + $0x100] ss:$52 sps:$4 sm:$0xff]  }
  0x92   : > { %2732 = vmatprep.subr.bf16.mxu1 %v2981_v18  ;;  %1776 = vmatprep.mubr.bf16.mxu0 %v2984_v21  ;;  %v3057_v18 = vld [vmem:[%s3328_s30 + $0x338] sm:$0xff]  }
  0x93   : > { %1841 = vmatprep.mubr.bf16.mxu1 %v2986_v22 }
  0x94   : > { %2693 = vmatpush3.bf16.msra.mxu0 %v2982_v19  ;;  %v3060_v19 = vld [vmem:[%s3335_s15 + $0x98] ss:$52 sps:$4 sm:$0xff]  }
  0x95   : > { %2733 = vmatpush3.bf16.msra.mxu1 %v2983_v20  ;;  %2694 = vmatprep.subr.bf16.mxu0 %v2990_v25  ;;  %v3061_v20 = vld [vmem:[%s3335_s15 + $0x168] ss:$52 sps:$4 sm:$0xff]  }
  0x96   : > { %2734 = vmatprep.subr.bf16.mxu1 %v2991_v26 }
  0x97   : > { %1777 = vmatmul.mubr.bf16.gmra.mrb[20].mxu0 %v2988_v23 }
  0x98   : > { %1842 = vmatmul.mubr.bf16.gmra.mrb[20].mxu1 %v2989_v24  ;;  %2695 = vmatpush3.bf16.msra.mxu0 %v2992_v27 }
  0x99   : > { %2735 = vmatpush3.bf16.msra.mxu1 %v2993_v28  ;;  %2696 = vmatprep.subr.bf16.mxu0 %v2994_v29 }
  0x9a   : > { %2736 = vmatprep.subr.bf16.mxu1 %v2995_v30  ;;  %1784 = vmatprep.mubr.bf16.mxu0 %v2998_v33 }
  0x9b   : > { %1849 = vmatprep.mubr.bf16.mxu1 %v3000_v34 }
  0x9c   : > { %2697 = vmatpush3.bf16.msra.mxu0 %v2996_v31 }
  0x9d   : > { %2737 = vmatpush3.bf16.msra.mxu1 %v2997_v32  ;;  %2698 = vmatprep.subr.bf16.mxu0 %v3004_v37 }
  0x9e   : > { %2738 = vmatprep.subr.bf16.mxu1 %v3005_v38 }
  0x9f   : > { %1785 = vmatmul.mubr.bf16.gmra.mrb[24].mxu0 %v3002_v35 }
  0xa0   : > { %1850 = vmatmul.mubr.bf16.gmra.mrb[24].mxu1 %v3003_v36  ;;  %2699 = vmatpush3.bf16.msra.mxu0 %v3006_v39 }
  0xa1   : > { %2739 = vmatpush3.bf16.msra.mxu1 %v3007_v40  ;;  %2700 = vmatprep.subr.bf16.mxu0 %v3008_v41 }
  0xa2   : > { %2740 = vmatprep.subr.bf16.mxu1 %v3009_v42  ;;  %1792 = vmatprep.mubr.bf16.mxu0 %v3012_v45 }
  0xa3   : > { %1857 = vmatprep.mubr.bf16.mxu1 %v3014_v46 }
  0xa4   : > { %2701 = vmatpush3.bf16.msra.mxu0 %v3010_v43 }
  0xa5   : > { %2741 = vmatpush3.bf16.msra.mxu1 %v3011_v44  ;;  %2702 = vmatprep.subr.bf16.mxu0 %v3018_v49 }
  0xa6   : > { %2742 = vmatprep.subr.bf16.mxu1 %v3019_v50 }
  0xa7   : > { %1793 = vmatmul.mubr.bf16.gmra.mrb[28].mxu0 %v3016_v47 }
  0xa8   : > { %1858 = vmatmul.mubr.bf16.gmra.mrb[28].mxu1 %v3017_v48  ;;  %2703 = vmatpush3.bf16.msra.mxu0 %v3020_v51 }
  0xa9   : > { %2743 = vmatpush3.bf16.msra.mxu1 %v3021_v52  ;;  %2704 = vmatprep.subr.bf16.mxu0 %v3022_v53 }
  0xaa   : > { %2744 = vmatprep.subr.bf16.mxu1 %v3023_v54  ;;  %1898 = vmatprep.mubr.bf16.mxu0 %v3028_v58 }
  0xab   : > { %1963 = vmatprep.mubr.bf16.mxu1 %v3031_v60 }
  0xac   : > { %2705 = vmatpush3.bf16.msra.mxu0 %v3024_v55 }
  0xad   : > { %2745 = vmatpush3.bf16.msra.mxu1 %v3025_v56  ;;  %2782 = vmatprep.subr.bf16.mxu0 %v3032_v61 }
  0xae   : > { %2806 = vmatprep.subr.bf16.mxu1 %v3032_v61 }
  0xaf   : > { %1899 = vmatmul.mubr.bf16.vlgmr.msra.gmra.mrb[32].mxu0 %v3026_v57 }
  0xb0   : > { %1964 = vmatmul.mubr.bf16.vlgmr.msra.gmra.mrb[32].mxu1 %v3029_v59  ;;  %2783 = vmatpush3.bf16.msra.mxu0 %v3032_v61 }
  0xb1   : > { %2814 = vmatpush3.bf16.msra.mxu1 %v3032_v61  ;;  %2784 = vmatprep.subr.bf16.mxu0 %v3033_v62 }
  0xb2   : > { %2807 = vmatprep.subr.bf16.mxu1 %v3033_v62  ;;  %1906 = vmatprep.mubr.bf16.mxu0 %v3034_v63 }
  0xb3   : > { %1971 = vmatprep.mubr.bf16.mxu1 %v3036_v0 }
  0xb4   : > { %2785 = vmatpush3.bf16.msra.mxu0 %v3033_v62 }
  0xb5   : > { %2815 = vmatpush3.bf16.msra.mxu1 %v3033_v62  ;;  %2786 = vmatprep.subr.bf16.mxu0 %v3040_v2 }
  0xb6   : > { %2808 = vmatprep.subr.bf16.mxu1 %v3040_v2 }
  0xb7   : > { %1907 = vmatmul.mubr.bf16.gmra.mrb[36].mxu0 %v3038_v1 }
  0xb8   : > { %1972 = vmatmul.mubr.bf16.gmra.mrb[36].mxu1 %v3039_v3  ;;  %1914 = vmatprep.mubr.bf16.mxu0 %v3042_v4 }
  0xb9   : > { %2787 = vmatpush3.bf16.msra.mxu0 %v3040_v2  ;;  %1979 = vmatprep.mubr.bf16.mxu1 %v3044_v6 }
  0xba   : > { %2816 = vmatpush3.bf16.msra.mxu1 %v3040_v2  ;;  %2788 = vmatprep.subr.bf16.mxu0 %v3041_v5 }
  0xbb   : > { %2809 = vmatprep.subr.bf16.mxu1 %v3041_v5 }
  0xbd   : > { %2789 = vmatpush3.bf16.msra.mxu0 %v3041_v5 }
  0xbe   : > { %2817 = vmatpush3.bf16.msra.mxu1 %v3041_v5  ;;  %2790 = vmatprep.subr.bf16.mxu0 %v3048_v7 }
  0xbf   : > { %1915 = vmatmul.mubr.bf16.gmra.mrb[40].mxu0 %v3046_v8  ;;  %2810 = vmatprep.subr.bf16.mxu1 %v3048_v7 }
  0xc0   : > { %1980 = vmatmul.mubr.bf16.gmra.mrb[40].mxu1 %v3047_v9  ;;  %1922 = vmatprep.mubr.bf16.mxu0 %v3050_v10 }
  0xc1   : > { %2791 = vmatpush3.bf16.msra.mxu0 %v3048_v7  ;;  %1987 = vmatprep.mubr.bf16.mxu1 %v3052_v11 }
  0xc2   : > { %2818 = vmatpush3.bf16.msra.mxu1 %v3048_v7  ;;  %2792 = vmatprep.subr.bf16.mxu0 %v3049_v12 }
  0xc3   : > { %2811 = vmatprep.subr.bf16.mxu1 %v3049_v12 }
  0xc5   : > { %2793 = vmatpush3.bf16.msra.mxu0 %v3049_v12 }
  0xc6   : > { %2819 = vmatpush3.bf16.msra.mxu1 %v3049_v12  ;;  %2794 = vmatprep.subr.bf16.mxu0 %v3056_v13 }
  0xc7   : > { %1923 = vmatmul.mubr.bf16.gmra.mrb[44].mxu0 %v3054_v14  ;;  %2812 = vmatprep.subr.bf16.mxu1 %v3056_v13 }
  0xc8   : > { %1988 = vmatmul.mubr.bf16.gmra.mrb[44].mxu1 %v3055_v15  ;;  %2798 = vmatprep.mubr.bf16.mxu0 %v3058_v16 }
  0xc9   : > { %2795 = vmatpush3.bf16.msra.mxu0 %v3056_v13  ;;  %2802 = vmatprep.mubr.bf16.mxu1 %v3059_v17 }
  0xca   : > { %2820 = vmatpush3.bf16.msra.mxu1 %v3056_v13  ;;  %2796 = vmatprep.subr.bf16.mxu0 %v3057_v18 }
  0xcb   : > { %2813 = vmatprep.subr.bf16.mxu1 %v3057_v18 }
  0xcd   : > { %2797 = vmatpush3.bf16.msra.mxu0 %v3057_v18 }
  0xce   : > { %2821 = vmatpush3.bf16.msra.mxu1 %v3057_v18 }
  0xd0   : > { %2799 = vmatmul.mubr.bf16.vlgmr.msra.gmra.mrb[48].mxu0 %v3060_v19 }
  0xd1   : > { %2803 = vmatmul.mubr.bf16.vlgmr.msra.gmra.mrb[48].mxu1 %v3061_v20 }
 0x142   : > { %v2546_v21 = vpop.f32.mrb[0].mxu0 }
 0x143   : > { %v2586_v22 = vpop.f32.mrb[0].mxu1  ;;  %v2547_v23 = vpop.f32.mrb[1].mxu0 }
 0x144   : > { %v2548_v24 = vadd.f32 %v2547_v23, %v2546_v21  ;;  %v2587_v25 = vpop.f32.mrb[1].mxu1  ;;  %v2549_v26 = vpop.f32.mrb[2].mxu0 }
 0x145   : > { %v2588_v27 = vadd.f32 %v2587_v25, %v2586_v22  ;;  %v2589_v28 = vpop.f32.mrb[2].mxu1  ;;  %v2550_v29 = vpop.f32.mrb[3].mxu0 }
 0x146   : > { %v2551_v30 = vadd.f32 %v2550_v29, %v2549_v26  ;;  %v2590_v31 = vpop.f32.mrb[3].mxu1 }
 0x147   : > { %v1706_v32 = vadd.f32 %v2588_v27, %v2548_v24  ;;  %v2591_v33 = vadd.f32 %v2590_v31, %v2589_v28 }
 0x149   : > { %v1709_v34 = vadd.f32 %v2591_v33, %v2551_v30 }
 0x14a   : > { %v2552_v35 = vpop.f32.mrb[4].mxu0 }
 0x14b   : > { %v2592_v36 = vpop.f32.mrb[4].mxu1  ;;  %v2553_v37 = vpop.f32.mrb[5].mxu0 }
 0x14c   : > { %v2554_v38 = vadd.f32 %v2553_v37, %v2552_v35  ;;  %v2593_v39 = vpop.f32.mrb[5].mxu1  ;;  %v2555_v40 = vpop.f32.mrb[6].mxu0 }
 0x14d   : > { %v2594_v41 = vadd.f32 %v2593_v39, %v2592_v36  ;;  %v2595_v42 = vpop.f32.mrb[6].mxu1  ;;  %v2556_v43 = vpop.f32.mrb[7].mxu0 }
 0x14e   : > { %v2557_v44 = vadd.f32 %v2556_v43, %v2555_v40  ;;  %v2596_v45 = vpop.f32.mrb[7].mxu1 }
 0x14f   : > { %v1714_v46 = vadd.f32 %v2594_v41, %v2554_v38  ;;  %v2597_v47 = vadd.f32 %v2596_v45, %v2595_v42 }
 0x151   : > { %v1717_v48 = vadd.f32 %v2597_v47, %v2557_v44 }
 0x152   : > { %v2558_v49 = vpop.f32.mrb[8].mxu0 }
 0x153   : > { %v2598_v50 = vpop.f32.mrb[8].mxu1  ;;  %v2559_v51 = vpop.f32.mrb[9].mxu0 }
 0x154   : > { %v2560_v52 = vadd.f32 %v2559_v51, %v2558_v49  ;;  %v2599_v53 = vpop.f32.mrb[9].mxu1  ;;  %v2561_v54 = vpop.f32.mrb[10].mxu0 }
 0x155   : > { %v2600_v55 = vadd.f32 %v2599_v53, %v2598_v50  ;;  %v2601_v56 = vpop.f32.mrb[10].mxu1  ;;  %v2562_v57 = vpop.f32.mrb[11].mxu0 }
 0x156   : > { %v2563_v58 = vadd.f32 %v2562_v57, %v2561_v54  ;;  %v2602_v59 = vpop.f32.mrb[11].mxu1 }
 0x157   : > { %v1722_v60 = vadd.f32 %v2600_v55, %v2560_v52  ;;  %v2603_v61 = vadd.f32 %v2602_v59, %v2601_v56 }
 0x159   : > { %v1725_v62 = vadd.f32 %v2603_v61, %v2563_v58 }
 0x15a   : > { %v2564_v63 = vpop.f32.mrb[12].mxu0 }
 0x15b   : > { %v2604_v0 = vpop.f32.mrb[12].mxu1  ;;  %v2565_v1 = vpop.f32.mrb[13].mxu0 }
 0x15c   : > { %v2605_v2 = vpop.f32.mrb[13].mxu1  ;;  %v2566_v3 = vadd.f32 %v2565_v1, %v2564_v63  ;;  %v2567_v5 = vpop.f32.mrb[14].mxu0 }
 0x15d   : > { %v2606_v4 = vadd.f32 %v2605_v2, %v2604_v0  ;;  %v2607_v6 = vpop.f32.mrb[14].mxu1  ;;  %v2568_v7 = vpop.f32.mrb[15].mxu0 }
 0x15e   : > { %v2608_v8 = vpop.f32.mrb[15].mxu1  ;;  %v2569_v10 = vadd.f32 %v2568_v7, %v2567_v5 }
 0x15f   : > { %v1730_v9 = vadd.f32 %v2606_v4, %v2566_v3  ;;  %v2609_v11 = vadd.f32 %v2608_v8, %v2607_v6 }
 0x161   : > { %v3494_v12 = vadd.f32 %v2609_v11, %v2569_v10 }
 0x162   : > { %v2626_v13 = vpop.f32.mrb[16].mxu0 }
 0x163   : > { %v2627_v14 = vpop.f32.mrb[17].mxu0  ;;  %v2666_v15 = vpop.f32.mrb[16].mxu1 }
 0x164   : > { %v2628_v16 = vadd.f32 %v2627_v14, %v2626_v13  ;;  %v2629_v17 = vpop.f32.mrb[18].mxu0  ;;  %v2667_v18 = vpop.f32.mrb[17].mxu1 }
 0x165   : > { %v2630_v19 = vpop.f32.mrb[19].mxu0  ;;  %v2668_v21 = vadd.f32 %v2667_v18, %v2666_v15  ;;  %v2669_v22 = vpop.f32.mrb[18].mxu1 }
 0x166   : > { %v1771_v20 = vadd.f32 %v2628_v16, %v1706_v32  ;;  %v2631_v23 = vadd.f32 %v2630_v19, %v2629_v17  ;;  %v2670_v24 = vpop.f32.mrb[19].mxu1 }
 0x167   : > { %v2671_v27 = vadd.f32 %v2670_v24, %v2669_v22 }
 0x168   : > { %v1836_v25 = vadd.f32 %v2668_v21, %v1771_v20  ;;  %v1774_v26 = vadd.f32 %v2631_v23, %v1709_v34 }
 0x16a   : > { %v1839_v28 = vadd.f32 %v2671_v27, %v1774_v26  ;;  %v2632_v29 = vpop.f32.mrb[20].mxu0 }
 0x16b   : > { %v2672_v30 = vpop.f32.mrb[20].mxu1  ;;  %v2633_v31 = vpop.f32.mrb[21].mxu0 }
 0x16c   : > { %v2634_v33 = vadd.f32 %v2633_v31, %v2632_v29  ;;  %v2673_v35 = vpop.f32.mrb[21].mxu1  ;;  %v2635_v36 = vpop.f32.mrb[22].mxu0 }
 0x16d   : > { %v2674_v37 = vadd.f32 %v2673_v35, %v2672_v30  ;;  %v2675_v38 = vpop.f32.mrb[22].mxu1  ;;  %v2636_v39 = vpop.f32.mrb[23].mxu0 }
 0x16e   : > { %v1779_v40 = vadd.f32 %v2634_v33, %v1714_v46  ;;  %v2637_v41 = vadd.f32 %v2636_v39, %v2635_v36  ;;  %v2676_v32 = vpop.f32.mrb[23].mxu1 }
 0x16f   : > { %v2677_v42 = vadd.f32 %v2676_v32, %v2675_v38 }
 0x170   : > { %v1844_v43 = vadd.f32 %v2674_v37, %v1779_v40  ;;  %v1782_v44 = vadd.f32 %v2637_v41, %v1717_v48 }
 0x172   : > { %v1847_v45 = vadd.f32 %v2677_v42, %v1782_v44  ;;  %v2638_v47 = vpop.f32.mrb[24].mxu0 }
 0x173   : > { %v2678_v34 = vpop.f32.mrb[24].mxu1  ;;  %v2639_v49 = vpop.f32.mrb[25].mxu0 }
 0x174   : > { %v2679_v50 = vpop.f32.mrb[25].mxu1  ;;  %v2640_v51 = vadd.f32 %v2639_v49, %v2638_v47  ;;  %v2641_v53 = vpop.f32.mrb[26].mxu0 }
 0x175   : > { %v2680_v52 = vadd.f32 %v2679_v50, %v2678_v34  ;;  %v2681_v54 = vpop.f32.mrb[26].mxu1  ;;  %v2642_v55 = vpop.f32.mrb[27].mxu0 }
 0x176   : > { %v2682_v56 = vpop.f32.mrb[27].mxu1  ;;  %v1787_v57 = vadd.f32 %v2640_v51, %v1722_v60  ;;  %v2643_v58 = vadd.f32 %v2642_v55, %v2641_v53 }
 0x177   : > { %v2683_v59 = vadd.f32 %v2682_v56, %v2681_v54 }
 0x178   : > { %v1852_v46 = vadd.f32 %v2680_v52, %v1787_v57  ;;  %v1790_v61 = vadd.f32 %v2643_v58, %v1725_v62 }
 0x17a   : > { %v1855_v63 = vadd.f32 %v2683_v59, %v1790_v61  ;;  %v2644_v0 = vpop.f32.mrb[28].mxu0 }
 0x17b   : > { %v2684_v1 = vpop.f32.mrb[28].mxu1  ;;  %v2645_v48 = vpop.f32.mrb[29].mxu0 }
 0x17c   : > { %v2646_v2 = vadd.f32 %v2645_v48, %v2644_v0  ;;  %v2685_v3 = vpop.f32.mrb[29].mxu1  ;;  %v2647_v4 = vpop.f32.mrb[30].mxu0 }
 0x17d   : > { %v2686_v5 = vadd.f32 %v2685_v3, %v2684_v1  ;;  %v2687_v6 = vpop.f32.mrb[30].mxu1  ;;  %v2648_v7 = vpop.f32.mrb[31].mxu0 }
 0x17e   : > { %v1795_v8 = vadd.f32 %v2646_v2, %v1730_v9  ;;  %v2649_v10 = vadd.f32 %v2648_v7, %v2647_v4  ;;  %v2688_v11 = vpop.f32.mrb[31].mxu1 }
 0x17f   : > { %v2689_v13 = vadd.f32 %v2688_v11, %v2687_v6 }
 0x180   : > { %v1860_v14 = vadd.f32 %v2686_v5, %v1795_v8  ;;  %v1798_v60 = vadd.f32 %v2649_v10, %v3494_v12 }
 0x182   : > { %v1863_v15 = vadd.f32 %v2689_v13, %v1798_v60  ;;  %v2706_v16 = vpop.f32.mrb[32].mxu0 }
 0x183   : > { %v2746_v62 = vpop.f32.mrb[32].mxu1  ;;  %v2707_v17 = vpop.f32.mrb[33].mxu0 }
 0x184   : > { %v2708_v18 = vadd.f32 %v2707_v17, %v2706_v16  ;;  %v2747_v19 = vpop.f32.mrb[33].mxu1  ;;  %v2709_v20 = vpop.f32.mrb[34].mxu0 }
 0x185   : > { %v2748_v21 = vadd.f32 %v2747_v19, %v2746_v62  ;;  %v2749_v22 = vpop.f32.mrb[34].mxu1  ;;  %v2710_v23 = vpop.f32.mrb[35].mxu0 }
 0x186   : > { %v1901_v24 = vadd.f32 %v2708_v18, %v1836_v25  ;;  %v2711_v26 = vadd.f32 %v2710_v23, %v2709_v20  ;;  %v2750_v27 = vpop.f32.mrb[35].mxu1  ;;  %v448_v18 = vld [vmem:[#allocation2 + $0x10] sm:$0xff] }
 0x187   : > { %v2751_v9 = vadd.f32 %v2750_v27, %v2749_v22  ;;  %v452_v20 = vld [vmem:[#allocation2 + $0x30] sm:$0xff]  ;;  %v446_v22 = vld [vmem:[#allocation2] sm:$0xff] }
 0x188   : > { %v1904_v29 = vadd.f32 %v2711_v26, %v1839_v28  ;;  %v1966_v30 = vadd.f32 %v2748_v21, %v1901_v24  ;;  %v450_v27 = vld [vmem:[#allocation2 + $0x20] sm:$0xff] }
 0x18a   : > { %v2712_v31 = vpop.f32.mrb[36].mxu0  ;;  %v3497_v33 = vadd.f32 %v2751_v9, %v1904_v29  ;;  %v449_v29 = vld [vmem:[#allocation2 + $0x18] sm:$0xff] }
 0x18b   : > { %v2752_v12 = vpop.f32.mrb[36].mxu1  ;;  %v2713_v35 = vpop.f32.mrb[37].mxu0 }
 0x18c   : > { %v2714_v36 = vadd.f32 %v2713_v35, %v2712_v31  ;;  %v2753_v37 = vpop.f32.mrb[37].mxu1  ;;  %v2715_v38 = vpop.f32.mrb[38].mxu0 }
 0x18d   : > { %v2754_v39 = vadd.f32 %v2753_v37, %v2752_v12  ;;  %v2755_v40 = vpop.f32.mrb[38].mxu1  ;;  %v2716_v41 = vpop.f32.mrb[39].mxu0  ;;  %v447_v37 = vld [vmem:[#allocation2 + $0x8] sm:$0xff] }
 0x18e   : > { %v1909_v32 = vadd.f32 %v2714_v36, %v1844_v43  ;;  %v2717_v42 = vadd.f32 %v2716_v41, %v2715_v38  ;;  %v2756_v44 = vpop.f32.mrb[39].mxu1  ;;  %v453_v36 = vld [vmem:[#allocation2 + $0x38] sm:$0xff] }
 0x18f   : > { %v2757_v25 = vadd.f32 %v2756_v44, %v2755_v40 }
 0x190   : > { %v1912_v47 = vadd.f32 %v2717_v42, %v1847_v45  ;;  %v1974_v34 = vadd.f32 %v2754_v39, %v1909_v32  ;;  %v451_v42 = vld [vmem:[#allocation2 + $0x28] sm:$0xff] }
 0x192   : > { %v2718_v49 = vpop.f32.mrb[40].mxu0  ;;  %v1977_v28 = vadd.f32 %v2757_v25, %v1912_v47 }
 0x193   : > { %v2758_v50 = vpop.f32.mrb[40].mxu1  ;;  %v2719_v51 = vpop.f32.mrb[41].mxu0 }
 0x194   : > { %v2720_v52 = vadd.f32 %v2719_v51, %v2718_v49  ;;  %v2759_v53 = vpop.f32.mrb[41].mxu1  ;;  %v2721_v54 = vpop.f32.mrb[42].mxu0  ;;  %v2487_v51 = vld [vmem:[%s3534_s2] ss:$0 sm:$0xff] (!%p2486_p13) }
 0x195   : > { %v2760_v55 = vadd.f32 %v2759_v53, %v2758_v50  ;;  %v2761_v56 = vpop.f32.mrb[42].mxu1  ;;  %v2722_v57 = vpop.f32.mrb[43].mxu0 }
 0x196   : > { %v1917_v58 = vadd.f32 %v2720_v52, %v1852_v46  ;;  %v2723_v59 = vadd.f32 %v2722_v57, %v2721_v54  ;;  %v2762_v61 = vpop.f32.mrb[43].mxu1  ;;  %v2488_v54 = vld [vmem:[%s3535_s3] ss:$0 sm:$0xff] (!%p2486_p13) }
 0x197   : > { %v2763_v0 = vadd.f32 %v2762_v61, %v2761_v56 }
 0x198   : > { %v1920_v43 = vadd.f32 %v2723_v59, %v1855_v63  ;;  %v1982_v1 = vadd.f32 %v2760_v55, %v1917_v58 }
 0x19a   : > { %v2724_v48 = vpop.f32.mrb[44].mxu0  ;;  %v1985_v2 = vadd.f32 %v2763_v0, %v1920_v43 }
 0x19b   : > { %v2764_v45 = vpop.f32.mrb[44].mxu1  ;;  %v2725_v3 = vpop.f32.mrb[45].mxu0 }
 0x19c   : > { %v2726_v4 = vadd.f32 %v2725_v3, %v2724_v48  ;;  %v2765_v5 = vpop.f32.mrb[45].mxu1  ;;  %v2727_v6 = vpop.f32.mrb[46].mxu0 }
 0x19d   : > { %v2766_v7 = vadd.f32 %v2765_v5, %v2764_v45  ;;  %v2767_v8 = vpop.f32.mrb[46].mxu1  ;;  %v2728_v10 = vpop.f32.mrb[47].mxu0 }
 0x19e   : > { %v1925_v11 = vadd.f32 %v2726_v4, %v1860_v14  ;;  %v2729_v13 = vadd.f32 %v2728_v10, %v2727_v6  ;;  %v2768_v60 = vpop.f32.mrb[47].mxu1 }
 0x19f   : > { %v2769_v16 = vadd.f32 %v2768_v60, %v2767_v8 }
 0x1a0   : > { %v1928_v46 = vadd.f32 %v2729_v13, %v1863_v15  ;;  %v1990_v62 = vadd.f32 %v2766_v7, %v1925_v11 }
 0x1a2   : > { %v1993_v17 = vadd.f32 %v2769_v16, %v1928_v46 }
 0x1a3   : > { %v2800_v63 = vpop.f32.mrb[48].mxu0 }
 0x1a4   : > { %v2039_v19 = vadd.f32 %v2800_v63, %v1974_v34  ;;  %v2804_v21 = vpop.f32.mrb[48].mxu1  ;;  %v2030_v23 = vpop.f32.mrb[49].mxu0 }
 0x1a5   : > { %v2055_v24 = vadd.f32 %v2804_v21, %v1990_v62  ;;  %v2031_v26 = vadd.f32 %v2030_v23, %v1966_v30  ;;  %v2046_v9 = vpop.f32.mrb[49].mxu1  ;;  %v2801_v31 = vpop.f32.mrb[50].mxu0 }
 0x1a6   : > { %v2063_v14 = vadd.f32 %v2039_v19, %v448_v18  ;;  %v2047_v12 = vadd.f32 %v2046_v9, %v1982_v1  ;;  %v2042_v35 = vadd.f32 %v2801_v31, %v1977_v28  ;;  %v2805_v15 = vpop.f32.mrb[50].mxu1  ;;  %v2033_v38 = vpop.f32.mrb[51].mxu0  ;;  %2080 = sbr.rel (%p2486_p13) target bundleno = 445 (0x1bd), region = 70 }
 0x1a7   : > { %v2067_v39 = vadd.f32 %v2055_v24, %v452_v20  ;;  %v2061_v40 = vadd.f32 %v2031_v26, %v446_v22  ;;  %v2058_v41 = vadd.f32 %v2805_v15, %v1993_v17  ;;  %v2034_v32 = vadd.f32 %v2033_v38, %v3497_v33  ;;  %v2049_v44 = vpop.f32.mrb[51].mxu1 }
 0x1a8   : > { %2071 = vst [vmem:[#allocation2 + $0x10] sm:$0xff] %v2063_v14  ;;  %v2065_v30 = vadd.f32 %v2047_v12, %v450_v27  ;;  %v2064_v25 = vadd.f32 %v2042_v35, %v449_v29  ;;  %v2050_v47 = vadd.f32 %v2049_v44, %v1985_v2 }
 0x1a9   : > { %2075 = vst [vmem:[#allocation2 + $0x30] sm:$0xff] %v2067_v39  ;;  %2069 = vst [vmem:[#allocation2] sm:$0xff] %v2061_v40  ;;  %v2068_v34 = vadd.f32 %v2058_v41, %v453_v36  ;;  %v2062_v49 = vadd.f32 %v2034_v32, %v447_v37 }
 0x1aa   : > { %2073 = vst [vmem:[#allocation2 + $0x20] sm:$0xff] %v2065_v30  ;;  %2072 = vst [vmem:[#allocation2 + $0x18] sm:$0xff] %v2064_v25  ;;  %v2066_v28 = vadd.f32 %v2050_v47, %v451_v42 }
 0x1ab   : > { %2076 = vst [vmem:[#allocation2 + $0x38] sm:$0xff] %v2068_v34  ;;  %2070 = vst [vmem:[#allocation2 + $0x8] sm:$0xff] %v2062_v49 }
 0x1ac   : > { %2074 = vst [vmem:[#allocation2 + $0x28] sm:$0xff] %v2066_v28 }
 0x1af   : > { %v2083_v55 = vld [vmem:[#allocation2 + $0x10] sm:$0xff] }
 0x1b0   : > { %v2081_v33 = vld [vmem:[#allocation2] sm:$0xff]  ;;  %v2098_v57 = vmul.f32 %v2487_v51, %v2083_v55  ;;  %v2087_v0 = vld [vmem:[#allocation2 + $0x30] sm:$0xff] }
 0x1b1   : > { %v2096_v52 = vmul.f32 %v2487_v51, %v2081_v33  ;;  %v2084_v56 = vld [vmem:[#allocation2 + $0x18] sm:$0xff]  ;;  %v2085_v59 = vld [vmem:[#allocation2 + $0x20] sm:$0xff]  ;;  %v2102_v5 = vmul.f32 %v2487_v51, %v2087_v0 }
 0x1b2   : > { %v2082_v50 = vld [vmem:[#allocation2 + $0x8] sm:$0xff]  ;;  %v2099_v58 = vmul.f32 %v2487_v51, %v2084_v56  ;;  %v2100_v48 = vmul.f32 %v2487_v51, %v2085_v59  ;;  %v2088_v45 = vld [vmem:[#allocation2 + $0x38] sm:$0xff]  ;;  %v2113_v3 = vadd.f32 %v2488_v54, %v2098_v57 }
 0x1b3   : > { %v2097_v53 = vmul.f32 %v2487_v51, %v2082_v50  ;;  %v2086_v61 = vld [vmem:[#allocation2 + $0x28] sm:$0xff]  ;;  %v2111_v43 = vadd.f32 %v2488_v54, %v2096_v52  ;;  %v2103_v6 = vmul.f32 %v2487_v51, %v2088_v45  ;;  %v2117_v16 = vadd.f32 %v2488_v54, %v2102_v5 }
 0x1b4   : > { %v2101_v2 = vmul.f32 %v2487_v51, %v2086_v61  ;;  %v2114_v4 = vadd.f32 %v2488_v54, %v2099_v58  ;;  %v2115_v10 = vadd.f32 %v2488_v54, %v2100_v48  ;;  %v2121_v13 = vmax.f32 %v2113_v3, 0.0 }
 0x1b5   : > { %v2112_v1 = vadd.f32 %v2488_v54, %v2097_v53  ;;  %v2119_v7 = vmax.f32 %v2111_v43, 0.0  ;;  %v2118_v46 = vadd.f32 %v2488_v54, %v2103_v6  ;;  %v2125_v19 = vmax.f32 %v2117_v16, 0.0 }
 0x1b6   : > { %v2116_v11 = vadd.f32 %v2488_v54, %v2101_v2  ;;  %v2122_v60 = vmax.f32 %v2114_v4, 0.0  ;;  %v2123_v17 = vmax.f32 %v2115_v10, 0.0 }
 0x1b7   : > { %v2120_v8 = vmax.f32 %v2112_v1, 0.0  ;;  %v2126_v20 = vmax.f32 %v2118_v46, 0.0 }
 0x1b8   : > { %v2124_v18 = vmax.f32 %v2116_v11, 0.0  ;;  %v2515_v63 = vpack.c.bf16 %v2122_v60, %v2121_v13 }
 0x1b9   : > { %v2510_v62 = vpack.c.bf16 %v2120_v8, %v2119_v7  ;;  %v2525_v22 = vpack.c.bf16 %v2126_v20, %v2125_v19 }
 0x1ba   : > { %v2520_v21 = vpack.c.bf16 %v2124_v18, %v2123_v17  ;;  %2527 = vst [vmem:[%s3333_s8 + $0x8] sm:$0xff] %v2515_v63  }
 0x1bb   : > { %2511 = vst [vmem:[%s3333_s8] sm:$0xff] %v2510_v62   ;;  %2529 = vst [vmem:[%s3333_s8 + $0x18] sm:$0xff] %v2525_v22  }
 0x1bc   : > { %2528 = vst [vmem:[%s3333_s8 + $0x10] sm:$0xff] %v2520_v21  }
 0x1bd PF: > { %s14_s21 = sadd.s32 1, %s3116_s21   ;;  %s3537_s15 = smov %s3096_s16 }
 0x1be   : > { %p11_p0 = scmp.ge.s32.totalorder %s14_s21, 10   ;;  %s3538_s16 = smov %s3195_s28 }
 0x1bf   : > { %s3539_s17 = smov %s3108_s19  ;;  %s3540_s18 = smov %s3112_s20 }
 0x1c0   : > { %s3541_s19 = smov %s3544_s22  ;;  %s3542_s20 = smov %s3548_s23 }
 0x1c1   :  { %13 = sbr.rel (!%p11_p0) target bundleno = 4 (0x4), region = 120 }

// kernel: _lambda_.9
= control target key start
LH: loop header
LB: loop body
LE: loop exit
PB: predicated region body
PF: predicated region fallthrough
CT: control target
= control target key end

     0   :  { %s5647_s15 = smov 0   ;;  %s5649_s16 = smov 0   ;;  %s6731_s0 = inlined_call_operand.vmem [shape: bf16[416,3328], index: 0, kind: input, shape index: {}]   ;;  %s6732_s1 = inlined_call_operand.vmem [shape: bf16[3328,128], index: 1, kind: input, shape index: {}]   ;;  %s6733_s2 = inlined_call_operand.vmem [shape: f32[1,128], index: 2, kind: input, shape index: {}]   ;;  %s6734_s3 = inlined_call_operand.vmem [shape: f32[1,128], index: 3, kind: input, shape index: {}]   ;;  %s6735_s4 = inlined_call_operand.vmem [shape: bf16[416,128], index: 4, kind: output, shape index: {}]  }
   0x1   :  { %s5651_s17 = smov 0   ;;  %s5653_s18 = smov 0  }
   0x2   :  { %s5655_s19 = smov 0   ;;  %s5657_s20 = smov 0  }
   0x3   :  { %s5659_s21 = smov 0  }
   0x4 LB: > { %s26_s22 = sadd.s32 1, %s5609_s19  ;;  %s33_s23 = sadd.s32 1, %s5613_s20  ;;  %s5617_s21 = sphi %s5659_s21, %s14_s21   ;;  %s5613_s20 = sphi %s5657_s20, %s6741_s20   ;;  %s5609_s19 = sphi %s5655_s19, %s6740_s19   ;;  %s5605_s18 = sphi %s5653_s18, %s6739_s18   ;;  %s5601_s17 = sphi %s5651_s17, %s6738_s17   ;;  %s5597_s16 = sphi %s5649_s16, %s6737_s16   ;;  %s5593_s15 = sphi %s5647_s15, %s6736_s15  }
   0x5   : > { %p27_p0 = scmp.ge.s32.totalorder %s26_s22, 2  ;;  %p49_p1 = scmp.ne.s32.totalorder %s5597_s16, %s5593_s15 }
   0x6   : > { %p50_p2 = scmp.eq.s32.totalorder %s5617_s21, 0  ;;  %s42_s27 = sadd.s32 1, %s5597_s16 }
   0x7   : > { %s6743_s22 = smov (%p27_p0, %s26_s22), 0  ;;  %s6745_s23 = smov (!%p27_p0, %s33_s23), %s5613_s20 }
   0x8   : > { %p51_p3 = por %p50_p2, %p49_p1  ;;  %p35_p4 = scmp.ge.s32.totalorder %s6745_s23, 2 }
   0x9   : > { %s38_s24 = ssub.s32 %s5609_s19, %s6743_s22  ;;  %p4015_p6 = scmp.ge.s32.totalorder %s5617_s21, 4 }
   0xa   : > { %s6747_s23 = smov (%p35_p4, %s6745_s23), 0 }
   0xb   : > { %s37_s25 = ssub.s32 %s5613_s20, %s6747_s23  ;;  %195 = sbr.rel (%p4015_p6) target bundleno = 122 (0x7a), region = 24 }
   0xc   : > { %s39_s26 = sor.u32 %s38_s24, %s37_s25 }
   0xd   : > { %p40_p5 = scmp.eq.s32.totalorder %s39_s26, 0 }
   0xf   : > { %s5698_s28 = scalar_select %p40_p5, %s5597_s16, %s42_s27  }
  0x12   : > { %198 = sbr.rel (!%p51_p3) target bundleno = 122 (0x7a), region = 28  ;;  %s200_s29 = sand.u32 (%p51_p3), 1, %s5597_s16  }
  0x13   : > { %s5149_s30 = smul.u32 (%p51_p3), 1352, %s200_s29 }
  0x14   : > { %s204_s5 = smul.u32 (%p51_p3), 13, %s5609_s19 }
  0x15   : > { %s5152_s6 = smul.u32 (%p51_p3), 676, %s5613_s20  ;;  %s5712_s12 = scalar_lea.vmem (%p51_p3), [#allocation3], %s5149_s30 }
  0x17   : > { %s206_s7 = sadd.s32 (%p51_p3), %s5152_s6, %s204_s5 }
  0x18   : > { %s4016_s8 = sshll.u32 (%p51_p3), %s206_s7, 2 }
  0x19   : > { %s5707_s11 = scalar_lea.vmem %s6731_s0, %s4016_s8 }
  0x1a   : > { %v223_v0 = vld [vmem:[%s5707_s11] sm:$0xff]  ;;  %v225_v1 = vld [vmem:[%s5707_s11 + $0x8] sm:$0xff]  ;;  %v227_v2 = vld [vmem:[%s5707_s11 + $0x10] sm:$0xff] }
  0x1b   : > { %224 = vst [vmem:[%s5712_s12] sm:$0xff] %v223_v0  ;;  %226 = vst [vmem:[%s5712_s12 + $0x8] sm:$0xff] %v225_v1  ;;  %v229_v3 = vld [vmem:[%s5707_s11 + $0x18] sm:$0xff]  ;;  %v231_v4 = vld [vmem:[%s5707_s11 + $0x20] sm:$0xff] }
  0x1c   : > { %228 = vst [vmem:[%s5712_s12 + $0x10] sm:$0xff] %v227_v2  ;;  %v233_v5 = vld [vmem:[%s5707_s11 + $0x28] sm:$0xff]  ;;  %230 = vst [vmem:[%s5712_s12 + $0x18] sm:$0xff] %v229_v3  ;;  %v237_v7 = vld [vmem:[%s5707_s11 + $0x70] sm:$0xff] }
  0x1d   : > { %232 = vst [vmem:[%s5712_s12 + $0x20] sm:$0xff] %v231_v4  ;;  %234 = vst [vmem:[%s5712_s12 + $0x28] sm:$0xff] %v233_v5  ;;  %v235_v6 = vld [vmem:[%s5707_s11 + $0x68] sm:$0xff]  ;;  %v239_v8 = vld [vmem:[%s5707_s11 + $0x78] sm:$0xff] }
  0x1e   : > { %236 = vst [vmem:[%s5712_s12 + $0x34] sm:$0xff] %v235_v6  ;;  %238 = vst [vmem:[%s5712_s12 + $0x3c] sm:$0xff] %v237_v7  ;;  %v241_v9 = vld [vmem:[%s5707_s11 + $0x80] sm:$0xff]  ;;  %v243_v10 = vld [vmem:[%s5707_s11 + $0x88] sm:$0xff] }
  0x1f   : > { %240 = vst [vmem:[%s5712_s12 + $0x44] sm:$0xff] %v239_v8  ;;  %v245_v11 = vld [vmem:[%s5707_s11 + $0x90] sm:$0xff]  ;;  %242 = vst [vmem:[%s5712_s12 + $0x4c] sm:$0xff] %v241_v9  ;;  %v249_v13 = vld [vmem:[%s5707_s11 + $0xd8] sm:$0xff] }
  0x20   : > { %244 = vst [vmem:[%s5712_s12 + $0x54] sm:$0xff] %v243_v10  ;;  %246 = vst [vmem:[%s5712_s12 + $0x5c] sm:$0xff] %v245_v11  ;;  %v247_v12 = vld [vmem:[%s5707_s11 + $0xd0] sm:$0xff]  ;;  %v251_v14 = vld [vmem:[%s5707_s11 + $0xe0] sm:$0xff] }
  0x21   : > { %248 = vst [vmem:[%s5712_s12 + $0x68] sm:$0xff] %v247_v12  ;;  %250 = vst [vmem:[%s5712_s12 + $0x70] sm:$0xff] %v249_v13  ;;  %v253_v15 = vld [vmem:[%s5707_s11 + $0xe8] sm:$0xff]  ;;  %v255_v16 = vld [vmem:[%s5707_s11 + $0xf0] sm:$0xff] }
  0x22   : > { %252 = vst [vmem:[%s5712_s12 + $0x78] sm:$0xff] %v251_v14  ;;  %v257_v17 = vld [vmem:[%s5707_s11 + $0xf8] sm:$0xff]  ;;  %254 = vst [vmem:[%s5712_s12 + $0x80] sm:$0xff] %v253_v15  ;;  %v261_v19 = vld [vmem:[%s5707_s11 + $0x140] sm:$0xff] }
  0x23   : > { %256 = vst [vmem:[%s5712_s12 + $0x88] sm:$0xff] %v255_v16  ;;  %258 = vst [vmem:[%s5712_s12 + $0x90] sm:$0xff] %v257_v17  ;;  %v259_v18 = vld [vmem:[%s5707_s11 + $0x138] sm:$0xff]  ;;  %v263_v20 = vld [vmem:[%s5707_s11 + $0x148] sm:$0xff] }
  0x24   : > { %260 = vst [vmem:[%s5712_s12 + $0x9c] sm:$0xff] %v259_v18  ;;  %262 = vst [vmem:[%s5712_s12 + $0xa4] sm:$0xff] %v261_v19  ;;  %v265_v21 = vld [vmem:[%s5707_s11 + $0x150] sm:$0xff]  ;;  %v267_v22 = vld [vmem:[%s5707_s11 + $0x158] sm:$0xff] }
  0x25   : > { %264 = vst [vmem:[%s5712_s12 + $0xac] sm:$0xff] %v263_v20  ;;  %v269_v23 = vld [vmem:[%s5707_s11 + $0x160] sm:$0xff]  ;;  %266 = vst [vmem:[%s5712_s12 + $0xb4] sm:$0xff] %v265_v21  ;;  %v273_v25 = vld [vmem:[%s5707_s11 + $0x1a8] sm:$0xff] }
  0x26   : > { %268 = vst [vmem:[%s5712_s12 + $0xbc] sm:$0xff] %v267_v22  ;;  %270 = vst [vmem:[%s5712_s12 + $0xc4] sm:$0xff] %v269_v23  ;;  %v271_v24 = vld [vmem:[%s5707_s11 + $0x1a0] sm:$0xff]  ;;  %v275_v26 = vld [vmem:[%s5707_s11 + $0x1b0] sm:$0xff] }
  0x27   : > { %272 = vst [vmem:[%s5712_s12 + $0xd0] sm:$0xff] %v271_v24  ;;  %274 = vst [vmem:[%s5712_s12 + $0xd8] sm:$0xff] %v273_v25  ;;  %v277_v27 = vld [vmem:[%s5707_s11 + $0x1b8] sm:$0xff]  ;;  %v279_v28 = vld [vmem:[%s5707_s11 + $0x1c0] sm:$0xff] }
  0x28   : > { %276 = vst [vmem:[%s5712_s12 + $0xe0] sm:$0xff] %v275_v26  ;;  %v281_v29 = vld [vmem:[%s5707_s11 + $0x1c8] sm:$0xff]  ;;  %278 = vst [vmem:[%s5712_s12 + $0xe8] sm:$0xff] %v277_v27  ;;  %v285_v31 = vld [vmem:[%s5707_s11 + $0x210] sm:$0xff] }
  0x29   : > { %280 = vst [vmem:[%s5712_s12 + $0xf0] sm:$0xff] %v279_v28  ;;  %282 = vst [vmem:[%s5712_s12 + $0xf8] sm:$0xff] %v281_v29  ;;  %v283_v30 = vld [vmem:[%s5707_s11 + $0x208] sm:$0xff]  ;;  %v287_v32 = vld [vmem:[%s5707_s11 + $0x218] sm:$0xff] }
  0x2a   : > { %284 = vst [vmem:[%s5712_s12 + $0x104] sm:$0xff] %v283_v30  ;;  %286 = vst [vmem:[%s5712_s12 + $0x10c] sm:$0xff] %v285_v31  ;;  %v289_v33 = vld [vmem:[%s5707_s11 + $0x220] sm:$0xff]  ;;  %v291_v34 = vld [vmem:[%s5707_s11 + $0x228] sm:$0xff] }
  0x2b   : > { %288 = vst [vmem:[%s5712_s12 + $0x114] sm:$0xff] %v287_v32  ;;  %v293_v35 = vld [vmem:[%s5707_s11 + $0x230] sm:$0xff]  ;;  %290 = vst [vmem:[%s5712_s12 + $0x11c] sm:$0xff] %v289_v33  ;;  %v297_v37 = vld [vmem:[%s5707_s11 + $0x278] sm:$0xff] }
  0x2c   : > { %292 = vst [vmem:[%s5712_s12 + $0x124] sm:$0xff] %v291_v34  ;;  %294 = vst [vmem:[%s5712_s12 + $0x12c] sm:$0xff] %v293_v35  ;;  %v295_v36 = vld [vmem:[%s5707_s11 + $0x270] sm:$0xff]  ;;  %v299_v38 = vld [vmem:[%s5707_s11 + $0x280] sm:$0xff] }
  0x2d   : > { %296 = vst [vmem:[%s5712_s12 + $0x138] sm:$0xff] %v295_v36  ;;  %298 = vst [vmem:[%s5712_s12 + $0x140] sm:$0xff] %v297_v37  ;;  %v301_v39 = vld [vmem:[%s5707_s11 + $0x288] sm:$0xff]  ;;  %v303_v40 = vld [vmem:[%s5707_s11 + $0x290] sm:$0xff] }
  0x2e   : > { %300 = vst [vmem:[%s5712_s12 + $0x148] sm:$0xff] %v299_v38  ;;  %v305_v41 = vld [vmem:[%s5707_s11 + $0x298] sm:$0xff]  ;;  %302 = vst [vmem:[%s5712_s12 + $0x150] sm:$0xff] %v301_v39  ;;  %v309_v43 = vld [vmem:[%s5707_s11 + $0x2e0] sm:$0xff] }
  0x2f   : > { %304 = vst [vmem:[%s5712_s12 + $0x158] sm:$0xff] %v303_v40  ;;  %306 = vst [vmem:[%s5712_s12 + $0x160] sm:$0xff] %v305_v41  ;;  %v307_v42 = vld [vmem:[%s5707_s11 + $0x2d8] sm:$0xff]  ;;  %v311_v44 = vld [vmem:[%s5707_s11 + $0x2e8] sm:$0xff] }
  0x30   : > { %308 = vst [vmem:[%s5712_s12 + $0x16c] sm:$0xff] %v307_v42  ;;  %310 = vst [vmem:[%s5712_s12 + $0x174] sm:$0xff] %v309_v43  ;;  %v313_v45 = vld [vmem:[%s5707_s11 + $0x2f0] sm:$0xff]  ;;  %v315_v46 = vld [vmem:[%s5707_s11 + $0x2f8] sm:$0xff] }
  0x31   : > { %312 = vst [vmem:[%s5712_s12 + $0x17c] sm:$0xff] %v311_v44  ;;  %v317_v47 = vld [vmem:[%s5707_s11 + $0x300] sm:$0xff]  ;;  %314 = vst [vmem:[%s5712_s12 + $0x184] sm:$0xff] %v313_v45  ;;  %v321_v49 = vld [vmem:[%s5707_s11 + $0x348] sm:$0xff] }
  0x32   : > { %316 = vst [vmem:[%s5712_s12 + $0x18c] sm:$0xff] %v315_v46  ;;  %318 = vst [vmem:[%s5712_s12 + $0x194] sm:$0xff] %v317_v47  ;;  %v319_v48 = vld [vmem:[%s5707_s11 + $0x340] sm:$0xff]  ;;  %v323_v50 = vld [vmem:[%s5707_s11 + $0x350] sm:$0xff] }
  0x33   : > { %320 = vst [vmem:[%s5712_s12 + $0x1a0] sm:$0xff] %v319_v48  ;;  %322 = vst [vmem:[%s5712_s12 + $0x1a8] sm:$0xff] %v321_v49  ;;  %v325_v51 = vld [vmem:[%s5707_s11 + $0x358] sm:$0xff]  ;;  %v327_v52 = vld [vmem:[%s5707_s11 + $0x360] sm:$0xff] }
  0x34   : > { %324 = vst [vmem:[%s5712_s12 + $0x1b0] sm:$0xff] %v323_v50  ;;  %v329_v53 = vld [vmem:[%s5707_s11 + $0x368] sm:$0xff]  ;;  %326 = vst [vmem:[%s5712_s12 + $0x1b8] sm:$0xff] %v325_v51  ;;  %v333_v55 = vld [vmem:[%s5707_s11 + $0x3b0] sm:$0xff] }
  0x35   : > { %328 = vst [vmem:[%s5712_s12 + $0x1c0] sm:$0xff] %v327_v52  ;;  %330 = vst [vmem:[%s5712_s12 + $0x1c8] sm:$0xff] %v329_v53  ;;  %v331_v54 = vld [vmem:[%s5707_s11 + $0x3a8] sm:$0xff]  ;;  %v335_v56 = vld [vmem:[%s5707_s11 + $0x3b8] sm:$0xff] }
  0x36   : > { %332 = vst [vmem:[%s5712_s12 + $0x1d4] sm:$0xff] %v331_v54  ;;  %334 = vst [vmem:[%s5712_s12 + $0x1dc] sm:$0xff] %v333_v55  ;;  %v337_v57 = vld [vmem:[%s5707_s11 + $0x3c0] sm:$0xff]  ;;  %v339_v58 = vld [vmem:[%s5707_s11 + $0x3c8] sm:$0xff] }
  0x37   : > { %336 = vst [vmem:[%s5712_s12 + $0x1e4] sm:$0xff] %v335_v56  ;;  %v341_v59 = vld [vmem:[%s5707_s11 + $0x3d0] sm:$0xff]  ;;  %338 = vst [vmem:[%s5712_s12 + $0x1ec] sm:$0xff] %v337_v57  ;;  %v345_v61 = vld [vmem:[%s5707_s11 + $0x418] sm:$0xff] }
  0x38   : > { %340 = vst [vmem:[%s5712_s12 + $0x1f4] sm:$0xff] %v339_v58  ;;  %342 = vst [vmem:[%s5712_s12 + $0x1fc] sm:$0xff] %v341_v59  ;;  %v343_v60 = vld [vmem:[%s5707_s11 + $0x410] sm:$0xff]  ;;  %v347_v62 = vld [vmem:[%s5707_s11 + $0x420] sm:$0xff] }
  0x39   : > { %344 = vst [vmem:[%s5712_s12 + $0x208] sm:$0xff] %v343_v60  ;;  %346 = vst [vmem:[%s5712_s12 + $0x210] sm:$0xff] %v345_v61  ;;  %v349_v63 = vld [vmem:[%s5707_s11 + $0x428] sm:$0xff]  ;;  %v351_v0 = vld [vmem:[%s5707_s11 + $0x430] sm:$0xff] }
  0x3a   : > { %348 = vst [vmem:[%s5712_s12 + $0x218] sm:$0xff] %v347_v62  ;;  %v353_v1 = vld [vmem:[%s5707_s11 + $0x438] sm:$0xff]  ;;  %350 = vst [vmem:[%s5712_s12 + $0x220] sm:$0xff] %v349_v63  ;;  %v357_v3 = vld [vmem:[%s5707_s11 + $0x480] sm:$0xff] }
  0x3b   : > { %352 = vst [vmem:[%s5712_s12 + $0x228] sm:$0xff] %v351_v0  ;;  %354 = vst [vmem:[%s5712_s12 + $0x230] sm:$0xff] %v353_v1  ;;  %v355_v2 = vld [vmem:[%s5707_s11 + $0x478] sm:$0xff]  ;;  %v359_v4 = vld [vmem:[%s5707_s11 + $0x488] sm:$0xff] }
  0x3c   : > { %356 = vst [vmem:[%s5712_s12 + $0x23c] sm:$0xff] %v355_v2  ;;  %358 = vst [vmem:[%s5712_s12 + $0x244] sm:$0xff] %v357_v3  ;;  %v361_v5 = vld [vmem:[%s5707_s11 + $0x490] sm:$0xff]  ;;  %v363_v6 = vld [vmem:[%s5707_s11 + $0x498] sm:$0xff] }
  0x3d   : > { %360 = vst [vmem:[%s5712_s12 + $0x24c] sm:$0xff] %v359_v4  ;;  %v365_v7 = vld [vmem:[%s5707_s11 + $0x4a0] sm:$0xff]  ;;  %362 = vst [vmem:[%s5712_s12 + $0x254] sm:$0xff] %v361_v5  ;;  %v369_v9 = vld [vmem:[%s5707_s11 + $0x4e8] sm:$0xff] }
  0x3e   : > { %364 = vst [vmem:[%s5712_s12 + $0x25c] sm:$0xff] %v363_v6  ;;  %366 = vst [vmem:[%s5712_s12 + $0x264] sm:$0xff] %v365_v7  ;;  %v367_v8 = vld [vmem:[%s5707_s11 + $0x4e0] sm:$0xff]  ;;  %v371_v10 = vld [vmem:[%s5707_s11 + $0x4f0] sm:$0xff] }
  0x3f   : > { %368 = vst [vmem:[%s5712_s12 + $0x270] sm:$0xff] %v367_v8  ;;  %370 = vst [vmem:[%s5712_s12 + $0x278] sm:$0xff] %v369_v9  ;;  %v373_v11 = vld [vmem:[%s5707_s11 + $0x4f8] sm:$0xff]  ;;  %v375_v12 = vld [vmem:[%s5707_s11 + $0x500] sm:$0xff] }
  0x40   : > { %372 = vst [vmem:[%s5712_s12 + $0x280] sm:$0xff] %v371_v10  ;;  %v377_v13 = vld [vmem:[%s5707_s11 + $0x508] sm:$0xff]  ;;  %374 = vst [vmem:[%s5712_s12 + $0x288] sm:$0xff] %v373_v11  ;;  %v381_v15 = vld [vmem:[%s5707_s11 + $0x550] sm:$0xff] }
  0x41   : > { %376 = vst [vmem:[%s5712_s12 + $0x290] sm:$0xff] %v375_v12  ;;  %378 = vst [vmem:[%s5712_s12 + $0x298] sm:$0xff] %v377_v13  ;;  %v379_v14 = vld [vmem:[%s5707_s11 + $0x548] sm:$0xff]  ;;  %v383_v16 = vld [vmem:[%s5707_s11 + $0x558] sm:$0xff] }
  0x42   : > { %380 = vst [vmem:[%s5712_s12 + $0x2a4] sm:$0xff] %v379_v14  ;;  %382 = vst [vmem:[%s5712_s12 + $0x2ac] sm:$0xff] %v381_v15  ;;  %v385_v17 = vld [vmem:[%s5707_s11 + $0x560] sm:$0xff]  ;;  %v387_v18 = vld [vmem:[%s5707_s11 + $0x568] sm:$0xff] }
  0x43   : > { %384 = vst [vmem:[%s5712_s12 + $0x2b4] sm:$0xff] %v383_v16  ;;  %v389_v19 = vld [vmem:[%s5707_s11 + $0x570] sm:$0xff]  ;;  %386 = vst [vmem:[%s5712_s12 + $0x2bc] sm:$0xff] %v385_v17  ;;  %v393_v21 = vld [vmem:[%s5707_s11 + $0x5b8] sm:$0xff] }
  0x44   : > { %388 = vst [vmem:[%s5712_s12 + $0x2c4] sm:$0xff] %v387_v18  ;;  %390 = vst [vmem:[%s5712_s12 + $0x2cc] sm:$0xff] %v389_v19  ;;  %v391_v20 = vld [vmem:[%s5707_s11 + $0x5b0] sm:$0xff]  ;;  %v395_v22 = vld [vmem:[%s5707_s11 + $0x5c0] sm:$0xff] }
  0x45   : > { %392 = vst [vmem:[%s5712_s12 + $0x2d8] sm:$0xff] %v391_v20  ;;  %394 = vst [vmem:[%s5712_s12 + $0x2e0] sm:$0xff] %v393_v21  ;;  %v397_v23 = vld [vmem:[%s5707_s11 + $0x5c8] sm:$0xff]  ;;  %v399_v24 = vld [vmem:[%s5707_s11 + $0x5d0] sm:$0xff] }
  0x46   : > { %396 = vst [vmem:[%s5712_s12 + $0x2e8] sm:$0xff] %v395_v22  ;;  %v401_v25 = vld [vmem:[%s5707_s11 + $0x5d8] sm:$0xff]  ;;  %398 = vst [vmem:[%s5712_s12 + $0x2f0] sm:$0xff] %v397_v23  ;;  %v405_v27 = vld [vmem:[%s5707_s11 + $0x620] sm:$0xff] }
  0x47   : > { %400 = vst [vmem:[%s5712_s12 + $0x2f8] sm:$0xff] %v399_v24  ;;  %402 = vst [vmem:[%s5712_s12 + $0x300] sm:$0xff] %v401_v25  ;;  %v403_v26 = vld [vmem:[%s5707_s11 + $0x618] sm:$0xff]  ;;  %v407_v28 = vld [vmem:[%s5707_s11 + $0x628] sm:$0xff] }
  0x48   : > { %404 = vst [vmem:[%s5712_s12 + $0x30c] sm:$0xff] %v403_v26  ;;  %406 = vst [vmem:[%s5712_s12 + $0x314] sm:$0xff] %v405_v27  ;;  %v409_v29 = vld [vmem:[%s5707_s11 + $0x630] sm:$0xff]  ;;  %v411_v30 = vld [vmem:[%s5707_s11 + $0x638] sm:$0xff] }
  0x49   : > { %408 = vst [vmem:[%s5712_s12 + $0x31c] sm:$0xff] %v407_v28  ;;  %v413_v31 = vld [vmem:[%s5707_s11 + $0x640] sm:$0xff]  ;;  %410 = vst [vmem:[%s5712_s12 + $0x324] sm:$0xff] %v409_v29  ;;  %v417_v33 = vld [vmem:[%s5707_s11 + $0x688] sm:$0xff] }
  0x4a   : > { %412 = vst [vmem:[%s5712_s12 + $0x32c] sm:$0xff] %v411_v30  ;;  %414 = vst [vmem:[%s5712_s12 + $0x334] sm:$0xff] %v413_v31  ;;  %v415_v32 = vld [vmem:[%s5707_s11 + $0x680] sm:$0xff]  ;;  %v419_v34 = vld [vmem:[%s5707_s11 + $0x690] sm:$0xff] }
  0x4b   : > { %416 = vst [vmem:[%s5712_s12 + $0x340] sm:$0xff] %v415_v32  ;;  %418 = vst [vmem:[%s5712_s12 + $0x348] sm:$0xff] %v417_v33  ;;  %v421_v35 = vld [vmem:[%s5707_s11 + $0x698] sm:$0xff]  ;;  %v423_v36 = vld [vmem:[%s5707_s11 + $0x6a0] sm:$0xff] }
  0x4c   : > { %420 = vst [vmem:[%s5712_s12 + $0x350] sm:$0xff] %v419_v34  ;;  %v425_v37 = vld [vmem:[%s5707_s11 + $0x6a8] sm:$0xff]  ;;  %422 = vst [vmem:[%s5712_s12 + $0x358] sm:$0xff] %v421_v35  ;;  %v429_v39 = vld [vmem:[%s5707_s11 + $0x6f0] sm:$0xff] }
  0x4d   : > { %424 = vst [vmem:[%s5712_s12 + $0x360] sm:$0xff] %v423_v36  ;;  %426 = vst [vmem:[%s5712_s12 + $0x368] sm:$0xff] %v425_v37  ;;  %v427_v38 = vld [vmem:[%s5707_s11 + $0x6e8] sm:$0xff]  ;;  %v431_v40 = vld [vmem:[%s5707_s11 + $0x6f8] sm:$0xff] }
  0x4e   : > { %428 = vst [vmem:[%s5712_s12 + $0x374] sm:$0xff] %v427_v38  ;;  %430 = vst [vmem:[%s5712_s12 + $0x37c] sm:$0xff] %v429_v39  ;;  %v433_v41 = vld [vmem:[%s5707_s11 + $0x700] sm:$0xff]  ;;  %v435_v42 = vld [vmem:[%s5707_s11 + $0x708] sm:$0xff] }
  0x4f   : > { %432 = vst [vmem:[%s5712_s12 + $0x384] sm:$0xff] %v431_v40  ;;  %v437_v43 = vld [vmem:[%s5707_s11 + $0x710] sm:$0xff]  ;;  %434 = vst [vmem:[%s5712_s12 + $0x38c] sm:$0xff] %v433_v41  ;;  %v441_v45 = vld [vmem:[%s5707_s11 + $0x758] sm:$0xff] }
  0x50   : > { %436 = vst [vmem:[%s5712_s12 + $0x394] sm:$0xff] %v435_v42  ;;  %438 = vst [vmem:[%s5712_s12 + $0x39c] sm:$0xff] %v437_v43  ;;  %v439_v44 = vld [vmem:[%s5707_s11 + $0x750] sm:$0xff]  ;;  %v443_v46 = vld [vmem:[%s5707_s11 + $0x760] sm:$0xff] }
  0x51   : > { %440 = vst [vmem:[%s5712_s12 + $0x3a8] sm:$0xff] %v439_v44  ;;  %442 = vst [vmem:[%s5712_s12 + $0x3b0] sm:$0xff] %v441_v45  ;;  %v445_v47 = vld [vmem:[%s5707_s11 + $0x768] sm:$0xff]  ;;  %v447_v48 = vld [vmem:[%s5707_s11 + $0x770] sm:$0xff] }
  0x52   : > { %444 = vst [vmem:[%s5712_s12 + $0x3b8] sm:$0xff] %v443_v46  ;;  %v449_v49 = vld [vmem:[%s5707_s11 + $0x778] sm:$0xff]  ;;  %446 = vst [vmem:[%s5712_s12 + $0x3c0] sm:$0xff] %v445_v47  ;;  %v453_v51 = vld [vmem:[%s5707_s11 + $0x7c0] sm:$0xff] }
  0x53   : > { %448 = vst [vmem:[%s5712_s12 + $0x3c8] sm:$0xff] %v447_v48  ;;  %450 = vst [vmem:[%s5712_s12 + $0x3d0] sm:$0xff] %v449_v49  ;;  %v451_v50 = vld [vmem:[%s5707_s11 + $0x7b8] sm:$0xff]  ;;  %v455_v52 = vld [vmem:[%s5707_s11 + $0x7c8] sm:$0xff] }
  0x54   : > { %452 = vst [vmem:[%s5712_s12 + $0x3dc] sm:$0xff] %v451_v50  ;;  %454 = vst [vmem:[%s5712_s12 + $0x3e4] sm:$0xff] %v453_v51  ;;  %v457_v53 = vld [vmem:[%s5707_s11 + $0x7d0] sm:$0xff]  ;;  %v459_v54 = vld [vmem:[%s5707_s11 + $0x7d8] sm:$0xff] }
  0x55   : > { %456 = vst [vmem:[%s5712_s12 + $0x3ec] sm:$0xff] %v455_v52  ;;  %v461_v55 = vld [vmem:[%s5707_s11 + $0x7e0] sm:$0xff]  ;;  %458 = vst [vmem:[%s5712_s12 + $0x3f4] sm:$0xff] %v457_v53  ;;  %v465_v57 = vld [vmem:[%s5707_s11 + $0x828] sm:$0xff] }
  0x56   : > { %460 = vst [vmem:[%s5712_s12 + $0x3fc] sm:$0xff] %v459_v54  ;;  %462 = vst [vmem:[%s5712_s12 + $0x404] sm:$0xff] %v461_v55  ;;  %v463_v56 = vld [vmem:[%s5707_s11 + $0x820] sm:$0xff]  ;;  %v467_v58 = vld [vmem:[%s5707_s11 + $0x830] sm:$0xff] }
  0x57   : > { %464 = vst [vmem:[%s5712_s12 + $0x410] sm:$0xff] %v463_v56  ;;  %466 = vst [vmem:[%s5712_s12 + $0x418] sm:$0xff] %v465_v57  ;;  %v469_v59 = vld [vmem:[%s5707_s11 + $0x838] sm:$0xff]  ;;  %v471_v60 = vld [vmem:[%s5707_s11 + $0x840] sm:$0xff] }
  0x58   : > { %468 = vst [vmem:[%s5712_s12 + $0x420] sm:$0xff] %v467_v58  ;;  %v473_v61 = vld [vmem:[%s5707_s11 + $0x848] sm:$0xff]  ;;  %470 = vst [vmem:[%s5712_s12 + $0x428] sm:$0xff] %v469_v59  ;;  %v477_v63 = vld [vmem:[%s5707_s11 + $0x890] sm:$0xff] }
  0x59   : > { %472 = vst [vmem:[%s5712_s12 + $0x430] sm:$0xff] %v471_v60  ;;  %474 = vst [vmem:[%s5712_s12 + $0x438] sm:$0xff] %v473_v61  ;;  %v475_v62 = vld [vmem:[%s5707_s11 + $0x888] sm:$0xff]  ;;  %v479_v0 = vld [vmem:[%s5707_s11 + $0x898] sm:$0xff] }
  0x5a   : > { %476 = vst [vmem:[%s5712_s12 + $0x444] sm:$0xff] %v475_v62  ;;  %478 = vst [vmem:[%s5712_s12 + $0x44c] sm:$0xff] %v477_v63  ;;  %v481_v1 = vld [vmem:[%s5707_s11 + $0x8a0] sm:$0xff]  ;;  %v483_v2 = vld [vmem:[%s5707_s11 + $0x8a8] sm:$0xff] }
  0x5b   : > { %480 = vst [vmem:[%s5712_s12 + $0x454] sm:$0xff] %v479_v0  ;;  %v485_v3 = vld [vmem:[%s5707_s11 + $0x8b0] sm:$0xff]  ;;  %482 = vst [vmem:[%s5712_s12 + $0x45c] sm:$0xff] %v481_v1  ;;  %v489_v5 = vld [vmem:[%s5707_s11 + $0x8f8] sm:$0xff] }
  0x5c   : > { %484 = vst [vmem:[%s5712_s12 + $0x464] sm:$0xff] %v483_v2  ;;  %486 = vst [vmem:[%s5712_s12 + $0x46c] sm:$0xff] %v485_v3  ;;  %v487_v4 = vld [vmem:[%s5707_s11 + $0x8f0] sm:$0xff]  ;;  %v491_v6 = vld [vmem:[%s5707_s11 + $0x900] sm:$0xff] }
  0x5d   : > { %488 = vst [vmem:[%s5712_s12 + $0x478] sm:$0xff] %v487_v4  ;;  %490 = vst [vmem:[%s5712_s12 + $0x480] sm:$0xff] %v489_v5  ;;  %v493_v7 = vld [vmem:[%s5707_s11 + $0x908] sm:$0xff]  ;;  %v495_v8 = vld [vmem:[%s5707_s11 + $0x910] sm:$0xff] }
  0x5e   : > { %492 = vst [vmem:[%s5712_s12 + $0x488] sm:$0xff] %v491_v6  ;;  %v497_v9 = vld [vmem:[%s5707_s11 + $0x918] sm:$0xff]  ;;  %494 = vst [vmem:[%s5712_s12 + $0x490] sm:$0xff] %v493_v7  ;;  %v501_v11 = vld [vmem:[%s5707_s11 + $0x960] sm:$0xff] }
  0x5f   : > { %496 = vst [vmem:[%s5712_s12 + $0x498] sm:$0xff] %v495_v8  ;;  %498 = vst [vmem:[%s5712_s12 + $0x4a0] sm:$0xff] %v497_v9  ;;  %v499_v10 = vld [vmem:[%s5707_s11 + $0x958] sm:$0xff]  ;;  %v503_v12 = vld [vmem:[%s5707_s11 + $0x968] sm:$0xff] }
  0x60   : > { %500 = vst [vmem:[%s5712_s12 + $0x4ac] sm:$0xff] %v499_v10  ;;  %502 = vst [vmem:[%s5712_s12 + $0x4b4] sm:$0xff] %v501_v11  ;;  %v505_v13 = vld [vmem:[%s5707_s11 + $0x970] sm:$0xff]  ;;  %v507_v14 = vld [vmem:[%s5707_s11 + $0x978] sm:$0xff] }
  0x61   : > { %504 = vst [vmem:[%s5712_s12 + $0x4bc] sm:$0xff] %v503_v12  ;;  %v509_v15 = vld [vmem:[%s5707_s11 + $0x980] sm:$0xff]  ;;  %506 = vst [vmem:[%s5712_s12 + $0x4c4] sm:$0xff] %v505_v13  ;;  %v513_v17 = vld [vmem:[%s5707_s11 + $0x9c8] sm:$0xff] }
  0x62   : > { %508 = vst [vmem:[%s5712_s12 + $0x4cc] sm:$0xff] %v507_v14  ;;  %510 = vst [vmem:[%s5712_s12 + $0x4d4] sm:$0xff] %v509_v15  ;;  %v511_v16 = vld [vmem:[%s5707_s11 + $0x9c0] sm:$0xff]  ;;  %v515_v18 = vld [vmem:[%s5707_s11 + $0x9d0] sm:$0xff] }
  0x63   : > { %512 = vst [vmem:[%s5712_s12 + $0x4e0] sm:$0xff] %v511_v16  ;;  %514 = vst [vmem:[%s5712_s12 + $0x4e8] sm:$0xff] %v513_v17  ;;  %v517_v19 = vld [vmem:[%s5707_s11 + $0x9d8] sm:$0xff]  ;;  %v519_v20 = vld [vmem:[%s5707_s11 + $0x9e0] sm:$0xff] }
  0x64   : > { %516 = vst [vmem:[%s5712_s12 + $0x4f0] sm:$0xff] %v515_v18  ;;  %v521_v21 = vld [vmem:[%s5707_s11 + $0x9e8] sm:$0xff]  ;;  %518 = vst [vmem:[%s5712_s12 + $0x4f8] sm:$0xff] %v517_v19  ;;  %v525_v23 = vld [vmem:[%s5707_s11 + $0xa30] sm:$0xff] }
  0x65   : > { %520 = vst [vmem:[%s5712_s12 + $0x500] sm:$0xff] %v519_v20  ;;  %522 = vst [vmem:[%s5712_s12 + $0x508] sm:$0xff] %v521_v21  ;;  %v523_v22 = vld [vmem:[%s5707_s11 + $0xa28] sm:$0xff]  ;;  %v527_v24 = vld [vmem:[%s5707_s11 + $0xa38] sm:$0xff] }
  0x66   : > { %524 = vst [vmem:[%s5712_s12 + $0x514] sm:$0xff] %v523_v22  ;;  %526 = vst [vmem:[%s5712_s12 + $0x51c] sm:$0xff] %v525_v23  ;;  %v529_v25 = vld [vmem:[%s5707_s11 + $0xa40] sm:$0xff]  ;;  %v531_v26 = vld [vmem:[%s5707_s11 + $0xa48] sm:$0xff] }
  0x67   : > { %528 = vst [vmem:[%s5712_s12 + $0x524] sm:$0xff] %v527_v24  ;;  %v533_v27 = vld [vmem:[%s5707_s11 + $0xa50] sm:$0xff]  ;;  %530 = vst [vmem:[%s5712_s12 + $0x52c] sm:$0xff] %v529_v25  ;;  %v4019_v29 = vld [vmem:[%s5707_s11 + $0x98] sm:$0xf] }
  0x68   : > { %532 = vst [vmem:[%s5712_s12 + $0x534] sm:$0xff] %v531_v26  ;;  %534 = vst [vmem:[%s5712_s12 + $0x53c] sm:$0xff] %v533_v27  ;;  %v4017_v28 = vld [vmem:[%s5707_s11 + $0x30] sm:$0xf]  ;;  %v4021_v30 = vld [vmem:[%s5707_s11 + $0x100] sm:$0xf] }
  0x69   : > { %4018 = vst [vmem:[%s5712_s12 + $0x30] sm:$0xf] %v4017_v28  ;;  %4020 = vst [vmem:[%s5712_s12 + $0x64] sm:$0xf] %v4019_v29  ;;  %v4023_v31 = vld [vmem:[%s5707_s11 + $0x168] sm:$0xf] }
  0x6a   : > { %4022 = vst [vmem:[%s5712_s12 + $0x98] sm:$0xf] %v4021_v30  ;;  %v4025_v32 = vld [vmem:[%s5707_s11 + $0x1d0] sm:$0xf]  ;;  %v4027_v33 = vld [vmem:[%s5707_s11 + $0x238] sm:$0xf] }
  0x6b   : > { %4024 = vst [vmem:[%s5712_s12 + $0xcc] sm:$0xf] %v4023_v31  ;;  %4026 = vst [vmem:[%s5712_s12 + $0x100] sm:$0xf] %v4025_v32  ;;  %v4029_v34 = vld [vmem:[%s5707_s11 + $0x2a0] sm:$0xf] }
  0x6c   : > { %4028 = vst [vmem:[%s5712_s12 + $0x134] sm:$0xf] %v4027_v33  ;;  %v4031_v35 = vld [vmem:[%s5707_s11 + $0x308] sm:$0xf]  ;;  %v4033_v36 = vld [vmem:[%s5707_s11 + $0x370] sm:$0xf] }
  0x6d   : > { %4030 = vst [vmem:[%s5712_s12 + $0x168] sm:$0xf] %v4029_v34  ;;  %4032 = vst [vmem:[%s5712_s12 + $0x19c] sm:$0xf] %v4031_v35  ;;  %v4035_v37 = vld [vmem:[%s5707_s11 + $0x3d8] sm:$0xf] }
  0x6e   : > { %4034 = vst [vmem:[%s5712_s12 + $0x1d0] sm:$0xf] %v4033_v36  ;;  %v4037_v38 = vld [vmem:[%s5707_s11 + $0x440] sm:$0xf]  ;;  %v4039_v39 = vld [vmem:[%s5707_s11 + $0x4a8] sm:$0xf] }
  0x6f   : > { %4036 = vst [vmem:[%s5712_s12 + $0x204] sm:$0xf] %v4035_v37  ;;  %4038 = vst [vmem:[%s5712_s12 + $0x238] sm:$0xf] %v4037_v38  ;;  %v4041_v40 = vld [vmem:[%s5707_s11 + $0x510] sm:$0xf] }
  0x70   : > { %4040 = vst [vmem:[%s5712_s12 + $0x26c] sm:$0xf] %v4039_v39  ;;  %v4043_v41 = vld [vmem:[%s5707_s11 + $0x578] sm:$0xf]  ;;  %v4045_v42 = vld [vmem:[%s5707_s11 + $0x5e0] sm:$0xf] }
  0x71   : > { %4042 = vst [vmem:[%s5712_s12 + $0x2a0] sm:$0xf] %v4041_v40  ;;  %4044 = vst [vmem:[%s5712_s12 + $0x2d4] sm:$0xf] %v4043_v41  ;;  %v4047_v43 = vld [vmem:[%s5707_s11 + $0x648] sm:$0xf] }
  0x72   : > { %4046 = vst [vmem:[%s5712_s12 + $0x308] sm:$0xf] %v4045_v42  ;;  %v4049_v44 = vld [vmem:[%s5707_s11 + $0x6b0] sm:$0xf]  ;;  %v4051_v45 = vld [vmem:[%s5707_s11 + $0x718] sm:$0xf] }
  0x73   : > { %4048 = vst [vmem:[%s5712_s12 + $0x33c] sm:$0xf] %v4047_v43  ;;  %4050 = vst [vmem:[%s5712_s12 + $0x370] sm:$0xf] %v4049_v44  ;;  %v4053_v46 = vld [vmem:[%s5707_s11 + $0x780] sm:$0xf] }
  0x74   : > { %4052 = vst [vmem:[%s5712_s12 + $0x3a4] sm:$0xf] %v4051_v45  ;;  %v4055_v47 = vld [vmem:[%s5707_s11 + $0x7e8] sm:$0xf]  ;;  %v4057_v48 = vld [vmem:[%s5707_s11 + $0x850] sm:$0xf] }
  0x75   : > { %4054 = vst [vmem:[%s5712_s12 + $0x3d8] sm:$0xf] %v4053_v46  ;;  %4056 = vst [vmem:[%s5712_s12 + $0x40c] sm:$0xf] %v4055_v47  ;;  %v4059_v49 = vld [vmem:[%s5707_s11 + $0x8b8] sm:$0xf] }
  0x76   : > { %4058 = vst [vmem:[%s5712_s12 + $0x440] sm:$0xf] %v4057_v48  ;;  %v4061_v50 = vld [vmem:[%s5707_s11 + $0x920] sm:$0xf]  ;;  %v4063_v51 = vld [vmem:[%s5707_s11 + $0x988] sm:$0xf] }
  0x77   : > { %4060 = vst [vmem:[%s5712_s12 + $0x474] sm:$0xf] %v4059_v49  ;;  %4062 = vst [vmem:[%s5712_s12 + $0x4a8] sm:$0xf] %v4061_v50  ;;  %v4065_v52 = vld [vmem:[%s5707_s11 + $0x9f0] sm:$0xf] }
  0x78   : > { %4064 = vst [vmem:[%s5712_s12 + $0x4dc] sm:$0xf] %v4063_v51  ;;  %v4067_v53 = vld [vmem:[%s5707_s11 + $0xa58] sm:$0xf]  ;;  %4066 = vst [vmem:[%s5712_s12 + $0x510] sm:$0xf] %v4065_v52 }
  0x79   : > { %4068 = vst [vmem:[%s5712_s12 + $0x544] sm:$0xf] %v4067_v53 }
  0x7a PF: > { %p4069_p7 = scmp.ge.s32.totalorder %s5617_s21, 1  ;;  %p610_p8 = scmp.lt.s32.totalorder %s5617_s21, 5 }
  0x7c   : > { %p611_p9 = pnand %p4069_p7, %p610_p8 }
  0x7d   : > { %s617_s13 = sand.u32 (!%p611_p9), 1, %s5593_s15   ;;  %s661_s14 = smul.u32 (!%p611_p9), 208, %s5601_s17 }
  0x7e   : > { %614 = sbr.rel (%p611_p9) target bundleno = 781 (0x30d), region = 58  ;;  %p4072_p12 = scmp.ne.s32.totalorder (!%p611_p9), %s5601_s17, 0 }
  0x7f   : > { %s5151_s24 = smul.u32 (!%p611_p9), 1352, %s617_s13  ;;  %p662_p10 = scmp.lt.s32.totalorder (!%p611_p9), %s661_s14, 415 }
  0x80   : > { %s676_s25 = smul.u32 (!%p611_p9), 26, %s5605_s18 }
  0x81   : > { %s6090_s15 = scalar_lea.vmem (!%p611_p9), [#allocation3], %s5151_s24 }
  0x82   : > { %p677_p11 = scmp.lt.s32.totalorder (!%p611_p9), %s676_s25, 51 }
  0x85   : > { %s6749_s14 = smov (!%p662_p10, %s661_s14), 415  ;;  %s6751_s25 = smov (!%p677_p11, %s676_s25), 51 }
  0x86   : > { %s4070_s26 = sshll.u32 %s6749_s14, 2  ;;  %s4071_s5 = sshll.u32 %s6751_s25, 2  ;;  %v5619_v54 = vmov (!%p4072_p12), 0.0  }
  0x87   : > { %s6083_s30 = scalar_lea.vmem %s6732_s1, %s4070_s26  ;;  %s6088_s8 = scalar_lea.vmem %s6735_s4, %s4071_s5  ;;  %690 = vst [vmem:[#allocation2] sm:$0xff] (!%p4072_p12), %v5619_v54  ;;  %691 = vst [vmem:[#allocation2 + $0x8] sm:$0xff] (!%p4072_p12), %v5619_v54 }
  0x88   : > { %689 = sbr.rel (%p4072_p12) target bundleno = 148 (0x94), region = 66  ;;  %692 = vst [vmem:[#allocation2 + $0x10] sm:$0xff] (!%p4072_p12), %v5619_v54  ;;  %693 = vst [vmem:[#allocation2 + $0x18] sm:$0xff] (!%p4072_p12), %v5619_v54 }
  0x89   : > { %694 = vst [vmem:[#allocation2 + $0x20] sm:$0xff] (!%p4072_p12), %v5619_v54  ;;  %695 = vst [vmem:[#allocation2 + $0x28] sm:$0xff] (!%p4072_p12), %v5619_v54 }
  0x8a   : > { %696 = vst [vmem:[#allocation2 + $0x30] sm:$0xff] (!%p4072_p12), %v5619_v54  ;;  %697 = vst [vmem:[#allocation2 + $0x38] sm:$0xff] (!%p4072_p12), %v5619_v54 }
  0x8b   : > { %698 = vst [vmem:[#allocation2 + $0x40] sm:$0xff] (!%p4072_p12), %v5619_v54  ;;  %699 = vst [vmem:[#allocation2 + $0x48] sm:$0xff] (!%p4072_p12), %v5619_v54 }
  0x8c   : > { %700 = vst [vmem:[#allocation2 + $0x50] sm:$0xff] (!%p4072_p12), %v5619_v54  ;;  %701 = vst [vmem:[#allocation2 + $0x58] sm:$0xff] (!%p4072_p12), %v5619_v54 }
  0x8d   : > { %702 = vst [vmem:[#allocation2 + $0x60] sm:$0xff] (!%p4072_p12), %v5619_v54  ;;  %703 = vst [vmem:[#allocation2 + $0x68] sm:$0xff] (!%p4072_p12), %v5619_v54 }
  0x8e   : > { %704 = vst [vmem:[#allocation2 + $0x70] sm:$0xff] (!%p4072_p12), %v5619_v54  ;;  %705 = vst [vmem:[#allocation2 + $0x78] sm:$0xff] (!%p4072_p12), %v5619_v54 }
  0x8f   : > { %706 = vst [vmem:[#allocation2 + $0x80] sm:$0xff] %v5619_v54  ;;  %707 = vst [vmem:[#allocation2 + $0x88] sm:$0xff] %v5619_v54 }
  0x90   : > { %708 = vst [vmem:[#allocation2 + $0x90] sm:$0xff] %v5619_v54  ;;  %709 = vst [vmem:[#allocation2 + $0x98] sm:$0xff] %v5619_v54 }
  0x91   : > { %710 = vst [vmem:[#allocation2 + $0xa0] sm:$0xff] %v5619_v54  ;;  %711 = vst [vmem:[#allocation2 + $0xa8] sm:$0xff] %v5619_v54 }
  0x92   : > { %712 = vst [vmem:[#allocation2 + $0xb0] sm:$0xff] %v5619_v54  ;;  %713 = vst [vmem:[#allocation2 + $0xb8] sm:$0xff] %v5619_v54 }
  0x93   : > { %714 = vst [vmem:[#allocation2 + $0xc0] sm:$0xff] %v5619_v54  ;;  %715 = vst [vmem:[#allocation2 + $0xc8] sm:$0xff] %v5619_v54 }
  0x94 PF: > { %v5212_v55 = vld [vmem:[%s6083_s30 + $0x40] sm:$0xff]   ;;  %v5214_v57 = vld [vmem:[%s6083_s30 + $0x48] sm:$0xff]   ;;  %v5216_v59 = vld [vmem:[%s6083_s30 + $0x50] sm:$0xff]   ;;  %vm5621_vm0 = vmmov 0   ;;  %p4346_p13 = scmp.ne.s32.totalorder %s5601_s17, 1 }
  0x95   : > { %v5213_v56 = vld [vmem:[%s6083_s30] sm:$0xff]   ;;  %4480 = vmatprep.subr.bf16.mxu0 %v5212_v55  ;;  %5133 = vmatprep.subr.bf16.mxu1 %v5212_v55  ;;  %v5215_v58 = vld [vmem:[%s6083_s30 + $0x8] sm:$0xff]   ;;  %v5217_v60 = vld [vmem:[%s6083_s30 + $0x10] sm:$0xff]  }
  0x96   : > { %4481 = vmatpush3.bf16.msra.mxu0 %v5213_v56  ;;  %5141 = vmatpush3.bf16.msra.mxu1 %v5213_v56  ;;  %v5218_v61 = vld [vmem:[%s6083_s30 + $0x58] sm:$0xff]   ;;  %v5220_v63 = vld [vmem:[%s6083_s30 + $0x60] sm:$0xff]   ;;  %v5222_v1 = vld [vmem:[%s6083_s30 + $0x68] sm:$0xff]  }
  0x97   : > { %4482 = vmatprep.subr.bf16.mxu0 %v5214_v57  ;;  %5134 = vmatprep.subr.bf16.mxu1 %v5214_v57  ;;  %v5219_v62 = vld [vmem:[%s6083_s30 + $0x18] sm:$0xff]   ;;  %v5221_v0 = vld [vmem:[%s6083_s30 + $0x20] sm:$0xff]   ;;  %v5223_v4 = vld [vmem:[%s6083_s30 + $0x28] sm:$0xff]  }
  0x98   : > { %v5230_v2 = vld [vmem:[%s6090_s15 + $0x4] ss:$52 sps:$4 sm:$0xff]   ;;  %v5233_v3 = vld [vmem:[%s6090_s15 + $0x2dc] ss:$52 sps:$4 sm:$0xff]   ;;  %v5228_v10 = vld [vmem:[%s6090_s15] ss:$52 sps:$4 sm:$0xff]  }
  0x99   : > { %v5224_v5 = vld [vmem:[%s6083_s30 + $0x70] sm:$0xff]   ;;  %2646 = vmatprep.mubr.bf16.mxu0 %v5230_v2  ;;  %2702 = vmatprep.mubr.bf16.mxu1 %v5233_v3  ;;  %v5226_v7 = vld [vmem:[%s6083_s30 + $0x78] sm:$0xff]   ;;  %v5234_v9 = vld [vmem:[%s6083_s30 + $0x140] sm:$0xff]  }
  0x9a   : > { %4483 = vmatpush3.bf16.msra.mxu0 %v5215_v58  ;;  %5142 = vmatpush3.bf16.msra.mxu1 %v5215_v58  ;;  %v5225_v6 = vld [vmem:[%s6083_s30 + $0x30] sm:$0xff]   ;;  %v5227_v8 = vld [vmem:[%s6083_s30 + $0x38] sm:$0xff]   ;;  %v5236_v12 = vld [vmem:[%s6083_s30 + $0xc0] sm:$0xff]  }
  0x9b   : > { %4484 = vmatprep.subr.bf16.mxu0 %v5216_v59  ;;  %5135 = vmatprep.subr.bf16.mxu1 %v5216_v59  ;;  %v5231_v11 = vld [vmem:[%s6090_s15 + $0x2d8] ss:$52 sps:$4 sm:$0xff]   ;;  %v5243_v22 = vld [vmem:[%s6090_s15 + $0x68] ss:$52 sps:$4 sm:$0xff]   ;;  %v5244_v23 = vld [vmem:[%s6090_s15 + $0x340] ss:$52 sps:$4 sm:$0xff]  }
  0x9c   : > { %v5235_v13 = vld [vmem:[%s6083_s30 + $0x100] sm:$0xff]   ;;  %v5240_v16 = vld [vmem:[%s6090_s15 + $0x344] ss:$52 sps:$4 sm:$0xff]  }
  0x9d   : > { %v5237_v14 = vld [vmem:[%s6083_s30 + $0x80] sm:$0xff]   ;;  %v5242_v17 = vld [vmem:[%s6083_s30 + $0x148] sm:$0xff]   ;;  %v5248_v21 = vld [vmem:[%s6083_s30 + $0x150] sm:$0xff]  }
  0x9e   : > { %4485 = vmatpush3.bf16.msra.mxu0 %v5217_v60  ;;  %5143 = vmatpush3.bf16.msra.mxu1 %v5217_v60  ;;  %v5238_v15 = vld [vmem:[%s6090_s15 + $0x6c] ss:$52 sps:$4 sm:$0xff]   ;;  %v5246_v18 = vld [vmem:[%s6083_s30 + $0xc8] sm:$0xff]  }
  0x9f   : > { %4486 = vmatprep.subr.bf16.mxu0 %v5218_v61  ;;  %5136 = vmatprep.subr.bf16.mxu1 %v5218_v61  ;;  %v5245_v19 = vld [vmem:[%s6083_s30 + $0x108] sm:$0xff]   ;;  %v5253_v24 = vld [vmem:[%s6083_s30 + $0xd0] sm:$0xff]   ;;  %v5258_v29 = vld [vmem:[%s6083_s30 + $0xd8] sm:$0xff]  }
  0xa0   : > { %v5247_v20 = vld [vmem:[%s6083_s30 + $0x88] sm:$0xff]   ;;  %v5251_v26 = vld [vmem:[%s6090_s15 + $0x3ac] ss:$52 sps:$4 sm:$0xff]  }
  0xa1   : > { %v5249_v25 = vld [vmem:[%s6090_s15 + $0xd4] ss:$52 sps:$4 sm:$0xff]   ;;  %v5254_v27 = vld [vmem:[%s6083_s30 + $0x110] sm:$0xff]  }
  0xa2   : > { %4487 = vmatpush3.bf16.msra.mxu0 %v5219_v62  ;;  %5144 = vmatpush3.bf16.msra.mxu1 %v5219_v62  ;;  %v5257_v28 = vld [vmem:[%s6083_s30 + $0x90] sm:$0xff]   ;;  %v5259_v30 = vld [vmem:[%s6083_s30 + $0x158] sm:$0xff]   ;;  %v5268_v35 = vld [vmem:[%s6083_s30 + $0xe0] sm:$0xff]  }
  0xa3   : > { %4488 = vmatprep.subr.bf16.mxu0 %v5220_v63  ;;  %5137 = vmatprep.subr.bf16.mxu1 %v5220_v63  ;;  %v5260_v31 = vld [vmem:[%s6083_s30 + $0x98] sm:$0xff]   ;;  %v5270_v36 = vld [vmem:[%s6083_s30 + $0x160] sm:$0xff]   ;;  %v5278_v41 = vld [vmem:[%s6083_s30 + $0xe8] sm:$0xff]  }
  0xa4   : > { %v5261_v32 = vld [vmem:[%s6083_s30 + $0x118] sm:$0xff]   ;;  %v5262_v37 = vld [vmem:[%s6090_s15 + $0x13c] ss:$52 sps:$4 sm:$0xff]  }
  0xa5   : > { %v5255_v33 = vld [vmem:[%s6090_s15 + $0xd0] ss:$52 sps:$4 sm:$0xff]   ;;  %v5256_v34 = vld [vmem:[%s6090_s15 + $0x3a8] ss:$52 sps:$4 sm:$0xff]   ;;  %v5266_v43 = vld [vmem:[%s6090_s15 + $0x138] ss:$52 sps:$4 sm:$0xff]  }
  0xa6   : > { %4489 = vmatpush3.bf16.msra.mxu0 %v5221_v0  ;;  %5145 = vmatpush3.bf16.msra.mxu1 %v5221_v0  ;;  %v5264_v38 = vld [vmem:[%s6090_s15 + $0x414] ss:$52 sps:$4 sm:$0xff]   ;;  %v5267_v44 = vld [vmem:[%s6090_s15 + $0x410] ss:$52 sps:$4 sm:$0xff]   ;;  %v5277_v54 = vld [vmem:[%s6090_s15 + $0x478] ss:$52 sps:$4 sm:$0xff]  }
  0xa7   : > { %4490 = vmatprep.subr.bf16.mxu0 %v5222_v1  ;;  %5138 = vmatprep.subr.bf16.mxu1 %v5222_v1  ;;  %v5269_v39 = vld [vmem:[%s6083_s30 + $0xa0] sm:$0xff]   ;;  %v5279_v42 = vld [vmem:[%s6083_s30 + $0xa8] sm:$0xff]   ;;  %v5286_v49 = vld [vmem:[%s6083_s30 + $0xf0] sm:$0xff]  }
  0xa8   : > { %v5271_v40 = vld [vmem:[%s6083_s30 + $0x120] sm:$0xff]   ;;  %v5280_v45 = vld [vmem:[%s6083_s30 + $0x168] sm:$0xff]   ;;  %v5289_v50 = vld [vmem:[%s6083_s30 + $0xb0] sm:$0xff]  }
  0xa9   : > { %v5281_v46 = vld [vmem:[%s6083_s30 + $0x128] sm:$0xff]   ;;  %v5290_v51 = vld [vmem:[%s6083_s30 + $0x170] sm:$0xff]   ;;  %v5292_v55 = vld [vmem:[%s6083_s30 + $0xf8] sm:$0xff]  }
  0xaa   : > { %4491 = vmatpush3.bf16.msra.mxu0 %v5223_v4  ;;  %5146 = vmatpush3.bf16.msra.mxu1 %v5223_v4  ;;  %v5272_v47 = vld [vmem:[%s6090_s15 + $0x1a4] ss:$52 sps:$4 sm:$0xff]   ;;  %v5274_v48 = vld [vmem:[%s6090_s15 + $0x47c] ss:$52 sps:$4 sm:$0xff]   ;;  %v5276_v53 = vld [vmem:[%s6090_s15 + $0x1a0] ss:$52 sps:$4 sm:$0xff]  }
  0xab   : > { %4492 = vmatprep.subr.bf16.mxu0 %v5224_v5  ;;  %5139 = vmatprep.subr.bf16.mxu1 %v5224_v5  ;;  %v5291_v52 = vld [vmem:[%s6083_s30 + $0x130] sm:$0xff]   ;;  %v5293_v56 = vld [vmem:[%s6083_s30 + $0xb8] sm:$0xff]   ;;  %v5302_v61 = vld [vmem:[%s6083_s30 + $0x1c0] sm:$0xff]  }
  0xac   : > { %v5282_v57 = vld [vmem:[%s6090_s15 + $0x20c] ss:$52 sps:$4 sm:$0xff]   ;;  %v5284_v58 = vld [vmem:[%s6090_s15 + $0x4e4] ss:$52 sps:$4 sm:$0xff]   ;;  %v5287_v62 = vld [vmem:[%s6090_s15 + $0x208] ss:$52 sps:$4 sm:$0xff]  }
  0xad   : > { %v5300_v59 = vld [vmem:[%s6083_s30 + $0x178] sm:$0xff]   ;;  %v5310_v2 = vld [vmem:[%s6083_s30 + $0x240] sm:$0xff]  }
  0xae   : > { %4493 = vmatpush3.bf16.msra.mxu0 %v5225_v6  ;;  %5147 = vmatpush3.bf16.msra.mxu1 %v5225_v6  ;;  %v5301_v60 = vld [vmem:[%s6083_s30 + $0x138] sm:$0xff]   ;;  %v5303_v5 = vld [vmem:[%s6083_s30 + $0x180] sm:$0xff]  }
  0xaf   : > { %4494 = vmatprep.subr.bf16.mxu0 %v5226_v7  ;;  %5140 = vmatprep.subr.bf16.mxu1 %v5226_v7  ;;  %v5288_v63 = vld [vmem:[%s6090_s15 + $0x4e0] ss:$52 sps:$4 sm:$0xff]   ;;  %v5296_v3 = vld [vmem:[%s6090_s15 + $0x8] ss:$52 sps:$4 sm:$0xff]   ;;  %v5299_v4 = vld [vmem:[%s6090_s15 + $0x270] ss:$52 sps:$4 sm:$0xff]  }
  0xb0   : > { %v5294_v0 = vld [vmem:[%s6090_s15 + $0x274] ss:$52 sps:$4 sm:$0xff]   ;;  %v5298_v1 = vld [vmem:[%s6090_s15 + $0xc] ss:$52 sps:$4 sm:$0xff]  }
  0xb1   : > { %v5304_v6 = vld [vmem:[%s6090_s15 + $0x74] ss:$52 sps:$4 sm:$0xff]  }
  0xb2   : > { %4495 = vmatpush3.bf16.msra.mxu0 %v5227_v8  ;;  %5148 = vmatpush3.bf16.msra.mxu1 %v5227_v8  ;;  %v5308_v7 = vld [vmem:[%s6090_s15 + $0x14] ss:$52 sps:$4 sm:$0xff]  }
  0xb3   : > { %4668 = vmatprep.subr.bf16.mxu0 %v5234_v9  ;;  %4574 = vmatprep.subr.bf16.mxu1 %v5236_v12  ;;  %v5318_v8 = vld [vmem:[%s6083_s30 + $0x1c8] sm:$0xff]  }
  0xb4   : > { %v5319_v9 = vld [vmem:[%s6083_s30 + $0x188] sm:$0xff]  }
  0xb5   : > { %2647 = vmatmul.mubr.bf16.vlgmr.msra.gmra.mrb[0].mxu0 %v5228_v10  ;;  %2703 = vmatmul.mubr.bf16.vlgmr.msra.gmra.mrb[0].mxu1 %v5231_v11  ;;  %v5306_v10 = vld [vmem:[%s6090_s15 + $0x10] ss:$52 sps:$4 sm:$0xff]  }
  0xb6   : > { %4669 = vmatpush3.bf16.msra.mxu0 %v5235_v13  ;;  %4575 = vmatpush3.bf16.msra.mxu1 %v5237_v14  ;;  %v5328_v11 = vld [vmem:[%s6083_s30 + $0x1d0] sm:$0xff]   ;;  %v5311_v13 = vld [vmem:[%s6083_s30 + $0x200] sm:$0xff]  }
  0xb7   : > { %2654 = vmatprep.mubr.bf16.mxu0 %v5238_v15  ;;  %2710 = vmatprep.mubr.bf16.mxu1 %v5240_v16  ;;  %v5309_v12 = vld [vmem:[%s6090_s15 + $0x70] ss:$52 sps:$4 sm:$0xff]  }
  0xb8   : > { %4670 = vmatprep.subr.bf16.mxu0 %v5242_v17  ;;  %4576 = vmatprep.subr.bf16.mxu1 %v5246_v18  ;;  %v5312_v14 = vld [vmem:[%s6090_s15 + $0xdc] ss:$52 sps:$4 sm:$0xff]  }
  0xb9   : > { %v5314_v15 = vld [vmem:[%s6090_s15 + $0x7c] ss:$52 sps:$4 sm:$0xff]  }
  0xba   : > { %4671 = vmatpush3.bf16.msra.mxu0 %v5245_v19  ;;  %4577 = vmatpush3.bf16.msra.mxu1 %v5247_v20  ;;  %v5320_v16 = vld [vmem:[%s6083_s30 + $0x248] sm:$0xff]   ;;  %v5329_v17 = vld [vmem:[%s6083_s30 + $0x190] sm:$0xff]  }
  0xbb   : > { %4672 = vmatprep.subr.bf16.mxu0 %v5248_v21  ;;  %4578 = vmatprep.subr.bf16.mxu1 %v5253_v24  ;;  %v5321_v18 = vld [vmem:[%s6083_s30 + $0x208] sm:$0xff]   ;;  %v5336_v19 = vld [vmem:[%s6083_s30 + $0x250] sm:$0xff]  }
  0xbc   : > { %v5316_v20 = vld [vmem:[%s6090_s15 + $0xd8] ss:$52 sps:$4 sm:$0xff]  }
  0xbd   : > { %2655 = vmatmul.mubr.bf16.gmra.mrb[4].mxu0 %v5243_v22  ;;  %2711 = vmatmul.mubr.bf16.gmra.mrb[4].mxu1 %v5244_v23  ;;  %v5317_v21 = vld [vmem:[%s6090_s15 + $0x78] ss:$52 sps:$4 sm:$0xff]  }
  0xbe   : > { %2662 = vmatprep.mubr.bf16.mxu0 %v5249_v25  ;;  %2718 = vmatprep.mubr.bf16.mxu1 %v5251_v26  ;;  %v5344_v22 = vld [vmem:[%s6083_s30 + $0x1d8] sm:$0xff]   ;;  %v5337_v26 = vld [vmem:[%s6083_s30 + $0x210] sm:$0xff]  }
  0xbf   : > { %4673 = vmatpush3.bf16.msra.mxu0 %v5254_v27  ;;  %4579 = vmatpush3.bf16.msra.mxu1 %v5257_v28  ;;  %v5345_v23 = vld [vmem:[%s6083_s30 + $0x198] sm:$0xff]  }
  0xc0   : > { %4580 = vmatprep.subr.bf16.mxu1 %v5258_v29  ;;  %4674 = vmatprep.subr.bf16.mxu0 %v5259_v30  ;;  %v5322_v24 = vld [vmem:[%s6090_s15 + $0x144] ss:$52 sps:$4 sm:$0xff]   ;;  %v5326_v28 = vld [vmem:[%s6090_s15 + $0x140] ss:$52 sps:$4 sm:$0xff]  }
  0xc1   : > { %v5324_v25 = vld [vmem:[%s6090_s15 + $0xe4] ss:$52 sps:$4 sm:$0xff]   ;;  %v5327_v29 = vld [vmem:[%s6090_s15 + $0xe0] ss:$52 sps:$4 sm:$0xff]  }
  0xc2   : > { %v5350_v27 = vld [vmem:[%s6083_s30 + $0x258] sm:$0xff]  }
  0xc3   : > { %4581 = vmatpush3.bf16.msra.mxu1 %v5260_v31  ;;  %4675 = vmatpush3.bf16.msra.mxu0 %v5261_v32  ;;  %v5353_v30 = vld [vmem:[%s6083_s30 + $0x218] sm:$0xff]   ;;  %v5358_v32 = vld [vmem:[%s6083_s30 + $0x1e0] sm:$0xff]  }
  0xc4   : > { %4582 = vmatprep.subr.bf16.mxu1 %v5268_v35  ;;  %4676 = vmatprep.subr.bf16.mxu0 %v5270_v36  ;;  %v5330_v31 = vld [vmem:[%s6090_s15 + $0x1ac] ss:$52 sps:$4 sm:$0xff]  }
  0xc5   : > { %2663 = vmatmul.mubr.bf16.gmra.mrb[8].mxu0 %v5255_v33  ;;  %2719 = vmatmul.mubr.bf16.gmra.mrb[8].mxu1 %v5256_v34  ;;  %v5332_v33 = vld [vmem:[%s6090_s15 + $0x14c] ss:$52 sps:$4 sm:$0xff]  }
  0xc6   : > { %2670 = vmatprep.mubr.bf16.mxu0 %v5262_v37  ;;  %2726 = vmatprep.mubr.bf16.mxu1 %v5264_v38  ;;  %v5361_v34 = vld [vmem:[%s6083_s30 + $0x1a0] sm:$0xff]  }
  0xc7   : > { %4583 = vmatpush3.bf16.msra.mxu1 %v5269_v39  ;;  %4677 = vmatpush3.bf16.msra.mxu0 %v5271_v40  ;;  %v5362_v35 = vld [vmem:[%s6083_s30 + $0x260] sm:$0xff]   ;;  %v5370_v39 = vld [vmem:[%s6083_s30 + $0x1e8] sm:$0xff]  }
  0xc8   : > { %4584 = vmatprep.subr.bf16.mxu1 %v5278_v41  ;;  %4678 = vmatprep.subr.bf16.mxu0 %v5280_v45  ;;  %v5363_v36 = vld [vmem:[%s6083_s30 + $0x220] sm:$0xff]   ;;  %v5371_v40 = vld [vmem:[%s6083_s30 + $0x1a8] sm:$0xff]  }
  0xc9   : > { %v5334_v37 = vld [vmem:[%s6090_s15 + $0x1a8] ss:$52 sps:$4 sm:$0xff]   ;;  %v5342_v45 = vld [vmem:[%s6090_s15 + $0x210] ss:$52 sps:$4 sm:$0xff]  }
  0xca   : > { %v5335_v38 = vld [vmem:[%s6090_s15 + $0x148] ss:$52 sps:$4 sm:$0xff]  }
  0xcb   : > { %4585 = vmatpush3.bf16.msra.mxu1 %v5279_v42  ;;  %4679 = vmatpush3.bf16.msra.mxu0 %v5281_v46  ;;  %v5338_v41 = vld [vmem:[%s6090_s15 + $0x214] ss:$52 sps:$4 sm:$0xff]   ;;  %v5343_v46 = vld [vmem:[%s6090_s15 + $0x1b0] ss:$52 sps:$4 sm:$0xff]  }
  0xcc   : > { %4586 = vmatprep.subr.bf16.mxu1 %v5286_v49  ;;  %4680 = vmatprep.subr.bf16.mxu0 %v5290_v51  ;;  %v5340_v42 = vld [vmem:[%s6090_s15 + $0x1b4] ss:$52 sps:$4 sm:$0xff]   ;;  %v5386_v49 = vld [vmem:[%s6083_s30 + $0x1f0] sm:$0xff]  }
  0xcd   : > { %2671 = vmatmul.mubr.bf16.gmra.mrb[12].mxu0 %v5266_v43  ;;  %2727 = vmatmul.mubr.bf16.gmra.mrb[12].mxu1 %v5267_v44  ;;  %v5378_v43 = vld [vmem:[%s6083_s30 + $0x268] sm:$0xff]   ;;  %v5388_v51 = vld [vmem:[%s6083_s30 + $0x270] sm:$0xff]  }
  0xce   : > { %2678 = vmatprep.mubr.bf16.mxu0 %v5272_v47  ;;  %2734 = vmatprep.mubr.bf16.mxu1 %v5274_v48  ;;  %v5379_v44 = vld [vmem:[%s6083_s30 + $0x228] sm:$0xff]  }
  0xcf   : > { %4587 = vmatpush3.bf16.msra.mxu1 %v5289_v50  ;;  %4681 = vmatpush3.bf16.msra.mxu0 %v5291_v52  ;;  %v5346_v47 = vld [vmem:[%s6090_s15 + $0x27c] ss:$52 sps:$4 sm:$0xff]  }
  0xd0   : > { %4588 = vmatprep.subr.bf16.mxu1 %v5292_v55  ;;  %4682 = vmatprep.subr.bf16.mxu0 %v5300_v59  ;;  %v5348_v48 = vld [vmem:[%s6090_s15 + $0x21c] ss:$52 sps:$4 sm:$0xff]   ;;  %v5396_v55 = vld [vmem:[%s6083_s30 + $0x1f8] sm:$0xff]  }
  0xd1   : > { %v5387_v50 = vld [vmem:[%s6083_s30 + $0x1b0] sm:$0xff]   ;;  %v5404_v59 = vld [vmem:[%s6083_s30 + $0x278] sm:$0xff]  }
  0xd2   : > { %v5393_v52 = vld [vmem:[%s6083_s30 + $0x230] sm:$0xff]  }
  0xd3   : > { %4589 = vmatpush3.bf16.msra.mxu1 %v5293_v56  ;;  %4683 = vmatpush3.bf16.msra.mxu0 %v5301_v60  ;;  %v5354_v56 = vld [vmem:[%s6090_s15 + $0x2e4] ss:$52 sps:$4 sm:$0xff]  }
  0xd4   : > { %4762 = vmatprep.subr.bf16.mxu1 %v5302_v61  ;;  %4856 = vmatprep.subr.bf16.mxu0 %v5310_v2  ;;  %v5405_v60 = vld [vmem:[%s6083_s30 + $0x238] sm:$0xff]  }
  0xd5   : > { %2679 = vmatmul.mubr.bf16.gmra.mrb[16].mxu0 %v5276_v53  ;;  %2735 = vmatmul.mubr.bf16.gmra.mrb[16].mxu1 %v5277_v54  ;;  %v5351_v53 = vld [vmem:[%s6090_s15 + $0x278] ss:$52 sps:$4 sm:$0xff]   ;;  %v5359_v61 = vld [vmem:[%s6090_s15 + $0x2e0] ss:$52 sps:$4 sm:$0xff]  }
  0xd6   : > { %2686 = vmatprep.mubr.bf16.mxu0 %v5282_v57  ;;  %2742 = vmatprep.mubr.bf16.mxu1 %v5284_v58  ;;  %v5352_v54 = vld [vmem:[%s6090_s15 + $0x218] ss:$52 sps:$4 sm:$0xff]  }
  0xd7   : > { %v5356_v57 = vld [vmem:[%s6090_s15 + $0x284] ss:$52 sps:$4 sm:$0xff]   ;;  %v5366_v2 = vld [vmem:[%s6090_s15 + $0x2ec] ss:$52 sps:$4 sm:$0xff]  }
  0xd8   : > { %v5401_v58 = vld [vmem:[%s6083_s30 + $0x1b8] sm:$0xff]  }
  0xdd   : > { %2687 = vmatmul.mubr.bf16.gmra.mrb[20].mxu0 %v5287_v62  ;;  %2743 = vmatmul.mubr.bf16.gmra.mrb[20].mxu1 %v5288_v63  ;;  %v5360_v62 = vld [vmem:[%s6090_s15 + $0x280] ss:$52 sps:$4 sm:$0xff]  }
  0xde   : > { %2694 = vmatprep.mubr.bf16.mxu0 %v5294_v0  ;;  %2783 = vmatprep.mubr.bf16.mxu1 %v5298_v1  ;;  %v5364_v63 = vld [vmem:[%s6090_s15 + $0x34c] ss:$52 sps:$4 sm:$0xff]   ;;  %v5620_v1 = vmov 0.0  }
  0xdf   : > { %v5412_v0 = vld [vmem:[%s6083_s30 + $0x2c0] sm:$0xff]  }
  0xe5   : > { %2695 = vmatmul.mubr.bf16.gmra.mrb[24].mxu0 %v5299_v4  ;;  %2784 = vmatmul.mubr.bf16.vlgmr.msra.gmra.mrb[24].mxu1 %v5296_v3  ;;  %v5368_v3 = vld [vmem:[%s6090_s15 + $0x348] ss:$52 sps:$4 sm:$0xff]  }
  0xe6   : > { %4763 = vmatpush3.bf16.msra.mxu1 %v5303_v5  ;;  %2791 = vmatprep.mubr.bf16.mxu1 %v5304_v6  ;;  %v5369_v4 = vld [vmem:[%s6090_s15 + $0x2e8] ss:$52 sps:$4 sm:$0xff]  }
  0xe7   : > { %2920 = vmatprep.mubr.bf16.mxu0 %v5308_v7  ;;  %4764 = vmatprep.subr.bf16.mxu1 %v5318_v8  ;;  %v5372_v5 = vld [vmem:[%s6090_s15 + $0x3b4] ss:$52 sps:$4 sm:$0xff]   ;;  %v5376_v7 = vld [vmem:[%s6090_s15 + $0x3b0] ss:$52 sps:$4 sm:$0xff]  }
  0xe8   : > { %v5374_v6 = vld [vmem:[%s6090_s15 + $0x354] ss:$52 sps:$4 sm:$0xff]   ;;  %v5377_v8 = vld [vmem:[%s6090_s15 + $0x350] ss:$52 sps:$4 sm:$0xff]  }
  0xea   : > { %4765 = vmatpush3.bf16.msra.mxu1 %v5319_v9  ;;  %v5380_v9 = vld [vmem:[%s6090_s15 + $0x41c] ss:$52 sps:$4 sm:$0xff]  }
  0xeb   : > { %4766 = vmatprep.subr.bf16.mxu1 %v5328_v11  ;;  %v5384_v11 = vld [vmem:[%s6090_s15 + $0x418] ss:$52 sps:$4 sm:$0xff]  }
  0xed   : > { %2792 = vmatmul.mubr.bf16.gmra.mrb[28].mxu1 %v5309_v12  ;;  %2921 = vmatmul.mubr.bf16.vlgmr.msra.gmra.mrb[28].mxu0 %v5306_v10  ;;  %v5382_v10 = vld [vmem:[%s6090_s15 + $0x3bc] ss:$52 sps:$4 sm:$0xff]   ;;  %v5385_v12 = vld [vmem:[%s6090_s15 + $0x3b8] ss:$52 sps:$4 sm:$0xff]  }
  0xee   : > { %4857 = vmatpush3.bf16.msra.mxu0 %v5311_v13  ;;  %2799 = vmatprep.mubr.bf16.mxu1 %v5312_v14  ;;  %v5389_v13 = vld [vmem:[%s6090_s15 + $0x484] ss:$52 sps:$4 sm:$0xff]  }
  0xef   : > { %2928 = vmatprep.mubr.bf16.mxu0 %v5314_v15  ;;  %4858 = vmatprep.subr.bf16.mxu0 %v5320_v16  ;;  %v5391_v14 = vld [vmem:[%s6090_s15 + $0x424] ss:$52 sps:$4 sm:$0xff]   ;;  %v5394_v15 = vld [vmem:[%s6090_s15 + $0x480] ss:$52 sps:$4 sm:$0xff]  }
  0xf0   : > { %4767 = vmatpush3.bf16.msra.mxu1 %v5329_v17  ;;  %v5395_v16 = vld [vmem:[%s6090_s15 + $0x420] ss:$52 sps:$4 sm:$0xff]  }
  0xf1   : > { %4768 = vmatprep.subr.bf16.mxu1 %v5344_v22  ;;  %v5397_v17 = vld [vmem:[%s6090_s15 + $0x4ec] ss:$52 sps:$4 sm:$0xff]   ;;  %v5410_v22 = vld [vmem:[%s6090_s15 + $0x1c] ss:$52 sps:$4 sm:$0xff]  }
  0xf2   : > { %4859 = vmatpush3.bf16.msra.mxu0 %v5321_v18  ;;  %v5399_v18 = vld [vmem:[%s6090_s15 + $0x48c] ss:$52 sps:$4 sm:$0xff]  }
  0xf3   : > { %4860 = vmatprep.subr.bf16.mxu0 %v5336_v19  ;;  %v5402_v19 = vld [vmem:[%s6090_s15 + $0x4e8] ss:$52 sps:$4 sm:$0xff]  }
  0xf4   : > { %4769 = vmatpush3.bf16.msra.mxu1 %v5345_v23  ;;  %v5408_v23 = vld [vmem:[%s6090_s15 + $0x18] ss:$52 sps:$4 sm:$0xff]  }
  0xf5   : > { %2800 = vmatmul.mubr.bf16.gmra.mrb[32].mxu1 %v5316_v20  ;;  %2929 = vmatmul.mubr.bf16.gmra.mrb[32].mxu0 %v5317_v21  ;;  %v5403_v20 = vld [vmem:[%s6090_s15 + $0x488] ss:$52 sps:$4 sm:$0xff]  }
  0xf6   : > { %2807 = vmatprep.mubr.bf16.mxu1 %v5322_v24  ;;  %2936 = vmatprep.mubr.bf16.mxu0 %v5324_v25  ;;  %v5406_v21 = vld [vmem:[%s6090_s15 + $0x4f4] ss:$52 sps:$4 sm:$0xff]   ;;  %v5411_v24 = vld [vmem:[%s6090_s15 + $0x4f0] ss:$52 sps:$4 sm:$0xff]  }
  0xf7   : > { %4861 = vmatpush3.bf16.msra.mxu0 %v5337_v26  ;;  %4770 = vmatprep.subr.bf16.mxu1 %v5358_v32  ;;  %v5413_v25 = vld [vmem:[%s6083_s30 + $0x280] sm:$0xff]   ;;  %v5414_v26 = vld [vmem:[%s6090_s15 + $0x84] ss:$52 sps:$4 sm:$0xff]  }
  0xf8   : > { %4862 = vmatprep.subr.bf16.mxu0 %v5350_v27  ;;  %4771 = vmatpush3.bf16.msra.mxu1 %v5361_v34  ;;  %v5418_v27 = vld [vmem:[%s6090_s15 + $0x24] ss:$52 sps:$4 sm:$0xff]   ;;  %v5419_v32 = vld [vmem:[%s6090_s15 + $0x80] ss:$52 sps:$4 sm:$0xff]  }
  0xf9   : > { %4772 = vmatprep.subr.bf16.mxu1 %v5370_v39  ;;  %v5421_v34 = vld [vmem:[%s6090_s15 + $0xec] ss:$52 sps:$4 sm:$0xff]   ;;  %v5425_v39 = vld [vmem:[%s6090_s15 + $0xe8] ss:$52 sps:$4 sm:$0xff]  }
  0xfb   : > { %4863 = vmatpush3.bf16.msra.mxu0 %v5353_v30  ;;  %v5436_v30 = vld [vmem:[%s6083_s30 + $0x2d0] sm:$0xff]  }
  0xfc   : > { %4864 = vmatprep.subr.bf16.mxu0 %v5362_v35  ;;  %4773 = vmatpush3.bf16.msra.mxu1 %v5371_v40  ;;  %v5423_v35 = vld [vmem:[%s6090_s15 + $0x8c] ss:$52 sps:$4 sm:$0xff]   ;;  %v5426_v40 = vld [vmem:[%s6090_s15 + $0x88] ss:$52 sps:$4 sm:$0xff]  }
  0xfd   : > { %2808 = vmatmul.mubr.bf16.gmra.mrb[36].mxu1 %v5326_v28  ;;  %2937 = vmatmul.mubr.bf16.gmra.mrb[36].mxu0 %v5327_v29  ;;  %v5427_v28 = vld [vmem:[%s6083_s30 + $0x2c8] sm:$0xff]  }
  0xfe   : > { %2815 = vmatprep.mubr.bf16.mxu1 %v5330_v31  ;;  %2944 = vmatprep.mubr.bf16.mxu0 %v5332_v33  ;;  %v5428_v29 = vld [vmem:[%s6083_s30 + $0x288] sm:$0xff]   ;;  %v5420_v33 = vld [vmem:[%s6083_s30 + $0x300] sm:$0xff]  }
  0xff   : > { %4865 = vmatpush3.bf16.msra.mxu0 %v5363_v36  ;;  %4774 = vmatprep.subr.bf16.mxu1 %v5386_v49  ;;  %v5416_v31 = vld [vmem:[%s6090_s15 + $0x20] ss:$52 sps:$4 sm:$0xff]  }
 0x100   : > { %4866 = vmatprep.subr.bf16.mxu0 %v5378_v43  ;;  %4775 = vmatpush3.bf16.msra.mxu1 %v5387_v50  ;;  %v5437_v36 = vld [vmem:[%s6083_s30 + $0x290] sm:$0xff]   ;;  %v5432_v43 = vld [vmem:[%s6090_s15 + $0xf4] ss:$52 sps:$4 sm:$0xff]  }
 0x101   : > { %4776 = vmatprep.subr.bf16.mxu1 %v5396_v55  ;;  %v5476_v49 = vld [vmem:[%s6083_s30 + $0x2a8] sm:$0xff]   ;;  %v5490_v55 = vld [vmem:[%s6083_s30 + $0x2f0] sm:$0xff]  }
 0x102   : > { %v5434_v50 = vld [vmem:[%s6090_s15 + $0x150] ss:$52 sps:$4 sm:$0xff]  }
 0x103   : > { %4867 = vmatpush3.bf16.msra.mxu0 %v5379_v44  ;;  %v5444_v44 = vld [vmem:[%s6083_s30 + $0x310] sm:$0xff]  }
 0x104   : > { %4868 = vmatprep.subr.bf16.mxu0 %v5388_v51  ;;  %4777 = vmatpush3.bf16.msra.mxu1 %v5401_v58  ;;  %v5435_v51 = vld [vmem:[%s6090_s15 + $0xf0] ss:$52 sps:$4 sm:$0xff]  }
 0x105   : > { %2816 = vmatmul.mubr.bf16.gmra.mrb[40].mxu1 %v5334_v37  ;;  %2945 = vmatmul.mubr.bf16.gmra.mrb[40].mxu0 %v5335_v38  ;;  %v5451_v37 = vld [vmem:[%s6083_s30 + $0x2d8] sm:$0xff]   ;;  %v5429_v38 = vld [vmem:[%s6083_s30 + $0x308] sm:$0xff]  }
 0x106   : > { %2823 = vmatprep.mubr.bf16.mxu1 %v5338_v41  ;;  %2952 = vmatprep.mubr.bf16.mxu0 %v5340_v42  ;;  %v5430_v41 = vld [vmem:[%s6090_s15 + $0x154] ss:$52 sps:$4 sm:$0xff]  }
 0x107   : > { %4869 = vmatpush3.bf16.msra.mxu0 %v5393_v52  ;;  %4950 = vmatprep.subr.bf16.mxu1 %v5412_v0  ;;  %v5452_v42 = vld [vmem:[%s6083_s30 + $0x298] sm:$0xff]   ;;  %v5438_v52 = vld [vmem:[%s6090_s15 + $0x1bc] ss:$52 sps:$4 sm:$0xff]  }
 0x108   : > { %4870 = vmatprep.subr.bf16.mxu0 %v5404_v59  ;;  %v5483_v58 = vld [vmem:[%s6083_s30 + $0x328] sm:$0xff]   ;;  %v5504_v59 = vld [vmem:[%s6083_s30 + $0x2b8] sm:$0xff]   ;;  %v5496_v0 = vld [vmem:[%s6083_s30 + $0x330] sm:$0xff]  }
 0x10b   : > { %4871 = vmatpush3.bf16.msra.mxu0 %v5405_v60  ;;  %v5442_v60 = vld [vmem:[%s6090_s15 + $0x1b8] ss:$52 sps:$4 sm:$0xff]  }
 0x10c   : > { %5065 = vmatprep.subr.bf16.mxu0 %v5620_v1 }
 0x10d   : > { %2824 = vmatmul.mubr.bf16.gmra.mrb[44].mxu1 %v5342_v45  ;;  %2953 = vmatmul.mubr.bf16.gmra.mrb[44].mxu0 %v5343_v46  ;;  %v5464_v45 = vld [vmem:[%s6083_s30 + $0x2e0] sm:$0xff]  }
 0x10e   : > { %2831 = vmatprep.mubr.bf16.mxu1 %v5346_v47  ;;  %2960 = vmatprep.mubr.bf16.mxu0 %v5348_v48  ;;  %v5467_v46 = vld [vmem:[%s6083_s30 + $0x2a0] sm:$0xff]   ;;  %v5459_v47 = vld [vmem:[%s6083_s30 + $0x318] sm:$0xff]   ;;  %v5475_v48 = vld [vmem:[%s6083_s30 + $0x2e8] sm:$0xff]  }
 0x115   : > { %2832 = vmatmul.mubr.bf16.gmra.mrb[48].mxu1 %v5351_v53  ;;  %2961 = vmatmul.mubr.bf16.gmra.mrb[48].mxu0 %v5352_v54  ;;  %v5440_v53 = vld [vmem:[%s6090_s15 + $0x15c] ss:$52 sps:$4 sm:$0xff]  }
 0x116   : > { %2839 = vmatprep.mubr.bf16.mxu1 %v5354_v56  ;;  %2968 = vmatprep.mubr.bf16.mxu0 %v5356_v57  ;;  %v5468_v54 = vld [vmem:[%s6083_s30 + $0x320] sm:$0xff]   ;;  %v5491_v56 = vld [vmem:[%s6083_s30 + $0x2b0] sm:$0xff]   ;;  %v5499_v57 = vld [vmem:[%s6083_s30 + $0x2f8] sm:$0xff]  }
 0x11d   : > { %2840 = vmatmul.mubr.bf16.gmra.mrb[52].mxu1 %v5359_v61  ;;  %2969 = vmatmul.mubr.bf16.gmra.mrb[52].mxu0 %v5360_v62  ;;  %v5443_v61 = vld [vmem:[%s6090_s15 + $0x158] ss:$52 sps:$4 sm:$0xff]  }
 0x11e   : > { %2847 = vmatprep.mubr.bf16.mxu1 %v5364_v63  ;;  %2976 = vmatprep.mubr.bf16.mxu0 %v5366_v2  ;;  %v5445_v62 = vld [vmem:[%s6090_s15 + $0x224] ss:$52 sps:$4 sm:$0xff]  }
 0x11f   : > { %v5447_v63 = vld [vmem:[%s6090_s15 + $0x1c4] ss:$52 sps:$4 sm:$0xff]  }
 0x120   : > { %v5507_v2 = vld [vmem:[%s6083_s30 + $0x338] sm:$0xff]  }
 0x125   : > { %2848 = vmatmul.mubr.bf16.gmra.mrb[56].mxu1 %v5368_v3  ;;  %2977 = vmatmul.mubr.bf16.gmra.mrb[56].mxu0 %v5369_v4  ;;  %v5449_v3 = vld [vmem:[%s6090_s15 + $0x220] ss:$52 sps:$4 sm:$0xff]  }
 0x126   : > { %2855 = vmatprep.mubr.bf16.mxu1 %v5372_v5  ;;  %2984 = vmatprep.mubr.bf16.mxu0 %v5374_v6  ;;  %v5450_v4 = vld [vmem:[%s6090_s15 + $0x1c0] ss:$52 sps:$4 sm:$0xff]  }
 0x127   : > { %v5453_v5 = vld [vmem:[%s6090_s15 + $0x28c] ss:$52 sps:$4 sm:$0xff]  }
 0x128   : > { %v5455_v6 = vld [vmem:[%s6090_s15 + $0x22c] ss:$52 sps:$4 sm:$0xff]  }
 0x12d   : > { %2856 = vmatmul.mubr.bf16.gmra.mrb[60].mxu1 %v5376_v7  ;;  %2985 = vmatmul.mubr.bf16.gmra.mrb[60].mxu0 %v5377_v8  ;;  %v5457_v7 = vld [vmem:[%s6090_s15 + $0x288] ss:$52 sps:$4 sm:$0xff]  }
 0x12e   : > { %2863 = vmatprep.mubr.bf16.mxu1 %v5380_v9  ;;  %2992 = vmatprep.mubr.bf16.mxu0 %v5382_v10  ;;  %v5458_v8 = vld [vmem:[%s6090_s15 + $0x228] ss:$52 sps:$4 sm:$0xff]  }
 0x12f   : > { %v5460_v9 = vld [vmem:[%s6090_s15 + $0x2f4] ss:$52 sps:$4 sm:$0xff]  }
 0x130   : > { %v5462_v10 = vld [vmem:[%s6090_s15 + $0x294] ss:$52 sps:$4 sm:$0xff]  }
 0x135   : > { %2864 = vmatmul.mubr.bf16.gmra.mrb[64].mxu1 %v5384_v11  ;;  %2993 = vmatmul.mubr.bf16.gmra.mrb[64].mxu0 %v5385_v12  ;;  %v5465_v11 = vld [vmem:[%s6090_s15 + $0x2f0] ss:$52 sps:$4 sm:$0xff]  }
 0x136   : > { %2871 = vmatprep.mubr.bf16.mxu1 %v5389_v13  ;;  %3000 = vmatprep.mubr.bf16.mxu0 %v5391_v14  ;;  %v5466_v12 = vld [vmem:[%s6090_s15 + $0x290] ss:$52 sps:$4 sm:$0xff]  }
 0x137   : > { %v5469_v13 = vld [vmem:[%s6090_s15 + $0x35c] ss:$52 sps:$4 sm:$0xff]  }
 0x138   : > { %v5471_v14 = vld [vmem:[%s6090_s15 + $0x2fc] ss:$52 sps:$4 sm:$0xff]  }
 0x13d   : > { %2872 = vmatmul.mubr.bf16.gmra.mrb[68].mxu1 %v5394_v15  ;;  %3001 = vmatmul.mubr.bf16.gmra.mrb[68].mxu0 %v5395_v16 }
 0x13e   : > { %2879 = vmatprep.mubr.bf16.mxu1 %v5397_v17  ;;  %3008 = vmatprep.mubr.bf16.mxu0 %v5399_v18 }
 0x145   : > { %2880 = vmatmul.mubr.bf16.gmra.mrb[72].mxu1 %v5402_v19  ;;  %3009 = vmatmul.mubr.bf16.gmra.mrb[72].mxu0 %v5403_v20  ;;  %v5473_v19 = vld [vmem:[%s6090_s15 + $0x358] ss:$52 sps:$4 sm:$0xff]  }
 0x146   : > { %3016 = vmatprep.mubr.bf16.mxu0 %v5406_v21  ;;  %3057 = vmatprep.mubr.bf16.mxu1 %v5410_v22  ;;  %v5474_v20 = vld [vmem:[%s6090_s15 + $0x2f8] ss:$52 sps:$4 sm:$0xff]  }
 0x14d   : > { %3017 = vmatmul.mubr.bf16.gmra.mrb[76].mxu0 %v5411_v24  ;;  %3058 = vmatmul.mubr.bf16.vlgmr.msra.gmra.mrb[76].mxu1 %v5408_v23 }
 0x14e   : > { %4951 = vmatpush3.bf16.msra.mxu1 %v5413_v25  ;;  %3065 = vmatprep.mubr.bf16.mxu1 %v5414_v26  ;;  %v5477_v25 = vld [vmem:[%s6090_s15 + $0x3c4] ss:$52 sps:$4 sm:$0xff]  }
 0x14f   : > { %3194 = vmatprep.mubr.bf16.mxu0 %v5418_v27  ;;  %4952 = vmatprep.subr.bf16.mxu1 %v5427_v28  ;;  %v5479_v26 = vld [vmem:[%s6090_s15 + $0x364] ss:$52 sps:$4 sm:$0xff]  }
 0x152   : > { %4953 = vmatpush3.bf16.msra.mxu1 %v5428_v29 }
 0x153   : > { %4954 = vmatprep.subr.bf16.mxu1 %v5436_v30 }
 0x155   : > { %3066 = vmatmul.mubr.bf16.gmra.mrb[80].mxu1 %v5419_v32  ;;  %3195 = vmatmul.mubr.bf16.vlgmr.msra.gmra.mrb[80].mxu0 %v5416_v31 }
 0x156   : > { %5066 = vmatpush3.bf16.msra.mxu0 %v5420_v33  ;;  %3073 = vmatprep.mubr.bf16.mxu1 %v5421_v34 }
 0x157   : > { %3202 = vmatprep.mubr.bf16.mxu0 %v5423_v35  ;;  %5067 = vmatprep.subr.bf16.mxu0 %v5620_v1  ;;  %v5481_v35 = vld [vmem:[%s6090_s15 + $0x3c0] ss:$52 sps:$4 sm:$0xff]  }
 0x158   : > { %4955 = vmatpush3.bf16.msra.mxu1 %v5437_v36  ;;  %v5482_v36 = vld [vmem:[%s6090_s15 + $0x360] ss:$52 sps:$4 sm:$0xff]  }
 0x159   : > { %4956 = vmatprep.subr.bf16.mxu1 %v5451_v37 }
 0x15a   : > { %5068 = vmatpush3.bf16.msra.mxu0 %v5429_v38 }
 0x15b   : > { %5069 = vmatprep.subr.bf16.mxu0 %v5620_v1 }
 0x15c   : > { %4957 = vmatpush3.bf16.msra.mxu1 %v5452_v42  ;;  %v5486_v42 = vld [vmem:[%s6090_s15 + $0x3cc] ss:$52 sps:$4 sm:$0xff]  }
 0x15d   : > { %3074 = vmatmul.mubr.bf16.gmra.mrb[84].mxu1 %v5425_v39  ;;  %3203 = vmatmul.mubr.bf16.gmra.mrb[84].mxu0 %v5426_v40 }
 0x15e   : > { %3081 = vmatprep.mubr.bf16.mxu1 %v5430_v41  ;;  %3210 = vmatprep.mubr.bf16.mxu0 %v5432_v43  ;;  %v5484_v41 = vld [vmem:[%s6090_s15 + $0x42c] ss:$52 sps:$4 sm:$0xff]  }
 0x15f   : > { %5070 = vmatpush3.bf16.msra.mxu0 %v5444_v44  ;;  %4958 = vmatprep.subr.bf16.mxu1 %v5464_v45 }
 0x160   : > { %5071 = vmatprep.subr.bf16.mxu0 %v5620_v1  ;;  %4959 = vmatpush3.bf16.msra.mxu1 %v5467_v46 }
 0x161   : > { %4960 = vmatprep.subr.bf16.mxu1 %v5475_v48 }
 0x163   : > { %5072 = vmatpush3.bf16.msra.mxu0 %v5459_v47 }
 0x164   : > { %5073 = vmatprep.subr.bf16.mxu0 %v5620_v1  ;;  %4961 = vmatpush3.bf16.msra.mxu1 %v5476_v49 }
 0x165   : > { %3082 = vmatmul.mubr.bf16.gmra.mrb[88].mxu1 %v5434_v50  ;;  %3211 = vmatmul.mubr.bf16.gmra.mrb[88].mxu0 %v5435_v51  ;;  %v5488_v51 = vld [vmem:[%s6090_s15 + $0x428] ss:$52 sps:$4 sm:$0xff]  }
 0x166   : > { %3089 = vmatprep.mubr.bf16.mxu1 %v5438_v52  ;;  %3218 = vmatprep.mubr.bf16.mxu0 %v5440_v53  ;;  %v5489_v52 = vld [vmem:[%s6090_s15 + $0x3c8] ss:$52 sps:$4 sm:$0xff]  }
 0x167   : > { %5074 = vmatpush3.bf16.msra.mxu0 %v5468_v54  ;;  %4962 = vmatprep.subr.bf16.mxu1 %v5490_v55 }
 0x168   : > { %5075 = vmatprep.subr.bf16.mxu0 %v5620_v1  ;;  %4963 = vmatpush3.bf16.msra.mxu1 %v5491_v56 }
 0x169   : > { %4964 = vmatprep.subr.bf16.mxu1 %v5499_v57  ;;  %v5492_v57 = vld [vmem:[%s6090_s15 + $0x494] ss:$52 sps:$4 sm:$0xff]  }
 0x16b   : > { %5076 = vmatpush3.bf16.msra.mxu0 %v5483_v58  ;;  %v5494_v58 = vld [vmem:[%s6090_s15 + $0x434] ss:$52 sps:$4 sm:$0xff]  }
 0x16c   : > { %5077 = vmatprep.subr.bf16.mxu0 %v5620_v1  ;;  %4965 = vmatpush3.bf16.msra.mxu1 %v5504_v59 }
 0x16d   : > { %3090 = vmatmul.mubr.bf16.gmra.mrb[92].mxu1 %v5442_v60  ;;  %3219 = vmatmul.mubr.bf16.gmra.mrb[92].mxu0 %v5443_v61 }
 0x16e   : > { %3097 = vmatprep.mubr.bf16.mxu1 %v5445_v62  ;;  %3226 = vmatprep.mubr.bf16.mxu0 %v5447_v63 }
 0x16f   : > { %5078 = vmatpush3.bf16.msra.mxu0 %v5496_v0 }
 0x170   : > { %5079 = vmatprep.subr.bf16.mxu0 %v5620_v1 }
 0x173   : > { %5080 = vmatpush3.bf16.msra.mxu0 %v5507_v2 }
 0x175   : > { %3098 = vmatmul.mubr.bf16.gmra.mrb[96].mxu1 %v5449_v3  ;;  %3227 = vmatmul.mubr.bf16.gmra.mrb[96].mxu0 %v5450_v4  ;;  %v5497_v4 = vld [vmem:[%s6090_s15 + $0x490] ss:$52 sps:$4 sm:$0xff]  }
 0x176   : > { %3105 = vmatprep.mubr.bf16.mxu1 %v5453_v5  ;;  %3234 = vmatprep.mubr.bf16.mxu0 %v5455_v6  ;;  %v5498_v5 = vld [vmem:[%s6090_s15 + $0x430] ss:$52 sps:$4 sm:$0xff]  }
 0x17d   : > { %3106 = vmatmul.mubr.bf16.gmra.mrb[100].mxu1 %v5457_v7  ;;  %3235 = vmatmul.mubr.bf16.gmra.mrb[100].mxu0 %v5458_v8 }
 0x17e   : > { %3113 = vmatprep.mubr.bf16.mxu1 %v5460_v9  ;;  %3242 = vmatprep.mubr.bf16.mxu0 %v5462_v10  ;;  %v5500_v10 = vld [vmem:[%s6090_s15 + $0x4fc] ss:$52 sps:$4 sm:$0xff]  }
 0x185   : > { %3114 = vmatmul.mubr.bf16.gmra.mrb[104].mxu1 %v5465_v11  ;;  %3243 = vmatmul.mubr.bf16.gmra.mrb[104].mxu0 %v5466_v12  ;;  %v5502_v11 = vld [vmem:[%s6090_s15 + $0x49c] ss:$52 sps:$4 sm:$0xff]  }
 0x186   : > { %3121 = vmatprep.mubr.bf16.mxu1 %v5469_v13  ;;  %3250 = vmatprep.mubr.bf16.mxu0 %v5471_v14 }
 0x188   : > { %v4496_v15 = vpop.f32.mrb[0].mxu0  ;;  %v4538_v16 = vpop.f32.mrb[0].mxu1 }
 0x189   : > { %v4497_v17 = vpop.f32.mrb[1].mxu0  ;;  %v4539_v18 = vpop.f32.mrb[1].mxu1 }
 0x18a   : > { %v6317_v21 = vadd.f32 %v4497_v17, %v4496_v15  ;;  %v4499_v22 = vpop.f32.mrb[2].mxu0  ;;  %v6319_v23 = vadd.f32 %v4539_v18, %v4538_v16  ;;  %v4541_v24 = vpop.f32.mrb[2].mxu1 }
 0x18b   : > { %v4500_v27 = vpop.f32.mrb[3].mxu0  ;;  %v4542_v28 = vpop.f32.mrb[3].mxu1 }
 0x18c   : > { %v6323_v29 = vadd.f32 %v4500_v27, %v4499_v22  ;;  %v6325_v30 = vadd.f32 %v4542_v28, %v4541_v24  ;;  %v5506_v22 = vld [vmem:[%s6090_s15 + $0x498] ss:$52 sps:$4 sm:$0xff]  }
 0x18d   : > { %3122 = vmatmul.mubr.bf16.gmra.mrb[108].mxu1 %v5473_v19  ;;  %3251 = vmatmul.mubr.bf16.gmra.mrb[108].mxu0 %v5474_v20  ;;  %v5505_v20 = vld [vmem:[%s6090_s15 + $0x4f8] ss:$52 sps:$4 sm:$0xff]  }
 0x18e   : > { %3129 = vmatprep.mubr.bf16.mxu1 %v5477_v25  ;;  %3258 = vmatprep.mubr.bf16.mxu0 %v5479_v26  ;;  %v5508_v28 = vld [vmem:[%s6090_s15 + $0x504] ss:$52 sps:$4 sm:$0xff]  }
 0x190   : > { %v4502_v31 = vpop.f32.mrb[4].mxu0  ;;  %v4544_v32 = vpop.f32.mrb[4].mxu1 }
 0x191   : > { %v4503_v33 = vpop.f32.mrb[5].mxu0  ;;  %v4545_v34 = vpop.f32.mrb[5].mxu1 }
 0x192   : > { %v6329_v37 = vadd.f32 %v4503_v33, %v4502_v31  ;;  %v4505_v38 = vpop.f32.mrb[6].mxu0  ;;  %v6331_v39 = vadd.f32 %v4545_v34, %v4544_v32  ;;  %v4547_v40 = vpop.f32.mrb[6].mxu1  ;;  %v5512_v31 = vld [vmem:[%s6090_s15 + $0x2c] ss:$52 sps:$4 sm:$0xff]  }
 0x193   : > { %v4506_v43 = vpop.f32.mrb[7].mxu0  ;;  %v4548_v44 = vpop.f32.mrb[7].mxu1 }
 0x194   : > { %v6335_v45 = vadd.f32 %v4506_v43, %v4505_v38  ;;  %v6337_v46 = vadd.f32 %v4548_v44, %v4547_v40  ;;  %v5513_v43 = vld [vmem:[%s6090_s15 + $0x500] ss:$52 sps:$4 sm:$0xff]  }
 0x195   : > { %3130 = vmatmul.mubr.bf16.gmra.mrb[112].mxu1 %v5481_v35  ;;  %3259 = vmatmul.mubr.bf16.gmra.mrb[112].mxu0 %v5482_v36 }
 0x196   : > { %3137 = vmatprep.mubr.bf16.mxu1 %v5484_v41  ;;  %3266 = vmatprep.mubr.bf16.mxu0 %v5486_v42  ;;  %v5510_v42 = vld [vmem:[%s6090_s15 + $0x28] ss:$52 sps:$4 sm:$0xff]  }
 0x198   : > { %v4508_v47 = vpop.f32.mrb[8].mxu0  ;;  %v4550_v48 = vpop.f32.mrb[8].mxu1 }
 0x199   : > { %v4509_v49 = vpop.f32.mrb[9].mxu0  ;;  %v4551_v50 = vpop.f32.mrb[9].mxu1 }
 0x19a   : > { %v6341_v53 = vadd.f32 %v4509_v49, %v4508_v47  ;;  %v4511_v54 = vpop.f32.mrb[10].mxu0  ;;  %v6343_v55 = vadd.f32 %v4551_v50, %v4550_v48  ;;  %v4553_v56 = vpop.f32.mrb[10].mxu1  ;;  %v5514_v50 = vld [vmem:[%s6090_s15 + $0x94] ss:$52 sps:$4 sm:$0xff]  }
 0x19b   : > { %v4512_v59 = vpop.f32.mrb[11].mxu0  ;;  %v4554_v60 = vpop.f32.mrb[11].mxu1 }
 0x19c   : > { %v6347_v61 = vadd.f32 %v4512_v59, %v4511_v54  ;;  %v6349_v62 = vadd.f32 %v4554_v60, %v4553_v56 }
 0x19d   : > { %3138 = vmatmul.mubr.bf16.gmra.mrb[116].mxu1 %v5488_v51  ;;  %3267 = vmatmul.mubr.bf16.gmra.mrb[116].mxu0 %v5489_v52 }
 0x19e   : > { %3145 = vmatprep.mubr.bf16.mxu1 %v5492_v57  ;;  %3274 = vmatprep.mubr.bf16.mxu0 %v5494_v58 }
 0x1a0   : > { %v4514_v63 = vpop.f32.mrb[12].mxu0  ;;  %v4556_v0 = vpop.f32.mrb[12].mxu1 }
 0x1a1   : > { %v4515_v2 = vpop.f32.mrb[13].mxu0  ;;  %v4557_v3 = vpop.f32.mrb[13].mxu1 }
 0x1a2   : > { %v6353_v6 = vadd.f32 %v4515_v2, %v4514_v63  ;;  %v4517_v7 = vpop.f32.mrb[14].mxu0  ;;  %v6355_v8 = vadd.f32 %v4557_v3, %v4556_v0  ;;  %v4559_v9 = vpop.f32.mrb[14].mxu1  ;;  %v5516_v63 = vld [vmem:[%s6090_s15 + $0x90] ss:$52 sps:$4 sm:$0xff]  }
 0x1a3   : > { %v4518_v12 = vpop.f32.mrb[15].mxu0  ;;  %v4560_v13 = vpop.f32.mrb[15].mxu1  ;;  %v5517_v0 = vld [vmem:[%s6090_s15 + $0x30] ss:$52 sps:$4 sm:$0xff]  }
 0x1a4   : > { %v6359_v14 = vadd.f32 %v4518_v12, %v4517_v7  ;;  %v6361_v15 = vadd.f32 %v4560_v13, %v4559_v9  ;;  %v5518_v7 = vld [vmem:[%s6090_s15 + $0xfc] ss:$52 sps:$4 sm:$0xff]  }
 0x1a5   : > { %3146 = vmatmul.mubr.bf16.gmra.mrb[120].mxu1 %v5497_v4  ;;  %3275 = vmatmul.mubr.bf16.gmra.mrb[120].mxu0 %v5498_v5 }
 0x1a6   : > { %3153 = vmatprep.mubr.bf16.mxu1 %v5500_v10  ;;  %3282 = vmatprep.mubr.bf16.mxu0 %v5502_v11 }
 0x1a8   : > { %v4520_v16 = vpop.f32.mrb[16].mxu0  ;;  %v4562_v17 = vpop.f32.mrb[16].mxu1 }
 0x1a9   : > { %v4521_v18 = vpop.f32.mrb[17].mxu0  ;;  %v4563_v19 = vpop.f32.mrb[17].mxu1 }
 0x1aa   : > { %v6365_v24 = vadd.f32 %v4521_v18, %v4520_v16  ;;  %v4523_v25 = vpop.f32.mrb[18].mxu0  ;;  %v6367_v26 = vadd.f32 %v4563_v19, %v4562_v17  ;;  %v4565_v27 = vpop.f32.mrb[18].mxu1 }
 0x1ab   : > { %v4524_v32 = vpop.f32.mrb[19].mxu0  ;;  %v4566_v33 = vpop.f32.mrb[19].mxu1 }
 0x1ac   : > { %v6371_v34 = vadd.f32 %v4524_v32, %v4523_v25  ;;  %v6373_v35 = vadd.f32 %v4566_v33, %v4565_v27  ;;  %v5521_v25 = vld [vmem:[%s6090_s15 + $0x98] ss:$52 sps:$4 sm:$0xff]  }
 0x1ad   : > { %3154 = vmatmul.mubr.bf16.gmra.mrb[124].mxu1 %v5505_v20  ;;  %3283 = vmatmul.mubr.bf16.gmra.mrb[124].mxu0 %v5506_v22  ;;  %v5520_v22 = vld [vmem:[%s6090_s15 + $0xf8] ss:$52 sps:$4 sm:$0xff]  }
 0x1ae   : > { %3290 = vmatprep.mubr.bf16.mxu0 %v5508_v28  ;;  %3331 = vmatprep.mubr.bf16.mxu1 %v5512_v31  ;;  %v5522_v32 = vld [vmem:[%s6090_s15 + $0x164] ss:$52 sps:$4 sm:$0xff]  }
 0x1b0   : > { %v4526_v36 = vpop.f32.mrb[20].mxu0  ;;  %v4568_v38 = vpop.f32.mrb[20].mxu1 }
 0x1b1   : > { %v4527_v40 = vpop.f32.mrb[21].mxu0  ;;  %v4569_v41 = vpop.f32.mrb[21].mxu1 }
 0x1b2   : > { %v6377_v44 = vadd.f32 %v4527_v40, %v4526_v36  ;;  %v4529_v47 = vpop.f32.mrb[22].mxu0  ;;  %v6379_v48 = vadd.f32 %v4569_v41, %v4568_v38  ;;  %v4571_v49 = vpop.f32.mrb[22].mxu1 }
 0x1b3   : > { %v4530_v51 = vpop.f32.mrb[23].mxu0  ;;  %v4572_v52 = vpop.f32.mrb[23].mxu1 }
 0x1b4   : > { %v6382_v54 = vadd.f32 %v4530_v51, %v4529_v47  ;;  %v6384_v56 = vadd.f32 %v4572_v52, %v4571_v49  ;;  %v5525_v52 = vld [vmem:[%s6090_s15 + $0x100] ss:$52 sps:$4 sm:$0xff]  }
 0x1b5   : > { %3291 = vmatmul.mubr.bf16.gmra.mrb[128].mxu0 %v5513_v43  ;;  %3332 = vmatmul.mubr.bf16.vlgmr.msra.gmra.mrb[128].mxu1 %v5510_v42 }
 0x1b6   : > { %3339 = vmatprep.mubr.bf16.mxu1 %v5514_v50  ;;  %5081 = vmatprep.mubr.msk.bf16.mxu0 %vm5621_vm0, %v5620_v1 }
 0x1b8   : > { %v4532_v57 = vpop.f32.mrb[24].mxu0  ;;  %v4590_v58 = vpop.f32.mrb[24].mxu1 }
 0x1b9   : > { %v4533_v59 = vpop.f32.mrb[25].mxu0  ;;  %v4591_v60 = vpop.f32.mrb[25].mxu1 }
 0x1ba   : > { %v6390_v2 = vadd.f32 %v4533_v59, %v4532_v57  ;;  %v4592_v3 = vadd.f32 %v4591_v60, %v4590_v58  ;;  %v4535_v4 = vpop.f32.mrb[26].mxu0  ;;  %v4593_v5 = vpop.f32.mrb[26].mxu1 }
 0x1bb   : > { %v4536_v9 = vpop.f32.mrb[27].mxu0  ;;  %v4594_v10 = vpop.f32.mrb[27].mxu1 }
 0x1bc   : > { %v2786_v11 = vadd.f32 %v4592_v3, %v6317_v21  ;;  %v6394_v12 = vadd.f32 %v4536_v9, %v4535_v4  ;;  %v4595_v13 = vadd.f32 %v4594_v10, %v4593_v5 }
 0x1bd   : > { %3340 = vmatmul.mubr.bf16.gmra.mrb[132].mxu1 %v5516_v63  ;;  %5082 = vmatmul.mubr.bf16.vlgmr.msra.gmra.mrb[132].mxu0 %v5517_v0  ;;  %v5526_v63 = vld [vmem:[%s6090_s15 + $0x1cc] ss:$52 sps:$4 sm:$0xff]  }
 0x1be   : > { %v2789_v16 = vadd.f32 %v4595_v13, %v6323_v29  ;;  %3347 = vmatprep.mubr.bf16.mxu1 %v5518_v7  ;;  %5085 = vmatprep.mubr.msk.bf16.mxu0 %vm5621_vm0, %v5620_v1 }
 0x1c0   : > { %v4596_v17 = vpop.f32.mrb[28].mxu1  ;;  %v4684_v18 = vpop.f32.mrb[28].mxu0 }
 0x1c1   : > { %v4597_v19 = vpop.f32.mrb[29].mxu1  ;;  %v4685_v20 = vpop.f32.mrb[29].mxu0 }
 0x1c2   : > { %v4598_v27 = vadd.f32 %v4597_v19, %v4596_v17  ;;  %v4686_v21 = vadd.f32 %v4685_v20, %v4684_v18  ;;  %v4599_v28 = vpop.f32.mrb[30].mxu1  ;;  %v4687_v31 = vpop.f32.mrb[30].mxu0  ;;  %v5529_v18 = vld [vmem:[%s6090_s15 + $0x168] ss:$52 sps:$4 sm:$0xff]  }
 0x1c3   : > { %v4600_v33 = vpop.f32.mrb[31].mxu1  ;;  %v4688_v36 = vpop.f32.mrb[31].mxu0 }
 0x1c4   : > { %v2794_v29 = vadd.f32 %v4598_v27, %v6329_v37  ;;  %v6403_v38 = vadd.f32 %v4686_v21, %v2786_v11  ;;  %v4601_v40 = vadd.f32 %v4600_v33, %v4599_v28  ;;  %v4689_v41 = vadd.f32 %v4688_v36, %v4687_v31  ;;  %v5524_v37 = vld [vmem:[%s6090_s15 + $0x160] ss:$52 sps:$4 sm:$0xff]  }
 0x1c5   : > { %3348 = vmatmul.mubr.bf16.gmra.mrb[136].mxu1 %v5520_v22  ;;  %5086 = vmatmul.mubr.bf16.gmra.mrb[136].mxu0 %v5521_v25  ;;  %v5530_v27 = vld [vmem:[%s6090_s15 + $0x234] ss:$52 sps:$4 sm:$0xff]  }
 0x1c6   : > { %v2797_v42 = vadd.f32 %v4601_v40, %v6335_v45  ;;  %v6406_v43 = vadd.f32 %v4689_v41, %v2789_v16  ;;  %3355 = vmatprep.mubr.bf16.mxu1 %v5522_v32  ;;  %5089 = vmatprep.mubr.msk.bf16.mxu0 %vm5621_vm0, %v5620_v1 }
 0x1c8   : > { %v4602_v47 = vpop.f32.mrb[32].mxu1  ;;  %v4690_v49 = vpop.f32.mrb[32].mxu0 }
 0x1c9   : > { %v4603_v50 = vpop.f32.mrb[33].mxu1  ;;  %v4691_v51 = vpop.f32.mrb[33].mxu0 }
 0x1ca   : > { %v4604_v57 = vadd.f32 %v4603_v50, %v4602_v47  ;;  %v4692_v58 = vadd.f32 %v4691_v51, %v4690_v49  ;;  %v4605_v59 = vpop.f32.mrb[34].mxu1  ;;  %v4693_v60 = vpop.f32.mrb[34].mxu0  ;;  %v5533_v49 = vld [vmem:[%s6090_s15 + $0x1d0] ss:$52 sps:$4 sm:$0xff]  }
 0x1cb   : > { %v4606_v0 = vpop.f32.mrb[35].mxu1  ;;  %v4694_v45 = vpop.f32.mrb[35].mxu0 }
 0x1cc   : > { %v2802_v3 = vadd.f32 %v4604_v57, %v6341_v53  ;;  %v6414_v4 = vadd.f32 %v4692_v58, %v2794_v29  ;;  %v4607_v5 = vadd.f32 %v4606_v0, %v4605_v59  ;;  %v4695_v7 = vadd.f32 %v4694_v45, %v4693_v60  ;;  %v5528_v53 = vld [vmem:[%s6090_s15 + $0x1c8] ss:$52 sps:$4 sm:$0xff]  }
 0x1cd   : > { %3356 = vmatmul.mubr.bf16.gmra.mrb[140].mxu1 %v5524_v37  ;;  %5090 = vmatmul.mubr.bf16.gmra.mrb[140].mxu0 %v5525_v52  ;;  %v5534_v57 = vld [vmem:[%s6090_s15 + $0x29c] ss:$52 sps:$4 sm:$0xff]  }
 0x1ce   : > { %v2805_v9 = vadd.f32 %v4607_v5, %v6347_v61  ;;  %v6417_v10 = vadd.f32 %v4695_v7, %v2797_v42  ;;  %3363 = vmatprep.mubr.bf16.mxu1 %v5526_v63  ;;  %5093 = vmatprep.mubr.msk.bf16.mxu0 %vm5621_vm0, %v5620_v1 }
 0x1d0   : > { %v4608_v11 = vpop.f32.mrb[36].mxu1  ;;  %v4696_v13 = vpop.f32.mrb[36].mxu0 }
 0x1d1   : > { %v4609_v16 = vpop.f32.mrb[37].mxu1  ;;  %v4697_v17 = vpop.f32.mrb[37].mxu0 }
 0x1d2   : > { %v4610_v19 = vadd.f32 %v4609_v16, %v4608_v11  ;;  %v4698_v20 = vadd.f32 %v4697_v17, %v4696_v13  ;;  %v4611_v22 = vpop.f32.mrb[38].mxu1  ;;  %v4699_v25 = vpop.f32.mrb[38].mxu0  ;;  %v5537_v13 = vld [vmem:[%s6090_s15 + $0x238] ss:$52 sps:$4 sm:$0xff]  }
 0x1d3   : > { %v4612_v21 = vpop.f32.mrb[39].mxu1  ;;  %v4700_v61 = vpop.f32.mrb[39].mxu0 }
 0x1d4   : > { %v2810_v28 = vadd.f32 %v4610_v19, %v6353_v6  ;;  %v6425_v31 = vadd.f32 %v4698_v20, %v2802_v3  ;;  %v4613_v32 = vadd.f32 %v4612_v21, %v4611_v22  ;;  %v4701_v33 = vadd.f32 %v4700_v61, %v4699_v25  ;;  %v5532_v6 = vld [vmem:[%s6090_s15 + $0x230] ss:$52 sps:$4 sm:$0xff]  }
 0x1d5   : > { %3364 = vmatmul.mubr.bf16.gmra.mrb[144].mxu1 %v5528_v53  ;;  %5094 = vmatmul.mubr.bf16.gmra.mrb[144].mxu0 %v5529_v18  ;;  %v5538_v19 = vld [vmem:[%s6090_s15 + $0x304] ss:$52 sps:$4 sm:$0xff]  }
 0x1d6   : > { %v2813_v36 = vadd.f32 %v4613_v32, %v6359_v14  ;;  %v6428_v29 = vadd.f32 %v4701_v33, %v2805_v9  ;;  %3371 = vmatprep.mubr.bf16.mxu1 %v5530_v27  ;;  %5097 = vmatprep.mubr.msk.bf16.mxu0 %vm5621_vm0, %v5620_v1 }
 0x1d8   : > { %v4614_v40 = vpop.f32.mrb[40].mxu1  ;;  %v4702_v41 = vpop.f32.mrb[40].mxu0 }
 0x1d9   : > { %v4615_v42 = vpop.f32.mrb[41].mxu1  ;;  %v4703_v47 = vpop.f32.mrb[41].mxu0 }
 0x1da   : > { %v4616_v50 = vadd.f32 %v4615_v42, %v4614_v40  ;;  %v4704_v51 = vadd.f32 %v4703_v47, %v4702_v41  ;;  %v4617_v37 = vpop.f32.mrb[42].mxu1  ;;  %v4705_v52 = vpop.f32.mrb[42].mxu0  ;;  %v5541_v41 = vld [vmem:[%s6090_s15 + $0x2a0] ss:$52 sps:$4 sm:$0xff]  }
 0x1db   : > { %v4618_v58 = vpop.f32.mrb[43].mxu1  ;;  %v4706_v14 = vpop.f32.mrb[43].mxu0 }
 0x1dc   : > { %v2818_v59 = vadd.f32 %v4616_v50, %v6365_v24  ;;  %v6436_v60 = vadd.f32 %v4704_v51, %v2810_v28  ;;  %v4619_v63 = vadd.f32 %v4618_v58, %v4617_v37  ;;  %v4707_v0 = vadd.f32 %v4706_v14, %v4705_v52  ;;  %v5536_v24 = vld [vmem:[%s6090_s15 + $0x298] ss:$52 sps:$4 sm:$0xff]  }
 0x1dd   : > { %3372 = vmatmul.mubr.bf16.gmra.mrb[148].mxu1 %v5532_v6  ;;  %5098 = vmatmul.mubr.bf16.gmra.mrb[148].mxu0 %v5533_v49  ;;  %v5542_v50 = vld [vmem:[%s6090_s15 + $0x36c] ss:$52 sps:$4 sm:$0xff]  }
 0x1de   : > { %v2821_v45 = vadd.f32 %v4619_v63, %v6371_v34  ;;  %v6439_v3 = vadd.f32 %v4707_v0, %v2813_v36  ;;  %3379 = vmatprep.mubr.bf16.mxu1 %v5534_v57  ;;  %5101 = vmatprep.mubr.msk.bf16.mxu0 %vm5621_vm0, %v5620_v1 }
 0x1e0   : > { %v4620_v5 = vpop.f32.mrb[44].mxu1  ;;  %v4708_v7 = vpop.f32.mrb[44].mxu0 }
 0x1e1   : > { %v4621_v9 = vpop.f32.mrb[45].mxu1  ;;  %v4709_v11 = vpop.f32.mrb[45].mxu0 }
 0x1e2   : > { %v4622_v16 = vadd.f32 %v4621_v9, %v4620_v5  ;;  %v4710_v17 = vadd.f32 %v4709_v11, %v4708_v7  ;;  %v4623_v53 = vpop.f32.mrb[46].mxu1  ;;  %v4711_v18 = vpop.f32.mrb[46].mxu0  ;;  %v5545_v7 = vld [vmem:[%s6090_s15 + $0x308] ss:$52 sps:$4 sm:$0xff]  }
 0x1e3   : > { %v4624_v20 = vpop.f32.mrb[47].mxu1  ;;  %v4712_v34 = vpop.f32.mrb[47].mxu0 }
 0x1e4   : > { %v2826_v22 = vadd.f32 %v4622_v16, %v6377_v44  ;;  %v6447_v25 = vadd.f32 %v4710_v17, %v2818_v59  ;;  %v4625_v27 = vadd.f32 %v4624_v20, %v4623_v53  ;;  %v4713_v21 = vadd.f32 %v4712_v34, %v4711_v18  ;;  %v5540_v44 = vld [vmem:[%s6090_s15 + $0x300] ss:$52 sps:$4 sm:$0xff]  }
 0x1e5   : > { %3380 = vmatmul.mubr.bf16.gmra.mrb[152].mxu1 %v5536_v24  ;;  %5102 = vmatmul.mubr.bf16.gmra.mrb[152].mxu0 %v5537_v13  ;;  %v5546_v16 = vld [vmem:[%s6090_s15 + $0x3d4] ss:$52 sps:$4 sm:$0xff]  }
 0x1e6   : > { %v2829_v61 = vadd.f32 %v4625_v27, %v6382_v54  ;;  %v6450_v28 = vadd.f32 %v4713_v21, %v2821_v45  ;;  %3387 = vmatprep.mubr.bf16.mxu1 %v5538_v19  ;;  %5105 = vmatprep.mubr.msk.bf16.mxu0 %vm5621_vm0, %v5620_v1 }
 0x1e8   : > { %v4626_v32 = vpop.f32.mrb[48].mxu1  ;;  %v4714_v33 = vpop.f32.mrb[48].mxu0 }
 0x1e9   : > { %v4627_v36 = vpop.f32.mrb[49].mxu1  ;;  %v4715_v40 = vpop.f32.mrb[49].mxu0 }
 0x1ea   : > { %v4628_v42 = vadd.f32 %v4627_v36, %v4626_v32  ;;  %v4716_v47 = vadd.f32 %v4715_v40, %v4714_v33  ;;  %v4629_v6 = vpop.f32.mrb[50].mxu1  ;;  %v4717_v49 = vpop.f32.mrb[50].mxu0  ;;  %v5549_v33 = vld [vmem:[%s6090_s15 + $0x370] ss:$52 sps:$4 sm:$0xff]  }
 0x1eb   : > { %v4630_v51 = vpop.f32.mrb[51].mxu1  ;;  %v4718_v54 = vpop.f32.mrb[51].mxu0 }
 0x1ec   : > { %v2834_v37 = vadd.f32 %v4628_v42, %v6390_v2  ;;  %v6458_v52 = vadd.f32 %v4716_v47, %v2826_v22  ;;  %v4631_v57 = vadd.f32 %v4630_v51, %v4629_v6  ;;  %v4719_v58 = vadd.f32 %v4718_v54, %v4717_v49  ;;  %v5544_v2 = vld [vmem:[%s6090_s15 + $0x368] ss:$52 sps:$4 sm:$0xff]  }
 0x1ed   : > { %3388 = vmatmul.mubr.bf16.gmra.mrb[156].mxu1 %v5540_v44  ;;  %5106 = vmatmul.mubr.bf16.gmra.mrb[156].mxu0 %v5541_v41  ;;  %v5550_v42 = vld [vmem:[%s6090_s15 + $0x43c] ss:$52 sps:$4 sm:$0xff]  }
 0x1ee   : > { %v2837_v14 = vadd.f32 %v4631_v57, %v6394_v12  ;;  %v6461_v59 = vadd.f32 %v4719_v58, %v2829_v61  ;;  %3395 = vmatprep.mubr.bf16.mxu1 %v5542_v50  ;;  %5109 = vmatprep.mubr.msk.bf16.mxu0 %vm5621_vm0, %v5620_v1 }
 0x1f0   : > { %v4632_v63 = vpop.f32.mrb[52].mxu1  ;;  %v4720_v0 = vpop.f32.mrb[52].mxu0 }
 0x1f1   : > { %v4633_v45 = vpop.f32.mrb[53].mxu1  ;;  %v4721_v5 = vpop.f32.mrb[53].mxu0 }
 0x1f2   : > { %v4634_v9 = vadd.f32 %v4633_v45, %v4632_v63  ;;  %v4722_v11 = vadd.f32 %v4721_v5, %v4720_v0  ;;  %v4635_v24 = vpop.f32.mrb[54].mxu1  ;;  %v4723_v13 = vpop.f32.mrb[54].mxu0  ;;  %v5553_v0 = vld [vmem:[%s6090_s15 + $0x3d8] ss:$52 sps:$4 sm:$0xff]  }
 0x1f3   : > { %v4636_v17 = vpop.f32.mrb[55].mxu1  ;;  %v4724_v12 = vpop.f32.mrb[55].mxu0 }
 0x1f4   : > { %v2842_v53 = vadd.f32 %v4634_v9, %v6319_v23  ;;  %v6469_v18 = vadd.f32 %v4722_v11, %v2834_v37  ;;  %v4637_v19 = vadd.f32 %v4636_v17, %v4635_v24  ;;  %v4725_v20 = vadd.f32 %v4724_v12, %v4723_v13  ;;  %v5548_v23 = vld [vmem:[%s6090_s15 + $0x3d0] ss:$52 sps:$4 sm:$0xff]  }
 0x1f5   : > { %3396 = vmatmul.mubr.bf16.gmra.mrb[160].mxu1 %v5544_v2  ;;  %5110 = vmatmul.mubr.bf16.gmra.mrb[160].mxu0 %v5545_v7  ;;  %v5554_v9 = vld [vmem:[%s6090_s15 + $0x4a4] ss:$52 sps:$4 sm:$0xff]  }
 0x1f6   : > { %v2845_v34 = vadd.f32 %v4637_v19, %v6325_v30  ;;  %v6472_v22 = vadd.f32 %v4725_v20, %v2837_v14  ;;  %3403 = vmatprep.mubr.bf16.mxu1 %v5546_v16  ;;  %5113 = vmatprep.mubr.msk.bf16.mxu0 %vm5621_vm0, %v5620_v1 }
 0x1f8   : > { %v4638_v27 = vpop.f32.mrb[56].mxu1  ;;  %v4726_v21 = vpop.f32.mrb[56].mxu0 }
 0x1f9   : > { %v4639_v61 = vpop.f32.mrb[57].mxu1  ;;  %v4727_v32 = vpop.f32.mrb[57].mxu0 }
 0x1fa   : > { %v4640_v36 = vadd.f32 %v4639_v61, %v4638_v27  ;;  %v4728_v40 = vadd.f32 %v4727_v32, %v4726_v21  ;;  %v4641_v44 = vpop.f32.mrb[58].mxu1  ;;  %v4729_v41 = vpop.f32.mrb[58].mxu0  ;;  %v5557_v21 = vld [vmem:[%s6090_s15 + $0x440] ss:$52 sps:$4 sm:$0xff]  }
 0x1fb   : > { %v4642_v47 = vpop.f32.mrb[59].mxu1  ;;  %v4730_v30 = vpop.f32.mrb[59].mxu0 }
 0x1fc   : > { %v2850_v6 = vadd.f32 %v4640_v36, %v6331_v39  ;;  %v6480_v49 = vadd.f32 %v4728_v40, %v2842_v53  ;;  %v4643_v50 = vadd.f32 %v4642_v47, %v4641_v44  ;;  %v4731_v51 = vadd.f32 %v4730_v30, %v4729_v41  ;;  %v5552_v39 = vld [vmem:[%s6090_s15 + $0x438] ss:$52 sps:$4 sm:$0xff]  }
 0x1fd   : > { %3404 = vmatmul.mubr.bf16.gmra.mrb[164].mxu1 %v5548_v23  ;;  %5114 = vmatmul.mubr.bf16.gmra.mrb[164].mxu0 %v5549_v33  ;;  %v5558_v36 = vld [vmem:[%s6090_s15 + $0x50c] ss:$52 sps:$4 sm:$0xff]  }
 0x1fe   : > { %v2853_v54 = vadd.f32 %v4643_v50, %v6337_v46  ;;  %v6483_v37 = vadd.f32 %v4731_v51, %v2845_v34  ;;  %3411 = vmatprep.mubr.bf16.mxu1 %v5550_v42  ;;  %5117 = vmatprep.mubr.msk.bf16.mxu0 %vm5621_vm0, %v5620_v1 }
 0x200   : > { %v4644_v57 = vpop.f32.mrb[60].mxu1  ;;  %v4732_v58 = vpop.f32.mrb[60].mxu0 }
 0x201   : > { %v4645_v14 = vpop.f32.mrb[61].mxu1  ;;  %v4733_v63 = vpop.f32.mrb[61].mxu0 }
 0x202   : > { %v4646_v45 = vadd.f32 %v4645_v14, %v4644_v57  ;;  %v4734_v5 = vadd.f32 %v4733_v63, %v4732_v58  ;;  %v4647_v2 = vpop.f32.mrb[62].mxu1  ;;  %v4735_v7 = vpop.f32.mrb[62].mxu0  ;;  %v5560_v58 = vld [vmem:[%s6090_s15 + $0x508] ss:$52 sps:$4 sm:$0xff]  }
 0x203   : > { %v4648_v11 = vpop.f32.mrb[63].mxu1  ;;  %v4736_v46 = vpop.f32.mrb[63].mxu0 }
 0x204   : > { %v2858_v24 = vadd.f32 %v4646_v45, %v6343_v55  ;;  %v6491_v13 = vadd.f32 %v4734_v5, %v2850_v6  ;;  %v4649_v16 = vadd.f32 %v4648_v11, %v4647_v2  ;;  %v4737_v17 = vadd.f32 %v4736_v46, %v4735_v7  ;;  %v5556_v55 = vld [vmem:[%s6090_s15 + $0x4a0] ss:$52 sps:$4 sm:$0xff]  }
 0x205   : > { %3412 = vmatmul.mubr.bf16.gmra.mrb[168].mxu1 %v5552_v39  ;;  %5118 = vmatmul.mubr.bf16.gmra.mrb[168].mxu0 %v5553_v0 }
 0x206   : > { %v2861_v12 = vadd.f32 %v4649_v16, %v6349_v62  ;;  %v6494_v53 = vadd.f32 %v4737_v17, %v2853_v54  ;;  %3419 = vmatprep.mubr.bf16.mxu1 %v5554_v9  ;;  %5121 = vmatprep.mubr.msk.bf16.mxu0 %vm5621_vm0, %v5620_v1 }
 0x208   : > { %v4650_v19 = vpop.f32.mrb[64].mxu1  ;;  %v4738_v20 = vpop.f32.mrb[64].mxu0 }
 0x209   : > { %v4651_v34 = vpop.f32.mrb[65].mxu1  ;;  %v4739_v27 = vpop.f32.mrb[65].mxu0 }
 0x20a   : > { %v4652_v61 = vadd.f32 %v4651_v34, %v4650_v19  ;;  %v4740_v32 = vadd.f32 %v4739_v27, %v4738_v20  ;;  %v4653_v23 = vpop.f32.mrb[66].mxu1  ;;  %v4741_v33 = vpop.f32.mrb[66].mxu0  ;;  %v5562_v19 = vld [vmem:[%s6090_s15 + $0x510] ss:$52 sps:$4 sm:$0xff]  }
 0x20b   : > { %v4654_v40 = vpop.f32.mrb[67].mxu1  ;;  %v4742_v62 = vpop.f32.mrb[67].mxu0 }
 0x20c   : > { %v2866_v44 = vadd.f32 %v4652_v61, %v6355_v8  ;;  %v6502_v41 = vadd.f32 %v4740_v32, %v2858_v24  ;;  %v4655_v42 = vadd.f32 %v4654_v40, %v4653_v23  ;;  %v4743_v47 = vadd.f32 %v4742_v62, %v4741_v33  ;;  %v5561_v8 = vld [vmem:[%s6090_s15 + $0x4a8] ss:$52 sps:$4 sm:$0xff]  }
 0x20d   : > { %3420 = vmatmul.mubr.bf16.gmra.mrb[172].mxu1 %v5556_v55  ;;  %5122 = vmatmul.mubr.bf16.gmra.mrb[172].mxu0 %v5557_v21 }
 0x20e   : > { %v2869_v30 = vadd.f32 %v4655_v42, %v6361_v15  ;;  %v6505_v6 = vadd.f32 %v4743_v47, %v2861_v12  ;;  %3427 = vmatprep.mubr.bf16.mxu1 %v5558_v36  ;;  %5125 = vmatprep.mubr.msk.bf16.mxu0 %vm5621_vm0, %v5620_v1 }
 0x210   : > { %v4656_v50 = vpop.f32.mrb[68].mxu1  ;;  %v4744_v51 = vpop.f32.mrb[68].mxu0 }
 0x211   : > { %v4657_v54 = vpop.f32.mrb[69].mxu1  ;;  %v4745_v57 = vpop.f32.mrb[69].mxu0 }
 0x212   : > { %v4658_v14 = vadd.f32 %v4657_v54, %v4656_v50  ;;  %v4746_v63 = vadd.f32 %v4745_v57, %v4744_v51  ;;  %v4659_v39 = vpop.f32.mrb[70].mxu1  ;;  %v4747_v0 = vpop.f32.mrb[70].mxu0 }
 0x213   : > { %v4660_v45 = vpop.f32.mrb[71].mxu1  ;;  %v4748_v5 = vpop.f32.mrb[71].mxu0 }
 0x214   : > { %v2874_v15 = vadd.f32 %v4658_v14, %v6367_v26  ;;  %v6512_v2 = vadd.f32 %v4746_v63, %v2866_v44  ;;  %v4661_v7 = vadd.f32 %v4660_v45, %v4659_v39  ;;  %v4749_v9 = vadd.f32 %v4748_v5, %v4747_v0 }
 0x215   : > { %3428 = vmatmul.mubr.bf16.gmra.mrb[176].mxu1 %v5560_v58  ;;  %5126 = vmatmul.mubr.bf16.gmra.mrb[176].mxu0 %v5561_v8 }
 0x216   : > { %v2877_v11 = vadd.f32 %v4661_v7, %v6373_v35  ;;  %v6515_v46 = vadd.f32 %v4749_v9, %v2869_v30  ;;  %5129 = vmatprep.mubr.msk.bf16.mxu0 %vm5621_vm0, %v5620_v1 }
 0x218   : > { %v4662_v24 = vpop.f32.mrb[72].mxu1  ;;  %v4750_v16 = vpop.f32.mrb[72].mxu0 }
 0x219   : > { %v4663_v17 = vpop.f32.mrb[73].mxu1  ;;  %v4751_v12 = vpop.f32.mrb[73].mxu0 }
 0x21a   : > { %v4664_v20 = vadd.f32 %v4663_v17, %v4662_v24  ;;  %v4752_v26 = vadd.f32 %v4751_v12, %v4750_v16  ;;  %v4665_v34 = vpop.f32.mrb[74].mxu1  ;;  %v4753_v27 = vpop.f32.mrb[74].mxu0 }
 0x21b   : > { %v4666_v55 = vpop.f32.mrb[75].mxu1  ;;  %v4754_v21 = vpop.f32.mrb[75].mxu0 }
 0x21c   : > { %v2882_v61 = vadd.f32 %v4664_v20, %v6379_v48  ;;  %v6521_v32 = vadd.f32 %v4752_v26, %v2874_v15  ;;  %v4667_v35 = vadd.f32 %v4666_v55, %v4665_v34  ;;  %v4755_v23 = vadd.f32 %v4754_v21, %v4753_v27 }
 0x21d   : > { %5130 = vmatmul.mubr.bf16.gmra.mrb[180].mxu0 %v5562_v19 }
 0x21e   : > { %v2885_v1 = vadd.f32 %v4667_v35, %v6384_v56  ;;  %v6524_v33 = vadd.f32 %v4755_v23, %v2877_v11 }
 0x220   : > { %v4756_v36 = vpop.f32.mrb[76].mxu0  ;;  %v4778_v40 = vpop.f32.mrb[76].mxu1 }
 0x221   : > { %v4757_v62 = vpop.f32.mrb[77].mxu0  ;;  %v4779_v44 = vpop.f32.mrb[77].mxu1 }
 0x222   : > { %v4758_v42 = vadd.f32 %v4757_v62, %v4756_v36  ;;  %v4780_v47 = vadd.f32 %v4779_v44, %v4778_v40  ;;  %v4759_v30 = vpop.f32.mrb[78].mxu0  ;;  %v4781_v50 = vpop.f32.mrb[78].mxu1 }
 0x223   : > { %v4760_v51 = vpop.f32.mrb[79].mxu0  ;;  %v4782_v54 = vpop.f32.mrb[79].mxu1 }
 0x224   : > { %v6526_v48 = vadd.f32 %v4758_v42, %v2882_v61  ;;  %v3060_v57 = vadd.f32 %v4780_v47, %v6403_v38  ;;  %v4761_v58 = vadd.f32 %v4760_v51, %v4759_v30  ;;  %v4783_v8 = vadd.f32 %v4782_v54, %v4781_v50 }
 0x226   : > { %v6529_v14 = vadd.f32 %v4761_v58, %v2885_v1  ;;  %v3063_v56 = vadd.f32 %v4783_v8, %v6406_v43 }
 0x228   : > { %v4784_v63 = vpop.f32.mrb[80].mxu1  ;;  %v4872_v39 = vpop.f32.mrb[80].mxu0 }
 0x229   : > { %v4785_v0 = vpop.f32.mrb[81].mxu1  ;;  %v4873_v45 = vpop.f32.mrb[81].mxu0 }
 0x22a   : > { %v4786_v5 = vadd.f32 %v4785_v0, %v4784_v63  ;;  %v4874_v15 = vadd.f32 %v4873_v45, %v4872_v39  ;;  %v4787_v7 = vpop.f32.mrb[82].mxu1  ;;  %v4875_v9 = vpop.f32.mrb[82].mxu0 }
 0x22b   : > { %v4788_v11 = vpop.f32.mrb[83].mxu1  ;;  %v4876_v24 = vpop.f32.mrb[83].mxu0 }
 0x22c   : > { %v3068_v16 = vadd.f32 %v4786_v5, %v6414_v4  ;;  %v6533_v17 = vadd.f32 %v4874_v15, %v3060_v57  ;;  %v4789_v38 = vadd.f32 %v4788_v11, %v4787_v7  ;;  %v4877_v12 = vadd.f32 %v4876_v24, %v4875_v9 }
 0x22e   : > { %v3071_v19 = vadd.f32 %v4789_v38, %v6417_v10  ;;  %v6536_v20 = vadd.f32 %v4877_v12, %v3063_v56 }
 0x230   : > { %v4790_v43 = vpop.f32.mrb[84].mxu1  ;;  %v4878_v26 = vpop.f32.mrb[84].mxu0 }
 0x231   : > { %v4791_v34 = vpop.f32.mrb[85].mxu1  ;;  %v4879_v27 = vpop.f32.mrb[85].mxu0 }
 0x232   : > { %v4792_v55 = vadd.f32 %v4791_v34, %v4790_v43  ;;  %v4880_v21 = vadd.f32 %v4879_v27, %v4878_v26  ;;  %v4793_v61 = vpop.f32.mrb[86].mxu1  ;;  %v4881_v35 = vpop.f32.mrb[86].mxu0 }
 0x233   : > { %v4794_v23 = vpop.f32.mrb[87].mxu1  ;;  %v4882_v1 = vpop.f32.mrb[87].mxu0 }
 0x234   : > { %v3076_v4 = vadd.f32 %v4792_v55, %v6425_v31  ;;  %v6539_v36 = vadd.f32 %v4880_v21, %v3068_v16  ;;  %v4795_v40 = vadd.f32 %v4794_v23, %v4793_v61  ;;  %v4883_v62 = vadd.f32 %v4882_v1, %v4881_v35 }
 0x236   : > { %v3079_v10 = vadd.f32 %v4795_v40, %v6428_v29  ;;  %v6542_v44 = vadd.f32 %v4883_v62, %v3071_v19 }
 0x238   : > { %v4796_v42 = vpop.f32.mrb[88].mxu1  ;;  %v4884_v47 = vpop.f32.mrb[88].mxu0 }
 0x239   : > { %v4797_v30 = vpop.f32.mrb[89].mxu1  ;;  %v4885_v50 = vpop.f32.mrb[89].mxu0 }
 0x23a   : > { %v4798_v51 = vadd.f32 %v4797_v30, %v4796_v42  ;;  %v4886_v54 = vadd.f32 %v4885_v50, %v4884_v47  ;;  %v4799_v57 = vpop.f32.mrb[90].mxu1  ;;  %v4887_v58 = vpop.f32.mrb[90].mxu0 }
 0x23b   : > { %v4800_v8 = vpop.f32.mrb[91].mxu1  ;;  %v4888_v56 = vpop.f32.mrb[91].mxu0 }
 0x23c   : > { %v3084_v31 = vadd.f32 %v4798_v51, %v6436_v60  ;;  %v6545_v63 = vadd.f32 %v4886_v54, %v3076_v4  ;;  %v4801_v39 = vadd.f32 %v4800_v8, %v4799_v57  ;;  %v4889_v0 = vadd.f32 %v4888_v56, %v4887_v58 }
 0x23e   : > { %v3087_v29 = vadd.f32 %v4801_v39, %v6439_v3  ;;  %v6548_v45 = vadd.f32 %v4889_v0, %v3079_v10 }
 0x240   : > { %v4802_v5 = vpop.f32.mrb[92].mxu1  ;;  %v4890_v15 = vpop.f32.mrb[92].mxu0 }
 0x241   : > { %v4803_v7 = vpop.f32.mrb[93].mxu1  ;;  %v4891_v9 = vpop.f32.mrb[93].mxu0 }
 0x242   : > { %v4804_v11 = vadd.f32 %v4803_v7, %v4802_v5  ;;  %v4892_v24 = vadd.f32 %v4891_v9, %v4890_v15  ;;  %v4805_v16 = vpop.f32.mrb[94].mxu1  ;;  %v4893_v38 = vpop.f32.mrb[94].mxu0 }
 0x243   : > { %v4806_v12 = vpop.f32.mrb[95].mxu1  ;;  %v4894_v19 = vpop.f32.mrb[95].mxu0 }
 0x244   : > { %v3092_v60 = vadd.f32 %v4804_v11, %v6447_v25  ;;  %v6551_v43 = vadd.f32 %v4892_v24, %v3084_v31  ;;  %v4807_v26 = vadd.f32 %v4806_v12, %v4805_v16  ;;  %v4895_v34 = vadd.f32 %v4894_v19, %v4893_v38 }
 0x246   : > { %v3095_v3 = vadd.f32 %v4807_v26, %v6450_v28  ;;  %v6554_v27 = vadd.f32 %v4895_v34, %v3087_v29 }
 0x248   : > { %v4808_v55 = vpop.f32.mrb[96].mxu1  ;;  %v4896_v21 = vpop.f32.mrb[96].mxu0 }
 0x249   : > { %v4809_v61 = vpop.f32.mrb[97].mxu1  ;;  %v4897_v35 = vpop.f32.mrb[97].mxu0 }
 0x24a   : > { %v4810_v23 = vadd.f32 %v4809_v61, %v4808_v55  ;;  %v4898_v1 = vadd.f32 %v4897_v35, %v4896_v21  ;;  %v4811_v4 = vpop.f32.mrb[98].mxu1  ;;  %v4899_v40 = vpop.f32.mrb[98].mxu0 }
 0x24b   : > { %v4812_v62 = vpop.f32.mrb[99].mxu1  ;;  %v4900_v10 = vpop.f32.mrb[99].mxu0 }
 0x24c   : > { %v3100_v25 = vadd.f32 %v4810_v23, %v6458_v52  ;;  %v6557_v42 = vadd.f32 %v4898_v1, %v3092_v60  ;;  %v4813_v47 = vadd.f32 %v4812_v62, %v4811_v4  ;;  %v4901_v30 = vadd.f32 %v4900_v10, %v4899_v40 }
 0x24e   : > { %v3103_v28 = vadd.f32 %v4813_v47, %v6461_v59  ;;  %v6560_v50 = vadd.f32 %v4901_v30, %v3095_v3 }
 0x250   : > { %v4814_v51 = vpop.f32.mrb[100].mxu1  ;;  %v4902_v54 = vpop.f32.mrb[100].mxu0 }
 0x251   : > { %v4815_v57 = vpop.f32.mrb[101].mxu1  ;;  %v4903_v58 = vpop.f32.mrb[101].mxu0 }
 0x252   : > { %v4816_v8 = vadd.f32 %v4815_v57, %v4814_v51  ;;  %v4904_v56 = vadd.f32 %v4903_v58, %v4902_v54  ;;  %v4817_v31 = vpop.f32.mrb[102].mxu1  ;;  %v4905_v39 = vpop.f32.mrb[102].mxu0 }
 0x253   : > { %v4818_v0 = vpop.f32.mrb[103].mxu1  ;;  %v4906_v29 = vpop.f32.mrb[103].mxu0 }
 0x254   : > { %v3108_v52 = vadd.f32 %v4816_v8, %v6469_v18  ;;  %v6563_v5 = vadd.f32 %v4904_v56, %v3100_v25  ;;  %v4819_v15 = vadd.f32 %v4818_v0, %v4817_v31  ;;  %v4907_v7 = vadd.f32 %v4906_v29, %v4905_v39 }
 0x256   : > { %v3111_v59 = vadd.f32 %v4819_v15, %v6472_v22  ;;  %v6566_v9 = vadd.f32 %v4907_v7, %v3103_v28 }
 0x258   : > { %v4820_v11 = vpop.f32.mrb[104].mxu1  ;;  %v4908_v24 = vpop.f32.mrb[104].mxu0 }
 0x259   : > { %v4821_v16 = vpop.f32.mrb[105].mxu1  ;;  %v4909_v38 = vpop.f32.mrb[105].mxu0 }
 0x25a   : > { %v4822_v12 = vadd.f32 %v4821_v16, %v4820_v11  ;;  %v4910_v19 = vadd.f32 %v4909_v38, %v4908_v24  ;;  %v4823_v60 = vpop.f32.mrb[106].mxu1  ;;  %v4911_v26 = vpop.f32.mrb[106].mxu0 }
 0x25b   : > { %v4824_v34 = vpop.f32.mrb[107].mxu1  ;;  %v4912_v3 = vpop.f32.mrb[107].mxu0 }
 0x25c   : > { %v3116_v18 = vadd.f32 %v4822_v12, %v6480_v49  ;;  %v6569_v55 = vadd.f32 %v4910_v19, %v3108_v52  ;;  %v4825_v21 = vadd.f32 %v4824_v34, %v4823_v60  ;;  %v4913_v61 = vadd.f32 %v4912_v3, %v4911_v26 }
 0x25e   : > { %v3119_v22 = vadd.f32 %v4825_v21, %v6483_v37  ;;  %v6572_v35 = vadd.f32 %v4913_v61, %v3111_v59 }
 0x260   : > { %v4826_v23 = vpop.f32.mrb[108].mxu1  ;;  %v4914_v1 = vpop.f32.mrb[108].mxu0 }
 0x261   : > { %v4827_v4 = vpop.f32.mrb[109].mxu1  ;;  %v4915_v40 = vpop.f32.mrb[109].mxu0 }
 0x262   : > { %v4828_v62 = vadd.f32 %v4827_v4, %v4826_v23  ;;  %v4916_v10 = vadd.f32 %v4915_v40, %v4914_v1  ;;  %v4829_v25 = vpop.f32.mrb[110].mxu1  ;;  %v4917_v47 = vpop.f32.mrb[110].mxu0 }
 0x263   : > { %v4830_v30 = vpop.f32.mrb[111].mxu1  ;;  %v4918_v28 = vpop.f32.mrb[111].mxu0 }
 0x264   : > { %v3124_v49 = vadd.f32 %v4828_v62, %v6491_v13  ;;  %v6575_v51 = vadd.f32 %v4916_v10, %v3116_v18  ;;  %v4831_v54 = vadd.f32 %v4830_v30, %v4829_v25  ;;  %v4919_v57 = vadd.f32 %v4918_v28, %v4917_v47 }
 0x266   : > { %v3127_v37 = vadd.f32 %v4831_v54, %v6494_v53  ;;  %v6578_v58 = vadd.f32 %v4919_v57, %v3119_v22 }
 0x268   : > { %v4832_v8 = vpop.f32.mrb[112].mxu1  ;;  %v4920_v56 = vpop.f32.mrb[112].mxu0 }
 0x269   : > { %v4833_v31 = vpop.f32.mrb[113].mxu1  ;;  %v4921_v39 = vpop.f32.mrb[113].mxu0 }
 0x26a   : > { %v4834_v0 = vadd.f32 %v4833_v31, %v4832_v8  ;;  %v4922_v29 = vadd.f32 %v4921_v39, %v4920_v56  ;;  %v4835_v52 = vpop.f32.mrb[114].mxu1  ;;  %v4923_v15 = vpop.f32.mrb[114].mxu0 }
 0x26b   : > { %v4836_v7 = vpop.f32.mrb[115].mxu1  ;;  %v4924_v59 = vpop.f32.mrb[115].mxu0 }
 0x26c   : > { %v3132_v13 = vadd.f32 %v4834_v0, %v6502_v41  ;;  %v6581_v11 = vadd.f32 %v4922_v29, %v3124_v49  ;;  %v4837_v24 = vadd.f32 %v4836_v7, %v4835_v52  ;;  %v4925_v16 = vadd.f32 %v4924_v59, %v4923_v15 }
 0x26e   : > { %v3135_v53 = vadd.f32 %v4837_v24, %v6505_v6  ;;  %v6584_v38 = vadd.f32 %v4925_v16, %v3127_v37 }
 0x270   : > { %v4838_v12 = vpop.f32.mrb[116].mxu1  ;;  %v4926_v19 = vpop.f32.mrb[116].mxu0 }
 0x271   : > { %v4839_v60 = vpop.f32.mrb[117].mxu1  ;;  %v4927_v26 = vpop.f32.mrb[117].mxu0 }
 0x272   : > { %v4840_v34 = vadd.f32 %v4839_v60, %v4838_v12  ;;  %v4928_v3 = vadd.f32 %v4927_v26, %v4926_v19  ;;  %v4841_v18 = vpop.f32.mrb[118].mxu1  ;;  %v4929_v21 = vpop.f32.mrb[118].mxu0 }
 0x273   : > { %v4842_v61 = vpop.f32.mrb[119].mxu1  ;;  %v4930_v22 = vpop.f32.mrb[119].mxu0 }
 0x274   : > { %v3140_v41 = vadd.f32 %v4840_v34, %v6512_v2  ;;  %v6587_v23 = vadd.f32 %v4928_v3, %v3132_v13  ;;  %v4843_v1 = vadd.f32 %v4842_v61, %v4841_v18  ;;  %v4931_v4 = vadd.f32 %v4930_v22, %v4929_v21 }
 0x276   : > { %v3143_v6 = vadd.f32 %v4843_v1, %v6515_v46  ;;  %v6590_v40 = vadd.f32 %v4931_v4, %v3135_v53 }
 0x278   : > { %v4844_v62 = vpop.f32.mrb[120].mxu1  ;;  %v4932_v10 = vpop.f32.mrb[120].mxu0 }
 0x279   : > { %v4845_v25 = vpop.f32.mrb[121].mxu1  ;;  %v4933_v47 = vpop.f32.mrb[121].mxu0 }
 0x27a   : > { %v4846_v30 = vadd.f32 %v4845_v25, %v4844_v62  ;;  %v4934_v28 = vadd.f32 %v4933_v47, %v4932_v10  ;;  %v4847_v49 = vpop.f32.mrb[122].mxu1  ;;  %v4935_v54 = vpop.f32.mrb[122].mxu0 }
 0x27b   : > { %v4848_v57 = vpop.f32.mrb[123].mxu1  ;;  %v4936_v37 = vpop.f32.mrb[123].mxu0 }
 0x27c   : > { %v3148_v2 = vadd.f32 %v4846_v30, %v6521_v32  ;;  %v6593_v8 = vadd.f32 %v4934_v28, %v3140_v41  ;;  %v4849_v56 = vadd.f32 %v4848_v57, %v4847_v49  ;;  %v4937_v31 = vadd.f32 %v4936_v37, %v4935_v54  ;;  %v716_v28 = vld [vmem:[#allocation2] sm:$0xff] }
 0x27e   : > { %v3151_v46 = vadd.f32 %v4849_v56, %v6524_v33  ;;  %v6596_v39 = vadd.f32 %v4937_v31, %v3143_v6  ;;  %v717_v31 = vld [vmem:[#allocation2 + $0x8] sm:$0xff] }
 0x280   : > { %v4850_v0 = vpop.f32.mrb[124].mxu1  ;;  %v4938_v29 = vpop.f32.mrb[124].mxu0 }
 0x281   : > { %v4851_v52 = vpop.f32.mrb[125].mxu1  ;;  %v4939_v15 = vpop.f32.mrb[125].mxu0 }
 0x282   : > { %v4852_v7 = vadd.f32 %v4851_v52, %v4850_v0  ;;  %v4940_v59 = vadd.f32 %v4939_v15, %v4938_v29  ;;  %v4853_v13 = vpop.f32.mrb[126].mxu1  ;;  %v4941_v24 = vpop.f32.mrb[126].mxu0 }
 0x283   : > { %v4854_v16 = vpop.f32.mrb[127].mxu1  ;;  %v4942_v53 = vpop.f32.mrb[127].mxu0 }
 0x284   : > { %v3156_v32 = vadd.f32 %v4852_v7, %v6526_v48  ;;  %v6599_v12 = vadd.f32 %v4940_v59, %v3148_v2  ;;  %v4855_v19 = vadd.f32 %v4854_v16, %v4853_v13  ;;  %v4943_v60 = vadd.f32 %v4942_v53, %v4941_v24  ;;  %v718_v24 = vld [vmem:[#allocation2 + $0x10] sm:$0xff] }
 0x286   : > { %v3159_v33 = vadd.f32 %v4855_v19, %v6529_v14  ;;  %v6602_v26 = vadd.f32 %v4943_v60, %v3151_v46 }
 0x288   : > { %v4944_v34 = vpop.f32.mrb[128].mxu0  ;;  %v4966_v3 = vpop.f32.mrb[128].mxu1 }
 0x289   : > { %v4945_v18 = vpop.f32.mrb[129].mxu0  ;;  %v4967_v21 = vpop.f32.mrb[129].mxu1 }
 0x28a   : > { %v4946_v61 = vadd.f32 %v4945_v18, %v4944_v34  ;;  %v4968_v22 = vadd.f32 %v4967_v21, %v4966_v3  ;;  %v4947_v41 = vpop.f32.mrb[130].mxu0  ;;  %v4969_v1 = vpop.f32.mrb[130].mxu1  ;;  %v719_v34 = vld [vmem:[#allocation2 + $0x18] sm:$0xff] }
 0x28b   : > { %v4948_v4 = vpop.f32.mrb[131].mxu0  ;;  %v4970_v6 = vpop.f32.mrb[131].mxu1 }
 0x28c   : > { %v6604_v62 = vadd.f32 %v4946_v61, %v3156_v32  ;;  %v4949_v48 = vadd.f32 %v4948_v4, %v4947_v41  ;;  %v4971_v10 = vadd.f32 %v4970_v6, %v4969_v1  ;;  %v3334_v25 = vadd.f32 %v4968_v22, %v6533_v17  ;;  %v720_v6 = vld [vmem:[#allocation2 + $0x20] sm:$0xff] }
 0x28e   : > { %v6607_v47 = vadd.f32 %v4949_v48, %v3159_v33  ;;  %v3337_v14 = vadd.f32 %v4971_v10, %v6536_v20 }
 0x290   : > { %v4972_v30 = vpop.f32.mrb[132].mxu1  ;;  %v3470_v49 = vpop.f32.mrb[132].mxu0 }
 0x291   : > { %v3471_v54 = vadd.f32 %v3470_v49, %v3334_v25  ;;  %v4973_v57 = vpop.f32.mrb[133].mxu1  ;;  %v5083_v37 = vpop.f32.mrb[133].mxu0  ;;  %v721_v49 = vld [vmem:[#allocation2 + $0x28] sm:$0xff] }
 0x292   : > { %v4974_v2 = vadd.f32 %v4973_v57, %v4972_v30  ;;  %v4975_v56 = vpop.f32.mrb[134].mxu1  ;;  %v3473_v46 = vpop.f32.mrb[134].mxu0 }
 0x293   : > { %v3573_v0 = vadd.f32 %v3471_v54, %v716_v28  ;;  %v3474_v29 = vadd.f32 %v3473_v46, %v3337_v14  ;;  %v4976_v52 = vpop.f32.mrb[135].mxu1  ;;  %v5084_v15 = vpop.f32.mrb[135].mxu0 }
 0x294   : > { %v4977_v7 = vadd.f32 %v4976_v52, %v4975_v56  ;;  %v3342_v17 = vadd.f32 %v4974_v2, %v6539_v36 }
 0x295   : > { %3599 = vst [vmem:[#allocation2] sm:$0xff] %v3573_v0  ;;  %v3574_v59 = vadd.f32 %v3474_v29, %v717_v31  ;;  %v722_v29 = vld [vmem:[#allocation2 + $0x30] sm:$0xff] }
 0x296   : > { %v3345_v20 = vadd.f32 %v4977_v7, %v6542_v44 }
 0x297   : > { %3600 = vst [vmem:[#allocation2 + $0x8] sm:$0xff] %v3574_v59 }
 0x298   : > { %v4978_v13 = vpop.f32.mrb[136].mxu1  ;;  %v3478_v16 = vpop.f32.mrb[136].mxu0 }
 0x299   : > { %v3479_v53 = vadd.f32 %v3478_v16, %v3342_v17  ;;  %v4979_v32 = vpop.f32.mrb[137].mxu1  ;;  %v5087_v19 = vpop.f32.mrb[137].mxu0 }
 0x29a   : > { %v4980_v60 = vadd.f32 %v4979_v32, %v4978_v13  ;;  %v4981_v33 = vpop.f32.mrb[138].mxu1  ;;  %v3481_v3 = vpop.f32.mrb[138].mxu0  ;;  %v723_v13 = vld [vmem:[#allocation2 + $0x38] sm:$0xff] }
 0x29b   : > { %v3575_v18 = vadd.f32 %v3479_v53, %v718_v24  ;;  %v3482_v21 = vadd.f32 %v3481_v3, %v3345_v20  ;;  %v4982_v61 = vpop.f32.mrb[139].mxu1  ;;  %v5088_v22 = vpop.f32.mrb[139].mxu0  ;;  %v724_v3 = vld [vmem:[#allocation2 + $0x40] sm:$0xff] }
 0x29c   : > { %v4983_v36 = vadd.f32 %v4982_v61, %v4981_v33  ;;  %v3350_v41 = vadd.f32 %v4980_v60, %v6545_v63 }
 0x29d   : > { %3601 = vst [vmem:[#allocation2 + $0x10] sm:$0xff] %v3575_v18  ;;  %v3576_v44 = vadd.f32 %v3482_v21, %v719_v34 }
 0x29e   : > { %v3353_v1 = vadd.f32 %v4983_v36, %v6548_v45 }
 0x29f   : > { %3602 = vst [vmem:[#allocation2 + $0x18] sm:$0xff] %v3576_v44  ;;  %v725_v44 = vld [vmem:[#allocation2 + $0x48] sm:$0xff] }
 0x2a0   : > { %v4984_v4 = vpop.f32.mrb[140].mxu1  ;;  %v3486_v48 = vpop.f32.mrb[140].mxu0 }
 0x2a1   : > { %v3487_v10 = vadd.f32 %v3486_v48, %v3350_v41  ;;  %v4985_v25 = vpop.f32.mrb[141].mxu1  ;;  %v5091_v14 = vpop.f32.mrb[141].mxu0 }
 0x2a2   : > { %v4986_v30 = vadd.f32 %v4985_v25, %v4984_v4  ;;  %v4987_v28 = vpop.f32.mrb[142].mxu1  ;;  %v3489_v54 = vpop.f32.mrb[142].mxu0 }
 0x2a3   : > { %v3577_v57 = vadd.f32 %v3487_v10, %v720_v6  ;;  %v3490_v37 = vadd.f32 %v3489_v54, %v3353_v1  ;;  %v4988_v2 = vpop.f32.mrb[143].mxu1  ;;  %v5092_v56 = vpop.f32.mrb[143].mxu0 }
 0x2a4   : > { %v4989_v63 = vadd.f32 %v4988_v2, %v4987_v28  ;;  %v3358_v31 = vadd.f32 %v4986_v30, %v6551_v43  ;;  %v726_v28 = vld [vmem:[#allocation2 + $0x50] sm:$0xff] }
 0x2a5   : > { %3603 = vst [vmem:[#allocation2 + $0x20] sm:$0xff] %v3577_v57  ;;  %v3578_v45 = vadd.f32 %v3490_v37, %v721_v49 }
 0x2a6   : > { %v3361_v46 = vadd.f32 %v4989_v63, %v6554_v27  ;;  %v727_v63 = vld [vmem:[#allocation2 + $0x58] sm:$0xff] }
 0x2a7   : > { %3604 = vst [vmem:[#allocation2 + $0x28] sm:$0xff] %v3578_v45 }
 0x2a8   : > { %v4990_v0 = vpop.f32.mrb[144].mxu1  ;;  %v3494_v52 = vpop.f32.mrb[144].mxu0 }
 0x2a9   : > { %v3495_v15 = vadd.f32 %v3494_v52, %v3358_v31  ;;  %v4991_v7 = vpop.f32.mrb[145].mxu1  ;;  %v5095_v17 = vpop.f32.mrb[145].mxu0 }
 0x2aa   : > { %v4992_v59 = vadd.f32 %v4991_v7, %v4990_v0  ;;  %v4993_v20 = vpop.f32.mrb[146].mxu1  ;;  %v3497_v24 = vpop.f32.mrb[146].mxu0  ;;  %v728_v17 = vld [vmem:[#allocation2 + $0x60] sm:$0xff] }
 0x2ab   : > { %v3579_v16 = vadd.f32 %v3495_v15, %v722_v29  ;;  %v3498_v53 = vadd.f32 %v3497_v24, %v3361_v46  ;;  %v4994_v32 = vpop.f32.mrb[147].mxu1  ;;  %v5096_v19 = vpop.f32.mrb[147].mxu0 }
 0x2ac   : > { %v4995_v43 = vadd.f32 %v4994_v32, %v4993_v20  ;;  %v3366_v60 = vadd.f32 %v4992_v59, %v6557_v42  ;;  %v729_v32 = vld [vmem:[#allocation2 + $0x68] sm:$0xff] }
 0x2ad   : > { %3605 = vst [vmem:[#allocation2 + $0x30] sm:$0xff] %v3579_v16  ;;  %v3580_v27 = vadd.f32 %v3498_v53, %v723_v13 }
 0x2ae   : > { %v3369_v33 = vadd.f32 %v4995_v43, %v6560_v50 }
 0x2af   : > { %3606 = vst [vmem:[#allocation2 + $0x38] sm:$0xff] %v3580_v27 }
 0x2b0   : > { %v4996_v34 = vpop.f32.mrb[148].mxu1  ;;  %v3502_v18 = vpop.f32.mrb[148].mxu0 }
 0x2b1   : > { %v3503_v21 = vadd.f32 %v3502_v18, %v3366_v60  ;;  %v4997_v61 = vpop.f32.mrb[149].mxu1  ;;  %v5099_v22 = vpop.f32.mrb[149].mxu0 }
 0x2b2   : > { %v4998_v36 = vadd.f32 %v4997_v61, %v4996_v34  ;;  %v4999_v41 = vpop.f32.mrb[150].mxu1  ;;  %v3505_v1 = vpop.f32.mrb[150].mxu0 }
 0x2b3   : > { %v3581_v4 = vadd.f32 %v3503_v21, %v724_v3  ;;  %v3506_v6 = vadd.f32 %v3505_v1, %v3369_v33  ;;  %v5000_v48 = vpop.f32.mrb[151].mxu1  ;;  %v5100_v10 = vpop.f32.mrb[151].mxu0  ;;  %v730_v21 = vld [vmem:[#allocation2 + $0x70] sm:$0xff] }
 0x2b4   : > { %v5001_v42 = vadd.f32 %v5000_v48, %v4999_v41  ;;  %v3374_v25 = vadd.f32 %v4998_v36, %v6563_v5 }
 0x2b5   : > { %3607 = vst [vmem:[#allocation2 + $0x40] sm:$0xff] %v3581_v4  ;;  %v3582_v50 = vadd.f32 %v3506_v6, %v725_v44  ;;  %v731_v4 = vld [vmem:[#allocation2 + $0x78] sm:$0xff] }
 0x2b6   : > { %v3377_v14 = vadd.f32 %v5001_v42, %v6566_v9 }
 0x2b7   : > { %3608 = vst [vmem:[#allocation2 + $0x48] sm:$0xff] %v3582_v50 }
 0x2b8   : > { %v5002_v30 = vpop.f32.mrb[152].mxu1  ;;  %v3510_v49 = vpop.f32.mrb[152].mxu0 }
 0x2b9   : > { %v3511_v54 = vadd.f32 %v3510_v49, %v3374_v25  ;;  %v5003_v57 = vpop.f32.mrb[153].mxu1  ;;  %v5103_v37 = vpop.f32.mrb[153].mxu0 }
 0x2ba   : > { %v5004_v2 = vadd.f32 %v5003_v57, %v5002_v30  ;;  %v5005_v56 = vpop.f32.mrb[154].mxu1  ;;  %v3513_v31 = vpop.f32.mrb[154].mxu0 }
 0x2bb   : > { %v3583_v45 = vadd.f32 %v3511_v54, %v726_v28  ;;  %v3514_v46 = vadd.f32 %v3513_v31, %v3377_v14  ;;  %v5006_v0 = vpop.f32.mrb[155].mxu1  ;;  %v5104_v29 = vpop.f32.mrb[155].mxu0  ;;  %v732_v28 = vld [vmem:[#allocation2 + $0x80] sm:$0xff] }
 0x2bc   : > { %v5007_v5 = vadd.f32 %v5006_v0, %v5005_v56  ;;  %v3382_v52 = vadd.f32 %v5004_v2, %v6569_v55 }
 0x2bd   : > { %3609 = vst [vmem:[#allocation2 + $0x50] sm:$0xff] %v3583_v45  ;;  %v3584_v9 = vadd.f32 %v3514_v46, %v727_v63  ;;  %v733_v63 = vld [vmem:[#allocation2 + $0x88] sm:$0xff] }
 0x2be   : > { %v3385_v15 = vadd.f32 %v5007_v5, %v6572_v35 }
 0x2bf   : > { %3610 = vst [vmem:[#allocation2 + $0x58] sm:$0xff] %v3584_v9 }
 0x2c0   : > { %v5008_v7 = vpop.f32.mrb[156].mxu1  ;;  %v3518_v59 = vpop.f32.mrb[156].mxu0 }
 0x2c1   : > { %v3519_v20 = vadd.f32 %v3518_v59, %v3382_v52  ;;  %v5009_v13 = vpop.f32.mrb[157].mxu1  ;;  %v5107_v24 = vpop.f32.mrb[157].mxu0 }
 0x2c2   : > { %v5010_v16 = vadd.f32 %v5009_v13, %v5008_v7  ;;  %v5011_v53 = vpop.f32.mrb[158].mxu1  ;;  %v3521_v19 = vpop.f32.mrb[158].mxu0 }
 0x2c3   : > { %v3585_v43 = vadd.f32 %v3519_v20, %v728_v17  ;;  %v3522_v60 = vadd.f32 %v3521_v19, %v3385_v15  ;;  %v5012_v27 = vpop.f32.mrb[159].mxu1  ;;  %v5108_v33 = vpop.f32.mrb[159].mxu0  ;;  %v734_v15 = vld [vmem:[#allocation2 + $0x90] sm:$0xff] }
 0x2c4   : > { %v5013_v55 = vadd.f32 %v5012_v27, %v5011_v53  ;;  %v3390_v34 = vadd.f32 %v5010_v16, %v6575_v51  ;;  %v735_v16 = vld [vmem:[#allocation2 + $0x98] sm:$0xff] }
 0x2c5   : > { %3611 = vst [vmem:[#allocation2 + $0x60] sm:$0xff] %v3585_v43  ;;  %v3586_v35 = vadd.f32 %v3522_v60, %v729_v32 }
 0x2c6   : > { %v3393_v3 = vadd.f32 %v5013_v55, %v6578_v58 }
 0x2c7   : > { %3612 = vst [vmem:[#allocation2 + $0x68] sm:$0xff] %v3586_v35 }
 0x2c8   : > { %v5014_v18 = vpop.f32.mrb[160].mxu1  ;;  %v3526_v61 = vpop.f32.mrb[160].mxu0 }
 0x2c9   : > { %v3527_v22 = vadd.f32 %v3526_v61, %v3390_v34  ;;  %v5015_v36 = vpop.f32.mrb[161].mxu1  ;;  %v5111_v41 = vpop.f32.mrb[161].mxu0  ;;  %v736_v34 = vld [vmem:[#allocation2 + $0xa0] sm:$0xff] }
 0x2ca   : > { %v5016_v44 = vadd.f32 %v5015_v36, %v5014_v18  ;;  %v5017_v1 = vpop.f32.mrb[162].mxu1  ;;  %v3529_v6 = vpop.f32.mrb[162].mxu0  ;;  %v737_v36 = vld [vmem:[#allocation2 + $0xa8] sm:$0xff] }
 0x2cb   : > { %v3587_v48 = vadd.f32 %v3527_v22, %v730_v21  ;;  %v3530_v10 = vadd.f32 %v3529_v6, %v3393_v3  ;;  %v5018_v42 = vpop.f32.mrb[163].mxu1  ;;  %v5112_v25 = vpop.f32.mrb[163].mxu0 }
 0x2cc   : > { %v5019_v51 = vadd.f32 %v5018_v42, %v5017_v1  ;;  %v3398_v50 = vadd.f32 %v5016_v44, %v6581_v11  ;;  %v738_v25 = vld [vmem:[#allocation2 + $0xb0] sm:$0xff] }
 0x2cd   : > { %3613 = vst [vmem:[#allocation2 + $0x70] sm:$0xff] %v3587_v48  ;;  %v3588_v58 = vadd.f32 %v3530_v10, %v731_v4 }
 0x2ce   : > { %v3401_v14 = vadd.f32 %v5019_v51, %v6584_v38 }
 0x2cf   : > { %3614 = vst [vmem:[#allocation2 + $0x78] sm:$0xff] %v3588_v58 }
 0x2d0   : > { %v5020_v30 = vpop.f32.mrb[164].mxu1  ;;  %v3534_v49 = vpop.f32.mrb[164].mxu0 }
 0x2d1   : > { %v3535_v54 = vadd.f32 %v3534_v49, %v3398_v50  ;;  %v5021_v57 = vpop.f32.mrb[165].mxu1  ;;  %v5115_v37 = vpop.f32.mrb[165].mxu0  ;;  %v739_v49 = vld [vmem:[#allocation2 + $0xb8] sm:$0xff] }
 0x2d2   : > { %v5022_v2 = vadd.f32 %v5021_v57, %v5020_v30  ;;  %v5023_v56 = vpop.f32.mrb[166].mxu1  ;;  %v3537_v31 = vpop.f32.mrb[166].mxu0 }
 0x2d3   : > { %v3589_v45 = vadd.f32 %v3535_v54, %v732_v28  ;;  %v3538_v46 = vadd.f32 %v3537_v31, %v3401_v14  ;;  %v5024_v0 = vpop.f32.mrb[167].mxu1  ;;  %v5116_v29 = vpop.f32.mrb[167].mxu0 }
 0x2d4   : > { %v5025_v11 = vadd.f32 %v5024_v0, %v5023_v56  ;;  %v3406_v5 = vadd.f32 %v5022_v2, %v6587_v23 }
 0x2d5   : > { %3615 = vst [vmem:[#allocation2 + $0x80] sm:$0xff] %v3589_v45  ;;  %v3590_v38 = vadd.f32 %v3538_v46, %v733_v63  ;;  %v740_v45 = vld [vmem:[#allocation2 + $0xc0] sm:$0xff] }
 0x2d6   : > { %v3409_v52 = vadd.f32 %v5025_v11, %v6590_v40  ;;  %v741_v11 = vld [vmem:[#allocation2 + $0xc8] sm:$0xff] }
 0x2d7   : > { %3616 = vst [vmem:[#allocation2 + $0x88] sm:$0xff] %v3590_v38 }
 0x2d8   : > { %v5026_v9 = vpop.f32.mrb[168].mxu1  ;;  %v3542_v7 = vpop.f32.mrb[168].mxu0 }
 0x2d9   : > { %v3543_v17 = vadd.f32 %v3542_v7, %v3406_v5  ;;  %v5027_v59 = vpop.f32.mrb[169].mxu1  ;;  %v5119_v20 = vpop.f32.mrb[169].mxu0  ;;  %v3630_v7 = vld [vmem:[#allocation2 + $0x8] sm:$0xff] (!%p4346_p13) }
 0x2da   : > { %v5028_v13 = vadd.f32 %v5027_v59, %v5026_v9  ;;  %v5029_v24 = vpop.f32.mrb[170].mxu1  ;;  %v3545_v53 = vpop.f32.mrb[170].mxu0  ;;  %v6645_v20 = vld [vmem:[%s6734_s3] ss:$0 sm:$0xff] (!%p4346_p13) }
 0x2db   : > { %v3591_v32 = vadd.f32 %v3543_v17, %v734_v15  ;;  %v3546_v19 = vadd.f32 %v3545_v53, %v3409_v52  ;;  %v5030_v43 = vpop.f32.mrb[171].mxu1  ;;  %v5120_v60 = vpop.f32.mrb[171].mxu0 }
 0x2dc   : > { %v5031_v23 = vadd.f32 %v5030_v43, %v5029_v24  ;;  %v3414_v27 = vadd.f32 %v5028_v13, %v6593_v8  ;;  %v3631_v13 = vld [vmem:[#allocation2 + $0x10] sm:$0xff] (!%p4346_p13)  ;;  %v3632_v24 = vld [vmem:[#allocation2 + $0x18] sm:$0xff] (!%p4346_p13) }
 0x2dd   : > { %3617 = vst [vmem:[#allocation2 + $0x90] sm:$0xff] %v3591_v32  ;;  %v3592_v40 = vadd.f32 %v3546_v19, %v735_v16  ;;  %v3633_v32 = vld [vmem:[#allocation2 + $0x20] sm:$0xff] (!%p4346_p13)  ;;  %v3634_v19 = vld [vmem:[#allocation2 + $0x28] sm:$0xff] (!%p4346_p13)  ;;  %v3635_v43 = vld [vmem:[#allocation2 + $0x30] sm:$0xff] (!%p4346_p13) }
 0x2de   : > { %v3417_v33 = vadd.f32 %v5031_v23, %v6596_v39 }
 0x2df   : > { %3618 = vst [vmem:[#allocation2 + $0x98] sm:$0xff] %v3592_v40 }
 0x2e0   : > { %v5032_v55 = vpop.f32.mrb[172].mxu1  ;;  %v3550_v35 = vpop.f32.mrb[172].mxu0 }
 0x2e1   : > { %v3551_v3 = vadd.f32 %v3550_v35, %v3414_v27  ;;  %v5033_v18 = vpop.f32.mrb[173].mxu1  ;;  %v5123_v21 = vpop.f32.mrb[173].mxu0 }
 0x2e2   : > { %v5034_v61 = vadd.f32 %v5033_v18, %v5032_v55  ;;  %v5035_v22 = vpop.f32.mrb[174].mxu1  ;;  %v3553_v41 = vpop.f32.mrb[174].mxu0  ;;  %v3637_v18 = vld [vmem:[#allocation2 + $0x40] sm:$0xff] (!%p4346_p13) }
 0x2e3   : > { %v3593_v44 = vadd.f32 %v3551_v3, %v736_v34  ;;  %v3554_v1 = vadd.f32 %v3553_v41, %v3417_v33  ;;  %v5036_v4 = vpop.f32.mrb[175].mxu1  ;;  %v5124_v6 = vpop.f32.mrb[175].mxu0  ;;  %v3636_v33 = vld [vmem:[#allocation2 + $0x38] sm:$0xff] (!%p4346_p13)  ;;  %v3638_v41 = vld [vmem:[#allocation2 + $0x48] sm:$0xff] (!%p4346_p13) }
 0x2e4   : > { %v5037_v8 = vadd.f32 %v5036_v4, %v5035_v22  ;;  %v3422_v48 = vadd.f32 %v5034_v61, %v6599_v12 }
 0x2e5   : > { %3619 = vst [vmem:[#allocation2 + $0xa0] sm:$0xff] %v3593_v44  ;;  %v3594_v39 = vadd.f32 %v3554_v1, %v737_v36 }
 0x2e6   : > { %v3425_v10 = vadd.f32 %v5037_v8, %v6602_v26  ;;  %v3639_v8 = vld [vmem:[#allocation2 + $0x50] sm:$0xff] (!%p4346_p13) }
 0x2e7   : > { %3620 = vst [vmem:[#allocation2 + $0xa8] sm:$0xff] %v3594_v39 }
 0x2e8   : > { %v5038_v42 = vpop.f32.mrb[176].mxu1  ;;  %v3558_v51 = vpop.f32.mrb[176].mxu0 }
 0x2e9   : > { %v3559_v50 = vadd.f32 %v3558_v51, %v3422_v48  ;;  %v5039_v58 = vpop.f32.mrb[177].mxu1  ;;  %v5127_v14 = vpop.f32.mrb[177].mxu0  ;;  %v3640_v48 = vld [vmem:[#allocation2 + $0x58] sm:$0xff] (!%p4346_p13)  ;;  %v3641_v51 = vld [vmem:[#allocation2 + $0x60] sm:$0xff] (!%p4346_p13) }
 0x2ea   : > { %v5040_v30 = vadd.f32 %v5039_v58, %v5038_v42  ;;  %v5041_v28 = vpop.f32.mrb[178].mxu1  ;;  %v3561_v54 = vpop.f32.mrb[178].mxu0 }
 0x2eb   : > { %v3595_v57 = vadd.f32 %v3559_v50, %v738_v25  ;;  %v3562_v37 = vadd.f32 %v3561_v54, %v3425_v10  ;;  %v5042_v2 = vpop.f32.mrb[179].mxu1  ;;  %v5128_v56 = vpop.f32.mrb[179].mxu0  ;;  %v3642_v50 = vld [vmem:[#allocation2 + $0x68] sm:$0xff] (!%p4346_p13) }
 0x2ec   : > { %v5043_v12 = vadd.f32 %v5042_v2, %v5041_v28  ;;  %v3430_v63 = vadd.f32 %v5040_v30, %v6604_v62  ;;  %v3629_v62 = vld [vmem:[#allocation2] sm:$0xff] (!%p4346_p13)  ;;  %v3644_v56 = vld [vmem:[#allocation2 + $0x78] sm:$0xff] (!%p4346_p13) }
 0x2ed   : > { %3621 = vst [vmem:[#allocation2 + $0xb0] sm:$0xff] %v3595_v57  ;;  %v3596_v26 = vadd.f32 %v3562_v37, %v739_v49  ;;  %v3643_v49 = vld [vmem:[#allocation2 + $0x70] sm:$0xff] (!%p4346_p13) }
 0x2ee   : > { %v3433_v31 = vadd.f32 %v5043_v12, %v6607_v47  ;;  %v6638_v47 = vld [vmem:[%s6733_s2] ss:$0 sm:$0xff] (!%p4346_p13) }
 0x2ef   : > { %3622 = vst [vmem:[#allocation2 + $0xb8] sm:$0xff] %v3596_v26  ;;  %v3662_v17 = vmul.f32 (!%p4346_p13), %v6638_v47, %v3629_v62  ;;  %v3663_v59 = vmul.f32 (!%p4346_p13), %v6638_v47, %v3630_v7  ;;  %v3664_v16 = vmul.f32 (!%p4346_p13), %v6638_v47, %v3631_v13  ;;  %v3665_v53 = vmul.f32 (!%p4346_p13), %v6638_v47, %v3632_v24  ;;  %v3647_v13 = vld [vmem:[#allocation2 + $0x90] sm:$0xff] (!%p4346_p13)  ;;  %v3648_v24 = vld [vmem:[#allocation2 + $0x98] sm:$0xff] (!%p4346_p13) }
 0x2f0   : > { %v3566_v46 = vpop.f32.mrb[180].mxu0  ;;  %v3666_v27 = vmul.f32 (!%p4346_p13), %v6638_v47, %v3633_v32  ;;  %v3667_v40 = vmul.f32 (!%p4346_p13), %v6638_v47, %v3634_v19  ;;  %v3668_v35 = vmul.f32 (!%p4346_p13), %v6638_v47, %v3635_v43  ;;  %v3669_v3 = vmul.f32 (!%p4346_p13), %v6638_v47, %v3636_v33  ;;  %v3649_v43 = vld [vmem:[#allocation2 + $0xa0] sm:$0xff] (!%p4346_p13) }
 0x2f1   : > { %v3567_v0 = vadd.f32 %v3566_v46, %v3430_v63  ;;  %v5131_v29 = vpop.f32.mrb[181].mxu0  ;;  %3628 = sbr.rel (%p4346_p13) target bundleno = 781 (0x30d), region = 70  ;;  %v3695_v60 = vadd.f32 (!%p4346_p13), %v6645_v20, %v3662_v17  ;;  %v3696_v23 = vadd.f32 (!%p4346_p13), %v6645_v20, %v3663_v59  ;;  %v3697_v55 = vadd.f32 (!%p4346_p13), %v6645_v20, %v3664_v16 }
 0x2f2   : > { %v3569_v5 = vpop.f32.mrb[182].mxu0  ;;  %v3698_v34 = vadd.f32 (!%p4346_p13), %v6645_v20, %v3665_v53  ;;  %v3699_v22 = vadd.f32 (!%p4346_p13), %v6645_v20, %v3666_v27  ;;  %v3700_v36 = vadd.f32 (!%p4346_p13), %v6645_v20, %v3667_v40  ;;  %v3701_v4 = vadd.f32 (!%p4346_p13), %v6645_v20, %v3668_v35 }
 0x2f3   : > { %v3597_v38 = vadd.f32 %v3567_v0, %v740_v45  ;;  %v3570_v52 = vadd.f32 %v3569_v5, %v3433_v31  ;;  %v5132_v9 = vpop.f32.mrb[183].mxu0  ;;  %v3721_v21 = vmax.f32 (!%p4346_p13), %v3695_v60, 0.0  ;;  %v3722_v61 = vmax.f32 (!%p4346_p13), %v3696_v23, 0.0  ;;  %v3645_v45 = vld [vmem:[#allocation2 + $0x80] sm:$0xff] (!%p4346_p13)  ;;  %v3650_v60 = vld [vmem:[#allocation2 + $0xa8] sm:$0xff] (!%p4346_p13) }
 0x2f4   : > { %v3723_v44 = vmax.f32 (!%p4346_p13), %v3697_v55, 0.0  ;;  %v3724_v1 = vmax.f32 (!%p4346_p13), %v3698_v34, 0.0  ;;  %v3702_v6 = vadd.f32 (!%p4346_p13), %v6645_v20, %v3669_v3  ;;  %v3725_v10 = vmax.f32 (!%p4346_p13), %v3699_v22, 0.0  ;;  %v3651_v55 = vld [vmem:[#allocation2 + $0xb0] sm:$0xff] (!%p4346_p13) }
 0x2f5   : > { %3623 = vst [vmem:[#allocation2 + $0xc0] sm:$0xff] %v3597_v38  ;;  %v3598_v15 = vadd.f32 %v3570_v52, %v741_v11  ;;  %v4406_v39 = vpack.c.bf16 (!%p4346_p13), %v3722_v61, %v3721_v21  ;;  %v3726_v42 = vmax.f32 (!%p4346_p13), %v3700_v36, 0.0  ;;  %v3670_v25 = vmul.f32 (!%p4346_p13), %v6638_v47, %v3637_v18 }
 0x2f6   : > { %v4411_v58 = vpack.c.bf16 (!%p4346_p13), %v3724_v1, %v3723_v44  ;;  %v3727_v14 = vmax.f32 (!%p4346_p13), %v3701_v4, 0.0  ;;  %v3728_v30 = vmax.f32 (!%p4346_p13), %v3702_v6, 0.0  ;;  %v3671_v28 = vmul.f32 (!%p4346_p13), %v6638_v47, %v3638_v41  ;;  %v3652_v21 = vld [vmem:[#allocation2 + $0xb8] sm:$0xff] (!%p4346_p13) }
 0x2f7   : > { %3624 = vst [vmem:[#allocation2 + $0xc8] sm:$0xff] %v3598_v15  ;;  %4407 = vst [vmem:[%s6088_s8] sm:$0xff] (!%p4346_p13), %v4406_v39   ;;  %v4416_v54 = vpack.c.bf16 (!%p4346_p13), %v3726_v42, %v3725_v10  ;;  %v3703_v57 = vadd.f32 (!%p4346_p13), %v6645_v20, %v3670_v25  ;;  %v3672_v37 = vmul.f32 (!%p4346_p13), %v6638_v47, %v3639_v8  ;;  %v3646_v15 = vld [vmem:[#allocation2 + $0x88] sm:$0xff] (!%p4346_p13) }
 0x2f8   : > { %v3673_v2 = vmul.f32 %v6638_v47, %v3640_v48  ;;  %4468 = vst [vmem:[%s6088_s8 + $0x8] sm:$0xff] %v4411_v58   ;;  %v4421_v12 = vpack.c.bf16 %v3728_v30, %v3727_v14  ;;  %v3704_v63 = vadd.f32 %v6645_v20, %v3671_v28  ;;  %v3674_v26 = vmul.f32 %v6638_v47, %v3641_v51 }
 0x2f9   : > { %v3675_v31 = vmul.f32 %v6638_v47, %v3642_v50  ;;  %4469 = vst [vmem:[%s6088_s8 + $0x10] sm:$0xff] %v4416_v54   ;;  %v3729_v46 = vmax.f32 %v3703_v57, 0.0  ;;  %v3705_v0 = vadd.f32 %v6645_v20, %v3672_v37  ;;  %v3676_v11 = vmul.f32 %v6638_v47, %v3643_v49 }
 0x2fa   : > { %v3706_v29 = vadd.f32 %v6645_v20, %v3673_v2  ;;  %4470 = vst [vmem:[%s6088_s8 + $0x18] sm:$0xff] %v4421_v12   ;;  %v3730_v5 = vmax.f32 %v3704_v63, 0.0  ;;  %v3707_v38 = vadd.f32 %v6645_v20, %v3674_v26  ;;  %v3677_v9 = vmul.f32 %v6638_v47, %v3644_v56 }
 0x2fb   : > { %v3708_v52 = vadd.f32 %v6645_v20, %v3675_v31  ;;  %v3731_v62 = vmax.f32 %v3705_v0, 0.0  ;;  %v3709_v17 = vadd.f32 %v6645_v20, %v3676_v11  ;;  %v3678_v59 = vmul.f32 %v6638_v47, %v3645_v45 }
 0x2fc   : > { %v3732_v7 = vmax.f32 %v3706_v29, 0.0  ;;  %v4426_v16 = vpack.c.bf16 %v3730_v5, %v3729_v46  ;;  %v3733_v53 = vmax.f32 %v3707_v38, 0.0  ;;  %v3710_v19 = vadd.f32 %v6645_v20, %v3677_v9  ;;  %v3653_v44 = vld [vmem:[#allocation2 + $0xc0] sm:$0xff] }
 0x2fd   : > { %v3734_v32 = vmax.f32 %v3708_v52, 0.0  ;;  %v3735_v27 = vmax.f32 %v3709_v17, 0.0  ;;  %v3679_v40 = vmul.f32 %v6638_v47, %v3646_v15  ;;  %v3711_v33 = vadd.f32 %v6645_v20, %v3678_v59 }
 0x2fe   : > { %v4431_v23 = vpack.c.bf16 %v3732_v7, %v3731_v62  ;;  %4471 = vst [vmem:[%s6088_s8 + $0x20] sm:$0xff] %v4426_v16   ;;  %v3736_v35 = vmax.f32 %v3710_v19, 0.0  ;;  %v3680_v3 = vmul.f32 %v6638_v47, %v3647_v13  ;;  %v3681_v18 = vmul.f32 %v6638_v47, %v3648_v24  ;;  %v3654_v25 = vld [vmem:[#allocation2 + $0xc8] sm:$0xff] }
 0x2ff   : > { %v4436_v34 = vpack.c.bf16 %v3734_v32, %v3733_v53  ;;  %v3712_v61 = vadd.f32 %v6645_v20, %v3679_v40  ;;  %v3737_v22 = vmax.f32 %v3711_v33, 0.0  ;;  %v3682_v36 = vmul.f32 %v6638_v47, %v3649_v43 }
 0x300   : > { %4472 = vst [vmem:[%s6088_s8 + $0x28] sm:$0xff] %v4431_v23   ;;  %v3683_v41 = vmul.f32 %v6638_v47, %v3650_v60  ;;  %v4441_v1 = vpack.c.bf16 %v3736_v35, %v3735_v27  ;;  %v3713_v4 = vadd.f32 %v6645_v20, %v3680_v3  ;;  %v3714_v6 = vadd.f32 %v6645_v20, %v3681_v18 }
 0x301   : > { %4473 = vst [vmem:[%s6088_s8 + $0x30] sm:$0xff] %v4436_v34   ;;  %v3684_v8 = vmul.f32 %v6638_v47, %v3651_v55  ;;  %v3738_v48 = vmax.f32 %v3712_v61, 0.0  ;;  %v3715_v39 = vadd.f32 %v6645_v20, %v3682_v36  ;;  %v3685_v42 = vmul.f32 %v6638_v47, %v3652_v21 }
 0x302   : > { %v3716_v10 = vadd.f32 %v6645_v20, %v3683_v41  ;;  %4474 = vst [vmem:[%s6088_s8 + $0x38] sm:$0xff] %v4441_v1   ;;  %v3739_v51 = vmax.f32 %v3713_v4, 0.0  ;;  %v3740_v50 = vmax.f32 %v3714_v6, 0.0  ;;  %v3686_v14 = vmul.f32 %v6638_v47, %v3653_v44 }
 0x303   : > { %v3717_v58 = vadd.f32 %v6645_v20, %v3684_v8  ;;  %v4446_v30 = vpack.c.bf16 %v3738_v48, %v3737_v22  ;;  %v3741_v28 = vmax.f32 %v3715_v39, 0.0  ;;  %v3718_v54 = vadd.f32 %v6645_v20, %v3685_v42 }
 0x304   : > { %v3742_v49 = vmax.f32 %v3716_v10, 0.0  ;;  %v4451_v57 = vpack.c.bf16 %v3740_v50, %v3739_v51  ;;  %v3687_v2 = vmul.f32 %v6638_v47, %v3654_v25  ;;  %v3719_v56 = vadd.f32 %v6645_v20, %v3686_v14 }
 0x305   : > { %v3743_v37 = vmax.f32 %v3717_v58, 0.0  ;;  %4475 = vst [vmem:[%s6088_s8 + $0x40] sm:$0xff] %v4446_v30   ;;  %v3744_v63 = vmax.f32 %v3718_v54, 0.0 }
 0x306   : > { %v4456_v12 = vpack.c.bf16 %v3742_v49, %v3741_v28  ;;  %4476 = vst [vmem:[%s6088_s8 + $0x48] sm:$0xff] %v4451_v57   ;;  %v3720_v26 = vadd.f32 %v6645_v20, %v3687_v2  ;;  %v3745_v31 = vmax.f32 %v3719_v56, 0.0 }
 0x307   : > { %v4461_v45 = vpack.c.bf16 %v3744_v63, %v3743_v37 }
 0x308   : > { %4477 = vst [vmem:[%s6088_s8 + $0x50] sm:$0xff] %v4456_v12   ;;  %v3746_v46 = vmax.f32 %v3720_v26, 0.0 }
 0x309   : > { %4478 = vst [vmem:[%s6088_s8 + $0x58] sm:$0xff] %v4461_v45  }
 0x30a   : > { %v4466_v0 = vpack.c.bf16 %v3746_v46, %v3745_v31 }
 0x30c   : > { %4479 = vst [vmem:[%s6088_s8 + $0x60] sm:$0xff] %v4466_v0  }
 0x30d PF: > { %s14_s21 = sadd.s32 1, %s5617_s21   ;;  %s6736_s15 = smov %s5597_s16 }
 0x30e   : > { %p11_p0 = scmp.ge.s32.totalorder %s14_s21, 6   ;;  %s6737_s16 = smov %s5698_s28 }
 0x30f   : > { %s6738_s17 = smov %s5609_s19  ;;  %s6739_s18 = smov %s5613_s20 }
 0x310   : > { %s6740_s19 = smov %s6743_s22  ;;  %s6741_s20 = smov %s6747_s23 }
 0x311   :  { %13 = sbr.rel (!%p11_p0) target bundleno = 4 (0x4), region = 120 }

// kernel: _lambda_.10
= control target key start
LH: loop header
LB: loop body
LE: loop exit
PB: predicated region body
PF: predicated region fallthrough
CT: control target
= control target key end

     0   :  { %s5604_s15 = smov 0   ;;  %s5606_s16 = smov 0   ;;  %s6507_s0 = inlined_call_operand.vmem [shape: bf16[1568,1664], index: 0, kind: input, shape index: {}]   ;;  %s6508_s1 = inlined_call_operand.vmem [shape: bf16[1664,128], index: 1, kind: input, shape index: {}]   ;;  %s6509_s2 = inlined_call_operand.vmem [shape: f32[1,128], index: 2, kind: input, shape index: {}]   ;;  %s6510_s3 = inlined_call_operand.vmem [shape: f32[1,128], index: 3, kind: input, shape index: {}]   ;;  %s6511_s4 = inlined_call_operand.vmem [shape: bf16[1568,128], index: 4, kind: output, shape index: {}]  }
   0x1   :  { %s5608_s17 = smov 0  }
   0x2 LB: > { %s33_s18 = sadd.s32 1, %s5573_s16  ;;  %p3934_p0 = scmp.ge.s32.totalorder %s5577_s17, 1  ;;  %s5577_s17 = sphi %s5608_s17, %s14_s17   ;;  %s5573_s16 = sphi %s5606_s16, %s6513_s16   ;;  %s5569_s15 = sphi %s5604_s15, %s6512_s15  }
   0x3   : > { %p35_p1 = scmp.ge.s32.totalorder %s33_s18, 7  ;;  %p224_p2 = scmp.lt.s32.totalorder %s5577_s17, 8 }
   0x5   : > { %s6515_s18 = smov (%p35_p1, %s33_s18), 0  ;;  %p225_p3 = pnand %p3934_p0, %p224_p2 }
   0x6   : > { %v5073_v0 = vld [vmem:[%s6508_s1 + $0x40] sm:$0xff] (!%p225_p3)   ;;  %v5077_v4 = vld [vmem:[%s6508_s1 + $0x48] sm:$0xff] (!%p225_p3)   ;;  %v5081_v8 = vld [vmem:[%s6508_s1 + $0x50] sm:$0xff] (!%p225_p3)   ;;  %s272_s25 = smul.u32 (!%p225_p3), 28, %s5569_s15 }
   0x7   : > { %228 = sbr.rel (%p225_p3) target bundleno = 678 (0x2a6), region = 36  ;;  %v5074_v1 = vld [vmem:[%s6508_s1 + $0xc0] sm:$0xff] (!%p225_p3)   ;;  %4366 = vmatprep.subr.bf16.mxu0 (!%p225_p3), %v5073_v0  ;;  %v5078_v5 = vld [vmem:[%s6508_s1 + $0xc8] sm:$0xff] (!%p225_p3)   ;;  %v5082_v9 = vld [vmem:[%s6508_s1 + $0xd0] sm:$0xff] (!%p225_p3)  }
   0x8   : > { %v5075_v2 = vld [vmem:[%s6508_s1] sm:$0xff] (!%p225_p3)   ;;  %4466 = vmatprep.subr.bf16.mxu1 (!%p225_p3), %v5074_v1  ;;  %v5079_v6 = vld [vmem:[%s6508_s1 + $0x8] sm:$0xff] (!%p225_p3)   ;;  %v5083_v10 = vld [vmem:[%s6508_s1 + $0x10] sm:$0xff] (!%p225_p3)   ;;  %p274_p4 = scmp.lt.s32.totalorder (!%p225_p3), %s272_s25, 195 }
   0x9   : > { %v5076_v3 = vld [vmem:[%s6508_s1 + $0x80] sm:$0xff] (!%p225_p3)   ;;  %4367 = vmatpush3.bf16.msra.mxu0 (!%p225_p3), %v5075_v2  ;;  %v5080_v7 = vld [vmem:[%s6508_s1 + $0x88] sm:$0xff] (!%p225_p3)   ;;  %v5084_v11 = vld [vmem:[%s6508_s1 + $0x90] sm:$0xff] (!%p225_p3)  }
   0xa   : > { %4467 = vmatpush3.bf16.msra.mxu1 (!%p225_p3), %v5076_v3  ;;  %4368 = vmatprep.subr.bf16.mxu0 (!%p225_p3), %v5077_v4  ;;  %v5085_v12 = vld [vmem:[%s6508_s1 + $0x58] sm:$0xff] (!%p225_p3)   ;;  %v5089_v16 = vld [vmem:[%s6508_s1 + $0x60] sm:$0xff] (!%p225_p3)   ;;  %v5093_v20 = vld [vmem:[%s6508_s1 + $0x68] sm:$0xff] (!%p225_p3)  }
   0xb   : > { %4468 = vmatprep.subr.bf16.mxu1 (!%p225_p3), %v5078_v5  ;;  %v5086_v13 = vld [vmem:[%s6508_s1 + $0xd8] sm:$0xff] (!%p225_p3)   ;;  %v5090_v17 = vld [vmem:[%s6508_s1 + $0xe0] sm:$0xff] (!%p225_p3)   ;;  %v5094_v21 = vld [vmem:[%s6508_s1 + $0xe8] sm:$0xff] (!%p225_p3)  }
   0xc   : > { %v5087_v14 = vld [vmem:[%s6508_s1 + $0x18] sm:$0xff] (!%p225_p3)   ;;  %v5091_v18 = vld [vmem:[%s6508_s1 + $0x20] sm:$0xff] (!%p225_p3)   ;;  %v5095_v22 = vld [vmem:[%s6508_s1 + $0x28] sm:$0xff] (!%p225_p3)  }
   0xd   : > { %4369 = vmatpush3.bf16.msra.mxu0 (!%p225_p3), %v5079_v6  ;;  %v5088_v15 = vld [vmem:[%s6508_s1 + $0x98] sm:$0xff] (!%p225_p3)   ;;  %v5092_v19 = vld [vmem:[%s6508_s1 + $0xa0] sm:$0xff] (!%p225_p3)   ;;  %v5096_v23 = vld [vmem:[%s6508_s1 + $0xa8] sm:$0xff] (!%p225_p3)  }
   0xe   : > { %4469 = vmatpush3.bf16.msra.mxu1 %v5080_v7  ;;  %4370 = vmatprep.subr.bf16.mxu0 %v5081_v8  ;;  %s6517_s25 = smov (!%p274_p4, %s272_s25), 195  ;;  %v5097_v24 = vld [vmem:[%s6508_s1 + $0x70] sm:$0xff]   ;;  %v5101_v28 = vld [vmem:[%s6508_s1 + $0x78] sm:$0xff]   ;;  %v5111_v36 = vld [vmem:[%s6508_s1 + $0x140] sm:$0xff]  }
   0xf   : > { %4470 = vmatprep.subr.bf16.mxu1 %v5082_v9  ;;  %v5098_v25 = vld [vmem:[%s6508_s1 + $0xf0] sm:$0xff]   ;;  %s5048_s28 = smul.u32 52, %s6517_s25  ;;  %v5102_v29 = vld [vmem:[%s6508_s1 + $0xf8] sm:$0xff]   ;;  %v5112_v37 = vld [vmem:[%s6508_s1 + $0x100] sm:$0xff]   ;;  %s3936_s21 = sshll.u32 %s6517_s25, 2 }
  0x10   : > { %v5099_v26 = vld [vmem:[%s6508_s1 + $0x30] sm:$0xff]   ;;  %v5103_v30 = vld [vmem:[%s6508_s1 + $0x38] sm:$0xff]   ;;  %v5119_v42 = vld [vmem:[%s6508_s1 + $0x1c0] sm:$0xff]   ;;  %s6459_s23 = scalar_lea.vmem %s6511_s4, %s3936_s21 }
  0x11   : > { %4371 = vmatpush3.bf16.msra.mxu0 %v5083_v10  ;;  %v5100_v27 = vld [vmem:[%s6508_s1 + $0xb0] sm:$0xff]   ;;  %s5721_s12 = scalar_lea.vmem %s6507_s0, %s5048_s28  ;;  %v5104_v31 = vld [vmem:[%s6508_s1 + $0xb8] sm:$0xff]   ;;  %v5120_v43 = vld [vmem:[%s6508_s1 + $0x180] sm:$0xff]  }
  0x12   : > { %4471 = vmatpush3.bf16.msra.mxu1 %v5084_v11  ;;  %4372 = vmatprep.subr.bf16.mxu0 %v5085_v12  ;;  %v5105_v32 = vld [vmem:[%s5721_s12] ss:$52 sps:$4 sm:$0xff]   ;;  %v5107_v33 = vld [vmem:[%s5721_s12 + $0x4] ss:$52 sps:$4 sm:$0xff]   ;;  %v5108_v34 = vld [vmem:[%s5721_s12 + $0x8] ss:$52 sps:$4 sm:$0xff]  }
  0x13   : > { %4472 = vmatprep.subr.bf16.mxu1 %v5086_v13  ;;  %v5110_v35 = vld [vmem:[%s5721_s12 + $0xc] ss:$52 sps:$4 sm:$0xff]   ;;  %2353 = vmatprep.mubr.bf16.mxu0 %v5107_v33  ;;  %v5115_v39 = vld [vmem:[%s5721_s12 + $0x74] ss:$52 sps:$4 sm:$0xff]   ;;  %v5118_v41 = vld [vmem:[%s5721_s12 + $0x70] ss:$52 sps:$4 sm:$0xff]  }
  0x14   : > { %2498 = vmatprep.mubr.bf16.mxu1 %v5110_v35  ;;  %v5113_v38 = vld [vmem:[%s5721_s12 + $0x6c] ss:$52 sps:$4 sm:$0xff]   ;;  %v5117_v40 = vld [vmem:[%s5721_s12 + $0x68] ss:$52 sps:$4 sm:$0xff]   ;;  %v5127_v48 = vld [vmem:[%s5721_s12 + $0xd0] ss:$52 sps:$4 sm:$0xff]  }
  0x15   : > { %4373 = vmatpush3.bf16.msra.mxu0 %v5087_v14  ;;  %v5121_v44 = vld [vmem:[%s6508_s1 + $0x148] sm:$0xff]   ;;  %v5124_v46 = vld [vmem:[%s5721_s12 + $0xdc] ss:$52 sps:$4 sm:$0xff]   ;;  %v5132_v53 = vld [vmem:[%s5721_s12 + $0x144] ss:$52 sps:$4 sm:$0xff]  }
  0x16   : > { %4473 = vmatpush3.bf16.msra.mxu1 %v5088_v15  ;;  %4374 = vmatprep.subr.bf16.mxu0 %v5089_v16  ;;  %v5122_v45 = vld [vmem:[%s5721_s12 + $0xd4] ss:$52 sps:$4 sm:$0xff]   ;;  %v5128_v50 = vld [vmem:[%s5721_s12 + $0xd8] ss:$52 sps:$4 sm:$0xff]   ;;  %v5130_v51 = vld [vmem:[%s5721_s12 + $0x13c] ss:$52 sps:$4 sm:$0xff]  }
  0x17   : > { %4474 = vmatprep.subr.bf16.mxu1 %v5090_v17  ;;  %v5126_v47 = vld [vmem:[%s6508_s1 + $0x108] sm:$0xff]   ;;  %v5137_v54 = vld [vmem:[%s6508_s1 + $0x150] sm:$0xff]   ;;  %v5139_v58 = vld [vmem:[%s5721_s12 + $0x1a4] ss:$52 sps:$4 sm:$0xff]  }
  0x18   : > { %v5129_v49 = vld [vmem:[%s6508_s1 + $0x1c8] sm:$0xff]   ;;  %v5138_v55 = vld [vmem:[%s6508_s1 + $0x110] sm:$0xff]   ;;  %v5153_v62 = vld [vmem:[%s6508_s1 + $0x158] sm:$0xff]  }
  0x19   : > { %4375 = vmatpush3.bf16.msra.mxu0 %v5091_v18  ;;  %v5134_v52 = vld [vmem:[%s6508_s1 + $0x188] sm:$0xff]   ;;  %v5136_v57 = vld [vmem:[%s5721_s12 + $0x140] ss:$52 sps:$4 sm:$0xff]   ;;  %v5154_v63 = vld [vmem:[%s6508_s1 + $0x118] sm:$0xff]  }
  0x1a   : > { %4475 = vmatpush3.bf16.msra.mxu1 %v5092_v19  ;;  %4376 = vmatprep.subr.bf16.mxu0 %v5093_v20  ;;  %v5135_v56 = vld [vmem:[%s5721_s12 + $0x138] ss:$52 sps:$4 sm:$0xff]   ;;  %v5145_v59 = vld [vmem:[%s6508_s1 + $0x1d0] sm:$0xff]   ;;  %v5144_v1 = vld [vmem:[%s5721_s12 + $0x1a8] ss:$52 sps:$4 sm:$0xff]  }
  0x1b   : > { %4476 = vmatprep.subr.bf16.mxu1 %v5094_v21  ;;  %v5146_v60 = vld [vmem:[%s6508_s1 + $0x190] sm:$0xff]   ;;  %v5141_v61 = vld [vmem:[%s5721_s12 + $0x1ac] ss:$52 sps:$4 sm:$0xff]   ;;  %v5161_v4 = vld [vmem:[%s6508_s1 + $0x1d8] sm:$0xff]  }
  0x1c   : > { %v5143_v0 = vld [vmem:[%s5721_s12 + $0x1a0] ss:$52 sps:$4 sm:$0xff]   ;;  %v5162_v5 = vld [vmem:[%s6508_s1 + $0x198] sm:$0xff]   ;;  %v5152_v9 = vld [vmem:[%s5721_s12 + $0x210] ss:$52 sps:$4 sm:$0xff]  }
  0x1d   : > { %4377 = vmatpush3.bf16.msra.mxu0 %v5095_v22  ;;  %v5147_v2 = vld [vmem:[%s5721_s12 + $0x20c] ss:$52 sps:$4 sm:$0xff]   ;;  %v5149_v3 = vld [vmem:[%s5721_s12 + $0x214] ss:$52 sps:$4 sm:$0xff]   ;;  %v5157_v11 = vld [vmem:[%s5721_s12 + $0x27c] ss:$52 sps:$4 sm:$0xff]  }
  0x1e   : > { %4477 = vmatpush3.bf16.msra.mxu1 %v5096_v23  ;;  %4378 = vmatprep.subr.bf16.mxu0 %v5097_v24  ;;  %v5169_v6 = vld [vmem:[%s6508_s1 + $0x160] sm:$0xff]   ;;  %v5151_v8 = vld [vmem:[%s5721_s12 + $0x208] ss:$52 sps:$4 sm:$0xff]   ;;  %v5160_v17 = vld [vmem:[%s5721_s12 + $0x278] ss:$52 sps:$4 sm:$0xff]  }
  0x1f   : > { %4478 = vmatprep.subr.bf16.mxu1 %v5098_v25  ;;  %v5170_v7 = vld [vmem:[%s6508_s1 + $0x120] sm:$0xff]   ;;  %v5155_v10 = vld [vmem:[%s5721_s12 + $0x274] ss:$52 sps:$4 sm:$0xff]   ;;  %v5163_v18 = vld [vmem:[%s5721_s12 + $0x2dc] ss:$52 sps:$4 sm:$0xff]  }
  0x20   : > { %v5177_v12 = vld [vmem:[%s6508_s1 + $0x1e0] sm:$0xff]   ;;  %v5179_v14 = vld [vmem:[%s6508_s1 + $0x168] sm:$0xff]   ;;  %v5195_v22 = vld [vmem:[%s6508_s1 + $0x170] sm:$0xff]  }
  0x21   : > { %4379 = vmatpush3.bf16.msra.mxu0 %v5099_v26  ;;  %v5178_v13 = vld [vmem:[%s6508_s1 + $0x1a0] sm:$0xff]   ;;  %v5184_v16 = vld [vmem:[%s6508_s1 + $0x128] sm:$0xff]   ;;  %v5196_v23 = vld [vmem:[%s6508_s1 + $0x130] sm:$0xff]  }
  0x22   : > { %4479 = vmatpush3.bf16.msra.mxu1 %v5100_v27  ;;  %4380 = vmatprep.subr.bf16.mxu0 %v5101_v28  ;;  %v5159_v15 = vld [vmem:[%s5721_s12 + $0x270] ss:$52 sps:$4 sm:$0xff]   ;;  %v5187_v19 = vld [vmem:[%s6508_s1 + $0x1e8] sm:$0xff]   ;;  %v5168_v25 = vld [vmem:[%s5721_s12 + $0x2e0] ss:$52 sps:$4 sm:$0xff]  }
  0x23   : > { %4480 = vmatprep.subr.bf16.mxu1 %v5102_v29  ;;  %v5165_v20 = vld [vmem:[%s5721_s12 + $0x2e4] ss:$52 sps:$4 sm:$0xff]   ;;  %v5192_v21 = vld [vmem:[%s6508_s1 + $0x1a8] sm:$0xff]   ;;  %v5203_v28 = vld [vmem:[%s6508_s1 + $0x1f0] sm:$0xff]  }
  0x24   : > { %v5167_v24 = vld [vmem:[%s5721_s12 + $0x2d8] ss:$52 sps:$4 sm:$0xff]   ;;  %v5204_v29 = vld [vmem:[%s6508_s1 + $0x1b0] sm:$0xff]  }
  0x25   : > { %4381 = vmatpush3.bf16.msra.mxu0 %v5103_v30  ;;  %v5171_v26 = vld [vmem:[%s5721_s12 + $0x344] ss:$52 sps:$4 sm:$0xff]   ;;  %v5173_v27 = vld [vmem:[%s5721_s12 + $0x34c] ss:$52 sps:$4 sm:$0xff]   ;;  %v5182_v35 = vld [vmem:[%s5721_s12 + $0x3b4] ss:$52 sps:$4 sm:$0xff]  }
  0x26   : > { %4481 = vmatpush3.bf16.msra.mxu1 %v5104_v31  ;;  %4566 = vmatprep.subr.bf16.mxu0 %v5111_v36  ;;  %v5175_v30 = vld [vmem:[%s5721_s12 + $0x340] ss:$52 sps:$4 sm:$0xff]   ;;  %v5176_v31 = vld [vmem:[%s5721_s12 + $0x348] ss:$52 sps:$4 sm:$0xff]  }
  0x27   : > { %4666 = vmatprep.subr.bf16.mxu1 %v5119_v42  ;;  %v5212_v33 = vld [vmem:[%s6508_s1 + $0x138] sm:$0xff]  }
  0x28   : > { %2354 = vmatmul.mubr.bf16.vlgmr.msra.gmra.mrb[0].mxu0 %v5105_v32  ;;  %v5211_v32 = vld [vmem:[%s6508_s1 + $0x178] sm:$0xff]  }
  0x29   : > { %2499 = vmatmul.mubr.bf16.vlgmr.msra.gmra.mrb[0].mxu1 %v5108_v34  ;;  %4567 = vmatpush3.bf16.msra.mxu0 %v5112_v37  ;;  %v5180_v34 = vld [vmem:[%s5721_s12 + $0x3ac] ss:$52 sps:$4 sm:$0xff]   ;;  %v5219_v36 = vld [vmem:[%s6508_s1 + $0x1f8] sm:$0xff]  }
  0x2a   : > { %2361 = vmatprep.mubr.bf16.mxu0 %v5113_v38  ;;  %2506 = vmatprep.mubr.bf16.mxu1 %v5115_v39  ;;  %v5220_v37 = vld [vmem:[%s6508_s1 + $0x1b8] sm:$0xff]   ;;  %v5186_v39 = vld [vmem:[%s5721_s12 + $0x3b0] ss:$52 sps:$4 sm:$0xff]  }
  0x2b   : > { %4667 = vmatpush3.bf16.msra.mxu1 %v5120_v43  ;;  %4568 = vmatprep.subr.bf16.mxu0 %v5121_v44  ;;  %v5185_v38 = vld [vmem:[%s5721_s12 + $0x3a8] ss:$52 sps:$4 sm:$0xff]   ;;  %v5235_v43 = vld [vmem:[%s6508_s1 + $0x2c0] sm:$0xff]  }
  0x2c   : > { %4668 = vmatprep.subr.bf16.mxu1 %v5129_v49  ;;  %v5190_v42 = vld [vmem:[%s5721_s12 + $0x41c] ss:$52 sps:$4 sm:$0xff]   ;;  %v5202_v49 = vld [vmem:[%s5721_s12 + $0x480] ss:$52 sps:$4 sm:$0xff]  }
  0x2d   : > { %4569 = vmatpush3.bf16.msra.mxu0 %v5126_v47  ;;  %v5193_v44 = vld [vmem:[%s5721_s12 + $0x410] ss:$52 sps:$4 sm:$0xff]  }
  0x2e   : > { %4570 = vmatprep.subr.bf16.mxu0 %v5137_v54  ;;  %v5199_v47 = vld [vmem:[%s5721_s12 + $0x484] ss:$52 sps:$4 sm:$0xff]   ;;  %v5213_v54 = vld [vmem:[%s5721_s12 + $0x54c] ss:$52 sps:$4 sm:$0xff]  }
  0x2f   : > { %4669 = vmatpush3.bf16.msra.mxu1 %v5134_v52  ;;  %v5209_v52 = vld [vmem:[%s5721_s12 + $0x4e0] ss:$52 sps:$4 sm:$0xff]  }
  0x30   : > { %2362 = vmatmul.mubr.bf16.gmra.mrb[4].mxu0 %v5117_v40  ;;  %4670 = vmatprep.subr.bf16.mxu1 %v5145_v59  ;;  %v5227_v40 = vld [vmem:[%s6508_s1 + $0x240] sm:$0xff]   ;;  %v5226_v59 = vld [vmem:[%s5721_s12 + $0x1c] ss:$52 sps:$4 sm:$0xff]  }
  0x31   : > { %2507 = vmatmul.mubr.bf16.gmra.mrb[4].mxu1 %v5118_v41  ;;  %2369 = vmatprep.mubr.bf16.mxu0 %v5122_v45  ;;  %v5188_v41 = vld [vmem:[%s5721_s12 + $0x414] ss:$52 sps:$4 sm:$0xff]   ;;  %v5194_v45 = vld [vmem:[%s5721_s12 + $0x418] ss:$52 sps:$4 sm:$0xff]  }
  0x32   : > { %2514 = vmatprep.mubr.bf16.mxu1 %v5124_v46  ;;  %4571 = vmatpush3.bf16.msra.mxu0 %v5138_v55  ;;  %v5197_v46 = vld [vmem:[%s5721_s12 + $0x47c] ss:$52 sps:$4 sm:$0xff]   ;;  %v5215_v55 = vld [vmem:[%s5721_s12 + $0x554] ss:$52 sps:$4 sm:$0xff]  }
  0x33   : > { %4671 = vmatpush3.bf16.msra.mxu1 %v5146_v60  ;;  %4572 = vmatprep.subr.bf16.mxu0 %v5153_v62  ;;  %v5221_v60 = vld [vmem:[%s5721_s12 + $0x10] ss:$52 sps:$4 sm:$0xff]  }
  0x34   : > { %4672 = vmatprep.subr.bf16.mxu1 %v5161_v4  ;;  %v5228_v62 = vld [vmem:[%s6508_s1 + $0x200] sm:$0xff]   ;;  %v5242_v4 = vld [vmem:[%s6508_s1 + $0x208] sm:$0xff]  }
  0x36   : > { %4573 = vmatpush3.bf16.msra.mxu0 %v5154_v63  ;;  %v5229_v63 = vld [vmem:[%s5721_s12 + $0x7c] ss:$52 sps:$4 sm:$0xff]  }
  0x37   : > { %4673 = vmatpush3.bf16.msra.mxu1 %v5162_v5  ;;  %4574 = vmatprep.subr.bf16.mxu0 %v5169_v6  ;;  %v5233_v5 = vld [vmem:[%s5721_s12 + $0x78] ss:$52 sps:$4 sm:$0xff]   ;;  %v5253_v6 = vld [vmem:[%s6508_s1 + $0x250] sm:$0xff]  }
  0x38   : > { %2370 = vmatmul.mubr.bf16.gmra.mrb[8].mxu0 %v5127_v48  ;;  %4674 = vmatprep.subr.bf16.mxu1 %v5177_v12  ;;  %v5201_v48 = vld [vmem:[%s5721_s12 + $0x478] ss:$52 sps:$4 sm:$0xff]   ;;  %v5254_v12 = vld [vmem:[%s6508_s1 + $0x210] sm:$0xff]  }
  0x39   : > { %2515 = vmatmul.mubr.bf16.gmra.mrb[8].mxu1 %v5128_v50  ;;  %2377 = vmatprep.mubr.bf16.mxu0 %v5130_v51  ;;  %v5205_v50 = vld [vmem:[%s5721_s12 + $0x4e4] ss:$52 sps:$4 sm:$0xff]   ;;  %v5207_v51 = vld [vmem:[%s5721_s12 + $0x4ec] ss:$52 sps:$4 sm:$0xff]  }
  0x3a   : > { %2522 = vmatprep.mubr.bf16.mxu1 %v5132_v53  ;;  %4575 = vmatpush3.bf16.msra.mxu0 %v5170_v7  ;;  %v5210_v53 = vld [vmem:[%s5721_s12 + $0x4e8] ss:$52 sps:$4 sm:$0xff]   ;;  %v5234_v7 = vld [vmem:[%s5721_s12 + $0x80] ss:$52 sps:$4 sm:$0xff]  }
  0x3b   : > { %4675 = vmatpush3.bf16.msra.mxu1 %v5178_v13  ;;  %4576 = vmatprep.subr.bf16.mxu0 %v5179_v14  ;;  %v5262_v13 = vld [vmem:[%s6508_s1 + $0x290] sm:$0xff]   ;;  %v5269_v14 = vld [vmem:[%s6508_s1 + $0x258] sm:$0xff]  }
  0x3c   : > { %4676 = vmatprep.subr.bf16.mxu1 %v5187_v19  ;;  %v5244_v19 = vld [vmem:[%s5721_s12 + $0xe8] ss:$52 sps:$4 sm:$0xff]  }
  0x3e   : > { %4577 = vmatpush3.bf16.msra.mxu0 %v5184_v16  ;;  %v5243_v16 = vld [vmem:[%s5721_s12 + $0xe0] ss:$52 sps:$4 sm:$0xff]  }
  0x3f   : > { %4677 = vmatpush3.bf16.msra.mxu1 %v5192_v21  ;;  %4578 = vmatprep.subr.bf16.mxu0 %v5195_v22  ;;  %v5285_v21 = vld [vmem:[%s6508_s1 + $0x260] sm:$0xff]  }
  0x40   : > { %2378 = vmatmul.mubr.bf16.gmra.mrb[12].mxu0 %v5135_v56  ;;  %4678 = vmatprep.subr.bf16.mxu1 %v5203_v28  ;;  %v5217_v56 = vld [vmem:[%s5721_s12 + $0x548] ss:$52 sps:$4 sm:$0xff]   ;;  %v5293_v22 = vld [vmem:[%s6508_s1 + $0x2e0] sm:$0xff]  }
  0x41   : > { %2523 = vmatmul.mubr.bf16.gmra.mrb[12].mxu1 %v5136_v57  ;;  %2385 = vmatprep.mubr.bf16.mxu0 %v5139_v58  ;;  %v5218_v57 = vld [vmem:[%s5721_s12 + $0x550] ss:$52 sps:$4 sm:$0xff]   ;;  %v5223_v58 = vld [vmem:[%s5721_s12 + $0x14] ss:$52 sps:$4 sm:$0xff]  }
  0x42   : > { %2530 = vmatprep.mubr.bf16.mxu1 %v5141_v61  ;;  %4579 = vmatpush3.bf16.msra.mxu0 %v5196_v23  ;;  %v5224_v61 = vld [vmem:[%s5721_s12 + $0x18] ss:$52 sps:$4 sm:$0xff]   ;;  %v5248_v23 = vld [vmem:[%s5721_s12 + $0x154] ss:$52 sps:$4 sm:$0xff]  }
  0x43   : > { %4679 = vmatpush3.bf16.msra.mxu1 %v5204_v29  ;;  %4580 = vmatprep.subr.bf16.mxu0 %v5211_v32  ;;  %v5300_v28 = vld [vmem:[%s6508_s1 + $0x228] sm:$0xff]   ;;  %v5311_v32 = vld [vmem:[%s6508_s1 + $0x270] sm:$0xff]  }
  0x44   : > { %4680 = vmatprep.subr.bf16.mxu1 %v5219_v36  ;;  %v5251_v29 = vld [vmem:[%s5721_s12 + $0x148] ss:$52 sps:$4 sm:$0xff]   ;;  %v5312_v36 = vld [vmem:[%s6508_s1 + $0x230] sm:$0xff]  }
  0x46   : > { %4581 = vmatpush3.bf16.msra.mxu0 %v5212_v33  ;;  %v5255_v33 = vld [vmem:[%s5721_s12 + $0x1b4] ss:$52 sps:$4 sm:$0xff]  }
  0x47   : > { %4681 = vmatpush3.bf16.msra.mxu1 %v5220_v37  ;;  %4766 = vmatprep.subr.bf16.mxu0 %v5227_v40  ;;  %v5320_v37 = vld [vmem:[%s6508_s1 + $0x2b0] sm:$0xff]   ;;  %v5328_v40 = vld [vmem:[%s6508_s1 + $0x238] sm:$0xff]  }
  0x48   : > { %2386 = vmatmul.mubr.bf16.gmra.mrb[16].mxu0 %v5143_v0  ;;  %4866 = vmatprep.subr.bf16.mxu1 %v5235_v43  ;;  %v5231_v0 = vld [vmem:[%s5721_s12 + $0x84] ss:$52 sps:$4 sm:$0xff]  }
  0x49   : > { %2531 = vmatmul.mubr.bf16.gmra.mrb[16].mxu1 %v5144_v1  ;;  %2393 = vmatprep.mubr.bf16.mxu0 %v5147_v2  ;;  %v5236_v1 = vld [vmem:[%s6508_s1 + $0x280] sm:$0xff]   ;;  %v5237_v2 = vld [vmem:[%s6508_s1 + $0x248] sm:$0xff]  }
  0x4a   : > { %2538 = vmatprep.mubr.bf16.mxu1 %v5149_v3  ;;  %v5245_v3 = vld [vmem:[%s6508_s1 + $0x2c8] sm:$0xff]   ;;  %v5259_v43 = vld [vmem:[%s5721_s12 + $0x1b0] ss:$52 sps:$4 sm:$0xff]  }
  0x50   : > { %2394 = vmatmul.mubr.bf16.gmra.mrb[20].mxu0 %v5151_v8  ;;  %v5238_v8 = vld [vmem:[%s5721_s12 + $0xe4] ss:$52 sps:$4 sm:$0xff]  }
  0x51   : > { %2539 = vmatmul.mubr.bf16.gmra.mrb[20].mxu1 %v5152_v9  ;;  %2401 = vmatprep.mubr.bf16.mxu0 %v5155_v10  ;;  %v5250_v9 = vld [vmem:[%s6508_s1 + $0x288] sm:$0xff]   ;;  %v5261_v10 = vld [vmem:[%s6508_s1 + $0x2d0] sm:$0xff]  }
  0x52   : > { %2546 = vmatprep.mubr.bf16.mxu1 %v5157_v11  ;;  %v5240_v11 = vld [vmem:[%s5721_s12 + $0xec] ss:$52 sps:$4 sm:$0xff]  }
  0x58   : > { %2402 = vmatmul.mubr.bf16.gmra.mrb[24].mxu0 %v5159_v15  ;;  %v5277_v15 = vld [vmem:[%s6508_s1 + $0x2d8] sm:$0xff]  }
  0x59   : > { %2547 = vmatmul.mubr.bf16.gmra.mrb[24].mxu1 %v5160_v17  ;;  %2409 = vmatprep.mubr.bf16.mxu0 %v5163_v18  ;;  %v5270_v17 = vld [vmem:[%s6508_s1 + $0x218] sm:$0xff]  }
  0x5a   : > { %2554 = vmatprep.mubr.bf16.mxu1 %v5165_v20  ;;  %v5278_v18 = vld [vmem:[%s6508_s1 + $0x298] sm:$0xff]   ;;  %v5246_v20 = vld [vmem:[%s5721_s12 + $0x14c] ss:$52 sps:$4 sm:$0xff]  }
  0x60   : > { %2410 = vmatmul.mubr.bf16.gmra.mrb[28].mxu0 %v5167_v24  ;;  %v5286_v24 = vld [vmem:[%s6508_s1 + $0x220] sm:$0xff]  }
  0x61   : > { %2555 = vmatmul.mubr.bf16.gmra.mrb[28].mxu1 %v5168_v25  ;;  %2417 = vmatprep.mubr.bf16.mxu0 %v5171_v26  ;;  %v5294_v25 = vld [vmem:[%s6508_s1 + $0x2a0] sm:$0xff]   ;;  %v5295_v26 = vld [vmem:[%s6508_s1 + $0x268] sm:$0xff]  }
  0x62   : > { %2562 = vmatprep.mubr.bf16.mxu1 %v5173_v27  ;;  %v5303_v27 = vld [vmem:[%s6508_s1 + $0x2e8] sm:$0xff]  }
  0x68   : > { %2418 = vmatmul.mubr.bf16.gmra.mrb[32].mxu0 %v5175_v30  ;;  %v5308_v30 = vld [vmem:[%s6508_s1 + $0x2a8] sm:$0xff]  }
  0x69   : > { %2563 = vmatmul.mubr.bf16.gmra.mrb[32].mxu1 %v5176_v31  ;;  %2425 = vmatprep.mubr.bf16.mxu0 %v5180_v34  ;;  %v5252_v31 = vld [vmem:[%s5721_s12 + $0x150] ss:$52 sps:$4 sm:$0xff]  }
  0x6a   : > { %2570 = vmatprep.mubr.bf16.mxu1 %v5182_v35  ;;  %v5319_v34 = vld [vmem:[%s6508_s1 + $0x2f0] sm:$0xff]  }
  0x6b   : > { %v5257_v35 = vld [vmem:[%s5721_s12 + $0x1bc] ss:$52 sps:$4 sm:$0xff]  }
  0x70   : > { %2426 = vmatmul.mubr.bf16.gmra.mrb[36].mxu0 %v5185_v38  ;;  %v5327_v38 = vld [vmem:[%s6508_s1 + $0x278] sm:$0xff]  }
  0x71   : > { %2571 = vmatmul.mubr.bf16.gmra.mrb[36].mxu1 %v5186_v39  ;;  %2433 = vmatprep.mubr.bf16.mxu0 %v5188_v41  ;;  %v5335_v39 = vld [vmem:[%s6508_s1 + $0x2f8] sm:$0xff]  }
  0x72   : > { %2578 = vmatprep.mubr.bf16.mxu1 %v5190_v42  ;;  %v5336_v41 = vld [vmem:[%s6508_s1 + $0x2b8] sm:$0xff]   ;;  %v5998_v42 = vld [vmem:[%s6508_s1 + $0x300] sm:$0xff]  }
  0x78   : > { %2434 = vmatmul.mubr.bf16.gmra.mrb[40].mxu0 %v5193_v44  ;;  %v5260_v44 = vld [vmem:[%s5721_s12 + $0x1b8] ss:$52 sps:$4 sm:$0xff]  }
  0x79   : > { %2579 = vmatmul.mubr.bf16.gmra.mrb[40].mxu1 %v5194_v45  ;;  %2441 = vmatprep.mubr.bf16.mxu0 %v5197_v46  ;;  %v5263_v45 = vld [vmem:[%s5721_s12 + $0x21c] ss:$52 sps:$4 sm:$0xff]   ;;  %v5265_v46 = vld [vmem:[%s5721_s12 + $0x224] ss:$52 sps:$4 sm:$0xff]  }
  0x7a   : > { %2586 = vmatprep.mubr.bf16.mxu1 %v5199_v47  ;;  %v5267_v47 = vld [vmem:[%s5721_s12 + $0x218] ss:$52 sps:$4 sm:$0xff]  }
  0x80   : > { %2442 = vmatmul.mubr.bf16.gmra.mrb[44].mxu0 %v5201_v48  ;;  %v5268_v48 = vld [vmem:[%s5721_s12 + $0x220] ss:$52 sps:$4 sm:$0xff]  }
  0x81   : > { %2587 = vmatmul.mubr.bf16.gmra.mrb[44].mxu1 %v5202_v49  ;;  %2449 = vmatprep.mubr.bf16.mxu0 %v5205_v50  ;;  %v5271_v49 = vld [vmem:[%s5721_s12 + $0x284] ss:$52 sps:$4 sm:$0xff]   ;;  %v5273_v50 = vld [vmem:[%s5721_s12 + $0x28c] ss:$52 sps:$4 sm:$0xff]  }
  0x82   : > { %2594 = vmatprep.mubr.bf16.mxu1 %v5207_v51  ;;  %v5275_v51 = vld [vmem:[%s5721_s12 + $0x280] ss:$52 sps:$4 sm:$0xff]  }
  0x88   : > { %2450 = vmatmul.mubr.bf16.gmra.mrb[48].mxu0 %v5209_v52  ;;  %v5276_v52 = vld [vmem:[%s5721_s12 + $0x288] ss:$52 sps:$4 sm:$0xff]  }
  0x89   : > { %2595 = vmatmul.mubr.bf16.gmra.mrb[48].mxu1 %v5210_v53  ;;  %2457 = vmatprep.mubr.bf16.mxu0 %v5213_v54  ;;  %v5279_v53 = vld [vmem:[%s5721_s12 + $0x2ec] ss:$52 sps:$4 sm:$0xff]   ;;  %v5281_v54 = vld [vmem:[%s5721_s12 + $0x2f4] ss:$52 sps:$4 sm:$0xff]  }
  0x8a   : > { %2602 = vmatprep.mubr.bf16.mxu1 %v5215_v55  ;;  %v5283_v55 = vld [vmem:[%s5721_s12 + $0x2e8] ss:$52 sps:$4 sm:$0xff]  }
  0x90   : > { %2458 = vmatmul.mubr.bf16.gmra.mrb[52].mxu0 %v5217_v56  ;;  %v5284_v56 = vld [vmem:[%s5721_s12 + $0x2f0] ss:$52 sps:$4 sm:$0xff]  }
  0x91   : > { %2603 = vmatmul.mubr.bf16.gmra.mrb[52].mxu1 %v5218_v57  ;;  %2643 = vmatprep.mubr.bf16.mxu0 %v5223_v58  ;;  %v5287_v57 = vld [vmem:[%s5721_s12 + $0x354] ss:$52 sps:$4 sm:$0xff]   ;;  %v5289_v58 = vld [vmem:[%s5721_s12 + $0x35c] ss:$52 sps:$4 sm:$0xff]  }
  0x92   : > { %2788 = vmatprep.mubr.bf16.mxu1 %v5226_v59  ;;  %v5291_v59 = vld [vmem:[%s5721_s12 + $0x350] ss:$52 sps:$4 sm:$0xff]  }
  0x98   : > { %2644 = vmatmul.mubr.bf16.vlgmr.msra.gmra.mrb[56].mxu0 %v5221_v60  ;;  %v5292_v60 = vld [vmem:[%s5721_s12 + $0x358] ss:$52 sps:$4 sm:$0xff]  }
  0x99   : > { %2789 = vmatmul.mubr.bf16.vlgmr.msra.gmra.mrb[56].mxu1 %v5224_v61  ;;  %4767 = vmatpush3.bf16.msra.mxu0 %v5228_v62  ;;  %v5296_v61 = vld [vmem:[%s5721_s12 + $0x3bc] ss:$52 sps:$4 sm:$0xff]   ;;  %v5298_v62 = vld [vmem:[%s5721_s12 + $0x3c4] ss:$52 sps:$4 sm:$0xff]  }
  0x9a   : > { %2651 = vmatprep.mubr.bf16.mxu0 %v5229_v63  ;;  %2796 = vmatprep.mubr.bf16.mxu1 %v5231_v0  ;;  %v5301_v63 = vld [vmem:[%s5721_s12 + $0x3b8] ss:$52 sps:$4 sm:$0xff]   ;;  %v5302_v0 = vld [vmem:[%s5721_s12 + $0x3c0] ss:$52 sps:$4 sm:$0xff]  }
  0x9b   : > { %4867 = vmatpush3.bf16.msra.mxu1 %v5236_v1  ;;  %4768 = vmatprep.subr.bf16.mxu0 %v5237_v2  ;;  %v5304_v1 = vld [vmem:[%s5721_s12 + $0x424] ss:$52 sps:$4 sm:$0xff]   ;;  %v5306_v2 = vld [vmem:[%s5721_s12 + $0x42c] ss:$52 sps:$4 sm:$0xff]  }
  0x9c   : > { %4868 = vmatprep.subr.bf16.mxu1 %v5245_v3  ;;  %v5309_v3 = vld [vmem:[%s5721_s12 + $0x420] ss:$52 sps:$4 sm:$0xff]  }
  0x9d   : > { %4769 = vmatpush3.bf16.msra.mxu0 %v5242_v4  ;;  %v5310_v4 = vld [vmem:[%s5721_s12 + $0x428] ss:$52 sps:$4 sm:$0xff]  }
  0x9e   : > { %4770 = vmatprep.subr.bf16.mxu0 %v5253_v6  ;;  %v5315_v6 = vld [vmem:[%s5721_s12 + $0x494] ss:$52 sps:$4 sm:$0xff]  }
  0x9f   : > { %4869 = vmatpush3.bf16.msra.mxu1 %v5250_v9  ;;  %v5321_v9 = vld [vmem:[%s5721_s12 + $0x4f4] ss:$52 sps:$4 sm:$0xff]  }
  0xa0   : > { %2652 = vmatmul.mubr.bf16.gmra.mrb[60].mxu0 %v5233_v5  ;;  %4870 = vmatprep.subr.bf16.mxu1 %v5261_v10  ;;  %v5313_v5 = vld [vmem:[%s5721_s12 + $0x48c] ss:$52 sps:$4 sm:$0xff]   ;;  %v5323_v10 = vld [vmem:[%s5721_s12 + $0x4fc] ss:$52 sps:$4 sm:$0xff]  }
  0xa1   : > { %2797 = vmatmul.mubr.bf16.gmra.mrb[60].mxu1 %v5234_v7  ;;  %2659 = vmatprep.mubr.bf16.mxu0 %v5238_v8  ;;  %v5317_v7 = vld [vmem:[%s5721_s12 + $0x488] ss:$52 sps:$4 sm:$0xff]   ;;  %v5318_v8 = vld [vmem:[%s5721_s12 + $0x490] ss:$52 sps:$4 sm:$0xff]  }
  0xa2   : > { %2804 = vmatprep.mubr.bf16.mxu1 %v5240_v11  ;;  %4771 = vmatpush3.bf16.msra.mxu0 %v5254_v12  ;;  %v5325_v11 = vld [vmem:[%s5721_s12 + $0x4f0] ss:$52 sps:$4 sm:$0xff]   ;;  %v5326_v12 = vld [vmem:[%s5721_s12 + $0x4f8] ss:$52 sps:$4 sm:$0xff]  }
  0xa3   : > { %4871 = vmatpush3.bf16.msra.mxu1 %v5262_v13  ;;  %4772 = vmatprep.subr.bf16.mxu0 %v5269_v14  ;;  %v5329_v13 = vld [vmem:[%s5721_s12 + $0x55c] ss:$52 sps:$4 sm:$0xff]   ;;  %v5331_v14 = vld [vmem:[%s5721_s12 + $0x564] ss:$52 sps:$4 sm:$0xff]  }
  0xa4   : > { %4872 = vmatprep.subr.bf16.mxu1 %v5277_v15 }
  0xa6   : > { %4773 = vmatpush3.bf16.msra.mxu0 %v5270_v17 }
  0xa7   : > { %4873 = vmatpush3.bf16.msra.mxu1 %v5278_v18  ;;  %4774 = vmatprep.subr.bf16.mxu0 %v5285_v21  ;;  %v5333_v18 = vld [vmem:[%s5721_s12 + $0x558] ss:$52 sps:$4 sm:$0xff]  }
  0xa8   : > { %2660 = vmatmul.mubr.bf16.gmra.mrb[64].mxu0 %v5243_v16  ;;  %4874 = vmatprep.subr.bf16.mxu1 %v5293_v22  ;;  %v5334_v22 = vld [vmem:[%s5721_s12 + $0x560] ss:$52 sps:$4 sm:$0xff]  }
  0xa9   : > { %2805 = vmatmul.mubr.bf16.gmra.mrb[64].mxu1 %v5244_v19  ;;  %2667 = vmatprep.mubr.bf16.mxu0 %v5246_v20 }
  0xaa   : > { %2812 = vmatprep.mubr.bf16.mxu1 %v5248_v23  ;;  %4775 = vmatpush3.bf16.msra.mxu0 %v5286_v24  ;;  %v5339_v23 = vld [vmem:[%s5721_s12 + $0x24] ss:$52 sps:$4 sm:$0xff]  }
  0xab   : > { %4875 = vmatpush3.bf16.msra.mxu1 %v5294_v25  ;;  %4776 = vmatprep.subr.bf16.mxu0 %v5295_v26 }
  0xac   : > { %4876 = vmatprep.subr.bf16.mxu1 %v5303_v27  ;;  %v5342_v27 = vld [vmem:[%s5721_s12 + $0x2c] ss:$52 sps:$4 sm:$0xff]  }
  0xae   : > { %4777 = vmatpush3.bf16.msra.mxu0 %v5300_v28 }
  0xaf   : > { %4877 = vmatpush3.bf16.msra.mxu1 %v5308_v30  ;;  %4778 = vmatprep.subr.bf16.mxu0 %v5311_v32 }
  0xb0   : > { %2668 = vmatmul.mubr.bf16.gmra.mrb[68].mxu0 %v5251_v29  ;;  %4878 = vmatprep.subr.bf16.mxu1 %v5319_v34 }
  0xb1   : > { %2813 = vmatmul.mubr.bf16.gmra.mrb[68].mxu1 %v5252_v31  ;;  %2675 = vmatprep.mubr.bf16.mxu0 %v5255_v33 }
  0xb2   : > { %2820 = vmatprep.mubr.bf16.mxu1 %v5257_v35  ;;  %4779 = vmatpush3.bf16.msra.mxu0 %v5312_v36  ;;  %v5337_v36 = vld [vmem:[%s5721_s12 + $0x20] ss:$52 sps:$4 sm:$0xff]  }
  0xb3   : > { %4879 = vmatpush3.bf16.msra.mxu1 %v5320_v37  ;;  %4780 = vmatprep.subr.bf16.mxu0 %v5327_v38 }
  0xb4   : > { %4880 = vmatprep.subr.bf16.mxu1 %v5335_v39 }
  0xb6   : > { %4781 = vmatpush3.bf16.msra.mxu0 %v5328_v40  ;;  %v5340_v40 = vld [vmem:[%s5721_s12 + $0x28] ss:$52 sps:$4 sm:$0xff]  }
  0xb7   : > { %4881 = vmatpush3.bf16.msra.mxu1 %v5336_v41  ;;  %4988 = vmatprep.subr.bf16.mxu0 %v5998_v42 }
  0xb8   : > { %2676 = vmatmul.mubr.bf16.gmra.mrb[72].mxu0 %v5259_v43  ;;  %5032 = vmatprep.subr.bf16.mxu1 %v5998_v42 }
  0xb9   : > { %2821 = vmatmul.mubr.bf16.gmra.mrb[72].mxu1 %v5260_v44  ;;  %2683 = vmatprep.mubr.bf16.mxu0 %v5263_v45  ;;  %v5344_v45 = vld [vmem:[%s5721_s12 + $0x8c] ss:$52 sps:$4 sm:$0xff]  }
  0xba   : > { %2828 = vmatprep.mubr.bf16.mxu1 %v5265_v46  ;;  %v5346_v46 = vld [vmem:[%s5721_s12 + $0x94] ss:$52 sps:$4 sm:$0xff]  }
  0xc0   : > { %2684 = vmatmul.mubr.bf16.gmra.mrb[76].mxu0 %v5267_v47 }
  0xc1   : > { %2829 = vmatmul.mubr.bf16.gmra.mrb[76].mxu1 %v5268_v48  ;;  %2691 = vmatprep.mubr.bf16.mxu0 %v5271_v49  ;;  %v5350_v49 = vld [vmem:[%s6508_s1 + $0x308] sm:$0xff]  }
  0xc2   : > { %2836 = vmatprep.mubr.bf16.mxu1 %v5273_v50 }
  0xc8   : > { %2692 = vmatmul.mubr.bf16.gmra.mrb[80].mxu0 %v5275_v51 }
  0xc9   : > { %2837 = vmatmul.mubr.bf16.gmra.mrb[80].mxu1 %v5276_v52  ;;  %2699 = vmatprep.mubr.bf16.mxu0 %v5279_v53  ;;  %v5363_v53 = vld [vmem:[%s6508_s1 + $0x310] sm:$0xff]  }
  0xca   : > { %2844 = vmatprep.mubr.bf16.mxu1 %v5281_v54 }
  0xd0   : > { %2700 = vmatmul.mubr.bf16.gmra.mrb[84].mxu0 %v5283_v55 }
  0xd1   : > { %2845 = vmatmul.mubr.bf16.gmra.mrb[84].mxu1 %v5284_v56  ;;  %2707 = vmatprep.mubr.bf16.mxu0 %v5287_v57  ;;  %v5348_v57 = vld [vmem:[%s5721_s12 + $0x88] ss:$52 sps:$4 sm:$0xff]  }
  0xd2   : > { %2852 = vmatprep.mubr.bf16.mxu1 %v5289_v58 }
  0xd8   : > { %2708 = vmatmul.mubr.bf16.gmra.mrb[88].mxu0 %v5291_v59 }
  0xd9   : > { %2853 = vmatmul.mubr.bf16.gmra.mrb[88].mxu1 %v5292_v60  ;;  %2715 = vmatprep.mubr.bf16.mxu0 %v5296_v61  ;;  %v5349_v61 = vld [vmem:[%s5721_s12 + $0x90] ss:$52 sps:$4 sm:$0xff]  }
  0xda   : > { %2860 = vmatprep.mubr.bf16.mxu1 %v5298_v62  ;;  %v5351_v62 = vld [vmem:[%s5721_s12 + $0xf4] ss:$52 sps:$4 sm:$0xff]  }
  0xe0   : > { %2716 = vmatmul.mubr.bf16.gmra.mrb[92].mxu0 %v5301_v63 }
  0xe1   : > { %2861 = vmatmul.mubr.bf16.gmra.mrb[92].mxu1 %v5302_v0  ;;  %2723 = vmatprep.mubr.bf16.mxu0 %v5304_v1 }
  0xe2   : > { %2868 = vmatprep.mubr.bf16.mxu1 %v5306_v2  ;;  %v5353_v2 = vld [vmem:[%s5721_s12 + $0xfc] ss:$52 sps:$4 sm:$0xff]  }
  0xe8   : > { %2724 = vmatmul.mubr.bf16.gmra.mrb[96].mxu0 %v5309_v3 }
  0xe9   : > { %2869 = vmatmul.mubr.bf16.gmra.mrb[96].mxu1 %v5310_v4  ;;  %2731 = vmatprep.mubr.bf16.mxu0 %v5313_v5 }
  0xea   : > { %2876 = vmatprep.mubr.bf16.mxu1 %v5315_v6 }
  0xf0   : > { %2732 = vmatmul.mubr.bf16.gmra.mrb[100].mxu0 %v5317_v7 }
  0xf1   : > { %2877 = vmatmul.mubr.bf16.gmra.mrb[100].mxu1 %v5318_v8  ;;  %2739 = vmatprep.mubr.bf16.mxu0 %v5321_v9  ;;  %v5389_v9 = vld [vmem:[%s6508_s1 + $0x320] sm:$0xff]  }
  0xf2   : > { %2884 = vmatprep.mubr.bf16.mxu1 %v5323_v10 }
  0xf8   : > { %2740 = vmatmul.mubr.bf16.gmra.mrb[104].mxu0 %v5325_v11 }
  0xf9   : > { %2885 = vmatmul.mubr.bf16.gmra.mrb[104].mxu1 %v5326_v12  ;;  %2747 = vmatprep.mubr.bf16.mxu0 %v5329_v13  ;;  %v5355_v12 = vld [vmem:[%s5721_s12 + $0xf0] ss:$52 sps:$4 sm:$0xff]  }
  0xfa   : > { %2892 = vmatprep.mubr.bf16.mxu1 %v5331_v14 }
  0xfb   : > { %v4382_v15 = vpop.f32.mrb[0].mxu0 }
  0xfc   : > { %v4482_v16 = vpop.f32.mrb[0].mxu1  ;;  %v4383_v17 = vpop.f32.mrb[1].mxu0 }
  0xfd   : > { %v4384_v19 = vadd.f32 %v4383_v17, %v4382_v15  ;;  %v4483_v20 = vpop.f32.mrb[1].mxu1  ;;  %v4385_v21 = vpop.f32.mrb[2].mxu0  ;;  %v5357_v17 = vld [vmem:[%s5721_s12 + $0x15c] ss:$52 sps:$4 sm:$0xff]  }
  0xfe   : > { %v4484_v24 = vadd.f32 %v4483_v20, %v4482_v16  ;;  %v4485_v25 = vpop.f32.mrb[2].mxu1  ;;  %v4386_v26 = vpop.f32.mrb[3].mxu0  ;;  %v5356_v16 = vld [vmem:[%s5721_s12 + $0xf8] ss:$52 sps:$4 sm:$0xff]  }
  0xff   : > { %v4387_v28 = vadd.f32 %v4386_v26, %v4385_v21  ;;  %v4486_v29 = vpop.f32.mrb[3].mxu1  ;;  %v5359_v21 = vld [vmem:[%s5721_s12 + $0x164] ss:$52 sps:$4 sm:$0xff]  }
 0x100   : > { %v6042_v30 = vadd.f32 %v4484_v24, %v4384_v19  ;;  %v4487_v31 = vadd.f32 %v4486_v29, %v4485_v25  ;;  %2748 = vmatmul.mubr.bf16.gmra.mrb[108].mxu0 %v5333_v18  ;;  %v5396_v24 = vld [vmem:[%s6508_s1 + $0x328] sm:$0xff]   ;;  %v5409_v29 = vld [vmem:[%s6508_s1 + $0x330] sm:$0xff]  }
 0x101   : > { %2893 = vmatmul.mubr.bf16.gmra.mrb[108].mxu1 %v5334_v22  ;;  %2933 = vmatprep.mubr.bf16.mxu0 %v5339_v23 }
 0x102   : > { %v6044_v32 = vadd.f32 %v4487_v31, %v4387_v28  ;;  %3078 = vmatprep.mubr.bf16.mxu1 %v5342_v27 }
 0x103   : > { %v4388_v33 = vpop.f32.mrb[4].mxu0 }
 0x104   : > { %v4488_v34 = vpop.f32.mrb[4].mxu1  ;;  %v4389_v35 = vpop.f32.mrb[5].mxu0 }
 0x105   : > { %v4390_v37 = vadd.f32 %v4389_v35, %v4388_v33  ;;  %v4489_v38 = vpop.f32.mrb[5].mxu1  ;;  %v4391_v39 = vpop.f32.mrb[6].mxu0 }
 0x106   : > { %v4490_v41 = vadd.f32 %v4489_v38, %v4488_v34  ;;  %v4491_v43 = vpop.f32.mrb[6].mxu1  ;;  %v4392_v44 = vpop.f32.mrb[7].mxu0  ;;  %v5361_v34 = vld [vmem:[%s5721_s12 + $0x158] ss:$52 sps:$4 sm:$0xff]   ;;  %v5362_v38 = vld [vmem:[%s5721_s12 + $0x160] ss:$52 sps:$4 sm:$0xff]  }
 0x107   : > { %v4393_v47 = vadd.f32 %v4392_v44, %v4391_v39  ;;  %v4492_v48 = vpop.f32.mrb[7].mxu1  ;;  %v5364_v39 = vld [vmem:[%s5721_s12 + $0x1c4] ss:$52 sps:$4 sm:$0xff]   ;;  %v5366_v44 = vld [vmem:[%s5721_s12 + $0x1cc] ss:$52 sps:$4 sm:$0xff]  }
 0x108   : > { %v6053_v50 = vadd.f32 %v4490_v41, %v4390_v37  ;;  %v4493_v51 = vadd.f32 %v4492_v48, %v4491_v43  ;;  %2934 = vmatmul.mubr.bf16.vlgmr.msra.gmra.mrb[112].mxu0 %v5337_v36 }
 0x109   : > { %3079 = vmatmul.mubr.bf16.vlgmr.msra.gmra.mrb[112].mxu1 %v5340_v40  ;;  %4989 = vmatpush3.bf16.msra.mxu0 %v5998_v42 }
 0x10a   : > { %v6056_v52 = vadd.f32 %v4493_v51, %v4393_v47  ;;  %2941 = vmatprep.mubr.bf16.mxu0 %v5344_v45  ;;  %3086 = vmatprep.mubr.bf16.mxu1 %v5346_v46  ;;  %v5422_v47 = vld [vmem:[%s6508_s1 + $0x338] sm:$0xff]  }
 0x10b   : > { %v4394_v54 = vpop.f32.mrb[8].mxu0  ;;  %5040 = vmatpush3.bf16.msra.mxu1 %v5998_v42  ;;  %4990 = vmatprep.subr.bf16.mxu0 %v5350_v49  ;;  %v5376_v42 = vld [vmem:[%s6508_s1 + $0x318] sm:$0xff]  }
 0x10c   : > { %v4494_v55 = vpop.f32.mrb[8].mxu1  ;;  %v4395_v56 = vpop.f32.mrb[9].mxu0  ;;  %5033 = vmatprep.subr.bf16.mxu1 %v5350_v49 }
 0x10d   : > { %v4396_v58 = vadd.f32 %v4395_v56, %v4394_v54  ;;  %v4495_v59 = vpop.f32.mrb[9].mxu1  ;;  %v4397_v60 = vpop.f32.mrb[10].mxu0  ;;  %4991 = vmatpush3.bf16.msra.mxu0 %v5350_v49  ;;  %v5368_v56 = vld [vmem:[%s5721_s12 + $0x1c0] ss:$52 sps:$4 sm:$0xff]  }
 0x10e   : > { %v4496_v63 = vadd.f32 %v4495_v59, %v4494_v55  ;;  %v4497_v0 = vpop.f32.mrb[10].mxu1  ;;  %v4398_v1 = vpop.f32.mrb[11].mxu0  ;;  %4992 = vmatprep.subr.bf16.mxu0 %v5363_v53 }
 0x10f   : > { %v4399_v3 = vadd.f32 %v4398_v1, %v4397_v60  ;;  %v4498_v4 = vpop.f32.mrb[11].mxu1  ;;  %5041 = vmatpush3.bf16.msra.mxu1 %v5350_v49  ;;  %v5369_v60 = vld [vmem:[%s5721_s12 + $0x1c8] ss:$52 sps:$4 sm:$0xff]  }
 0x110   : > { %v6069_v5 = vadd.f32 %v4496_v63, %v4396_v58  ;;  %v4499_v6 = vadd.f32 %v4498_v4, %v4497_v0  ;;  %2942 = vmatmul.mubr.bf16.gmra.mrb[116].mxu0 %v5348_v57  ;;  %5034 = vmatprep.subr.bf16.mxu1 %v5363_v53  ;;  %v5372_v1 = vld [vmem:[%s5721_s12 + $0x234] ss:$52 sps:$4 sm:$0xff]  }
 0x111   : > { %3087 = vmatmul.mubr.bf16.gmra.mrb[116].mxu1 %v5349_v61  ;;  %2949 = vmatprep.mubr.bf16.mxu0 %v5351_v62  ;;  %v5370_v61 = vld [vmem:[%s5721_s12 + $0x22c] ss:$52 sps:$4 sm:$0xff]  }
 0x112   : > { %v6071_v7 = vadd.f32 %v4499_v6, %v4399_v3  ;;  %3094 = vmatprep.mubr.bf16.mxu1 %v5353_v2  ;;  %4993 = vmatpush3.bf16.msra.mxu0 %v5363_v53 }
 0x113   : > { %v4400_v8 = vpop.f32.mrb[12].mxu0  ;;  %5042 = vmatpush3.bf16.msra.mxu1 %v5363_v53  ;;  %4994 = vmatprep.subr.bf16.mxu0 %v5376_v42 }
 0x114   : > { %v4500_v10 = vpop.f32.mrb[12].mxu1  ;;  %v4401_v11 = vpop.f32.mrb[13].mxu0  ;;  %5035 = vmatprep.subr.bf16.mxu1 %v5376_v42 }
 0x115   : > { %v4402_v13 = vadd.f32 %v4401_v11, %v4400_v8  ;;  %v4501_v14 = vpop.f32.mrb[13].mxu1  ;;  %v4403_v15 = vpop.f32.mrb[14].mxu0  ;;  %v5374_v11 = vld [vmem:[%s5721_s12 + $0x228] ss:$52 sps:$4 sm:$0xff]  }
 0x116   : > { %v4502_v18 = vadd.f32 %v4501_v14, %v4500_v10  ;;  %v4503_v19 = vpop.f32.mrb[14].mxu1  ;;  %v4404_v20 = vpop.f32.mrb[15].mxu0  ;;  %4995 = vmatpush3.bf16.msra.mxu0 %v5376_v42 }
 0x117   : > { %v4405_v22 = vadd.f32 %v4404_v20, %v4403_v15  ;;  %v4504_v23 = vpop.f32.mrb[15].mxu1  ;;  %5043 = vmatpush3.bf16.msra.mxu1 %v5376_v42  ;;  %4996 = vmatprep.subr.bf16.mxu0 %v5389_v9  ;;  %v5375_v15 = vld [vmem:[%s5721_s12 + $0x230] ss:$52 sps:$4 sm:$0xff]  }
 0x118   : > { %v6083_v25 = vadd.f32 %v4502_v18, %v4402_v13  ;;  %v4505_v26 = vadd.f32 %v4504_v23, %v4503_v19  ;;  %2950 = vmatmul.mubr.bf16.gmra.mrb[120].mxu0 %v5355_v12  ;;  %5036 = vmatprep.subr.bf16.mxu1 %v5389_v9  ;;  %v5379_v20 = vld [vmem:[%s5721_s12 + $0x29c] ss:$52 sps:$4 sm:$0xff]  }
 0x119   : > { %3095 = vmatmul.mubr.bf16.gmra.mrb[120].mxu1 %v5356_v16  ;;  %2957 = vmatprep.mubr.bf16.mxu0 %v5357_v17  ;;  %v5377_v16 = vld [vmem:[%s5721_s12 + $0x294] ss:$52 sps:$4 sm:$0xff]  }
 0x11a   : > { %v6085_v27 = vadd.f32 %v4505_v26, %v4405_v22  ;;  %3102 = vmatprep.mubr.bf16.mxu1 %v5359_v21  ;;  %4997 = vmatpush3.bf16.msra.mxu0 %v5389_v9 }
 0x11b   : > { %v4406_v28 = vpop.f32.mrb[16].mxu0  ;;  %5044 = vmatpush3.bf16.msra.mxu1 %v5389_v9  ;;  %4998 = vmatprep.subr.bf16.mxu0 %v5396_v24 }
 0x11c   : > { %v4506_v31 = vpop.f32.mrb[16].mxu1  ;;  %v4407_v33 = vpop.f32.mrb[17].mxu0  ;;  %5037 = vmatprep.subr.bf16.mxu1 %v5396_v24 }
 0x11d   : > { %v4408_v35 = vadd.f32 %v4407_v33, %v4406_v28  ;;  %v4507_v36 = vpop.f32.mrb[17].mxu1  ;;  %v4409_v37 = vpop.f32.mrb[18].mxu0  ;;  %v5381_v33 = vld [vmem:[%s5721_s12 + $0x290] ss:$52 sps:$4 sm:$0xff]  }
 0x11e   : > { %v4508_v40 = vadd.f32 %v4507_v36, %v4506_v31  ;;  %v4509_v41 = vpop.f32.mrb[18].mxu1  ;;  %v4410_v43 = vpop.f32.mrb[19].mxu0  ;;  %4999 = vmatpush3.bf16.msra.mxu0 %v5396_v24 }
 0x11f   : > { %v4411_v45 = vadd.f32 %v4410_v43, %v4409_v37  ;;  %v4510_v46 = vpop.f32.mrb[19].mxu1  ;;  %5045 = vmatpush3.bf16.msra.mxu1 %v5396_v24  ;;  %5000 = vmatprep.subr.bf16.mxu0 %v5409_v29  ;;  %v5382_v37 = vld [vmem:[%s5721_s12 + $0x298] ss:$52 sps:$4 sm:$0xff]  }
 0x120   : > { %v6097_v48 = vadd.f32 %v4508_v40, %v4408_v35  ;;  %v4511_v49 = vadd.f32 %v4510_v46, %v4509_v41  ;;  %2958 = vmatmul.mubr.bf16.gmra.mrb[124].mxu0 %v5361_v34  ;;  %5038 = vmatprep.subr.bf16.mxu1 %v5409_v29  ;;  %v5385_v43 = vld [vmem:[%s5721_s12 + $0x304] ss:$52 sps:$4 sm:$0xff]  }
 0x121   : > { %3103 = vmatmul.mubr.bf16.gmra.mrb[124].mxu1 %v5362_v38  ;;  %2965 = vmatprep.mubr.bf16.mxu0 %v5364_v39  ;;  %v5383_v38 = vld [vmem:[%s5721_s12 + $0x2fc] ss:$52 sps:$4 sm:$0xff]  }
 0x122   : > { %v6099_v51 = vadd.f32 %v4511_v49, %v4411_v45  ;;  %3110 = vmatprep.mubr.bf16.mxu1 %v5366_v44  ;;  %5001 = vmatpush3.bf16.msra.mxu0 %v5409_v29 }
 0x123   : > { %v4412_v53 = vpop.f32.mrb[20].mxu0  ;;  %5046 = vmatpush3.bf16.msra.mxu1 %v5409_v29  ;;  %5002 = vmatprep.subr.bf16.mxu0 %v5422_v47 }
 0x124   : > { %v4512_v54 = vpop.f32.mrb[20].mxu1  ;;  %v4413_v55 = vpop.f32.mrb[21].mxu0  ;;  %5039 = vmatprep.subr.bf16.mxu1 %v5422_v47 }
 0x125   : > { %v4414_v57 = vadd.f32 %v4413_v55, %v4412_v53  ;;  %v4513_v58 = vpop.f32.mrb[21].mxu1  ;;  %v4415_v59 = vpop.f32.mrb[22].mxu0 }
 0x126   : > { %v4514_v62 = vadd.f32 %v4513_v58, %v4512_v54  ;;  %v4515_v63 = vpop.f32.mrb[22].mxu1  ;;  %v4416_v0 = vpop.f32.mrb[23].mxu0  ;;  %5003 = vmatpush3.bf16.msra.mxu0 %v5422_v47 }
 0x127   : > { %v4417_v2 = vadd.f32 %v4416_v0, %v4415_v59  ;;  %v4516_v3 = vpop.f32.mrb[23].mxu1  ;;  %5047 = vmatpush3.bf16.msra.mxu1 %v5422_v47 }
 0x128   : > { %v6105_v4 = vadd.f32 %v4514_v62, %v4414_v57  ;;  %v4517_v42 = vadd.f32 %v4516_v3, %v4515_v63  ;;  %2966 = vmatmul.mubr.bf16.gmra.mrb[128].mxu0 %v5368_v56  ;;  %v5387_v56 = vld [vmem:[%s5721_s12 + $0x2f8] ss:$52 sps:$4 sm:$0xff]  }
 0x129   : > { %3111 = vmatmul.mubr.bf16.gmra.mrb[128].mxu1 %v5369_v60  ;;  %2973 = vmatprep.mubr.bf16.mxu0 %v5370_v61  ;;  %v5388_v60 = vld [vmem:[%s5721_s12 + $0x300] ss:$52 sps:$4 sm:$0xff]   ;;  %v5390_v61 = vld [vmem:[%s5721_s12 + $0x364] ss:$52 sps:$4 sm:$0xff]  }
 0x12a   : > { %v6107_v6 = vadd.f32 %v4517_v42, %v4417_v2  ;;  %3118 = vmatprep.mubr.bf16.mxu1 %v5372_v1  ;;  %v5392_v1 = vld [vmem:[%s5721_s12 + $0x36c] ss:$52 sps:$4 sm:$0xff]  }
 0x12b   : > { %v4418_v8 = vpop.f32.mrb[24].mxu0 }
 0x12c   : > { %v4518_v9 = vpop.f32.mrb[24].mxu1  ;;  %v4419_v10 = vpop.f32.mrb[25].mxu0 }
 0x12d   : > { %v4420_v12 = vadd.f32 %v4419_v10, %v4418_v8  ;;  %v4519_v13 = vpop.f32.mrb[25].mxu1  ;;  %v4421_v14 = vpop.f32.mrb[26].mxu0 }
 0x12e   : > { %v4520_v17 = vadd.f32 %v4519_v13, %v4518_v9  ;;  %v4521_v18 = vpop.f32.mrb[26].mxu1  ;;  %v4422_v19 = vpop.f32.mrb[27].mxu0  ;;  %v5394_v13 = vld [vmem:[%s5721_s12 + $0x360] ss:$52 sps:$4 sm:$0xff]  }
 0x12f   : > { %v4423_v21 = vadd.f32 %v4422_v19, %v4421_v14  ;;  %v4522_v22 = vpop.f32.mrb[27].mxu1 }
 0x130   : > { %v6113_v23 = vadd.f32 %v4520_v17, %v4420_v12  ;;  %v4523_v24 = vadd.f32 %v4522_v22, %v4521_v18  ;;  %2974 = vmatmul.mubr.bf16.gmra.mrb[132].mxu0 %v5374_v11  ;;  %v5395_v17 = vld [vmem:[%s5721_s12 + $0x368] ss:$52 sps:$4 sm:$0xff]   ;;  %v5397_v18 = vld [vmem:[%s5721_s12 + $0x3cc] ss:$52 sps:$4 sm:$0xff]  }
 0x131   : > { %3119 = vmatmul.mubr.bf16.gmra.mrb[132].mxu1 %v5375_v15  ;;  %2981 = vmatprep.mubr.bf16.mxu0 %v5377_v16  ;;  %v5399_v22 = vld [vmem:[%s5721_s12 + $0x3d4] ss:$52 sps:$4 sm:$0xff]  }
 0x132   : > { %v6115_v26 = vadd.f32 %v4523_v24, %v4423_v21  ;;  %3126 = vmatprep.mubr.bf16.mxu1 %v5379_v20 }
 0x133   : > { %v4424_v28 = vpop.f32.mrb[28].mxu0 }
 0x134   : > { %v4524_v29 = vpop.f32.mrb[28].mxu1  ;;  %v4425_v31 = vpop.f32.mrb[29].mxu0 }
 0x135   : > { %v4426_v34 = vadd.f32 %v4425_v31, %v4424_v28  ;;  %v4525_v35 = vpop.f32.mrb[29].mxu1  ;;  %v4427_v36 = vpop.f32.mrb[30].mxu0 }
 0x136   : > { %v4526_v39 = vadd.f32 %v4525_v35, %v4524_v29  ;;  %v4527_v40 = vpop.f32.mrb[30].mxu1  ;;  %v4428_v41 = vpop.f32.mrb[31].mxu0 }
 0x137   : > { %v4429_v44 = vadd.f32 %v4428_v41, %v4427_v36  ;;  %v4528_v45 = vpop.f32.mrb[31].mxu1  ;;  %v5402_v41 = vld [vmem:[%s5721_s12 + $0x3d0] ss:$52 sps:$4 sm:$0xff]  }
 0x138   : > { %v6121_v46 = vadd.f32 %v4526_v39, %v4426_v34  ;;  %v4529_v47 = vadd.f32 %v4528_v45, %v4527_v40  ;;  %2982 = vmatmul.mubr.bf16.gmra.mrb[136].mxu0 %v5381_v33 }
 0x139   : > { %3127 = vmatmul.mubr.bf16.gmra.mrb[136].mxu1 %v5382_v37  ;;  %2989 = vmatprep.mubr.bf16.mxu0 %v5383_v38  ;;  %v5401_v37 = vld [vmem:[%s5721_s12 + $0x3c8] ss:$52 sps:$4 sm:$0xff]  }
 0x13a   : > { %v6123_v49 = vadd.f32 %v4529_v47, %v4429_v44  ;;  %3134 = vmatprep.mubr.bf16.mxu1 %v5385_v43  ;;  %v5403_v43 = vld [vmem:[%s5721_s12 + $0x434] ss:$52 sps:$4 sm:$0xff]  }
 0x13b   : > { %v4430_v53 = vpop.f32.mrb[32].mxu0 }
 0x13c   : > { %v4530_v54 = vpop.f32.mrb[32].mxu1  ;;  %v4431_v55 = vpop.f32.mrb[33].mxu0 }
 0x13d   : > { %v4432_v57 = vadd.f32 %v4431_v55, %v4430_v53  ;;  %v4531_v58 = vpop.f32.mrb[33].mxu1  ;;  %v4433_v59 = vpop.f32.mrb[34].mxu0  ;;  %v5405_v53 = vld [vmem:[%s5721_s12 + $0x43c] ss:$52 sps:$4 sm:$0xff]  }
 0x13e   : > { %v4532_v62 = vadd.f32 %v4531_v58, %v4530_v54  ;;  %v4533_v63 = vpop.f32.mrb[34].mxu1  ;;  %v4434_v0 = vpop.f32.mrb[35].mxu0 }
 0x13f   : > { %v4435_v2 = vadd.f32 %v4434_v0, %v4433_v59  ;;  %v4534_v3 = vpop.f32.mrb[35].mxu1 }
 0x140   : > { %v6129_v42 = vadd.f32 %v4532_v62, %v4432_v57  ;;  %v4535_v8 = vadd.f32 %v4534_v3, %v4533_v63  ;;  %2990 = vmatmul.mubr.bf16.gmra.mrb[140].mxu0 %v5387_v56  ;;  %v5407_v62 = vld [vmem:[%s5721_s12 + $0x430] ss:$52 sps:$4 sm:$0xff]  }
 0x141   : > { %3135 = vmatmul.mubr.bf16.gmra.mrb[140].mxu1 %v5388_v60  ;;  %2997 = vmatprep.mubr.bf16.mxu0 %v5390_v61  ;;  %v5410_v3 = vld [vmem:[%s5721_s12 + $0x49c] ss:$52 sps:$4 sm:$0xff]  }
 0x142   : > { %v6131_v9 = vadd.f32 %v4535_v8, %v4435_v2  ;;  %3142 = vmatprep.mubr.bf16.mxu1 %v5392_v1  ;;  %v5408_v2 = vld [vmem:[%s5721_s12 + $0x438] ss:$52 sps:$4 sm:$0xff]  }
 0x143   : > { %v4436_v10 = vpop.f32.mrb[36].mxu0 }
 0x144   : > { %v4536_v11 = vpop.f32.mrb[36].mxu1  ;;  %v4437_v12 = vpop.f32.mrb[37].mxu0 }
 0x145   : > { %v4438_v14 = vadd.f32 %v4437_v12, %v4436_v10  ;;  %v4537_v15 = vpop.f32.mrb[37].mxu1  ;;  %v4439_v16 = vpop.f32.mrb[38].mxu0  ;;  %v5412_v12 = vld [vmem:[%s5721_s12 + $0x4a4] ss:$52 sps:$4 sm:$0xff]  }
 0x146   : > { %v4538_v19 = vadd.f32 %v4537_v15, %v4536_v11  ;;  %v4539_v20 = vpop.f32.mrb[38].mxu1  ;;  %v4440_v21 = vpop.f32.mrb[39].mxu0 }
 0x147   : > { %v4441_v24 = vadd.f32 %v4440_v21, %v4439_v16  ;;  %v4540_v28 = vpop.f32.mrb[39].mxu1  ;;  %v5414_v21 = vld [vmem:[%s5721_s12 + $0x498] ss:$52 sps:$4 sm:$0xff]  }
 0x148   : > { %v6137_v29 = vadd.f32 %v4538_v19, %v4438_v14  ;;  %v4541_v31 = vadd.f32 %v4540_v28, %v4539_v20  ;;  %2998 = vmatmul.mubr.bf16.gmra.mrb[144].mxu0 %v5394_v13 }
 0x149   : > { %3143 = vmatmul.mubr.bf16.gmra.mrb[144].mxu1 %v5395_v17  ;;  %3005 = vmatprep.mubr.bf16.mxu0 %v5397_v18 }
 0x14a   : > { %v6139_v33 = vadd.f32 %v4541_v31, %v4441_v24  ;;  %3150 = vmatprep.mubr.bf16.mxu1 %v5399_v22  ;;  %v5415_v31 = vld [vmem:[%s5721_s12 + $0x4a0] ss:$52 sps:$4 sm:$0xff]  }
 0x14b   : > { %v4442_v34 = vpop.f32.mrb[40].mxu0 }
 0x14c   : > { %v4542_v35 = vpop.f32.mrb[40].mxu1  ;;  %v4443_v36 = vpop.f32.mrb[41].mxu0 }
 0x14d   : > { %v4444_v38 = vadd.f32 %v4443_v36, %v4442_v34  ;;  %v4543_v39 = vpop.f32.mrb[41].mxu1  ;;  %v4445_v40 = vpop.f32.mrb[42].mxu0  ;;  %v5416_v34 = vld [vmem:[%s5721_s12 + $0x504] ss:$52 sps:$4 sm:$0xff]  }
 0x14e   : > { %v4544_v44 = vadd.f32 %v4543_v39, %v4542_v35  ;;  %v4545_v45 = vpop.f32.mrb[42].mxu1  ;;  %v4446_v47 = vpop.f32.mrb[43].mxu0 }
 0x14f   : > { %v4447_v54 = vadd.f32 %v4446_v47, %v4445_v40  ;;  %v4546_v55 = vpop.f32.mrb[43].mxu1 }
 0x150   : > { %v6145_v56 = vadd.f32 %v4544_v44, %v4444_v38  ;;  %v4547_v57 = vadd.f32 %v4546_v55, %v4545_v45  ;;  %3006 = vmatmul.mubr.bf16.gmra.mrb[148].mxu0 %v5401_v37  ;;  %v5418_v38 = vld [vmem:[%s5721_s12 + $0x50c] ss:$52 sps:$4 sm:$0xff]  }
 0x151   : > { %3151 = vmatmul.mubr.bf16.gmra.mrb[148].mxu1 %v5402_v41  ;;  %3013 = vmatprep.mubr.bf16.mxu0 %v5403_v43 }
 0x152   : > { %v6147_v58 = vadd.f32 %v4547_v57, %v4447_v54  ;;  %3158 = vmatprep.mubr.bf16.mxu1 %v5405_v53  ;;  %v5420_v54 = vld [vmem:[%s5721_s12 + $0x500] ss:$52 sps:$4 sm:$0xff]  }
 0x153   : > { %v4448_v59 = vpop.f32.mrb[44].mxu0 }
 0x154   : > { %v4548_v60 = vpop.f32.mrb[44].mxu1  ;;  %v4449_v61 = vpop.f32.mrb[45].mxu0 }
 0x155   : > { %v4450_v63 = vadd.f32 %v4449_v61, %v4448_v59  ;;  %v4549_v0 = vpop.f32.mrb[45].mxu1  ;;  %v4451_v1 = vpop.f32.mrb[46].mxu0  ;;  %v5423_v61 = vld [vmem:[%s5721_s12 + $0x56c] ss:$52 sps:$4 sm:$0xff]  }
 0x156   : > { %v4550_v8 = vadd.f32 %v4549_v0, %v4548_v60  ;;  %v4551_v10 = vpop.f32.mrb[46].mxu1  ;;  %v4452_v11 = vpop.f32.mrb[47].mxu0  ;;  %v5421_v60 = vld [vmem:[%s5721_s12 + $0x508] ss:$52 sps:$4 sm:$0xff]  }
 0x157   : > { %v4453_v13 = vadd.f32 %v4452_v11, %v4451_v1  ;;  %v4552_v14 = vpop.f32.mrb[47].mxu1  ;;  %v5425_v1 = vld [vmem:[%s5721_s12 + $0x574] ss:$52 sps:$4 sm:$0xff]  }
 0x158   : > { %v6153_v15 = vadd.f32 %v4550_v8, %v4450_v63  ;;  %v4553_v16 = vadd.f32 %v4552_v14, %v4551_v10  ;;  %3014 = vmatmul.mubr.bf16.gmra.mrb[152].mxu0 %v5407_v62 }
 0x159   : > { %3159 = vmatmul.mubr.bf16.gmra.mrb[152].mxu1 %v5408_v2  ;;  %3021 = vmatprep.mubr.bf16.mxu0 %v5410_v3 }
 0x15a   : > { %v6155_v17 = vadd.f32 %v4553_v16, %v4453_v13  ;;  %3166 = vmatprep.mubr.bf16.mxu1 %v5412_v12  ;;  %v5427_v16 = vld [vmem:[%s5721_s12 + $0x568] ss:$52 sps:$4 sm:$0xff]  }
 0x15b   : > { %v4454_v18 = vpop.f32.mrb[48].mxu0 }
 0x15c   : > { %v4554_v19 = vpop.f32.mrb[48].mxu1  ;;  %v4455_v20 = vpop.f32.mrb[49].mxu0 }
 0x15d   : > { %v4456_v22 = vadd.f32 %v4455_v20, %v4454_v18  ;;  %v4555_v24 = vpop.f32.mrb[49].mxu1  ;;  %v4457_v28 = vpop.f32.mrb[50].mxu0 }
 0x15e   : > { %v4556_v35 = vadd.f32 %v4555_v24, %v4554_v19  ;;  %v4557_v36 = vpop.f32.mrb[50].mxu1  ;;  %v4458_v37 = vpop.f32.mrb[51].mxu0 }
 0x15f   : > { %v4459_v39 = vadd.f32 %v4458_v37, %v4457_v28  ;;  %v4558_v40 = vpop.f32.mrb[51].mxu1 }
 0x160   : > { %v6161_v41 = vadd.f32 %v4556_v35, %v4456_v22  ;;  %v4559_v43 = vadd.f32 %v4558_v40, %v4557_v36  ;;  %3022 = vmatmul.mubr.bf16.gmra.mrb[156].mxu0 %v5414_v21  ;;  %v5428_v21 = vld [vmem:[%s5721_s12 + $0x570] ss:$52 sps:$4 sm:$0xff]  }
 0x161   : > { %3167 = vmatmul.mubr.bf16.gmra.mrb[156].mxu1 %v5415_v31  ;;  %3029 = vmatprep.mubr.bf16.mxu0 %v5416_v34  ;;  %v5429_v22 = vld [vmem:[%s5721_s12 + $0x30] ss:$52 sps:$4 sm:$0xff]  }
 0x162   : > { %v6163_v44 = vadd.f32 %v4559_v43, %v4459_v39  ;;  %3174 = vmatprep.mubr.bf16.mxu1 %v5418_v38  ;;  %v5430_v34 = vld [vmem:[%s5721_s12 + $0x370] ss:$52 sps:$4 sm:$0xff]  }
 0x163   : > { %v4460_v45 = vpop.f32.mrb[52].mxu0 }
 0x164   : > { %v4560_v47 = vpop.f32.mrb[52].mxu1  ;;  %v4461_v53 = vpop.f32.mrb[53].mxu0 }
 0x165   : > { %v4462_v55 = vadd.f32 %v4461_v53, %v4460_v45  ;;  %v4561_v57 = vpop.f32.mrb[53].mxu1  ;;  %v4463_v59 = vpop.f32.mrb[54].mxu0 }
 0x166   : > { %v4562_v62 = vadd.f32 %v4561_v57, %v4560_v47  ;;  %v4563_v63 = vpop.f32.mrb[54].mxu1  ;;  %v4464_v0 = vpop.f32.mrb[55].mxu0 }
 0x167   : > { %v4465_v2 = vadd.f32 %v4464_v0, %v4463_v59  ;;  %v4564_v3 = vpop.f32.mrb[55].mxu1  ;;  %v5432_v59 = vld [vmem:[%s5721_s12 + $0x3d8] ss:$52 sps:$4 sm:$0xff]  }
 0x168   : > { %v6169_v8 = vadd.f32 %v4562_v62, %v4462_v55  ;;  %v4565_v10 = vadd.f32 %v4564_v3, %v4563_v63  ;;  %3030 = vmatmul.mubr.bf16.gmra.mrb[160].mxu0 %v5420_v54  ;;  %v5434_v63 = vld [vmem:[%s5721_s12 + $0x440] ss:$52 sps:$4 sm:$0xff]  }
 0x169   : > { %3175 = vmatmul.mubr.bf16.gmra.mrb[160].mxu1 %v5421_v60  ;;  %3037 = vmatprep.mubr.bf16.mxu0 %v5423_v61  ;;  %v5433_v60 = vld [vmem:[%s5721_s12 + $0x100] ss:$52 sps:$4 sm:$0xff]  }
 0x16a   : > { %v6171_v11 = vadd.f32 %v4565_v10, %v4465_v2  ;;  %3182 = vmatprep.mubr.bf16.mxu1 %v5425_v1 }
 0x16b   : > { %v4582_v12 = vpop.f32.mrb[56].mxu0 }
 0x16c   : > { %v4583_v13 = vpop.f32.mrb[57].mxu0  ;;  %v4682_v14 = vpop.f32.mrb[56].mxu1 }
 0x16d   : > { %v4584_v18 = vadd.f32 %v4583_v13, %v4582_v12  ;;  %v4585_v19 = vpop.f32.mrb[58].mxu0  ;;  %v4683_v20 = vpop.f32.mrb[57].mxu1 }
 0x16e   : > { %v4586_v24 = vpop.f32.mrb[59].mxu0  ;;  %v4684_v28 = vadd.f32 %v4683_v20, %v4682_v14  ;;  %v4685_v31 = vpop.f32.mrb[58].mxu1 }
 0x16f   : > { %v2646_v35 = vadd.f32 %v4584_v18, %v6042_v30  ;;  %v4587_v36 = vadd.f32 %v4586_v24, %v4585_v19  ;;  %v4686_v37 = vpop.f32.mrb[59].mxu1  ;;  %v5431_v30 = vld [vmem:[%s5721_s12 + $0x98] ss:$52 sps:$4 sm:$0xff]   ;;  %v5437_v24 = vld [vmem:[%s5721_s12 + $0x1d0] ss:$52 sps:$4 sm:$0xff]  }
 0x170   : > { %v4687_v38 = vadd.f32 %v4686_v37, %v4685_v31  ;;  %3038 = vmatmul.mubr.bf16.gmra.mrb[164].mxu0 %v5427_v16 }
 0x171   : > { %v2649_v39 = vadd.f32 %v4587_v36, %v6044_v32  ;;  %v6179_v40 = vadd.f32 %v4684_v28, %v2646_v35  ;;  %3183 = vmatmul.mubr.bf16.gmra.mrb[164].mxu1 %v5428_v21  ;;  %5004 = vmatprep.mubr.bf16.mxu0 %v5429_v22  ;;  %v5436_v22 = vld [vmem:[%s5721_s12 + $0x4a8] ss:$52 sps:$4 sm:$0xff]  }
 0x172   : > { %5020 = vmatprep.mubr.bf16.mxu1 %v5430_v34  ;;  %v5438_v34 = vld [vmem:[%s5721_s12 + $0x510] ss:$52 sps:$4 sm:$0xff]  }
 0x173   : > { %v6181_v43 = vadd.f32 %v4687_v38, %v2649_v39  ;;  %v4588_v45 = vpop.f32.mrb[60].mxu0 }
 0x174   : > { %v4589_v47 = vpop.f32.mrb[61].mxu0  ;;  %v4688_v53 = vpop.f32.mrb[60].mxu1 }
 0x175   : > { %v4590_v54 = vadd.f32 %v4589_v47, %v4588_v45  ;;  %v4591_v55 = vpop.f32.mrb[62].mxu0  ;;  %v4689_v57 = vpop.f32.mrb[61].mxu1 }
 0x176   : > { %v4592_v61 = vpop.f32.mrb[63].mxu0  ;;  %v4690_v62 = vadd.f32 %v4689_v57, %v4688_v53  ;;  %v4691_v32 = vpop.f32.mrb[62].mxu1 }
 0x177   : > { %v2654_v0 = vadd.f32 %v4590_v54, %v6053_v50  ;;  %v4593_v1 = vadd.f32 %v4592_v61, %v4591_v55  ;;  %v4692_v2 = vpop.f32.mrb[63].mxu1  ;;  %v5435_v50 = vld [vmem:[%s5721_s12 + $0x168] ss:$52 sps:$4 sm:$0xff]   ;;  %v5439_v55 = vld [vmem:[%s5721_s12 + $0x238] ss:$52 sps:$4 sm:$0xff]  }
 0x178   : > { %v4693_v3 = vadd.f32 %v4692_v2, %v4691_v32  ;;  %5005 = vmatmul.mubr.bf16.vlgmr.msra.gmra.mrb[168].mxu0 %v5431_v30  ;;  %v5441_v61 = vld [vmem:[%s5721_s12 + $0x2a0] ss:$52 sps:$4 sm:$0xff]  }
 0x179   : > { %v2657_v10 = vadd.f32 %v4593_v1, %v6056_v52  ;;  %v6189_v12 = vadd.f32 %v4690_v62, %v2654_v0  ;;  %5021 = vmatmul.mubr.bf16.vlgmr.msra.gmra.mrb[168].mxu1 %v5432_v59  ;;  %5008 = vmatprep.mubr.bf16.mxu0 %v5433_v60  ;;  %v5440_v60 = vld [vmem:[%s5721_s12 + $0x578] ss:$52 sps:$4 sm:$0xff]  }
 0x17a   : > { %5024 = vmatprep.mubr.bf16.mxu1 %v5434_v63 }
 0x17b   : > { %v6191_v13 = vadd.f32 %v4693_v3, %v2657_v10  ;;  %v4594_v14 = vpop.f32.mrb[64].mxu0 }
 0x17c   : > { %v4595_v16 = vpop.f32.mrb[65].mxu0  ;;  %v4694_v18 = vpop.f32.mrb[64].mxu1 }
 0x17d   : > { %v4596_v19 = vadd.f32 %v4595_v16, %v4594_v14  ;;  %v4597_v20 = vpop.f32.mrb[66].mxu0  ;;  %v4695_v21 = vpop.f32.mrb[65].mxu1 }
 0x17e   : > { %v4598_v28 = vpop.f32.mrb[67].mxu0  ;;  %v4696_v31 = vadd.f32 %v4695_v21, %v4694_v18  ;;  %v4697_v52 = vpop.f32.mrb[66].mxu1 }
 0x17f   : > { %v2662_v35 = vadd.f32 %v4596_v19, %v6069_v5  ;;  %v4599_v36 = vadd.f32 %v4598_v28, %v4597_v20  ;;  %v4698_v37 = vpop.f32.mrb[67].mxu1  ;;  %v5442_v19 = vld [vmem:[%s5721_s12 + $0x308] ss:$52 sps:$4 sm:$0xff]  }
 0x180   : > { %v4699_v38 = vadd.f32 %v4698_v37, %v4697_v52  ;;  %5009 = vmatmul.mubr.bf16.gmra.mrb[172].mxu0 %v5435_v50 }
 0x181   : > { %v2665_v39 = vadd.f32 %v4599_v36, %v6071_v7  ;;  %v6199_v45 = vadd.f32 %v4696_v31, %v2662_v35  ;;  %5025 = vmatmul.mubr.bf16.gmra.mrb[172].mxu1 %v5436_v22  ;;  %5012 = vmatprep.mubr.bf16.mxu0 %v5437_v24 }
 0x182   : > { %5028 = vmatprep.mubr.bf16.mxu1 %v5438_v34 }
 0x183   : > { %v6201_v47 = vadd.f32 %v4699_v38, %v2665_v39  ;;  %v4600_v53 = vpop.f32.mrb[68].mxu0 }
 0x184   : > { %v4601_v30 = vpop.f32.mrb[69].mxu0  ;;  %v4700_v54 = vpop.f32.mrb[68].mxu1 }
 0x185   : > { %v4602_v5 = vadd.f32 %v4601_v30, %v4600_v53  ;;  %v4603_v57 = vpop.f32.mrb[70].mxu0  ;;  %v4701_v59 = vpop.f32.mrb[69].mxu1 }
 0x186   : > { %v4604_v62 = vpop.f32.mrb[71].mxu0  ;;  %v4702_v32 = vadd.f32 %v4701_v59, %v4700_v54  ;;  %v4703_v7 = vpop.f32.mrb[70].mxu1 }
 0x187   : > { %v2670_v63 = vadd.f32 %v4602_v5, %v6083_v25  ;;  %v4605_v0 = vadd.f32 %v4604_v62, %v4603_v57  ;;  %v4704_v1 = vpop.f32.mrb[71].mxu1 }
 0x188   : > { %v4705_v2 = vadd.f32 %v4704_v1, %v4703_v7  ;;  %5013 = vmatmul.mubr.bf16.gmra.mrb[176].mxu0 %v5439_v55 }
 0x189   : > { %v2673_v3 = vadd.f32 %v4605_v0, %v6085_v27  ;;  %v6208_v10 = vadd.f32 %v4702_v32, %v2670_v63  ;;  %5029 = vmatmul.mubr.bf16.gmra.mrb[176].mxu1 %v5440_v60  ;;  %5016 = vmatprep.mubr.bf16.mxu0 %v5441_v61 }
 0x18b   : > { %v6210_v14 = vadd.f32 %v4705_v2, %v2673_v3  ;;  %v4606_v16 = vpop.f32.mrb[72].mxu0 }
 0x18c   : > { %v4607_v18 = vpop.f32.mrb[73].mxu0  ;;  %v4706_v50 = vpop.f32.mrb[72].mxu1 }
 0x18d   : > { %v4608_v20 = vadd.f32 %v4607_v18, %v4606_v16  ;;  %v4609_v21 = vpop.f32.mrb[74].mxu0  ;;  %v4707_v22 = vpop.f32.mrb[73].mxu1 }
 0x18e   : > { %v4610_v25 = vpop.f32.mrb[75].mxu0  ;;  %v4708_v24 = vadd.f32 %v4707_v22, %v4706_v50  ;;  %v4709_v28 = vpop.f32.mrb[74].mxu1 }
 0x18f   : > { %v2678_v31 = vadd.f32 %v4608_v20, %v6097_v48  ;;  %v4611_v52 = vadd.f32 %v4610_v25, %v4609_v21  ;;  %v4710_v27 = vpop.f32.mrb[75].mxu1 }
 0x190   : > { %v4711_v34 = vadd.f32 %v4710_v27, %v4709_v28  ;;  %5017 = vmatmul.mubr.bf16.gmra.mrb[180].mxu0 %v5442_v19 }
 0x191   : > { %v2681_v35 = vadd.f32 %v4611_v52, %v6099_v51  ;;  %v6215_v36 = vadd.f32 %v4708_v24, %v2678_v31 }
 0x193   : > { %v6217_v37 = vadd.f32 %v4711_v34, %v2681_v35  ;;  %v4612_v38 = vpop.f32.mrb[76].mxu0 }
 0x194   : > { %v4613_v39 = vpop.f32.mrb[77].mxu0  ;;  %v4712_v53 = vpop.f32.mrb[76].mxu1 }
 0x195   : > { %v4614_v30 = vadd.f32 %v4613_v39, %v4612_v38  ;;  %v4615_v54 = vpop.f32.mrb[78].mxu0  ;;  %v4713_v55 = vpop.f32.mrb[77].mxu1 }
 0x196   : > { %v4616_v5 = vpop.f32.mrb[79].mxu0  ;;  %v4714_v57 = vadd.f32 %v4713_v55, %v4712_v53  ;;  %v4715_v59 = vpop.f32.mrb[78].mxu1 }
 0x197   : > { %v2686_v48 = vadd.f32 %v4614_v30, %v6105_v4  ;;  %v4617_v60 = vadd.f32 %v4616_v5, %v4615_v54  ;;  %v4716_v61 = vpop.f32.mrb[79].mxu1 }
 0x198   : > { %v4717_v62 = vadd.f32 %v4716_v61, %v4715_v59 }
 0x199   : > { %v2689_v51 = vadd.f32 %v4617_v60, %v6107_v6  ;;  %v6221_v32 = vadd.f32 %v4714_v57, %v2686_v48 }
 0x19b   : > { %v6223_v7 = vadd.f32 %v4717_v62, %v2689_v51  ;;  %v4618_v63 = vpop.f32.mrb[80].mxu0 }
 0x19c   : > { %v4619_v0 = vpop.f32.mrb[81].mxu0  ;;  %v4718_v1 = vpop.f32.mrb[80].mxu1 }
 0x19d   : > { %v4620_v2 = vadd.f32 %v4619_v0, %v4618_v63  ;;  %v4621_v3 = vpop.f32.mrb[82].mxu0  ;;  %v4719_v16 = vpop.f32.mrb[81].mxu1 }
 0x19e   : > { %v4622_v18 = vpop.f32.mrb[83].mxu0  ;;  %v4720_v50 = vadd.f32 %v4719_v16, %v4718_v1  ;;  %v4721_v19 = vpop.f32.mrb[82].mxu1 }
 0x19f   : > { %v2694_v4 = vadd.f32 %v4620_v2, %v6113_v23  ;;  %v4623_v20 = vadd.f32 %v4622_v18, %v4621_v3  ;;  %v4722_v21 = vpop.f32.mrb[83].mxu1 }
 0x1a0   : > { %v4723_v22 = vadd.f32 %v4722_v21, %v4721_v19 }
 0x1a1   : > { %v2697_v6 = vadd.f32 %v4623_v20, %v6115_v26  ;;  %v6227_v25 = vadd.f32 %v4720_v50, %v2694_v4 }
 0x1a3   : > { %v6229_v24 = vadd.f32 %v4723_v22, %v2697_v6  ;;  %v4624_v28 = vpop.f32.mrb[84].mxu0 }
 0x1a4   : > { %v4625_v31 = vpop.f32.mrb[85].mxu0  ;;  %v4724_v52 = vpop.f32.mrb[84].mxu1 }
 0x1a5   : > { %v4626_v27 = vadd.f32 %v4625_v31, %v4624_v28  ;;  %v4627_v34 = vpop.f32.mrb[86].mxu0  ;;  %v4725_v35 = vpop.f32.mrb[85].mxu1 }
 0x1a6   : > { %v4628_v38 = vpop.f32.mrb[87].mxu0  ;;  %v4726_v39 = vadd.f32 %v4725_v35, %v4724_v52  ;;  %v4727_v53 = vpop.f32.mrb[86].mxu1 }
 0x1a7   : > { %v2702_v23 = vadd.f32 %v4626_v27, %v6121_v46  ;;  %v4629_v30 = vadd.f32 %v4628_v38, %v4627_v34  ;;  %v4728_v54 = vpop.f32.mrb[87].mxu1 }
 0x1a8   : > { %v4729_v55 = vadd.f32 %v4728_v54, %v4727_v53 }
 0x1a9   : > { %v2705_v26 = vadd.f32 %v4629_v30, %v6123_v49  ;;  %v6233_v5 = vadd.f32 %v4726_v39, %v2702_v23 }
 0x1ab   : > { %v6235_v57 = vadd.f32 %v4729_v55, %v2705_v26  ;;  %v4630_v59 = vpop.f32.mrb[88].mxu0 }
 0x1ac   : > { %v4631_v48 = vpop.f32.mrb[89].mxu0  ;;  %v4730_v60 = vpop.f32.mrb[88].mxu1 }
 0x1ad   : > { %v4632_v61 = vadd.f32 %v4631_v48, %v4630_v59  ;;  %v4633_v62 = vpop.f32.mrb[90].mxu0  ;;  %v4731_v51 = vpop.f32.mrb[89].mxu1 }
 0x1ae   : > { %v4634_v63 = vpop.f32.mrb[91].mxu0  ;;  %v4732_v0 = vadd.f32 %v4731_v51, %v4730_v60  ;;  %v4733_v1 = vpop.f32.mrb[90].mxu1 }
 0x1af   : > { %v2710_v46 = vadd.f32 %v4632_v61, %v6129_v42  ;;  %v4635_v2 = vadd.f32 %v4634_v63, %v4633_v62  ;;  %v4734_v3 = vpop.f32.mrb[91].mxu1 }
 0x1b0   : > { %v4735_v16 = vadd.f32 %v4734_v3, %v4733_v1 }
 0x1b1   : > { %v2713_v49 = vadd.f32 %v4635_v2, %v6131_v9  ;;  %v6239_v18 = vadd.f32 %v4732_v0, %v2710_v46 }
 0x1b3   : > { %v6241_v50 = vadd.f32 %v4735_v16, %v2713_v49  ;;  %v4636_v19 = vpop.f32.mrb[92].mxu0 }
 0x1b4   : > { %v4637_v4 = vpop.f32.mrb[93].mxu0  ;;  %v4736_v20 = vpop.f32.mrb[92].mxu1 }
 0x1b5   : > { %v4638_v21 = vadd.f32 %v4637_v4, %v4636_v19  ;;  %v4639_v22 = vpop.f32.mrb[94].mxu0  ;;  %v4737_v6 = vpop.f32.mrb[93].mxu1 }
 0x1b6   : > { %v4640_v28 = vpop.f32.mrb[95].mxu0  ;;  %v4738_v31 = vadd.f32 %v4737_v6, %v4736_v20  ;;  %v4739_v52 = vpop.f32.mrb[94].mxu1 }
 0x1b7   : > { %v2718_v42 = vadd.f32 %v4638_v21, %v6137_v29  ;;  %v4641_v27 = vadd.f32 %v4640_v28, %v4639_v22  ;;  %v4740_v34 = vpop.f32.mrb[95].mxu1 }
 0x1b8   : > { %v4741_v35 = vadd.f32 %v4740_v34, %v4739_v52 }
 0x1b9   : > { %v2721_v9 = vadd.f32 %v4641_v27, %v6139_v33  ;;  %v6245_v38 = vadd.f32 %v4738_v31, %v2718_v42 }
 0x1bb   : > { %v6247_v39 = vadd.f32 %v4741_v35, %v2721_v9  ;;  %v4642_v53 = vpop.f32.mrb[96].mxu0 }
 0x1bc   : > { %v4643_v23 = vpop.f32.mrb[97].mxu0  ;;  %v4742_v30 = vpop.f32.mrb[96].mxu1 }
 0x1bd   : > { %v4644_v54 = vadd.f32 %v4643_v23, %v4642_v53  ;;  %v4645_v55 = vpop.f32.mrb[98].mxu0  ;;  %v4743_v26 = vpop.f32.mrb[97].mxu1 }
 0x1be   : > { %v4646_v59 = vpop.f32.mrb[99].mxu0  ;;  %v4744_v48 = vadd.f32 %v4743_v26, %v4742_v30  ;;  %v4745_v60 = vpop.f32.mrb[98].mxu1 }
 0x1bf   : > { %v2726_v29 = vadd.f32 %v4644_v54, %v6145_v56  ;;  %v4647_v61 = vadd.f32 %v4646_v59, %v4645_v55  ;;  %v4746_v62 = vpop.f32.mrb[99].mxu1 }
 0x1c0   : > { %v4747_v51 = vadd.f32 %v4746_v62, %v4745_v60 }
 0x1c1   : > { %v2729_v33 = vadd.f32 %v4647_v61, %v6147_v58  ;;  %v6251_v63 = vadd.f32 %v4744_v48, %v2726_v29 }
 0x1c3   : > { %v6253_v0 = vadd.f32 %v4747_v51, %v2729_v33  ;;  %v4648_v1 = vpop.f32.mrb[100].mxu0 }
 0x1c4   : > { %v4649_v46 = vpop.f32.mrb[101].mxu0  ;;  %v4748_v2 = vpop.f32.mrb[100].mxu1 }
 0x1c5   : > { %v4650_v3 = vadd.f32 %v4649_v46, %v4648_v1  ;;  %v4651_v16 = vpop.f32.mrb[102].mxu0  ;;  %v4749_v49 = vpop.f32.mrb[101].mxu1 }
 0x1c6   : > { %v4652_v19 = vpop.f32.mrb[103].mxu0  ;;  %v4750_v4 = vadd.f32 %v4749_v49, %v4748_v2  ;;  %v4751_v20 = vpop.f32.mrb[102].mxu1 }
 0x1c7   : > { %v2734_v56 = vadd.f32 %v4650_v3, %v6153_v15  ;;  %v4653_v21 = vadd.f32 %v4652_v19, %v4651_v16  ;;  %v4752_v22 = vpop.f32.mrb[103].mxu1 }
 0x1c8   : > { %v4753_v6 = vadd.f32 %v4752_v22, %v4751_v20 }
 0x1c9   : > { %v2737_v58 = vadd.f32 %v4653_v21, %v6155_v17  ;;  %v6257_v28 = vadd.f32 %v4750_v4, %v2734_v56 }
 0x1cb   : > { %v6259_v31 = vadd.f32 %v4753_v6, %v2737_v58  ;;  %v4654_v52 = vpop.f32.mrb[104].mxu0 }
 0x1cc   : > { %v4655_v42 = vpop.f32.mrb[105].mxu0  ;;  %v4754_v27 = vpop.f32.mrb[104].mxu1 }
 0x1cd   : > { %v4656_v34 = vadd.f32 %v4655_v42, %v4654_v52  ;;  %v4657_v35 = vpop.f32.mrb[106].mxu0  ;;  %v4755_v9 = vpop.f32.mrb[105].mxu1 }
 0x1ce   : > { %v4658_v53 = vpop.f32.mrb[107].mxu0  ;;  %v4756_v23 = vadd.f32 %v4755_v9, %v4754_v27  ;;  %v4757_v30 = vpop.f32.mrb[106].mxu1 }
 0x1cf   : > { %v2742_v15 = vadd.f32 %v4656_v34, %v6161_v41  ;;  %v4659_v54 = vadd.f32 %v4658_v53, %v4657_v35  ;;  %v4758_v55 = vpop.f32.mrb[107].mxu1 }
 0x1d0   : > { %v4759_v26 = vadd.f32 %v4758_v55, %v4757_v30 }
 0x1d1   : > { %v2745_v17 = vadd.f32 %v4659_v54, %v6163_v44  ;;  %v6263_v59 = vadd.f32 %v4756_v23, %v2742_v15 }
 0x1d3   : > { %v6265_v48 = vadd.f32 %v4759_v26, %v2745_v17  ;;  %v4660_v60 = vpop.f32.mrb[108].mxu0 }
 0x1d4   : > { %v4661_v29 = vpop.f32.mrb[109].mxu0  ;;  %v4760_v61 = vpop.f32.mrb[108].mxu1 }
 0x1d5   : > { %v4662_v62 = vadd.f32 %v4661_v29, %v4660_v60  ;;  %v4663_v51 = vpop.f32.mrb[110].mxu0  ;;  %v4761_v33 = vpop.f32.mrb[109].mxu1 }
 0x1d6   : > { %v4664_v1 = vpop.f32.mrb[111].mxu0  ;;  %v4762_v46 = vadd.f32 %v4761_v33, %v4760_v61  ;;  %v4763_v2 = vpop.f32.mrb[110].mxu1 }
 0x1d7   : > { %v2750_v41 = vadd.f32 %v4662_v62, %v6169_v8  ;;  %v4665_v3 = vadd.f32 %v4664_v1, %v4663_v51  ;;  %v4764_v16 = vpop.f32.mrb[111].mxu1 }
 0x1d8   : > { %v4765_v49 = vadd.f32 %v4764_v16, %v4763_v2 }
 0x1d9   : > { %v2753_v44 = vadd.f32 %v4665_v3, %v6171_v11  ;;  %v6269_v19 = vadd.f32 %v4762_v46, %v2750_v41 }
 0x1db   : > { %v6271_v4 = vadd.f32 %v4765_v49, %v2753_v44  ;;  %v4782_v20 = vpop.f32.mrb[112].mxu0 }
 0x1dc   : > { %v4783_v56 = vpop.f32.mrb[113].mxu0  ;;  %v4882_v21 = vpop.f32.mrb[112].mxu1 }
 0x1dd   : > { %v4784_v22 = vadd.f32 %v4783_v56, %v4782_v20  ;;  %v4785_v6 = vpop.f32.mrb[114].mxu0  ;;  %v4883_v58 = vpop.f32.mrb[113].mxu1 }
 0x1de   : > { %v4786_v52 = vpop.f32.mrb[115].mxu0  ;;  %v4884_v42 = vadd.f32 %v4883_v58, %v4882_v21  ;;  %v4885_v27 = vpop.f32.mrb[114].mxu1 }
 0x1df   : > { %v2936_v8 = vadd.f32 %v4784_v22, %v6179_v40  ;;  %v4787_v34 = vadd.f32 %v4786_v52, %v4785_v6  ;;  %v4886_v35 = vpop.f32.mrb[115].mxu1 }
 0x1e0   : > { %v4887_v9 = vadd.f32 %v4886_v35, %v4885_v27 }
 0x1e1   : > { %v2939_v11 = vadd.f32 %v4787_v34, %v6181_v43  ;;  %v6275_v53 = vadd.f32 %v4884_v42, %v2936_v8 }
 0x1e3   : > { %v4788_v23 = vpop.f32.mrb[116].mxu0  ;;  %v6277_v30 = vadd.f32 %v4887_v9, %v2939_v11 }
 0x1e4   : > { %v4789_v15 = vpop.f32.mrb[117].mxu0  ;;  %v4888_v54 = vpop.f32.mrb[116].mxu1 }
 0x1e5   : > { %v4790_v55 = vadd.f32 %v4789_v15, %v4788_v23  ;;  %v4791_v26 = vpop.f32.mrb[118].mxu0  ;;  %v4889_v17 = vpop.f32.mrb[117].mxu1 }
 0x1e6   : > { %v4792_v60 = vpop.f32.mrb[119].mxu0  ;;  %v4890_v29 = vadd.f32 %v4889_v17, %v4888_v54  ;;  %v4891_v61 = vpop.f32.mrb[118].mxu1 }
 0x1e7   : > { %v2944_v40 = vadd.f32 %v4790_v55, %v6189_v12  ;;  %v4793_v62 = vadd.f32 %v4792_v60, %v4791_v26  ;;  %v4892_v51 = vpop.f32.mrb[119].mxu1 }
 0x1e8   : > { %v4893_v33 = vadd.f32 %v4892_v51, %v4891_v61 }
 0x1e9   : > { %v2947_v43 = vadd.f32 %v4793_v62, %v6191_v13  ;;  %v6281_v1 = vadd.f32 %v4890_v29, %v2944_v40 }
 0x1eb   : > { %v4794_v46 = vpop.f32.mrb[120].mxu0  ;;  %v6283_v2 = vadd.f32 %v4893_v33, %v2947_v43 }
 0x1ec   : > { %v4795_v41 = vpop.f32.mrb[121].mxu0  ;;  %v4894_v3 = vpop.f32.mrb[120].mxu1 }
 0x1ed   : > { %v4796_v16 = vadd.f32 %v4795_v41, %v4794_v46  ;;  %v4797_v49 = vpop.f32.mrb[122].mxu0  ;;  %v4895_v44 = vpop.f32.mrb[121].mxu1 }
 0x1ee   : > { %v4798_v20 = vpop.f32.mrb[123].mxu0  ;;  %v4896_v56 = vadd.f32 %v4895_v44, %v4894_v3  ;;  %v4897_v21 = vpop.f32.mrb[122].mxu1 }
 0x1ef   : > { %v2952_v12 = vadd.f32 %v4796_v16, %v6199_v45  ;;  %v4799_v22 = vadd.f32 %v4798_v20, %v4797_v49  ;;  %v4898_v6 = vpop.f32.mrb[123].mxu1 }
 0x1f0   : > { %v4899_v58 = vadd.f32 %v4898_v6, %v4897_v21 }
 0x1f1   : > { %v2955_v13 = vadd.f32 %v4799_v22, %v6201_v47  ;;  %v6287_v52 = vadd.f32 %v4896_v56, %v2952_v12 }
 0x1f3   : > { %v4800_v42 = vpop.f32.mrb[124].mxu0  ;;  %v6289_v27 = vadd.f32 %v4899_v58, %v2955_v13 }
 0x1f4   : > { %v4801_v8 = vpop.f32.mrb[125].mxu0  ;;  %v4900_v34 = vpop.f32.mrb[124].mxu1 }
 0x1f5   : > { %v4802_v35 = vadd.f32 %v4801_v8, %v4800_v42  ;;  %v4803_v9 = vpop.f32.mrb[126].mxu0  ;;  %v4901_v11 = vpop.f32.mrb[125].mxu1 }
 0x1f6   : > { %v4804_v23 = vpop.f32.mrb[127].mxu0  ;;  %v4902_v15 = vadd.f32 %v4901_v11, %v4900_v34  ;;  %v4903_v54 = vpop.f32.mrb[126].mxu1 }
 0x1f7   : > { %v2960_v45 = vadd.f32 %v4802_v35, %v6208_v10  ;;  %v4805_v55 = vadd.f32 %v4804_v23, %v4803_v9  ;;  %v4904_v26 = vpop.f32.mrb[127].mxu1 }
 0x1f8   : > { %v4905_v17 = vadd.f32 %v4904_v26, %v4903_v54 }
 0x1f9   : > { %v2963_v47 = vadd.f32 %v4805_v55, %v6210_v14  ;;  %v6293_v60 = vadd.f32 %v4902_v15, %v2960_v45 }
 0x1fb   : > { %v4806_v29 = vpop.f32.mrb[128].mxu0  ;;  %v6295_v61 = vadd.f32 %v4905_v17, %v2963_v47 }
 0x1fc   : > { %v4807_v40 = vpop.f32.mrb[129].mxu0  ;;  %v4906_v62 = vpop.f32.mrb[128].mxu1 }
 0x1fd   : > { %v4808_v51 = vadd.f32 %v4807_v40, %v4806_v29  ;;  %v4809_v33 = vpop.f32.mrb[130].mxu0  ;;  %v4907_v43 = vpop.f32.mrb[129].mxu1 }
 0x1fe   : > { %v4810_v46 = vpop.f32.mrb[131].mxu0  ;;  %v4908_v41 = vadd.f32 %v4907_v43, %v4906_v62  ;;  %v4909_v3 = vpop.f32.mrb[130].mxu1 }
 0x1ff   : > { %v2968_v10 = vadd.f32 %v4808_v51, %v6215_v36  ;;  %v4811_v16 = vadd.f32 %v4810_v46, %v4809_v33  ;;  %v4910_v49 = vpop.f32.mrb[131].mxu1 }
 0x200   : > { %v4911_v44 = vadd.f32 %v4910_v49, %v4909_v3 }
 0x201   : > { %v2971_v14 = vadd.f32 %v4811_v16, %v6217_v37  ;;  %v6299_v20 = vadd.f32 %v4908_v41, %v2968_v10 }
 0x203   : > { %v4812_v56 = vpop.f32.mrb[132].mxu0  ;;  %v6301_v21 = vadd.f32 %v4911_v44, %v2971_v14 }
 0x204   : > { %v4813_v12 = vpop.f32.mrb[133].mxu0  ;;  %v4912_v22 = vpop.f32.mrb[132].mxu1 }
 0x205   : > { %v4814_v6 = vadd.f32 %v4813_v12, %v4812_v56  ;;  %v4815_v58 = vpop.f32.mrb[134].mxu0  ;;  %v4913_v13 = vpop.f32.mrb[133].mxu1 }
 0x206   : > { %v4816_v42 = vpop.f32.mrb[135].mxu0  ;;  %v4914_v8 = vadd.f32 %v4913_v13, %v4912_v22  ;;  %v4915_v34 = vpop.f32.mrb[134].mxu1 }
 0x207   : > { %v2976_v36 = vadd.f32 %v4814_v6, %v6221_v32  ;;  %v4817_v35 = vadd.f32 %v4816_v42, %v4815_v58  ;;  %v4916_v9 = vpop.f32.mrb[135].mxu1 }
 0x208   : > { %v4917_v11 = vadd.f32 %v4916_v9, %v4915_v34 }
 0x209   : > { %v2979_v37 = vadd.f32 %v4817_v35, %v6223_v7  ;;  %v6305_v23 = vadd.f32 %v4914_v8, %v2976_v36 }
 0x20b   : > { %v4818_v15 = vpop.f32.mrb[136].mxu0  ;;  %v6307_v54 = vadd.f32 %v4917_v11, %v2979_v37 }
 0x20c   : > { %v4819_v45 = vpop.f32.mrb[137].mxu0  ;;  %v4918_v55 = vpop.f32.mrb[136].mxu1 }
 0x20d   : > { %v4820_v26 = vadd.f32 %v4819_v45, %v4818_v15  ;;  %v4821_v17 = vpop.f32.mrb[138].mxu0  ;;  %v4919_v47 = vpop.f32.mrb[137].mxu1 }
 0x20e   : > { %v4822_v29 = vpop.f32.mrb[139].mxu0  ;;  %v4920_v40 = vadd.f32 %v4919_v47, %v4918_v55  ;;  %v4921_v62 = vpop.f32.mrb[138].mxu1 }
 0x20f   : > { %v2984_v32 = vadd.f32 %v4820_v26, %v6227_v25  ;;  %v4823_v51 = vadd.f32 %v4822_v29, %v4821_v17  ;;  %v4922_v33 = vpop.f32.mrb[139].mxu1 }
 0x210   : > { %v4923_v43 = vadd.f32 %v4922_v33, %v4921_v62 }
 0x211   : > { %v2987_v7 = vadd.f32 %v4823_v51, %v6229_v24  ;;  %v6311_v46 = vadd.f32 %v4920_v40, %v2984_v32 }
 0x213   : > { %v4824_v41 = vpop.f32.mrb[140].mxu0  ;;  %v6313_v3 = vadd.f32 %v4923_v43, %v2987_v7 }
 0x214   : > { %v4825_v10 = vpop.f32.mrb[141].mxu0  ;;  %v4924_v16 = vpop.f32.mrb[140].mxu1 }
 0x215   : > { %v4826_v49 = vadd.f32 %v4825_v10, %v4824_v41  ;;  %v4827_v44 = vpop.f32.mrb[142].mxu0  ;;  %v4925_v14 = vpop.f32.mrb[141].mxu1 }
 0x216   : > { %v4828_v56 = vpop.f32.mrb[143].mxu0  ;;  %v4926_v12 = vadd.f32 %v4925_v14, %v4924_v16  ;;  %v4927_v22 = vpop.f32.mrb[142].mxu1 }
 0x217   : > { %v2992_v25 = vadd.f32 %v4826_v49, %v6233_v5  ;;  %v4829_v6 = vadd.f32 %v4828_v56, %v4827_v44  ;;  %v4928_v58 = vpop.f32.mrb[143].mxu1 }
 0x218   : > { %v4929_v13 = vadd.f32 %v4928_v58, %v4927_v22 }
 0x219   : > { %v2995_v24 = vadd.f32 %v4829_v6, %v6235_v57  ;;  %v6317_v42 = vadd.f32 %v4926_v12, %v2992_v25 }
 0x21b   : > { %v4830_v8 = vpop.f32.mrb[144].mxu0  ;;  %v6319_v34 = vadd.f32 %v4929_v13, %v2995_v24 }
 0x21c   : > { %v4831_v36 = vpop.f32.mrb[145].mxu0  ;;  %v4930_v35 = vpop.f32.mrb[144].mxu1 }
 0x21d   : > { %v4832_v9 = vadd.f32 %v4831_v36, %v4830_v8  ;;  %v4833_v11 = vpop.f32.mrb[146].mxu0  ;;  %v4931_v37 = vpop.f32.mrb[145].mxu1 }
 0x21e   : > { %v4834_v15 = vpop.f32.mrb[147].mxu0  ;;  %v4932_v45 = vadd.f32 %v4931_v37, %v4930_v35  ;;  %v4933_v55 = vpop.f32.mrb[146].mxu1 }
 0x21f   : > { %v3000_v5 = vadd.f32 %v4832_v9, %v6239_v18  ;;  %v4835_v26 = vadd.f32 %v4834_v15, %v4833_v11  ;;  %v4934_v17 = vpop.f32.mrb[147].mxu1 }
 0x220   : > { %v4935_v47 = vadd.f32 %v4934_v17, %v4933_v55 }
 0x221   : > { %v3003_v57 = vadd.f32 %v4835_v26, %v6241_v50  ;;  %v6323_v29 = vadd.f32 %v4932_v45, %v3000_v5 }
 0x223   : > { %v4836_v40 = vpop.f32.mrb[148].mxu0  ;;  %v6325_v62 = vadd.f32 %v4935_v47, %v3003_v57 }
 0x224   : > { %v4837_v32 = vpop.f32.mrb[149].mxu0  ;;  %v4936_v51 = vpop.f32.mrb[148].mxu1 }
 0x225   : > { %v4838_v33 = vadd.f32 %v4837_v32, %v4836_v40  ;;  %v4839_v43 = vpop.f32.mrb[150].mxu0  ;;  %v4937_v7 = vpop.f32.mrb[149].mxu1 }
 0x226   : > { %v4840_v41 = vpop.f32.mrb[151].mxu0  ;;  %v4938_v10 = vadd.f32 %v4937_v7, %v4936_v51  ;;  %v4939_v16 = vpop.f32.mrb[150].mxu1 }
 0x227   : > { %v3008_v18 = vadd.f32 %v4838_v33, %v6245_v38  ;;  %v4841_v49 = vadd.f32 %v4840_v41, %v4839_v43  ;;  %v4940_v44 = vpop.f32.mrb[151].mxu1 }
 0x228   : > { %v4941_v14 = vadd.f32 %v4940_v44, %v4939_v16 }
 0x229   : > { %v3011_v50 = vadd.f32 %v4841_v49, %v6247_v39  ;;  %v6329_v56 = vadd.f32 %v4938_v10, %v3008_v18 }
 0x22b   : > { %v4842_v12 = vpop.f32.mrb[152].mxu0  ;;  %v6331_v22 = vadd.f32 %v4941_v14, %v3011_v50 }
 0x22c   : > { %v4843_v25 = vpop.f32.mrb[153].mxu0  ;;  %v4942_v6 = vpop.f32.mrb[152].mxu1 }
 0x22d   : > { %v4844_v58 = vadd.f32 %v4843_v25, %v4842_v12  ;;  %v4845_v13 = vpop.f32.mrb[154].mxu0  ;;  %v4943_v24 = vpop.f32.mrb[153].mxu1 }
 0x22e   : > { %v4846_v8 = vpop.f32.mrb[155].mxu0  ;;  %v4944_v36 = vadd.f32 %v4943_v24, %v4942_v6  ;;  %v4945_v35 = vpop.f32.mrb[154].mxu1 }
 0x22f   : > { %v3016_v38 = vadd.f32 %v4844_v58, %v6251_v63  ;;  %v4847_v9 = vadd.f32 %v4846_v8, %v4845_v13  ;;  %v4946_v11 = vpop.f32.mrb[155].mxu1 }
 0x230   : > { %v4947_v37 = vadd.f32 %v4946_v11, %v4945_v35 }
 0x231   : > { %v3019_v39 = vadd.f32 %v4847_v9, %v6253_v0  ;;  %v6335_v15 = vadd.f32 %v4944_v36, %v3016_v38 }
 0x233   : > { %v4848_v45 = vpop.f32.mrb[156].mxu0  ;;  %v6337_v55 = vadd.f32 %v4947_v37, %v3019_v39 }
 0x234   : > { %v4849_v5 = vpop.f32.mrb[157].mxu0  ;;  %v4948_v26 = vpop.f32.mrb[156].mxu1 }
 0x235   : > { %v4850_v17 = vadd.f32 %v4849_v5, %v4848_v45  ;;  %v4851_v47 = vpop.f32.mrb[158].mxu0  ;;  %v4949_v57 = vpop.f32.mrb[157].mxu1 }
 0x236   : > { %v4852_v40 = vpop.f32.mrb[159].mxu0  ;;  %v4950_v32 = vadd.f32 %v4949_v57, %v4948_v26  ;;  %v4951_v51 = vpop.f32.mrb[158].mxu1 }
 0x237   : > { %v3024_v63 = vadd.f32 %v4850_v17, %v6257_v28  ;;  %v4853_v33 = vadd.f32 %v4852_v40, %v4851_v47  ;;  %v4952_v43 = vpop.f32.mrb[159].mxu1 }
 0x238   : > { %v4953_v7 = vadd.f32 %v4952_v43, %v4951_v51  ;;  %v6358_v51 = vld [vmem:[%s6509_s2] ss:$0 sm:$0xff] }
 0x239   : > { %v3027_v0 = vadd.f32 %v4853_v33, %v6259_v31  ;;  %v6341_v41 = vadd.f32 %v4950_v32, %v3024_v63 }
 0x23b   : > { %v4854_v10 = vpop.f32.mrb[160].mxu0  ;;  %v6343_v16 = vadd.f32 %v4953_v7, %v3027_v0 }
 0x23c   : > { %v4855_v18 = vpop.f32.mrb[161].mxu0  ;;  %v4954_v49 = vpop.f32.mrb[160].mxu1 }
 0x23d   : > { %v4856_v44 = vadd.f32 %v4855_v18, %v4854_v10  ;;  %v4857_v14 = vpop.f32.mrb[162].mxu0  ;;  %v4955_v50 = vpop.f32.mrb[161].mxu1 }
 0x23e   : > { %v4858_v12 = vpop.f32.mrb[163].mxu0  ;;  %v4956_v25 = vadd.f32 %v4955_v50, %v4954_v49  ;;  %v4957_v6 = vpop.f32.mrb[162].mxu1 }
 0x23f   : > { %v3032_v28 = vadd.f32 %v4856_v44, %v6263_v59  ;;  %v4859_v58 = vadd.f32 %v4858_v12, %v4857_v14  ;;  %v4958_v13 = vpop.f32.mrb[163].mxu1 }
 0x240   : > { %v4959_v24 = vadd.f32 %v4958_v13, %v4957_v6 }
 0x241   : > { %v3035_v31 = vadd.f32 %v4859_v58, %v6265_v48  ;;  %v6347_v8 = vadd.f32 %v4956_v25, %v3032_v28 }
 0x243   : > { %v4860_v36 = vpop.f32.mrb[164].mxu0  ;;  %v6349_v35 = vadd.f32 %v4959_v24, %v3035_v31 }
 0x244   : > { %v4861_v38 = vpop.f32.mrb[165].mxu0  ;;  %v4960_v9 = vpop.f32.mrb[164].mxu1 }
 0x245   : > { %v4862_v11 = vadd.f32 %v4861_v38, %v4860_v36  ;;  %v4863_v37 = vpop.f32.mrb[166].mxu0  ;;  %v4961_v39 = vpop.f32.mrb[165].mxu1 }
 0x246   : > { %v4864_v45 = vpop.f32.mrb[167].mxu0  ;;  %v4962_v5 = vadd.f32 %v4961_v39, %v4960_v9  ;;  %v4963_v26 = vpop.f32.mrb[166].mxu1 }
 0x247   : > { %v3040_v59 = vadd.f32 %v4862_v11, %v6269_v19  ;;  %v4865_v17 = vadd.f32 %v4864_v45, %v4863_v37  ;;  %v4964_v47 = vpop.f32.mrb[167].mxu1  ;;  %v6366_v19 = vld [vmem:[%s6510_s3] ss:$0 sm:$0xff] }
 0x248   : > { %v4965_v57 = vadd.f32 %v4964_v47, %v4963_v26 }
 0x249   : > { %v3043_v48 = vadd.f32 %v4865_v17, %v6271_v4  ;;  %v6353_v40 = vadd.f32 %v4962_v5, %v3040_v59 }
 0x24b   : > { %v5006_v32 = vpop.f32.mrb[168].mxu0  ;;  %v6360_v63 = vadd.f32 %v4965_v57, %v3043_v48 }
 0x24c   : > { %v3234_v33 = vadd.f32 %v5006_v32, %v6281_v1  ;;  %v5022_v43 = vpop.f32.mrb[168].mxu1  ;;  %v3225_v7 = vpop.f32.mrb[169].mxu0 }
 0x24d   : > { %v3298_v4 = vadd.f32 %v5022_v43, %v6329_v56  ;;  %v3226_v0 = vadd.f32 %v3225_v7, %v6275_v53  ;;  %v3289_v10 = vpop.f32.mrb[169].mxu1  ;;  %v5007_v18 = vpop.f32.mrb[170].mxu0 }
 0x24e   : > { %v3432_v49 = vmul.f32 %v6358_v51, %v3234_v33  ;;  %v3290_v44 = vadd.f32 %v3289_v10, %v6323_v29  ;;  %v3237_v14 = vadd.f32 %v5007_v18, %v6283_v2  ;;  %v5023_v1 = vpop.f32.mrb[170].mxu1  ;;  %v3228_v50 = vpop.f32.mrb[171].mxu0 }
 0x24f   : > { %v3448_v12 = vmul.f32 %v6358_v51, %v3298_v4  ;;  %v3430_v25 = vmul.f32 %v6358_v51, %v3226_v0  ;;  %v3301_v6 = vadd.f32 %v5023_v1, %v6331_v22  ;;  %v3229_v56 = vadd.f32 %v3228_v50, %v6277_v30  ;;  %v3292_v28 = vpop.f32.mrb[171].mxu1 }
 0x250   : > { %v3467_v53 = vadd.f32 %v6366_v19, %v3432_v49  ;;  %v3446_v58 = vmul.f32 %v6358_v51, %v3290_v44  ;;  %v3433_v13 = vmul.f32 %v6358_v51, %v3237_v14  ;;  %v3293_v29 = vadd.f32 %v3292_v28, %v6325_v62 }
 0x251   : > { %v3483_v2 = vadd.f32 %v6366_v19, %v3448_v12  ;;  %v3465_v24 = vadd.f32 %v6366_v19, %v3430_v25  ;;  %v3449_v31 = vmul.f32 %v6358_v51, %v3301_v6  ;;  %v3431_v36 = vmul.f32 %v6358_v51, %v3229_v56 }
 0x252   : > { %v3495_v22 = vsub.f32 0.0, %v3467_v53  ;;  %v3481_v30 = vadd.f32 %v6366_v19, %v3446_v58  ;;  %v3468_v38 = vadd.f32 %v6366_v19, %v3433_v13  ;;  %v3447_v9 = vmul.f32 %v6358_v51, %v3293_v29 }
 0x253   : > { %v3511_v11 = vsub.f32 0.0, %v3483_v2  ;;  %v3493_v37 = vsub.f32 0.0, %v3465_v24  ;;  %v3484_v39 = vadd.f32 %v6366_v19, %v3449_v31  ;;  %v3466_v62 = vadd.f32 %v6366_v19, %v3431_v36  ;;  %v5010_v45 = vpop.f32.mrb[172].mxu0 }
 0x254   : > { %v3525_v5 = vmul.f32 1.442695, %v3495_v22  ;;  %v3509_v26 = vsub.f32 0.0, %v3481_v30  ;;  %v3496_v59 = vsub.f32 0.0, %v3468_v38  ;;  %v3482_v17 = vadd.f32 %v6366_v19, %v3447_v9  ;;  %v5026_v47 = vpop.f32.mrb[172].mxu1  ;;  %v3241_v57 = vpop.f32.mrb[173].mxu0 }
 0x255   : > { %v3557_v48 = vmul.f32 1.442695, %v3511_v11  ;;  %v3521_v32 = vmul.f32 1.442695, %v3493_v37  ;;  %v3512_v33 = vsub.f32 0.0, %v3484_v39  ;;  %v3494_v43 = vsub.f32 0.0, %v3466_v62 }
 0x256   : > { %5443 = vpow2.f32 %v3525_v5  ;;  %v3553_v7 = vmul.f32 1.442695, %v3509_v26  ;;  %v3527_v4 = vmul.f32 1.442695, %v3496_v59  ;;  %v3510_v0 = vsub.f32 0.0, %v3482_v17  ;;  %v3305_v10 = vpop.f32.mrb[173].mxu1 }
 0x257   : > { %5445 = vpow2.f32 %v3557_v48  ;;  %v3559_v18 = vmul.f32 1.442695, %v3512_v33  ;;  %v3523_v49 = vmul.f32 1.442695, %v3494_v43  ;;  %v3250_v44 = vadd.f32 %v5010_v45, %v6293_v60  ;;  %v5011_v14 = vpop.f32.mrb[174].mxu0  ;;  %v5027_v1 = vpop.f32.mrb[174].mxu1 }
 0x258   : > { %5447 = vpow2.f32 %v3521_v32  ;;  %v3555_v50 = vmul.f32 1.442695, %v3510_v0  ;;  %v3314_v12 = vadd.f32 %v5026_v47, %v6341_v41  ;;  %v3242_v25 = vadd.f32 %v3241_v57, %v6287_v52  ;;  %v3244_v6 = vpop.f32.mrb[175].mxu0  ;;  %v3308_v56 = vpop.f32.mrb[175].mxu1 }
 0x259   : > { %5449 = vpow2.f32 %v3553_v7  ;;  %v3436_v28 = vmul.f32 %v6358_v51, %v3250_v44  ;;  %v3306_v53 = vadd.f32 %v3305_v10, %v6335_v15  ;;  %v3253_v58 = vadd.f32 %v5011_v14, %v6295_v61 }
 0x25a   : > { %5451 = vpow2.f32 %v3527_v4  ;;  %v3452_v60 = vmul.f32 %v6358_v51, %v3314_v12  ;;  %v3434_v13 = vmul.f32 %v6358_v51, %v3242_v25  ;;  %v3317_v29 = vadd.f32 %v5027_v1, %v6343_v16 }
 0x25b   : > { %5453 = vpow2.f32 %v3559_v18  ;;  %v3471_v41 = vadd.f32 %v6366_v19, %v3436_v28  ;;  %v3450_v52 = vmul.f32 %v6358_v51, %v3306_v53  ;;  %v3437_v2 = vmul.f32 %v6358_v51, %v3253_v58  ;;  %v5014_v24 = vpop.f32.mrb[176].mxu0 }
 0x25c   : > { %5455 = vpow2.f32 %v3523_v49  ;;  %v3487_v15 = vadd.f32 %v6366_v19, %v3452_v60  ;;  %v3469_v61 = vadd.f32 %v6366_v19, %v3434_v13  ;;  %v3453_v31 = vmul.f32 %v6358_v51, %v3317_v29  ;;  %v5030_v36 = vpop.f32.mrb[176].mxu1  ;;  %v3257_v22 = vpop.f32.mrb[177].mxu0 }
 0x25d   : > { %5457 = vpow2.f32 %v3555_v50  ;;  %v3499_v30 = vsub.f32 0.0, %v3471_v41  ;;  %v3485_v16 = vadd.f32 %v6366_v19, %v3450_v52  ;;  %v3472_v38 = vadd.f32 %v6366_v19, %v3437_v2  ;;  %v3321_v9 = vpop.f32.mrb[177].mxu1  ;;  %v6408_v11 = vpop.f32.mrb[178].mxu0 }
 0x25e   : > { %v3515_v37 = vsub.f32 0.0, %v3487_v15  ;;  %v3497_v39 = vsub.f32 0.0, %v3469_v61  ;;  %v3488_v62 = vadd.f32 %v6366_v19, %v3453_v31  ;;  %v3245_v45 = vadd.f32 %v3244_v6, %v6289_v27  ;;  %v6412_v5 = vpop.f32.mrb[178].mxu1  ;;  %v6414_v26 = vpop.f32.mrb[179].mxu0 }
 0x25f   : > { %v3533_v59 = vmul.f32 1.442695, %v3499_v30  ;;  %v3309_v17 = vadd.f32 %v3308_v56, %v6337_v55  ;;  %v6417_v47 = vpop.f32.mrb[179].mxu1  ;;  %v3513_v32 = vsub.f32 0.0, %v3485_v16  ;;  %v3500_v0 = vsub.f32 0.0, %v3472_v38 }
 0x260   : > { %v5444_v57 = vpop.eup %5443  ;;  %v3565_v48 = vmul.f32 1.442695, %v3515_v37  ;;  %v3435_v33 = vmul.f32 %v6358_v51, %v3245_v45  ;;  %v3529_v4 = vmul.f32 1.442695, %v3497_v39  ;;  %v3516_v18 = vsub.f32 0.0, %v3488_v62 }
 0x261   : > { %v5446_v43 = vpop.eup %5445  ;;  %v3579_v7 = vadd.f32 1.0, %v5444_v57  ;;  %5459 = vpow2.f32 %v3533_v59  ;;  %v3451_v14 = vmul.f32 %v6358_v51, %v3309_v17  ;;  %v3266_v1 = vadd.f32 %v5014_v24, %v6305_v23 }
 0x262   : > { %v5448_v27 = vpop.eup %5447  ;;  %v3595_v10 = vadd.f32 1.0, %v5446_v43  ;;  %5461 = vpow2.f32 %v3565_v48  ;;  %v3470_v49 = vadd.f32 %v6366_v19, %v3435_v33  ;;  %v3561_v6 = vmul.f32 1.442695, %v3513_v32 }
 0x263   : > { %v5450_v44 = vpop.eup %5449  ;;  %5463 = vrcp.f32 %v3579_v7  ;;  %v3577_v55 = vadd.f32 1.0, %v5448_v27  ;;  %v6423_v50 = vpop.f32.mrb[180].mxu0  ;;  %v3330_v56 = vadd.f32 %v5030_v36, %v6353_v40  ;;  %v3486_v60 = vadd.f32 %v6366_v19, %v3451_v14 }
 0x264   : > { %v5452_v12 = vpop.eup %5451  ;;  %5465 = vrcp.f32 %v3595_v10  ;;  %v3593_v25 = vadd.f32 1.0, %v5450_v44  ;;  %v6426_v28 = vpop.f32.mrb[181].mxu0  ;;  %v3440_v13 = vmul.f32 %v6358_v51, %v3266_v1  ;;  %v3498_v52 = vsub.f32 0.0, %v3470_v49 }
 0x265   : > { %v5454_v53 = vpop.eup %5453  ;;  %5467 = vrcp.f32 %v3577_v55  ;;  %v3580_v58 = vadd.f32 1.0, %v5452_v12  ;;  %v6430_v29 = vpop.f32.mrb[182].mxu0  ;;  %v3456_v2 = vmul.f32 %v6358_v51, %v3330_v56  ;;  %v3514_v61 = vsub.f32 0.0, %v3486_v60 }
 0x266   : > { %v5456_v23 = vpop.eup %5455  ;;  %5469 = vrcp.f32 %v3593_v25  ;;  %v3596_v41 = vadd.f32 1.0, %v5454_v53  ;;  %v6433_v24 = vpop.f32.mrb[183].mxu0  ;;  %v3475_v31 = vadd.f32 %v6366_v19, %v3440_v13  ;;  %v3258_v16 = vadd.f32 %v3257_v22, %v6299_v20 }
 0x267   : > { %v5458_v40 = vpop.eup %5457  ;;  %5471 = vrcp.f32 %v3580_v58  ;;  %v3578_v15 = vadd.f32 1.0, %v5456_v23  ;;  %v3491_v30 = vadd.f32 %v6366_v19, %v3456_v2  ;;  %v3535_v38 = vmul.f32 1.442695, %v3500_v0 }
 0x268   : > { %5473 = vrcp.f32 %v3596_v41  ;;  %v3594_v36 = vadd.f32 1.0, %v5458_v40  ;;  %v3567_v37 = vmul.f32 1.442695, %v3516_v18  ;;  %v3322_v39 = vadd.f32 %v3321_v9, %v6347_v8 }
 0x269   : > { %5475 = vrcp.f32 %v3578_v15  ;;  %v3531_v62 = vmul.f32 1.442695, %v3498_v52  ;;  %v3438_v45 = vmul.f32 %v6358_v51, %v3258_v16  ;;  %v3269_v59 = vadd.f32 %v6408_v11, %v6307_v54 }
 0x26a   : > { %5477 = vrcp.f32 %v3594_v36  ;;  %v3563_v57 = vmul.f32 1.442695, %v3514_v61  ;;  %v3503_v48 = vsub.f32 0.0, %v3475_v31  ;;  %v3333_v20 = vadd.f32 %v6412_v5, %v6360_v63 }
 0x26b   : > { %v5460_v17 = vpop.eup %5459  ;;  %5479 = vpow2.f32 %v3529_v4  ;;  %v3519_v33 = vsub.f32 0.0, %v3491_v30  ;;  %v3473_v8 = vadd.f32 %v6366_v19, %v3438_v45  ;;  %v3454_v7 = vmul.f32 %v6358_v51, %v3322_v39 }
 0x26c   : > { %v5462_v22 = vpop.eup %5461  ;;  %v3583_v32 = vadd.f32 1.0, %v5460_v17  ;;  %5481 = vpow2.f32 %v3561_v6  ;;  %v3441_v54 = vmul.f32 %v6358_v51, %v3269_v59  ;;  %v3457_v0 = vmul.f32 %v6358_v51, %v3333_v20 }
 0x26d   : > { %v5464_v9 = vpop.eup %5463  ;;  %v3599_v43 = vadd.f32 1.0, %v5462_v22  ;;  %5483 = vpow2.f32 %v3535_v38  ;;  %v3501_v4 = vsub.f32 0.0, %v3473_v8  ;;  %v3261_v63 = vadd.f32 %v6414_v26, %v6301_v21 }
 0x26e   : > { %v5466_v11 = vpop.eup %5465  ;;  %5485 = vrcp.f32 %v3583_v32  ;;  %v3541_v27 = vmul.f32 1.442695, %v3503_v48  ;;  %v3476_v10 = vadd.f32 %v6366_v19, %v3441_v54  ;;  %v3325_v18 = vadd.f32 %v6417_v47, %v6349_v35 }
 0x26f   : > { %v5468_v5 = vpop.eup %5467  ;;  %5487 = vrcp.f32 %v3599_v43  ;;  %v3573_v44 = vmul.f32 1.442695, %v3519_v33  ;;  %v3492_v55 = vadd.f32 %v6366_v19, %v3457_v0  ;;  %v3439_v14 = vmul.f32 %v6358_v51, %v3261_v63 }
 0x270   : > { %v5470_v49 = vpop.eup %5469  ;;  %5489 = vpow2.f32 %v3567_v37  ;;  %v3537_v21 = vmul.f32 1.442695, %v3501_v4  ;;  %v3489_v26 = vadd.f32 %v6366_v19, %v3454_v7  ;;  %v3504_v12 = vsub.f32 0.0, %v3476_v10 }
 0x271   : > { %v5472_v1 = vpop.eup %5471  ;;  %5491 = vpow2.f32 %v3531_v62  ;;  %v3520_v25 = vsub.f32 0.0, %v3492_v55  ;;  %v3474_v6 = vadd.f32 %v6366_v19, %v3439_v14  ;;  %v3455_v2 = vmul.f32 %v6358_v51, %v3325_v18 }
 0x272   : > { %v5474_v35 = vpop.eup %5473  ;;  %v4291_v47 = vpack.c.bf16 %v5472_v1, %v5464_v9  ;;  %5493 = vpow2.f32 %v3563_v57  ;;  %v3543_v58 = vmul.f32 1.442695, %v3504_v12  ;;  %v3282_v40 = vadd.f32 %v6423_v50, %v6317_v42 }
 0x273   : > { %v5476_v56 = vpop.eup %5475  ;;  %v4331_v53 = vpack.c.bf16 %v5474_v35, %v5466_v11  ;;  %5495 = vpow2.f32 %v3541_v27  ;;  %v3502_v23 = vsub.f32 0.0, %v3474_v6  ;;  %v3517_v31 = vsub.f32 0.0, %v3489_v26 }
 0x274   : > { %v5478_v60 = vpop.eup %5477  ;;  %4353 = vst [vmem:[%s6459_s23 + $0x8] sm:$0xff] %v4291_v47   ;;  %v4286_v13 = vpack.c.bf16 %v5476_v56, %v5468_v5  ;;  %5497 = vpow2.f32 %v3573_v44  ;;  %v3575_v36 = vmul.f32 1.442695, %v3520_v25  ;;  %v3274_v30 = vadd.f32 %v6426_v28, %v6311_v46 }
 0x275   : > { %v5480_v41 = vpop.eup %5479  ;;  %4361 = vst [vmem:[%s6459_s23 + $0x48] sm:$0xff] %v4331_v53   ;;  %v4326_v52 = vpack.c.bf16 %v5478_v60, %v5470_v49  ;;  %5499 = vpow2.f32 %v3537_v21  ;;  %v3539_v37 = vmul.f32 1.442695, %v3502_v23  ;;  %v3444_v39 = vmul.f32 %v6358_v51, %v3282_v40 }
 0x276   : > { %v5482_v15 = vpop.eup %5481  ;;  %4287 = vst [vmem:[%s6459_s23] sm:$0xff] %v4286_v13   ;;  %v3581_v61 = vadd.f32 1.0, %v5480_v41  ;;  %5501 = vpow2.f32 %v3543_v58  ;;  %v3442_v42 = vmul.f32 %v6358_v51, %v3274_v30  ;;  %v3285_v50 = vadd.f32 %v6430_v29, %v6319_v34 }
 0x277   : > { %v5484_v16 = vpop.eup %5483  ;;  %4360 = vst [vmem:[%s6459_s23 + $0x40] sm:$0xff] %v4326_v52   ;;  %v3597_v38 = vadd.f32 1.0, %v5482_v15  ;;  %v3490_v46 = vadd.f32 %v6366_v19, %v3455_v2  ;;  %v3277_v28 = vadd.f32 %v6433_v24, %v6313_v3  ;;  %v3479_v57 = vadd.f32 %v6366_v19, %v3444_v39 }
 0x278   : > { %v5486_v62 = vpop.eup %5485  ;;  %5503 = vrcp.f32 %v3581_v61  ;;  %v3584_v45 = vadd.f32 1.0, %v5484_v16  ;;  %v3445_v48 = vmul.f32 %v6358_v51, %v3285_v50  ;;  %v3477_v32 = vadd.f32 %v6366_v19, %v3442_v42 }
 0x279   : > { %v6476_v59 = vpop.eup %5487  ;;  %5505 = vrcp.f32 %v3597_v38  ;;  %v3443_v34 = vmul.f32 %v6358_v51, %v3277_v28  ;;  %v3569_v8 = vmul.f32 1.442695, %v3517_v31  ;;  %v3518_v24 = vsub.f32 0.0, %v3490_v46 }
 0x27a   : > { %v5490_v17 = vpop.eup %5489  ;;  %5507 = vrcp.f32 %v3584_v45  ;;  %v3507_v54 = vsub.f32 0.0, %v3479_v57  ;;  %v3480_v11 = vadd.f32 %v6366_v19, %v3445_v48  ;;  %v3505_v63 = vsub.f32 0.0, %v3477_v32 }
 0x27b   : > { %v5492_v20 = vpop.eup %5491  ;;  %v3600_v22 = vadd.f32 1.0, %v5490_v17  ;;  %5509 = vpow2.f32 %v3575_v36  ;;  %v3478_v51 = vadd.f32 %v6366_v19, %v3443_v34  ;;  %v3571_v10 = vmul.f32 1.442695, %v3518_v24 }
 0x27c   : > { %v5494_v29 = vpop.eup %5493  ;;  %v3582_v33 = vadd.f32 1.0, %v5492_v20  ;;  %5511 = vpow2.f32 %v3539_v37  ;;  %v3549_v44 = vmul.f32 1.442695, %v3507_v54  ;;  %v3508_v55 = vsub.f32 0.0, %v3480_v11 }
 0x27d   : > { %v5496_v9 = vpop.eup %5495  ;;  %5513 = vrcp.f32 %v3600_v22  ;;  %v3598_v3 = vadd.f32 1.0, %v5494_v29  ;;  %v3545_v1 = vmul.f32 1.442695, %v3505_v63  ;;  %v3506_v21 = vsub.f32 0.0, %v3478_v51 }
 0x27e   : > { %v5498_v43 = vpop.eup %5497  ;;  %5515 = vrcp.f32 %v3582_v33  ;;  %v3587_v7 = vadd.f32 1.0, %v5496_v9  ;;  %v3551_v25 = vmul.f32 1.442695, %v3508_v55 }
 0x27f   : > { %v5500_v4 = vpop.eup %5499  ;;  %5517 = vrcp.f32 %v3598_v3  ;;  %v3603_v0 = vadd.f32 1.0, %v5498_v43  ;;  %v3547_v53 = vmul.f32 1.442695, %v3506_v21 }
 0x280   : > { %v3585_v5 = vadd.f32 1.0, %v5500_v4  ;;  %5519 = vpow2.f32 %v3569_v8  ;;  %v5502_v27 = vpop.eup %5501 }
 0x281   : > { %5521 = vrcp.f32 %v3587_v7  ;;  %v3588_v49 = vadd.f32 1.0, %v5502_v27 }
 0x282   : > { %v5504_v18 = vpop.eup %5503  ;;  %5523 = vrcp.f32 %v3603_v0 }
 0x283   : > { %v5506_v14 = vpop.eup %5505  ;;  %5525 = vrcp.f32 %v3585_v5 }
 0x284   : > { %v5508_v26 = vpop.eup %5507  ;;  %5527 = vrcp.f32 %v3588_v49 }
 0x285   : > { %v5510_v12 = vpop.eup %5509  ;;  %v4301_v35 = vpack.c.bf16 %v5508_v26, %v5486_v62  ;;  %5529 = vpow2.f32 %v3571_v10 }
 0x286   : > { %v5512_v19 = vpop.eup %5511  ;;  %v3604_v47 = vadd.f32 1.0, %v5510_v12  ;;  %5531 = vpow2.f32 %v3549_v44 }
 0x287   : > { %v5514_v6 = vpop.eup %5513  ;;  %4355 = vst [vmem:[%s6459_s23 + $0x18] sm:$0xff] %v4301_v35   ;;  %v3586_v56 = vadd.f32 1.0, %v5512_v19  ;;  %5533 = vpow2.f32 %v3545_v1 }
 0x288   : > { %v5516_v58 = vpop.eup %5515  ;;  %v4341_v60 = vpack.c.bf16 %v5514_v6, %v6476_v59  ;;  %5535 = vrcp.f32 %v3604_v47 }
 0x289   : > { %v5518_v13 = vpop.eup %5517  ;;  %v4296_v23 = vpack.c.bf16 %v5516_v58, %v5504_v18  ;;  %5537 = vrcp.f32 %v3586_v56 }
 0x28a   : > { %v5520_v41 = vpop.eup %5519  ;;  %4363 = vst [vmem:[%s6459_s23 + $0x58] sm:$0xff] %v4341_v60   ;;  %v4336_v52 = vpack.c.bf16 %v5518_v13, %v5506_v14  ;;  %5539 = vpow2.f32 %v3551_v25 }
 0x28b   : > { %v5522_v2 = vpop.eup %5521  ;;  %4354 = vst [vmem:[%s6459_s23 + $0x10] sm:$0xff] %v4296_v23   ;;  %5541 = vpow2.f32 %v3547_v53  ;;  %v3601_v61 = vadd.f32 1.0, %v5520_v41 }
 0x28c   : > { %v5524_v40 = vpop.eup %5523  ;;  %4362 = vst [vmem:[%s6459_s23 + $0x50] sm:$0xff] %v4336_v52  }
 0x28d   : > { %v5526_v15 = vpop.eup %5525  ;;  %5543 = vrcp.f32 %v3601_v61 }
 0x28e   : > { %v5528_v31 = vpop.eup %5527 }
 0x28f   : > { %v5530_v36 = vpop.eup %5529  ;;  %v4311_v30 = vpack.c.bf16 %v5528_v31, %v5522_v2 }
 0x290   : > { %v5532_v16 = vpop.eup %5531  ;;  %v3602_v38 = vadd.f32 1.0, %v5530_v36 }
 0x291   : > { %v5534_v37 = vpop.eup %5533  ;;  %4357 = vst [vmem:[%s6459_s23 + $0x28] sm:$0xff] %v4311_v30   ;;  %v3591_v39 = vadd.f32 1.0, %v5532_v16 }
 0x292   : > { %v5536_v62 = vpop.eup %5535  ;;  %5545 = vrcp.f32 %v3602_v38  ;;  %v3589_v45 = vadd.f32 1.0, %v5534_v37 }
 0x293   : > { %v5538_v42 = vpop.eup %5537  ;;  %v4351_v50 = vpack.c.bf16 %v5536_v62, %v5524_v40  ;;  %5547 = vrcp.f32 %v3591_v39 }
 0x294   : > { %v5540_v59 = vpop.eup %5539  ;;  %v4306_v46 = vpack.c.bf16 %v5538_v42, %v5526_v15  ;;  %5549 = vrcp.f32 %v3589_v45 }
 0x295   : > { %v5542_v28 = vpop.eup %5541  ;;  %4365 = vst [vmem:[%s6459_s23 + $0x68] sm:$0xff] %v4351_v50   ;;  %v3592_v17 = vadd.f32 1.0, %v5540_v59 }
 0x296   : > { %4356 = vst [vmem:[%s6459_s23 + $0x20] sm:$0xff] %v4306_v46   ;;  %v3590_v57 = vadd.f32 1.0, %v5542_v28 }
 0x297   : > { %5551 = vrcp.f32 %v3592_v17  ;;  %v5544_v48 = vpop.eup %5543 }
 0x298   : > { %5553 = vrcp.f32 %v3590_v57 }
 0x29c   : > { %v5546_v20 = vpop.eup %5545 }
 0x29d   : > { %v4346_v22 = vpack.c.bf16 %v5546_v20, %v5544_v48  ;;  %v5548_v32 = vpop.eup %5547 }
 0x29e   : > { %v5550_v34 = vpop.eup %5549 }
 0x29f   : > { %4364 = vst [vmem:[%s6459_s23 + $0x60] sm:$0xff] %v4346_v22  }
 0x2a1   : > { %v5552_v29 = vpop.eup %5551 }
 0x2a2   : > { %v5554_v33 = vpop.eup %5553  ;;  %v4321_v8 = vpack.c.bf16 %v5552_v29, %v5548_v32 }
 0x2a3   : > { %v4316_v9 = vpack.c.bf16 %v5554_v33, %v5550_v34 }
 0x2a4   : > { %4359 = vst [vmem:[%s6459_s23 + $0x38] sm:$0xff] %v4321_v8  }
 0x2a5   : > { %4358 = vst [vmem:[%s6459_s23 + $0x30] sm:$0xff] %v4316_v9  }
 0x2a6 PF: > { %s14_s17 = sadd.s32 1, %s5577_s17   ;;  %s6512_s15 = smov %s5573_s16 }
 0x2a7   : > { %p11_p5 = scmp.ge.s32.totalorder %s14_s17, 9   ;;  %s6513_s16 = smov %s6515_s18 }
 0x2a9   :  { %13 = sbr.rel (!%p11_p5) target bundleno = 2 (0x2), region = 83 }

// kernel: _lambda_.11
= control target key start
LH: loop header
LB: loop body
LE: loop exit
PB: predicated region body
PF: predicated region fallthrough
CT: control target
= control target key end

     0   :  { %s1455_s15 = smov 0   ;;  %s1457_s16 = smov 0   ;;  %s1653_s0 = inlined_call_operand.vmem [shape: bf16[832,128], index: 0, kind: input, shape index: {}]   ;;  %s1654_s1 = inlined_call_operand.vmem [shape: bf16[128,128], index: 1, kind: input, shape index: {}]   ;;  %s1655_s2 = inlined_call_operand.vmem [shape: f32[1,128], index: 2, kind: input, shape index: {}]   ;;  %s1656_s3 = inlined_call_operand.vmem [shape: f32[1,128], index: 3, kind: input, shape index: {}]   ;;  %s1657_s4 = inlined_call_operand.vmem [shape: bf16[832,128], index: 4, kind: output, shape index: {}]  }
   0x1   :  { %s1459_s17 = smov 0  }
   0x2 LB: > { %s33_s18 = sadd.s32 1, %s1422_s16  ;;  %p1095_p0 = scmp.ge.s32.totalorder %s1426_s17, 1  ;;  %s1426_s17 = sphi %s1459_s17, %s14_s17   ;;  %s1422_s16 = sphi %s1457_s16, %s1659_s16   ;;  %s1418_s15 = sphi %s1455_s15, %s1658_s15  }
   0x3   : > { %p35_p1 = scmp.ge.s32.totalorder %s33_s18, 4  ;;  %p221_p2 = scmp.lt.s32.totalorder %s1426_s17, 5 }
   0x5   : > { %s1661_s18 = smov (%p35_p1, %s33_s18), 0  ;;  %p222_p3 = pnand %p1095_p0, %p221_p2 }
   0x6   : > { %v1383_v0 = vld [vmem:[%s1654_s1] sm:$0xff] (!%p222_p3)   ;;  %v1428_v1 = vmov (!%p222_p3), 0.0   ;;  %v1384_v2 = vld [vmem:[%s1654_s1 + $0x8] sm:$0xff] (!%p222_p3)   ;;  %s267_s23 = smul.u32 (!%p222_p3), 26, %s1418_s15  ;;  %vm1429_vm0 = vmmov (!%p222_p3), 0   ;;  %v1385_v3 = vld [vmem:[%s1654_s1 + $0x10] sm:$0xff] (!%p222_p3)  }
   0x7   : > { %225 = sbr.rel (%p222_p3) target bundleno = 310 (0x136), region = 36  ;;  %1273 = vmatprep.subr.bf16.mxu0 (!%p222_p3), %v1428_v1  ;;  %1341 = vmatprep.subr.bf16.mxu1 (!%p222_p3), %v1428_v1  ;;  %v1386_v4 = vld [vmem:[%s1654_s1 + $0x18] sm:$0xff] (!%p222_p3)   ;;  %v1387_v5 = vld [vmem:[%s1654_s1 + $0x20] sm:$0xff] (!%p222_p3)   ;;  %v1388_v6 = vld [vmem:[%s1654_s1 + $0x28] sm:$0xff] (!%p222_p3)  }
   0x8   : > { %1274 = vmatpush3.bf16.msra.mxu0 (!%p222_p3), %v1383_v0  ;;  %1349 = vmatpush3.bf16.msra.mxu1 (!%p222_p3), %v1383_v0  ;;  %p268_p4 = scmp.lt.s32.totalorder (!%p222_p3), %s267_s23, 103  ;;  %v1389_v7 = vld [vmem:[%s1654_s1 + $0x30] sm:$0xff] (!%p222_p3)   ;;  %v1390_v8 = vld [vmem:[%s1654_s1 + $0x38] sm:$0xff] (!%p222_p3)   ;;  %v1565_v22 = vld [vmem:[%s1655_s2] ss:$0 sm:$0xff] (!%p222_p3) }
   0x9   : > { %1275 = vmatprep.subr.bf16.mxu0 (!%p222_p3), %v1428_v1  ;;  %1342 = vmatprep.subr.bf16.mxu1 (!%p222_p3), %v1428_v1  ;;  %v1570_v24 = vld [vmem:[%s1656_s3] ss:$0 sm:$0xff] (!%p222_p3) }
   0xa   : > { %1289 = vmatprep.mubr.msk.bf16.mxu0 (!%p222_p3), %vm1429_vm0, %v1428_v1  ;;  %1317 = vmatprep.mubr.msk.bf16.mxu1 (!%p222_p3), %vm1429_vm0, %v1428_v1 }
   0xc   : > { %1276 = vmatpush3.bf16.msra.mxu0 (!%p222_p3), %v1384_v2  ;;  %1350 = vmatpush3.bf16.msra.mxu1 (!%p222_p3), %v1384_v2 }
   0xd   : > { %1277 = vmatprep.subr.bf16.mxu0 (!%p222_p3), %v1428_v1  ;;  %1343 = vmatprep.subr.bf16.mxu1 (!%p222_p3), %v1428_v1 }
   0xe   : > { %s1663_s23 = smov (!%p268_p4, %s267_s23), 103 }
   0xf   : > { %s1096_s26 = sshll.u32 %s1663_s23, 2 }
  0x10   : > { %s1500_s29 = scalar_lea.vmem %s1653_s0, %s1096_s26  ;;  %1278 = vmatpush3.bf16.msra.mxu0 %v1385_v3  ;;  %1351 = vmatpush3.bf16.msra.mxu1 %v1385_v3  ;;  %s1585_s24 = scalar_lea.vmem %s1657_s4, %s1096_s26 }
  0x11   : > { %1279 = vmatprep.subr.bf16.mxu0 %v1428_v1  ;;  %1344 = vmatprep.subr.bf16.mxu1 %v1428_v1  ;;  %v1391_v9 = vld [vmem:[%s1500_s29] sm:$0xff]   ;;  %v1392_v10 = vld [vmem:[%s1500_s29 + $0x38] sm:$0xff]   ;;  %v1393_v11 = vld [vmem:[%s1500_s29 + $0x8] sm:$0xff]  }
  0x12   : > { %v1394_v12 = vld [vmem:[%s1500_s29 + $0x40] sm:$0xff]   ;;  %v1395_v13 = vld [vmem:[%s1500_s29 + $0x10] sm:$0xff]   ;;  %v1396_v14 = vld [vmem:[%s1500_s29 + $0x48] sm:$0xff]  }
  0x13   : > { %v1397_v15 = vld [vmem:[%s1500_s29 + $0x18] sm:$0xff]   ;;  %v1398_v16 = vld [vmem:[%s1500_s29 + $0x50] sm:$0xff]   ;;  %v1399_v17 = vld [vmem:[%s1500_s29 + $0x20] sm:$0xff]  }
  0x14   : > { %1280 = vmatpush3.bf16.msra.mxu0 %v1386_v4  ;;  %1352 = vmatpush3.bf16.msra.mxu1 %v1386_v4  ;;  %v1400_v18 = vld [vmem:[%s1500_s29 + $0x58] sm:$0xff]   ;;  %v1401_v19 = vld [vmem:[%s1500_s29 + $0x28] sm:$0xff]   ;;  %v1402_v20 = vld [vmem:[%s1500_s29 + $0x60] sm:$0xff]  }
  0x15   : > { %1281 = vmatprep.subr.bf16.mxu0 %v1428_v1  ;;  %1345 = vmatprep.subr.bf16.mxu1 %v1428_v1  ;;  %v1403_v21 = vld [vmem:[%s1500_s29 + $0x30] sm:$0xff]  }
  0x18   : > { %1282 = vmatpush3.bf16.msra.mxu0 %v1387_v5  ;;  %1353 = vmatpush3.bf16.msra.mxu1 %v1387_v5 }
  0x19   : > { %1283 = vmatprep.subr.bf16.mxu0 %v1428_v1  ;;  %1346 = vmatprep.subr.bf16.mxu1 %v1428_v1 }
  0x1c   : > { %1284 = vmatpush3.bf16.msra.mxu0 %v1388_v6  ;;  %1354 = vmatpush3.bf16.msra.mxu1 %v1388_v6 }
  0x1d   : > { %1285 = vmatprep.subr.bf16.mxu0 %v1428_v1  ;;  %1347 = vmatprep.subr.bf16.mxu1 %v1428_v1 }
  0x20   : > { %1286 = vmatpush3.bf16.msra.mxu0 %v1389_v7  ;;  %1355 = vmatpush3.bf16.msra.mxu1 %v1389_v7 }
  0x21   : > { %1287 = vmatprep.subr.bf16.mxu0 %v1428_v1  ;;  %1348 = vmatprep.subr.bf16.mxu1 %v1428_v1 }
  0x24   : > { %1288 = vmatpush3.bf16.msra.mxu0 %v1390_v8  ;;  %1356 = vmatpush3.bf16.msra.mxu1 %v1390_v8 }
  0x27   : > { %1290 = vmatmul.mubr.bf16.vlgmr.msra.gmra.mrb[0].mxu0 %v1391_v9  ;;  %1318 = vmatmul.mubr.bf16.vlgmr.msra.gmra.mrb[0].mxu1 %v1392_v10 }
  0x28   : > { %1293 = vmatprep.mubr.msk.bf16.mxu0 %vm1429_vm0, %v1428_v1  ;;  %1321 = vmatprep.mubr.msk.bf16.mxu1 %vm1429_vm0, %v1428_v1 }
  0x2f   : > { %1294 = vmatmul.mubr.bf16.gmra.mrb[4].mxu0 %v1393_v11  ;;  %1322 = vmatmul.mubr.bf16.gmra.mrb[4].mxu1 %v1394_v12 }
  0x30   : > { %1297 = vmatprep.mubr.msk.bf16.mxu0 %vm1429_vm0, %v1428_v1  ;;  %1325 = vmatprep.mubr.msk.bf16.mxu1 %vm1429_vm0, %v1428_v1 }
  0x37   : > { %1298 = vmatmul.mubr.bf16.gmra.mrb[8].mxu0 %v1395_v13  ;;  %1326 = vmatmul.mubr.bf16.gmra.mrb[8].mxu1 %v1396_v14 }
  0x38   : > { %1301 = vmatprep.mubr.msk.bf16.mxu0 %vm1429_vm0, %v1428_v1  ;;  %1329 = vmatprep.mubr.msk.bf16.mxu1 %vm1429_vm0, %v1428_v1 }
  0x3f   : > { %1302 = vmatmul.mubr.bf16.gmra.mrb[12].mxu0 %v1397_v15  ;;  %1330 = vmatmul.mubr.bf16.gmra.mrb[12].mxu1 %v1398_v16 }
  0x40   : > { %1305 = vmatprep.mubr.msk.bf16.mxu0 %vm1429_vm0, %v1428_v1  ;;  %1333 = vmatprep.mubr.msk.bf16.mxu1 %vm1429_vm0, %v1428_v1 }
  0x47   : > { %1306 = vmatmul.mubr.bf16.gmra.mrb[16].mxu0 %v1399_v17  ;;  %1334 = vmatmul.mubr.bf16.gmra.mrb[16].mxu1 %v1400_v18 }
  0x48   : > { %1309 = vmatprep.mubr.msk.bf16.mxu0 %vm1429_vm0, %v1428_v1  ;;  %1337 = vmatprep.mubr.msk.bf16.mxu1 %vm1429_vm0, %v1428_v1 }
  0x4f   : > { %1310 = vmatmul.mubr.bf16.gmra.mrb[20].mxu0 %v1401_v19  ;;  %1338 = vmatmul.mubr.bf16.gmra.mrb[20].mxu1 %v1402_v20 }
  0x50   : > { %1313 = vmatprep.mubr.msk.bf16.mxu0 %vm1429_vm0, %v1428_v1 }
  0x57   : > { %1314 = vmatmul.mubr.bf16.gmra.mrb[24].mxu0 %v1403_v21 }
  0xfa   : > { %v559_v23 = vpop.f32.mrb[0].mxu0  ;;  %v615_v25 = vpop.f32.mrb[0].mxu1 }
  0xfb   : > { %v750_v26 = vmul.f32 %v1565_v22, %v559_v23  ;;  %v1291_v27 = vpop.f32.mrb[1].mxu0  ;;  %v764_v28 = vmul.f32 %v1565_v22, %v615_v25  ;;  %v1319_v29 = vpop.f32.mrb[1].mxu1 }
  0xfc   : > { %v562_v30 = vpop.f32.mrb[2].mxu0  ;;  %v618_v31 = vpop.f32.mrb[2].mxu1 }
  0xfd   : > { %v783_v32 = vadd.f32 %v1570_v24, %v750_v26  ;;  %v751_v33 = vmul.f32 %v1565_v22, %v562_v30  ;;  %v1292_v34 = vpop.f32.mrb[3].mxu0  ;;  %v797_v35 = vadd.f32 %v1570_v24, %v764_v28  ;;  %v765_v36 = vmul.f32 %v1565_v22, %v618_v31  ;;  %v1320_v37 = vpop.f32.mrb[3].mxu1 }
  0xff   : > { %v784_v38 = vadd.f32 %v1570_v24, %v751_v33  ;;  %v823_v39 = vmax.f32 %v797_v35, 0.0  ;;  %v798_v40 = vadd.f32 %v1570_v24, %v765_v36  ;;  %v809_v41 = vmax.f32 %v783_v32, 0.0 }
 0x101   : > { %v810_v42 = vmax.f32 %v784_v38, 0.0  ;;  %v824_v43 = vmax.f32 %v798_v40, 0.0 }
 0x102   : > { %v567_v44 = vpop.f32.mrb[4].mxu0  ;;  %v623_v45 = vpop.f32.mrb[4].mxu1 }
 0x103   : > { %v1178_v46 = vpack.c.bf16 %v810_v42, %v809_v41  ;;  %v1213_v47 = vpack.c.bf16 %v824_v43, %v823_v39  ;;  %v752_v48 = vmul.f32 %v1565_v22, %v567_v44  ;;  %v1295_v49 = vpop.f32.mrb[5].mxu0  ;;  %v766_v50 = vmul.f32 %v1565_v22, %v623_v45  ;;  %v1323_v51 = vpop.f32.mrb[5].mxu1 }
 0x104   : > { %v570_v52 = vpop.f32.mrb[6].mxu0  ;;  %v626_v53 = vpop.f32.mrb[6].mxu1 }
 0x105   : > { %1179 = vst [vmem:[%s1585_s24] sm:$0xff] %v1178_v46   ;;  %1246 = vst [vmem:[%s1585_s24 + $0x38] sm:$0xff] %v1213_v47   ;;  %v785_v54 = vadd.f32 %v1570_v24, %v752_v48  ;;  %v753_v55 = vmul.f32 %v1565_v22, %v570_v52  ;;  %v1296_v56 = vpop.f32.mrb[7].mxu0  ;;  %v799_v57 = vadd.f32 %v1570_v24, %v766_v50  ;;  %v1324_v59 = vpop.f32.mrb[7].mxu1 }
 0x106   : > { %v767_v58 = vmul.f32 %v1565_v22, %v626_v53 }
 0x107   : > { %v786_v60 = vadd.f32 %v1570_v24, %v753_v55  ;;  %v825_v61 = vmax.f32 %v799_v57, 0.0  ;;  %v811_v63 = vmax.f32 %v785_v54, 0.0 }
 0x108   : > { %v800_v62 = vadd.f32 %v1570_v24, %v767_v58 }
 0x109   : > { %v812_v0 = vmax.f32 %v786_v60, 0.0 }
 0x10a   : > { %v826_v1 = vmax.f32 %v800_v62, 0.0  ;;  %v575_v2 = vpop.f32.mrb[8].mxu0  ;;  %v631_v3 = vpop.f32.mrb[8].mxu1 }
 0x10b   : > { %v1183_v4 = vpack.c.bf16 %v812_v0, %v811_v63  ;;  %v754_v6 = vmul.f32 %v1565_v22, %v575_v2  ;;  %v1299_v7 = vpop.f32.mrb[9].mxu0  ;;  %v768_v8 = vmul.f32 %v1565_v22, %v631_v3  ;;  %v1327_v9 = vpop.f32.mrb[9].mxu1 }
 0x10c   : > { %v1218_v5 = vpack.c.bf16 %v826_v1, %v825_v61  ;;  %v578_v10 = vpop.f32.mrb[10].mxu0  ;;  %v634_v11 = vpop.f32.mrb[10].mxu1 }
 0x10d   : > { %1240 = vst [vmem:[%s1585_s24 + $0x8] sm:$0xff] %v1183_v4   ;;  %v787_v12 = vadd.f32 %v1570_v24, %v754_v6  ;;  %v755_v13 = vmul.f32 %v1565_v22, %v578_v10  ;;  %v1300_v14 = vpop.f32.mrb[11].mxu0  ;;  %v801_v15 = vadd.f32 %v1570_v24, %v768_v8  ;;  %v769_v16 = vmul.f32 %v1565_v22, %v634_v11  ;;  %v1328_v17 = vpop.f32.mrb[11].mxu1 }
 0x10e   : > { %1247 = vst [vmem:[%s1585_s24 + $0x40] sm:$0xff] %v1218_v5  }
 0x10f   : > { %v788_v18 = vadd.f32 %v1570_v24, %v755_v13  ;;  %v827_v19 = vmax.f32 %v801_v15, 0.0  ;;  %v802_v20 = vadd.f32 %v1570_v24, %v769_v16  ;;  %v813_v21 = vmax.f32 %v787_v12, 0.0 }
 0x111   : > { %v814_v23 = vmax.f32 %v788_v18, 0.0  ;;  %v828_v25 = vmax.f32 %v802_v20, 0.0 }
 0x112   : > { %v583_v26 = vpop.f32.mrb[12].mxu0  ;;  %v639_v27 = vpop.f32.mrb[12].mxu1 }
 0x113   : > { %v1188_v28 = vpack.c.bf16 %v814_v23, %v813_v21  ;;  %v1223_v29 = vpack.c.bf16 %v828_v25, %v827_v19  ;;  %v756_v30 = vmul.f32 %v1565_v22, %v583_v26  ;;  %v1303_v31 = vpop.f32.mrb[13].mxu0  ;;  %v770_v32 = vmul.f32 %v1565_v22, %v639_v27  ;;  %v1331_v33 = vpop.f32.mrb[13].mxu1 }
 0x114   : > { %v586_v34 = vpop.f32.mrb[14].mxu0  ;;  %v642_v35 = vpop.f32.mrb[14].mxu1 }
 0x115   : > { %1241 = vst [vmem:[%s1585_s24 + $0x10] sm:$0xff] %v1188_v28   ;;  %1248 = vst [vmem:[%s1585_s24 + $0x48] sm:$0xff] %v1223_v29   ;;  %v789_v36 = vadd.f32 %v1570_v24, %v756_v30  ;;  %v757_v37 = vmul.f32 %v1565_v22, %v586_v34  ;;  %v1304_v38 = vpop.f32.mrb[15].mxu0  ;;  %v803_v39 = vadd.f32 %v1570_v24, %v770_v32  ;;  %v1332_v41 = vpop.f32.mrb[15].mxu1 }
 0x116   : > { %v771_v40 = vmul.f32 %v1565_v22, %v642_v35 }
 0x117   : > { %v790_v42 = vadd.f32 %v1570_v24, %v757_v37  ;;  %v829_v43 = vmax.f32 %v803_v39, 0.0  ;;  %v815_v45 = vmax.f32 %v789_v36, 0.0 }
 0x118   : > { %v804_v44 = vadd.f32 %v1570_v24, %v771_v40 }
 0x119   : > { %v816_v46 = vmax.f32 %v790_v42, 0.0 }
 0x11a   : > { %v830_v47 = vmax.f32 %v804_v44, 0.0  ;;  %v591_v48 = vpop.f32.mrb[16].mxu0  ;;  %v647_v49 = vpop.f32.mrb[16].mxu1 }
 0x11b   : > { %v1193_v50 = vpack.c.bf16 %v816_v46, %v815_v45  ;;  %v758_v52 = vmul.f32 %v1565_v22, %v591_v48  ;;  %v1307_v53 = vpop.f32.mrb[17].mxu0  ;;  %v772_v54 = vmul.f32 %v1565_v22, %v647_v49  ;;  %v1335_v55 = vpop.f32.mrb[17].mxu1 }
 0x11c   : > { %v1228_v51 = vpack.c.bf16 %v830_v47, %v829_v43  ;;  %v594_v56 = vpop.f32.mrb[18].mxu0  ;;  %v650_v57 = vpop.f32.mrb[18].mxu1 }
 0x11d   : > { %1242 = vst [vmem:[%s1585_s24 + $0x18] sm:$0xff] %v1193_v50   ;;  %v791_v58 = vadd.f32 %v1570_v24, %v758_v52  ;;  %v759_v59 = vmul.f32 %v1565_v22, %v594_v56  ;;  %v1308_v60 = vpop.f32.mrb[19].mxu0  ;;  %v805_v61 = vadd.f32 %v1570_v24, %v772_v54  ;;  %v773_v62 = vmul.f32 %v1565_v22, %v650_v57  ;;  %v1336_v63 = vpop.f32.mrb[19].mxu1 }
 0x11e   : > { %1249 = vst [vmem:[%s1585_s24 + $0x50] sm:$0xff] %v1228_v51  }
 0x11f   : > { %v792_v0 = vadd.f32 %v1570_v24, %v759_v59  ;;  %v831_v1 = vmax.f32 %v805_v61, 0.0  ;;  %v806_v2 = vadd.f32 %v1570_v24, %v773_v62  ;;  %v817_v3 = vmax.f32 %v791_v58, 0.0 }
 0x121   : > { %v818_v4 = vmax.f32 %v792_v0, 0.0  ;;  %v832_v5 = vmax.f32 %v806_v2, 0.0 }
 0x122   : > { %v599_v6 = vpop.f32.mrb[20].mxu0  ;;  %v655_v7 = vpop.f32.mrb[20].mxu1 }
 0x123   : > { %v1198_v8 = vpack.c.bf16 %v818_v4, %v817_v3  ;;  %v1233_v9 = vpack.c.bf16 %v832_v5, %v831_v1  ;;  %v760_v10 = vmul.f32 %v1565_v22, %v599_v6  ;;  %v1311_v11 = vpop.f32.mrb[21].mxu0  ;;  %v774_v12 = vmul.f32 %v1565_v22, %v655_v7  ;;  %v1339_v13 = vpop.f32.mrb[21].mxu1 }
 0x124   : > { %v602_v14 = vpop.f32.mrb[22].mxu0  ;;  %v658_v15 = vpop.f32.mrb[22].mxu1 }
 0x125   : > { %1243 = vst [vmem:[%s1585_s24 + $0x20] sm:$0xff] %v1198_v8   ;;  %1250 = vst [vmem:[%s1585_s24 + $0x58] sm:$0xff] %v1233_v9   ;;  %v793_v16 = vadd.f32 %v1570_v24, %v760_v10  ;;  %v761_v17 = vmul.f32 %v1565_v22, %v602_v14  ;;  %v1312_v18 = vpop.f32.mrb[23].mxu0  ;;  %v807_v19 = vadd.f32 %v1570_v24, %v774_v12  ;;  %v1340_v21 = vpop.f32.mrb[23].mxu1 }
 0x126   : > { %v775_v20 = vmul.f32 %v1565_v22, %v658_v15 }
 0x127   : > { %v794_v23 = vadd.f32 %v1570_v24, %v761_v17  ;;  %v833_v25 = vmax.f32 %v807_v19, 0.0  ;;  %v819_v27 = vmax.f32 %v793_v16, 0.0 }
 0x128   : > { %v808_v26 = vadd.f32 %v1570_v24, %v775_v20 }
 0x129   : > { %v820_v28 = vmax.f32 %v794_v23, 0.0 }
 0x12a   : > { %v834_v29 = vmax.f32 %v808_v26, 0.0  ;;  %v607_v30 = vpop.f32.mrb[24].mxu0 }
 0x12b   : > { %v1203_v31 = vpack.c.bf16 %v820_v28, %v819_v27  ;;  %v762_v33 = vmul.f32 %v1565_v22, %v607_v30  ;;  %v1315_v34 = vpop.f32.mrb[25].mxu0 }
 0x12c   : > { %v1238_v32 = vpack.c.bf16 %v834_v29, %v833_v25  ;;  %v610_v35 = vpop.f32.mrb[26].mxu0 }
 0x12d   : > { %1244 = vst [vmem:[%s1585_s24 + $0x28] sm:$0xff] %v1203_v31   ;;  %v795_v36 = vadd.f32 %v1570_v24, %v762_v33  ;;  %v763_v37 = vmul.f32 %v1565_v22, %v610_v35  ;;  %v1316_v38 = vpop.f32.mrb[27].mxu0 }
 0x12e   : > { %1251 = vst [vmem:[%s1585_s24 + $0x60] sm:$0xff] %v1238_v32  }
 0x12f   : > { %v796_v39 = vadd.f32 %v1570_v24, %v763_v37  ;;  %v821_v40 = vmax.f32 %v795_v36, 0.0 }
 0x131   : > { %v822_v41 = vmax.f32 %v796_v39, 0.0 }
 0x133   : > { %v1208_v42 = vpack.c.bf16 %v822_v41, %v821_v40 }
 0x135   : > { %1245 = vst [vmem:[%s1585_s24 + $0x30] sm:$0xff] %v1208_v42  }
 0x136 PF: > { %s14_s17 = sadd.s32 1, %s1426_s17   ;;  %s1658_s15 = smov %s1422_s16 }
 0x137   : > { %p11_p5 = scmp.ge.s32.totalorder %s14_s17, 6   ;;  %s1659_s16 = smov %s1661_s18 }
 0x139   :  { %13 = sbr.rel (!%p11_p5) target bundleno = 2 (0x2), region = 83 }

// kernel: _lambda_.12
= control target key start
LH: loop header
LB: loop body
LE: loop exit
PB: predicated region body
PF: predicated region fallthrough
CT: control target
= control target key end

     0   :  { %s3669_s15 = smov 0   ;;  %s3671_s16 = smov 0   ;;  %s4282_s0 = inlined_call_operand.vmem [shape: bf16[224,1664], index: 0, kind: input, shape index: {}]   ;;  %s4283_s1 = inlined_call_operand.vmem [shape: bf16[1664,128], index: 1, kind: input, shape index: {}]   ;;  %s4284_s2 = inlined_call_operand.vmem [shape: f32[1,128], index: 2, kind: input, shape index: {}]   ;;  %s4285_s3 = inlined_call_operand.vmem [shape: f32[1,128], index: 3, kind: input, shape index: {}]   ;;  %s4286_s4 = inlined_call_operand.vmem [shape: bf16[224,128], index: 4, kind: output, shape index: {}]  }
   0x1   :  { %s3673_s17 = smov 0  }
   0x2 LB: > { %s33_s18 = sadd.s32 1, %s3636_s16  ;;  %p2660_p0 = scmp.ge.s32.totalorder %s3640_s17, 1  ;;  %s3640_s17 = sphi %s3673_s17, %s14_s17   ;;  %s3636_s16 = sphi %s3671_s16, %s4288_s16   ;;  %s3632_s15 = sphi %s3669_s15, %s4287_s15  }
   0x3   : > { %p35_p1 = scmp.ge.s32.totalorder %s33_s18, 2  ;;  %p224_p2 = scmp.lt.s32.totalorder %s3640_s17, 3 }
   0x5   : > { %s4290_s18 = smov (%p35_p1, %s33_s18), 0  ;;  %p225_p3 = pnand %p2660_p0, %p224_p2 }
   0x6   : > { %v3381_v0 = vld [vmem:[%s4283_s1 + $0x40] sm:$0xff] (!%p225_p3)   ;;  %s272_s21 = smul.u32 (!%p225_p3), 14, %s3632_s15  ;;  %v3383_v2 = vld [vmem:[%s4283_s1 + $0x48] sm:$0xff] (!%p225_p3)   ;;  %v3385_v4 = vld [vmem:[%s4283_s1 + $0x50] sm:$0xff] (!%p225_p3)   ;;  %vm3643_vm0 = vmmov (!%p225_p3), 0  }
   0x7   : > { %228 = sbr.rel (%p225_p3) target bundleno = 461 (0x1cd), region = 36  ;;  %v3382_v1 = vld [vmem:[%s4283_s1] sm:$0xff] (!%p225_p3)   ;;  %3338 = vmatprep.subr.bf16.mxu1 (!%p225_p3), %v3381_v0  ;;  %2931 = vmatprep.subr.bf16.mxu0 (!%p225_p3), %v3381_v0  ;;  %v3384_v3 = vld [vmem:[%s4283_s1 + $0x8] sm:$0xff] (!%p225_p3)   ;;  %v3386_v5 = vld [vmem:[%s4283_s1 + $0x10] sm:$0xff] (!%p225_p3)  }
   0x8   : > { %p274_p4 = scmp.lt.s32.totalorder (!%p225_p3), %s272_s21, 27  ;;  %3346 = vmatpush3.bf16.msra.mxu1 (!%p225_p3), %v3382_v1  ;;  %2932 = vmatpush3.bf16.msra.mxu0 (!%p225_p3), %v3382_v1  ;;  %v3387_v6 = vld [vmem:[%s4283_s1 + $0x58] sm:$0xff] (!%p225_p3)   ;;  %v3389_v8 = vld [vmem:[%s4283_s1 + $0x60] sm:$0xff] (!%p225_p3)   ;;  %v3391_v10 = vld [vmem:[%s4283_s1 + $0x68] sm:$0xff] (!%p225_p3)  }
   0x9   : > { %3339 = vmatprep.subr.bf16.mxu1 (!%p225_p3), %v3383_v2  ;;  %2933 = vmatprep.subr.bf16.mxu0 (!%p225_p3), %v3383_v2  ;;  %v3388_v7 = vld [vmem:[%s4283_s1 + $0x18] sm:$0xff] (!%p225_p3)   ;;  %v3390_v9 = vld [vmem:[%s4283_s1 + $0x20] sm:$0xff] (!%p225_p3)   ;;  %v3392_v12 = vld [vmem:[%s4283_s1 + $0x28] sm:$0xff] (!%p225_p3)  }
   0xa   : > { %v3393_v14 = vld [vmem:[%s4283_s1 + $0x70] sm:$0xff] (!%p225_p3)   ;;  %v3395_v16 = vld [vmem:[%s4283_s1 + $0x78] sm:$0xff] (!%p225_p3)   ;;  %v3400_v18 = vld [vmem:[%s4283_s1 + $0xc0] sm:$0xff] (!%p225_p3)  }
   0xb   : > { %v3394_v15 = vld [vmem:[%s4283_s1 + $0x30] sm:$0xff] (!%p225_p3)   ;;  %v3396_v17 = vld [vmem:[%s4283_s1 + $0x38] sm:$0xff] (!%p225_p3)   ;;  %v3405_v21 = vld [vmem:[%s4283_s1 + $0x140] sm:$0xff] (!%p225_p3)  }
   0xc   : > { %3347 = vmatpush3.bf16.msra.mxu1 (!%p225_p3), %v3384_v3  ;;  %2934 = vmatpush3.bf16.msra.mxu0 (!%p225_p3), %v3384_v3  ;;  %v3404_v22 = vld [vmem:[%s4283_s1 + $0x80] sm:$0xff] (!%p225_p3)   ;;  %v3407_v24 = vld [vmem:[%s4283_s1 + $0xc8] sm:$0xff] (!%p225_p3)   ;;  %v3411_v30 = vld [vmem:[%s4283_s1 + $0xd0] sm:$0xff] (!%p225_p3)  }
   0xd   : > { %3340 = vmatprep.subr.bf16.mxu1 (!%p225_p3), %v3385_v4  ;;  %2935 = vmatprep.subr.bf16.mxu0 (!%p225_p3), %v3385_v4  ;;  %v3406_v23 = vld [vmem:[%s4283_s1 + $0x100] sm:$0xff] (!%p225_p3)   ;;  %v3409_v25 = vld [vmem:[%s4283_s1 + $0x148] sm:$0xff] (!%p225_p3)   ;;  %v3416_v31 = vld [vmem:[%s4283_s1 + $0x150] sm:$0xff] (!%p225_p3)  }
   0xe   : > { %s4292_s21 = smov (!%p274_p4, %s272_s21), 27  ;;  %v3408_v27 = vld [vmem:[%s4283_s1 + $0x88] sm:$0xff]   ;;  %v3414_v32 = vld [vmem:[%s4283_s1 + $0x90] sm:$0xff]   ;;  %v3418_v36 = vld [vmem:[%s4283_s1 + $0xd8] sm:$0xff]  }
   0xf   : > { %s3354_s8 = smul.u32 52, %s4292_s21  ;;  %v3410_v29 = vld [vmem:[%s4283_s1 + $0x108] sm:$0xff]   ;;  %v3417_v35 = vld [vmem:[%s4283_s1 + $0x110] sm:$0xff]   ;;  %v3423_v37 = vld [vmem:[%s4283_s1 + $0x158] sm:$0xff]   ;;  %s2662_s24 = sshll.u32 %s4292_s21, 2 }
  0x10   : > { %3348 = vmatpush3.bf16.msra.mxu1 %v3386_v5  ;;  %2936 = vmatpush3.bf16.msra.mxu0 %v3386_v5  ;;  %v3421_v38 = vld [vmem:[%s4283_s1 + $0x98] sm:$0xff]   ;;  %v3425_v41 = vld [vmem:[%s4283_s1 + $0xe0] sm:$0xff]   ;;  %v3432_v48 = vld [vmem:[%s4283_s1 + $0xe8] sm:$0xff]   ;;  %s4230_s27 = scalar_lea.vmem %s4286_s4, %s2662_s24 }
  0x11   : > { %3341 = vmatprep.subr.bf16.mxu1 %v3387_v6  ;;  %2937 = vmatprep.subr.bf16.mxu0 %v3387_v6  ;;  %s3720_s15 = scalar_lea.vmem %s4282_s0, %s3354_s8  ;;  %v3424_v39 = vld [vmem:[%s4283_s1 + $0x118] sm:$0xff]   ;;  %v3430_v42 = vld [vmem:[%s4283_s1 + $0x160] sm:$0xff]   ;;  %v3437_v49 = vld [vmem:[%s4283_s1 + $0x168] sm:$0xff]  }
  0x12   : > { %v3399_v11 = vld [vmem:[%s3720_s15 + $0x1a4] ss:$52 sps:$4 sm:$0xff]   ;;  %v3397_v19 = vld [vmem:[%s3720_s15 + $0x1a0] ss:$52 sps:$4 sm:$0xff]   ;;  %v3415_v33 = vld [vmem:[%s3720_s15 + $0x68] ss:$52 sps:$4 sm:$0xff]  }
  0x13   : > { %v3403_v13 = vld [vmem:[%s3720_s15 + $0x4] ss:$52 sps:$4 sm:$0xff]   ;;  %1797 = vmatprep.mubr.bf16.mxu1 %v3399_v11  ;;  %v3401_v20 = vld [vmem:[%s3720_s15] ss:$52 sps:$4 sm:$0xff]   ;;  %v3422_v34 = vld [vmem:[%s3720_s15 + $0x208] ss:$52 sps:$4 sm:$0xff]  }
  0x14   : > { %3349 = vmatpush3.bf16.msra.mxu1 %v3388_v7  ;;  %2938 = vmatpush3.bf16.msra.mxu0 %v3388_v7  ;;  %v3412_v26 = vld [vmem:[%s3720_s15 + $0x6c] ss:$52 sps:$4 sm:$0xff]   ;;  %v3426_v40 = vld [vmem:[%s3720_s15 + $0xd4] ss:$52 sps:$4 sm:$0xff]   ;;  %v3429_v45 = vld [vmem:[%s3720_s15 + $0xd0] ss:$52 sps:$4 sm:$0xff]  }
  0x15   : > { %3342 = vmatprep.subr.bf16.mxu1 %v3389_v8  ;;  %2939 = vmatprep.subr.bf16.mxu0 %v3389_v8  ;;  %v3419_v28 = vld [vmem:[%s3720_s15 + $0x20c] ss:$52 sps:$4 sm:$0xff]   ;;  %v3433_v43 = vld [vmem:[%s3720_s15 + $0x274] ss:$52 sps:$4 sm:$0xff]   ;;  %v3436_v47 = vld [vmem:[%s3720_s15 + $0x270] ss:$52 sps:$4 sm:$0xff]  }
  0x16   : > { %1765 = vmatprep.mubr.bf16.mxu0 %v3403_v13  ;;  %v3428_v44 = vld [vmem:[%s4283_s1 + $0xa0] sm:$0xff]   ;;  %v3435_v50 = vld [vmem:[%s4283_s1 + $0xa8] sm:$0xff]   ;;  %v3440_v51 = vld [vmem:[%s3720_s15 + $0x13c] ss:$52 sps:$4 sm:$0xff]  }
  0x17   : > { %v3431_v46 = vld [vmem:[%s4283_s1 + $0x120] sm:$0xff]   ;;  %v3438_v52 = vld [vmem:[%s4283_s1 + $0x128] sm:$0xff]   ;;  %v3439_v53 = vld [vmem:[%s4283_s1 + $0xf0] sm:$0xff]  }
  0x18   : > { %3350 = vmatpush3.bf16.msra.mxu1 %v3390_v9  ;;  %2940 = vmatpush3.bf16.msra.mxu0 %v3390_v9  ;;  %v3444_v54 = vld [vmem:[%s4283_s1 + $0x170] sm:$0xff]   ;;  %v3443_v56 = vld [vmem:[%s3720_s15 + $0x138] ss:$52 sps:$4 sm:$0xff]   ;;  %v3453_v63 = vld [vmem:[%s4283_s1 + $0x1c0] sm:$0xff]  }
  0x19   : > { %3343 = vmatprep.subr.bf16.mxu1 %v3391_v10  ;;  %2941 = vmatprep.subr.bf16.mxu0 %v3391_v10  ;;  %v3442_v55 = vld [vmem:[%s4283_s1 + $0xb0] sm:$0xff]   ;;  %v3446_v58 = vld [vmem:[%s4283_s1 + $0xf8] sm:$0xff]   ;;  %v3451_v61 = vld [vmem:[%s3720_s15 + $0xc] ss:$52 sps:$4 sm:$0xff]  }
  0x1a   : > { %v3445_v57 = vld [vmem:[%s4283_s1 + $0x130] sm:$0xff]   ;;  %v3448_v59 = vld [vmem:[%s4283_s1 + $0x178] sm:$0xff]   ;;  %v3457_v3 = vld [vmem:[%s4283_s1 + $0x180] sm:$0xff]  }
  0x1b   : > { %v3447_v60 = vld [vmem:[%s4283_s1 + $0xb8] sm:$0xff]   ;;  %v3454_v1 = vld [vmem:[%s3720_s15 + $0x10] ss:$52 sps:$4 sm:$0xff]   ;;  %v3456_v2 = vld [vmem:[%s3720_s15 + $0x14] ss:$52 sps:$4 sm:$0xff]  }
  0x1c   : > { %3351 = vmatpush3.bf16.msra.mxu1 %v3392_v12  ;;  %2942 = vmatpush3.bf16.msra.mxu0 %v3392_v12  ;;  %v3452_v62 = vld [vmem:[%s4283_s1 + $0x138] sm:$0xff]   ;;  %v3458_v4 = vld [vmem:[%s4283_s1 + $0x240] sm:$0xff]   ;;  %v3460_v6 = vld [vmem:[%s3720_s15 + $0x74] ss:$52 sps:$4 sm:$0xff]  }
  0x1d   : > { %3344 = vmatprep.subr.bf16.mxu1 %v3393_v14  ;;  %2943 = vmatprep.subr.bf16.mxu0 %v3393_v14  ;;  %v3449_v0 = vld [vmem:[%s3720_s15 + $0x8] ss:$52 sps:$4 sm:$0xff]   ;;  %v3459_v5 = vld [vmem:[%s4283_s1 + $0x200] sm:$0xff]   ;;  %v3467_v11 = vld [vmem:[%s3720_s15 + $0x78] ss:$52 sps:$4 sm:$0xff]  }
  0x1e   : > { %v3462_v7 = vld [vmem:[%s4283_s1 + $0x1c8] sm:$0xff]   ;;  %v3463_v9 = vld [vmem:[%s3720_s15 + $0x70] ss:$52 sps:$4 sm:$0xff]  }
  0x1f   : > { %v3464_v8 = vld [vmem:[%s4283_s1 + $0x188] sm:$0xff]   ;;  %v3465_v10 = vld [vmem:[%s3720_s15 + $0x7c] ss:$52 sps:$4 sm:$0xff]  }
  0x20   : > { %3352 = vmatpush3.bf16.msra.mxu1 %v3394_v15  ;;  %2944 = vmatpush3.bf16.msra.mxu0 %v3394_v15  ;;  %v3468_v12 = vld [vmem:[%s4283_s1 + $0x248] sm:$0xff]   ;;  %v3470_v14 = vld [vmem:[%s4283_s1 + $0x1d0] sm:$0xff]  }
  0x21   : > { %3345 = vmatprep.subr.bf16.mxu1 %v3395_v16  ;;  %2945 = vmatprep.subr.bf16.mxu0 %v3395_v16  ;;  %v3469_v13 = vld [vmem:[%s4283_s1 + $0x208] sm:$0xff]   ;;  %v3471_v15 = vld [vmem:[%s3720_s15 + $0xdc] ss:$52 sps:$4 sm:$0xff]  }
  0x22   : > { %v3473_v16 = vld [vmem:[%s4283_s1 + $0x190] sm:$0xff]  }
  0x24   : > { %3353 = vmatpush3.bf16.msra.mxu1 %v3396_v17  ;;  %2946 = vmatpush3.bf16.msra.mxu0 %v3396_v17  ;;  %v3475_v17 = vld [vmem:[%s3720_s15 + $0xe4] ss:$52 sps:$4 sm:$0xff]  }
  0x25   : > { %2989 = vmatprep.subr.bf16.mxu1 %v3400_v18  ;;  %3047 = vmatprep.subr.bf16.mxu0 %v3405_v21  ;;  %v3474_v18 = vld [vmem:[%s3720_s15 + $0xd8] ss:$52 sps:$4 sm:$0xff]   ;;  %v3479_v21 = vld [vmem:[%s4283_s1 + $0x210] sm:$0xff]  }
  0x27   : > { %1798 = vmatmul.mubr.bf16.vlgmr.msra.gmra.mrb[0].mxu1 %v3397_v19  ;;  %1766 = vmatmul.mubr.bf16.vlgmr.msra.gmra.mrb[0].mxu0 %v3401_v20  ;;  %v3477_v19 = vld [vmem:[%s3720_s15 + $0xe0] ss:$52 sps:$4 sm:$0xff]  }
  0x28   : > { %2990 = vmatpush3.bf16.msra.mxu1 %v3404_v22  ;;  %3048 = vmatpush3.bf16.msra.mxu0 %v3406_v23  ;;  %v3478_v20 = vld [vmem:[%s4283_s1 + $0x250] sm:$0xff]   ;;  %v3480_v22 = vld [vmem:[%s4283_s1 + $0x1d8] sm:$0xff]  }
  0x29   : > { %2991 = vmatprep.subr.bf16.mxu1 %v3407_v24  ;;  %3049 = vmatprep.subr.bf16.mxu0 %v3409_v25  ;;  %v3481_v23 = vld [vmem:[%s4283_s1 + $0x198] sm:$0xff]   ;;  %v3485_v25 = vld [vmem:[%s3720_s15 + $0x14c] ss:$52 sps:$4 sm:$0xff]  }
  0x2a   : > { %1773 = vmatprep.mubr.bf16.mxu0 %v3412_v26  ;;  %1805 = vmatprep.mubr.bf16.mxu1 %v3419_v28  ;;  %v3482_v24 = vld [vmem:[%s3720_s15 + $0x144] ss:$52 sps:$4 sm:$0xff]   ;;  %v3484_v28 = vld [vmem:[%s3720_s15 + $0x140] ss:$52 sps:$4 sm:$0xff]  }
  0x2b   : > { %v3488_v26 = vld [vmem:[%s4283_s1 + $0x258] sm:$0xff]  }
  0x2c   : > { %2992 = vmatpush3.bf16.msra.mxu1 %v3408_v27  ;;  %3050 = vmatpush3.bf16.msra.mxu0 %v3410_v29  ;;  %v3489_v27 = vld [vmem:[%s4283_s1 + $0x218] sm:$0xff]   ;;  %v3490_v29 = vld [vmem:[%s4283_s1 + $0x1e0] sm:$0xff]  }
  0x2d   : > { %2993 = vmatprep.subr.bf16.mxu1 %v3411_v30  ;;  %3051 = vmatprep.subr.bf16.mxu0 %v3416_v31  ;;  %v3491_v30 = vld [vmem:[%s4283_s1 + $0x1a0] sm:$0xff]   ;;  %v3487_v31 = vld [vmem:[%s3720_s15 + $0x148] ss:$52 sps:$4 sm:$0xff]  }
  0x2f   : > { %1774 = vmatmul.mubr.bf16.gmra.mrb[4].mxu0 %v3415_v33  ;;  %1806 = vmatmul.mubr.bf16.gmra.mrb[4].mxu1 %v3422_v34  ;;  %v3495_v33 = vld [vmem:[%s3720_s15 + $0x1b4] ss:$52 sps:$4 sm:$0xff]   ;;  %v3497_v34 = vld [vmem:[%s4283_s1 + $0x260] sm:$0xff]  }
  0x30   : > { %2994 = vmatpush3.bf16.msra.mxu1 %v3414_v32  ;;  %3052 = vmatpush3.bf16.msra.mxu0 %v3417_v35  ;;  %v3492_v32 = vld [vmem:[%s3720_s15 + $0x1ac] ss:$52 sps:$4 sm:$0xff]  }
  0x31   : > { %2995 = vmatprep.subr.bf16.mxu1 %v3418_v36  ;;  %3053 = vmatprep.subr.bf16.mxu0 %v3423_v37  ;;  %v3499_v35 = vld [vmem:[%s4283_s1 + $0x220] sm:$0xff]   ;;  %v3500_v36 = vld [vmem:[%s4283_s1 + $0x1e8] sm:$0xff]  }
  0x32   : > { %1781 = vmatprep.mubr.bf16.mxu0 %v3426_v40  ;;  %1813 = vmatprep.mubr.bf16.mxu1 %v3433_v43  ;;  %v3494_v37 = vld [vmem:[%s3720_s15 + $0x1a8] ss:$52 sps:$4 sm:$0xff]  }
  0x33   : > { %v3502_v40 = vld [vmem:[%s3720_s15 + $0x214] ss:$52 sps:$4 sm:$0xff]  }
  0x34   : > { %2996 = vmatpush3.bf16.msra.mxu1 %v3421_v38  ;;  %3054 = vmatpush3.bf16.msra.mxu0 %v3424_v39  ;;  %v3501_v38 = vld [vmem:[%s4283_s1 + $0x1a8] sm:$0xff]   ;;  %v3498_v39 = vld [vmem:[%s3720_s15 + $0x1b0] ss:$52 sps:$4 sm:$0xff]  }
  0x35   : > { %2997 = vmatprep.subr.bf16.mxu1 %v3425_v41  ;;  %3055 = vmatprep.subr.bf16.mxu0 %v3430_v42  ;;  %v3505_v41 = vld [vmem:[%s4283_s1 + $0x268] sm:$0xff]   ;;  %v3506_v42 = vld [vmem:[%s3720_s15 + $0x21c] ss:$52 sps:$4 sm:$0xff]  }
  0x36   : > { %v3508_v43 = vld [vmem:[%s4283_s1 + $0x228] sm:$0xff]  }
  0x37   : > { %1782 = vmatmul.mubr.bf16.gmra.mrb[8].mxu0 %v3429_v45  ;;  %1814 = vmatmul.mubr.bf16.gmra.mrb[8].mxu1 %v3436_v47  ;;  %v3511_v45 = vld [vmem:[%s4283_s1 + $0x1b0] sm:$0xff]   ;;  %v3509_v47 = vld [vmem:[%s3720_s15 + $0x218] ss:$52 sps:$4 sm:$0xff]  }
  0x38   : > { %2998 = vmatpush3.bf16.msra.mxu1 %v3428_v44  ;;  %3056 = vmatpush3.bf16.msra.mxu0 %v3431_v46  ;;  %v3510_v44 = vld [vmem:[%s4283_s1 + $0x1f0] sm:$0xff]  }
  0x39   : > { %2999 = vmatprep.subr.bf16.mxu1 %v3432_v48  ;;  %3057 = vmatprep.subr.bf16.mxu0 %v3437_v49  ;;  %v3504_v46 = vld [vmem:[%s3720_s15 + $0x210] ss:$52 sps:$4 sm:$0xff]  }
  0x3a   : > { %1789 = vmatprep.mubr.bf16.mxu0 %v3440_v51  ;;  %1854 = vmatprep.mubr.bf16.mxu1 %v3451_v61  ;;  %v3512_v48 = vld [vmem:[%s3720_s15 + $0x27c] ss:$52 sps:$4 sm:$0xff]   ;;  %v3517_v51 = vld [vmem:[%s3720_s15 + $0x284] ss:$52 sps:$4 sm:$0xff]   ;;  %v3642_v61 = vmov 0.0  }
  0x3b   : > { %v3514_v49 = vld [vmem:[%s4283_s1 + $0x270] sm:$0xff]  }
  0x3c   : > { %3000 = vmatpush3.bf16.msra.mxu1 %v3435_v50  ;;  %3058 = vmatpush3.bf16.msra.mxu0 %v3438_v52  ;;  %v3516_v50 = vld [vmem:[%s4283_s1 + $0x230] sm:$0xff]   ;;  %v3519_v52 = vld [vmem:[%s4283_s1 + $0x1f8] sm:$0xff]  }
  0x3d   : > { %3001 = vmatprep.subr.bf16.mxu1 %v3439_v53  ;;  %3059 = vmatprep.subr.bf16.mxu0 %v3444_v54  ;;  %v3521_v53 = vld [vmem:[%s4283_s1 + $0x1b8] sm:$0xff]  }
  0x3e   : > { %v3522_v54 = vld [vmem:[%s4283_s1 + $0x278] sm:$0xff]  }
  0x3f   : > { %1790 = vmatmul.mubr.bf16.gmra.mrb[12].mxu0 %v3443_v56  ;;  %v3520_v56 = vld [vmem:[%s3720_s15 + $0x280] ss:$52 sps:$4 sm:$0xff]  }
  0x40   : > { %3002 = vmatpush3.bf16.msra.mxu1 %v3442_v55  ;;  %3060 = vmatpush3.bf16.msra.mxu0 %v3445_v57  ;;  %v3515_v55 = vld [vmem:[%s3720_s15 + $0x278] ss:$52 sps:$4 sm:$0xff]  }
  0x41   : > { %3003 = vmatprep.subr.bf16.mxu1 %v3446_v58  ;;  %3061 = vmatprep.subr.bf16.mxu0 %v3448_v59  ;;  %v3526_v57 = vld [vmem:[%s4283_s1 + $0x238] sm:$0xff]   ;;  %v3527_v58 = vld [vmem:[%s4283_s1 + $0x2c0] sm:$0xff]  }
  0x42   : > { %1943 = vmatprep.mubr.bf16.mxu0 %v3456_v2  ;;  %v3525_v59 = vld [vmem:[%s3720_s15 + $0x1c] ss:$52 sps:$4 sm:$0xff]   ;;  %v3533_v2 = vld [vmem:[%s3720_s15 + $0x84] ss:$52 sps:$4 sm:$0xff]  }
  0x44   : > { %3004 = vmatpush3.bf16.msra.mxu1 %v3447_v60  ;;  %3062 = vmatpush3.bf16.msra.mxu0 %v3452_v62  ;;  %v3530_v60 = vld [vmem:[%s3720_s15 + $0x24] ss:$52 sps:$4 sm:$0xff]  }
  0x45   : > { %3105 = vmatprep.subr.bf16.mxu1 %v3453_v63  ;;  %3163 = vmatprep.subr.bf16.mxu0 %v3458_v4  ;;  %v3523_v62 = vld [vmem:[%s3720_s15 + $0x18] ss:$52 sps:$4 sm:$0xff]   ;;  %v3528_v63 = vld [vmem:[%s3720_s15 + $0x20] ss:$52 sps:$4 sm:$0xff]  }
  0x46   : > { %v3538_v4 = vld [vmem:[%s3720_s15 + $0x8c] ss:$52 sps:$4 sm:$0xff]  }
  0x47   : > { %1855 = vmatmul.mubr.bf16.vlgmr.msra.gmra.mrb[12].mxu1 %v3449_v0  ;;  %1944 = vmatmul.mubr.bf16.vlgmr.msra.gmra.mrb[16].mxu0 %v3454_v1  ;;  %v3531_v0 = vld [vmem:[%s4283_s1 + $0x280] sm:$0xff]  }
  0x48   : > { %3106 = vmatpush3.bf16.msra.mxu1 %v3457_v3  ;;  %3164 = vmatpush3.bf16.msra.mxu0 %v3459_v5  ;;  %v3532_v1 = vld [vmem:[%s4283_s1 + $0x300] sm:$0xff]   ;;  %v3535_v3 = vld [vmem:[%s4283_s1 + $0x2c8] sm:$0xff]  }
  0x49   : > { %1862 = vmatprep.mubr.bf16.mxu1 %v3460_v6  ;;  %3107 = vmatprep.subr.bf16.mxu1 %v3462_v7  ;;  %v3537_v5 = vld [vmem:[%s4283_s1 + $0x288] sm:$0xff]   ;;  %v3536_v7 = vld [vmem:[%s3720_s15 + $0x80] ss:$52 sps:$4 sm:$0xff]  }
  0x4a   : > { %1951 = vmatprep.mubr.bf16.mxu0 %v3465_v10  ;;  %3165 = vmatprep.subr.bf16.mxu0 %v3468_v12  ;;  %v3541_v6 = vld [vmem:[%s4283_s1 + $0x308] sm:$0xff]  }
  0x4b   : > { %v3543_v10 = vld [vmem:[%s3720_s15 + $0xec] ss:$52 sps:$4 sm:$0xff]   ;;  %v3547_v12 = vld [vmem:[%s3720_s15 + $0xf4] ss:$52 sps:$4 sm:$0xff]  }
  0x4c   : > { %3108 = vmatpush3.bf16.msra.mxu1 %v3464_v8  ;;  %3166 = vmatpush3.bf16.msra.mxu0 %v3469_v13  ;;  %v3540_v8 = vld [vmem:[%s3720_s15 + $0x88] ss:$52 sps:$4 sm:$0xff]   ;;  %v3550_v13 = vld [vmem:[%s4283_s1 + $0x310] sm:$0xff]  }
  0x4d   : > { %3109 = vmatprep.subr.bf16.mxu1 %v3470_v14  ;;  %3167 = vmatprep.subr.bf16.mxu0 %v3478_v20  ;;  %v3551_v14 = vld [vmem:[%s4283_s1 + $0x2d8] sm:$0xff]   ;;  %v3553_v20 = vld [vmem:[%s3720_s15 + $0x154] ss:$52 sps:$4 sm:$0xff]  }
  0x4f   : > { %1863 = vmatmul.mubr.bf16.gmra.mrb[16].mxu1 %v3463_v9  ;;  %1952 = vmatmul.mubr.bf16.gmra.mrb[20].mxu0 %v3467_v11  ;;  %v3542_v9 = vld [vmem:[%s4283_s1 + $0x2d0] sm:$0xff]  }
  0x50   : > { %1870 = vmatprep.mubr.bf16.mxu1 %v3471_v15  ;;  %3110 = vmatpush3.bf16.msra.mxu1 %v3473_v16  ;;  %v3545_v11 = vld [vmem:[%s4283_s1 + $0x290] sm:$0xff]   ;;  %v3552_v15 = vld [vmem:[%s4283_s1 + $0x298] sm:$0xff]  }
  0x51   : > { %1959 = vmatprep.mubr.bf16.mxu0 %v3475_v17  ;;  %3168 = vmatpush3.bf16.msra.mxu0 %v3479_v21  ;;  %v3559_v16 = vld [vmem:[%s4283_s1 + $0x318] sm:$0xff]  }
  0x52   : > { %3111 = vmatprep.subr.bf16.mxu1 %v3480_v22  ;;  %3169 = vmatprep.subr.bf16.mxu0 %v3488_v26  ;;  %v3546_v17 = vld [vmem:[%s3720_s15 + $0xe8] ss:$52 sps:$4 sm:$0xff]   ;;  %v3561_v22 = vld [vmem:[%s4283_s1 + $0x2a0] sm:$0xff]   ;;  %v3558_v26 = vld [vmem:[%s3720_s15 + $0x158] ss:$52 sps:$4 sm:$0xff]  }
  0x53   : > { %v3556_v21 = vld [vmem:[%s3720_s15 + $0x15c] ss:$52 sps:$4 sm:$0xff]  }
  0x54   : > { %3112 = vmatpush3.bf16.msra.mxu1 %v3481_v23  ;;  %v3568_v23 = vld [vmem:[%s4283_s1 + $0x320] sm:$0xff]  }
  0x55   : > { %3170 = vmatpush3.bf16.msra.mxu0 %v3489_v27  ;;  %3113 = vmatprep.subr.bf16.mxu1 %v3490_v29  ;;  %v3570_v27 = vld [vmem:[%s4283_s1 + $0x2a8] sm:$0xff]  }
  0x56   : > { %3171 = vmatprep.subr.bf16.mxu0 %v3497_v34  ;;  %v3576_v29 = vld [vmem:[%s4283_s1 + $0x328] sm:$0xff]  }
  0x57   : > { %1871 = vmatmul.mubr.bf16.gmra.mrb[20].mxu1 %v3474_v18  ;;  %1960 = vmatmul.mubr.bf16.gmra.mrb[24].mxu0 %v3477_v19  ;;  %v3560_v18 = vld [vmem:[%s4283_s1 + $0x2e0] sm:$0xff]   ;;  %v3564_v34 = vld [vmem:[%s3720_s15 + $0x1b8] ss:$52 sps:$4 sm:$0xff]  }
  0x58   : > { %1878 = vmatprep.mubr.bf16.mxu1 %v3482_v24  ;;  %1967 = vmatprep.mubr.bf16.mxu0 %v3485_v25  ;;  %v3549_v19 = vld [vmem:[%s3720_s15 + $0xf0] ss:$52 sps:$4 sm:$0xff]   ;;  %v3569_v24 = vld [vmem:[%s4283_s1 + $0x2e8] sm:$0xff]  }
  0x59   : > { %3114 = vmatpush3.bf16.msra.mxu1 %v3491_v30  ;;  %3172 = vmatpush3.bf16.msra.mxu0 %v3499_v35  ;;  %v3555_v25 = vld [vmem:[%s3720_s15 + $0x150] ss:$52 sps:$4 sm:$0xff]   ;;  %v3567_v35 = vld [vmem:[%s3720_s15 + $0x1c0] ss:$52 sps:$4 sm:$0xff]  }
  0x5a   : > { %3115 = vmatprep.subr.bf16.mxu1 %v3500_v36  ;;  %3173 = vmatprep.subr.bf16.mxu0 %v3505_v41  ;;  %v3578_v30 = vld [vmem:[%s4283_s1 + $0x2f0] sm:$0xff]   ;;  %v3586_v36 = vld [vmem:[%s4283_s1 + $0x2f8] sm:$0xff]  }
  0x5b   : > { %v3573_v41 = vld [vmem:[%s3720_s15 + $0x220] ss:$52 sps:$4 sm:$0xff]  }
  0x5d   : > { %3116 = vmatpush3.bf16.msra.mxu1 %v3501_v38  ;;  %3174 = vmatpush3.bf16.msra.mxu0 %v3508_v43  ;;  %v3571_v38 = vld [vmem:[%s3720_s15 + $0x224] ss:$52 sps:$4 sm:$0xff]   ;;  %v3580_v43 = vld [vmem:[%s3720_s15 + $0x28c] ss:$52 sps:$4 sm:$0xff]  }
  0x5e   : > { %3117 = vmatprep.subr.bf16.mxu1 %v3510_v44  ;;  %3175 = vmatprep.subr.bf16.mxu0 %v3514_v49  ;;  %v3584_v44 = vld [vmem:[%s3720_s15 + $0x294] ss:$52 sps:$4 sm:$0xff]   ;;  %v3593_v49 = vld [vmem:[%s3720_s15 + $0x30] ss:$52 sps:$4 sm:$0xff]  }
  0x5f   : > { %1879 = vmatmul.mubr.bf16.gmra.mrb[24].mxu1 %v3484_v28  ;;  %1968 = vmatmul.mubr.bf16.gmra.mrb[28].mxu0 %v3487_v31  ;;  %v3562_v28 = vld [vmem:[%s3720_s15 + $0x1bc] ss:$52 sps:$4 sm:$0xff]   ;;  %v3565_v31 = vld [vmem:[%s3720_s15 + $0x1c4] ss:$52 sps:$4 sm:$0xff]  }
  0x60   : > { %1886 = vmatprep.mubr.bf16.mxu1 %v3492_v32  ;;  %1975 = vmatprep.mubr.bf16.mxu0 %v3495_v33  ;;  %v3579_v32 = vld [vmem:[%s4283_s1 + $0x2b0] sm:$0xff]  }
  0x61   : > { %3118 = vmatpush3.bf16.msra.mxu1 %v3511_v45  ;;  %3176 = vmatpush3.bf16.msra.mxu0 %v3516_v50  ;;  %v3583_v33 = vld [vmem:[%s4283_s1 + $0x330] sm:$0xff]   ;;  %v3582_v45 = vld [vmem:[%s3720_s15 + $0x288] ss:$52 sps:$4 sm:$0xff]  }
  0x62   : > { %3119 = vmatprep.subr.bf16.mxu1 %v3519_v52  ;;  %3177 = vmatprep.subr.bf16.mxu0 %v3522_v54  ;;  %v3594_v50 = vld [vmem:[%s3720_s15 + $0x94] ss:$52 sps:$4 sm:$0xff]   ;;  %v3597_v52 = vld [vmem:[%s3720_s15 + $0x98] ss:$52 sps:$4 sm:$0xff]  }
  0x63   : > { %v3600_v54 = vld [vmem:[%s3720_s15 + $0xf8] ss:$52 sps:$4 sm:$0xff]  }
  0x65   : > { %3120 = vmatpush3.bf16.msra.mxu1 %v3521_v53  ;;  %3178 = vmatpush3.bf16.msra.mxu0 %v3526_v57  ;;  %v3598_v53 = vld [vmem:[%s3720_s15 + $0xfc] ss:$52 sps:$4 sm:$0xff]   ;;  %v3604_v57 = vld [vmem:[%s3720_s15 + $0x160] ss:$52 sps:$4 sm:$0xff]  }
  0x66   : > { %3221 = vmatprep.subr.bf16.mxu1 %v3527_v58  ;;  %3294 = vmatprep.subr.bf16.mxu0 %v3642_v61  ;;  %v3605_v58 = vld [vmem:[%s3720_s15 + $0x168] ss:$52 sps:$4 sm:$0xff]  }
  0x67   : > { %1887 = vmatmul.mubr.bf16.gmra.mrb[28].mxu1 %v3494_v37  ;;  %1976 = vmatmul.mubr.bf16.gmra.mrb[32].mxu0 %v3498_v39  ;;  %v3588_v37 = vld [vmem:[%s4283_s1 + $0x2b8] sm:$0xff]   ;;  %v3574_v39 = vld [vmem:[%s3720_s15 + $0x22c] ss:$52 sps:$4 sm:$0xff]  }
  0x68   : > { %1894 = vmatprep.mubr.bf16.mxu1 %v3502_v40  ;;  %1983 = vmatprep.mubr.bf16.mxu0 %v3506_v42  ;;  %v3592_v40 = vld [vmem:[%s4283_s1 + $0x338] sm:$0xff]  }
  0x69   : > { %v3577_v42 = vld [vmem:[%s3720_s15 + $0x228] ss:$52 sps:$4 sm:$0xff]  }
  0x6f   : > { %1895 = vmatmul.mubr.bf16.gmra.mrb[32].mxu1 %v3504_v46  ;;  %1984 = vmatmul.mubr.bf16.gmra.mrb[36].mxu0 %v3509_v47  ;;  %v3587_v46 = vld [vmem:[%s3720_s15 + $0x290] ss:$52 sps:$4 sm:$0xff]   ;;  %v3591_v47 = vld [vmem:[%s3720_s15 + $0x2c] ss:$52 sps:$4 sm:$0xff]  }
  0x70   : > { %1902 = vmatprep.mubr.bf16.mxu1 %v3512_v48  ;;  %1991 = vmatprep.mubr.bf16.mxu0 %v3517_v51  ;;  %v3589_v48 = vld [vmem:[%s3720_s15 + $0x28] ss:$52 sps:$4 sm:$0xff]   ;;  %v3596_v51 = vld [vmem:[%s3720_s15 + $0x90] ss:$52 sps:$4 sm:$0xff]  }
  0x77   : > { %1903 = vmatmul.mubr.bf16.gmra.mrb[36].mxu1 %v3515_v55  ;;  %1992 = vmatmul.mubr.bf16.gmra.mrb[40].mxu0 %v3520_v56  ;;  %v3601_v55 = vld [vmem:[%s3720_s15 + $0x100] ss:$52 sps:$4 sm:$0xff]   ;;  %v3602_v56 = vld [vmem:[%s3720_s15 + $0x164] ss:$52 sps:$4 sm:$0xff]  }
  0x78   : > { %2032 = vmatprep.mubr.bf16.mxu1 %v3525_v59  ;;  %2121 = vmatprep.mubr.bf16.mxu0 %v3530_v60  ;;  %v3606_v59 = vld [vmem:[%s3720_s15 + $0x1cc] ss:$52 sps:$4 sm:$0xff]   ;;  %v3608_v60 = vld [vmem:[%s3720_s15 + $0x1c8] ss:$52 sps:$4 sm:$0xff]  }
  0x7f   : > { %2033 = vmatmul.mubr.bf16.vlgmr.msra.gmra.mrb[40].mxu1 %v3523_v62  ;;  %2122 = vmatmul.mubr.bf16.vlgmr.msra.gmra.mrb[44].mxu0 %v3528_v63  ;;  %v3609_v62 = vld [vmem:[%s3720_s15 + $0x1d0] ss:$52 sps:$4 sm:$0xff]   ;;  %v3610_v63 = vld [vmem:[%s3720_s15 + $0x234] ss:$52 sps:$4 sm:$0xff]  }
  0x80   : > { %3222 = vmatpush3.bf16.msra.mxu1 %v3531_v0  ;;  %3295 = vmatpush3.bf16.msra.mxu0 %v3532_v1  ;;  %v3612_v0 = vld [vmem:[%s3720_s15 + $0x230] ss:$52 sps:$4 sm:$0xff]   ;;  %v3613_v1 = vld [vmem:[%s3720_s15 + $0x238] ss:$52 sps:$4 sm:$0xff]  }
  0x81   : > { %2040 = vmatprep.mubr.bf16.mxu1 %v3533_v2  ;;  %3223 = vmatprep.subr.bf16.mxu1 %v3535_v3  ;;  %v3614_v2 = vld [vmem:[%s3720_s15 + $0x29c] ss:$52 sps:$4 sm:$0xff]   ;;  %v3616_v3 = vld [vmem:[%s3720_s15 + $0x298] ss:$52 sps:$4 sm:$0xff]  }
  0x82   : > { %2129 = vmatprep.mubr.bf16.mxu0 %v3538_v4  ;;  %3296 = vmatprep.subr.bf16.mxu0 %v3642_v61  ;;  %v3617_v4 = vld [vmem:[%s3720_s15 + $0x2a0] ss:$52 sps:$4 sm:$0xff]  }
  0x84   : > { %3224 = vmatpush3.bf16.msra.mxu1 %v3537_v5  ;;  %3297 = vmatpush3.bf16.msra.mxu0 %v3541_v6 }
  0x85   : > { %3225 = vmatprep.subr.bf16.mxu1 %v3542_v9  ;;  %3298 = vmatprep.subr.bf16.mxu0 %v3642_v61 }
  0x87   : > { %2041 = vmatmul.mubr.bf16.gmra.mrb[44].mxu1 %v3536_v7  ;;  %2130 = vmatmul.mubr.bf16.gmra.mrb[48].mxu0 %v3540_v8 }
  0x88   : > { %2048 = vmatprep.mubr.bf16.mxu1 %v3543_v10  ;;  %3226 = vmatpush3.bf16.msra.mxu1 %v3545_v11 }
  0x89   : > { %2137 = vmatprep.mubr.bf16.mxu0 %v3547_v12  ;;  %3299 = vmatpush3.bf16.msra.mxu0 %v3550_v13 }
  0x8a   : > { %3227 = vmatprep.subr.bf16.mxu1 %v3551_v14  ;;  %3300 = vmatprep.subr.bf16.mxu0 %v3642_v61 }
  0x8c   : > { %3228 = vmatpush3.bf16.msra.mxu1 %v3552_v15 }
  0x8d   : > { %3301 = vmatpush3.bf16.msra.mxu0 %v3559_v16  ;;  %3229 = vmatprep.subr.bf16.mxu1 %v3560_v18 }
  0x8e   : > { %3302 = vmatprep.subr.bf16.mxu0 %v3642_v61 }
  0x8f   : > { %2049 = vmatmul.mubr.bf16.gmra.mrb[48].mxu1 %v3546_v17  ;;  %2138 = vmatmul.mubr.bf16.gmra.mrb[52].mxu0 %v3549_v19 }
  0x90   : > { %2056 = vmatprep.mubr.bf16.mxu1 %v3553_v20  ;;  %2145 = vmatprep.mubr.bf16.mxu0 %v3556_v21 }
  0x91   : > { %3230 = vmatpush3.bf16.msra.mxu1 %v3561_v22  ;;  %3303 = vmatpush3.bf16.msra.mxu0 %v3568_v23 }
  0x92   : > { %3231 = vmatprep.subr.bf16.mxu1 %v3569_v24  ;;  %3304 = vmatprep.subr.bf16.mxu0 %v3642_v61 }
  0x95   : > { %3232 = vmatpush3.bf16.msra.mxu1 %v3570_v27  ;;  %3305 = vmatpush3.bf16.msra.mxu0 %v3576_v29 }
  0x96   : > { %3233 = vmatprep.subr.bf16.mxu1 %v3578_v30  ;;  %3306 = vmatprep.subr.bf16.mxu0 %v3642_v61 }
  0x97   : > { %2057 = vmatmul.mubr.bf16.gmra.mrb[52].mxu1 %v3555_v25  ;;  %2146 = vmatmul.mubr.bf16.gmra.mrb[56].mxu0 %v3558_v26 }
  0x98   : > { %2064 = vmatprep.mubr.bf16.mxu1 %v3562_v28  ;;  %2153 = vmatprep.mubr.bf16.mxu0 %v3565_v31 }
  0x99   : > { %3234 = vmatpush3.bf16.msra.mxu1 %v3579_v32  ;;  %3307 = vmatpush3.bf16.msra.mxu0 %v3583_v33 }
  0x9a   : > { %3308 = vmatprep.subr.bf16.mxu0 %v3642_v61  ;;  %3235 = vmatprep.subr.bf16.mxu1 %v3586_v36 }
  0x9d   : > { %3236 = vmatpush3.bf16.msra.mxu1 %v3588_v37  ;;  %3309 = vmatpush3.bf16.msra.mxu0 %v3592_v40 }
  0x9f   : > { %2065 = vmatmul.mubr.bf16.gmra.mrb[56].mxu1 %v3564_v34  ;;  %2154 = vmatmul.mubr.bf16.gmra.mrb[60].mxu0 %v3567_v35 }
  0xa0   : > { %2072 = vmatprep.mubr.bf16.mxu1 %v3571_v38  ;;  %2161 = vmatprep.mubr.bf16.mxu0 %v3574_v39 }
  0xa7   : > { %2073 = vmatmul.mubr.bf16.gmra.mrb[60].mxu1 %v3573_v41  ;;  %2162 = vmatmul.mubr.bf16.gmra.mrb[64].mxu0 %v3577_v42 }
  0xa8   : > { %2080 = vmatprep.mubr.bf16.mxu1 %v3580_v43  ;;  %2169 = vmatprep.mubr.bf16.mxu0 %v3584_v44 }
  0xaf   : > { %2081 = vmatmul.mubr.bf16.gmra.mrb[64].mxu1 %v3582_v45  ;;  %2170 = vmatmul.mubr.bf16.gmra.mrb[68].mxu0 %v3587_v46 }
  0xb0   : > { %2210 = vmatprep.mubr.bf16.mxu1 %v3591_v47  ;;  %3310 = vmatprep.mubr.msk.bf16.mxu0 %vm3643_vm0, %v3642_v61 }
  0xb7   : > { %2211 = vmatmul.mubr.bf16.vlgmr.msra.gmra.mrb[68].mxu1 %v3589_v48  ;;  %3311 = vmatmul.mubr.bf16.vlgmr.msra.gmra.mrb[72].mxu0 %v3593_v49 }
  0xb8   : > { %2218 = vmatprep.mubr.bf16.mxu1 %v3594_v50  ;;  %3314 = vmatprep.mubr.msk.bf16.mxu0 %vm3643_vm0, %v3642_v61 }
  0xbf   : > { %2219 = vmatmul.mubr.bf16.gmra.mrb[72].mxu1 %v3596_v51  ;;  %3315 = vmatmul.mubr.bf16.gmra.mrb[76].mxu0 %v3597_v52 }
  0xc0   : > { %2226 = vmatprep.mubr.bf16.mxu1 %v3598_v53  ;;  %3318 = vmatprep.mubr.msk.bf16.mxu0 %vm3643_vm0, %v3642_v61 }
  0xc7   : > { %2227 = vmatmul.mubr.bf16.gmra.mrb[76].mxu1 %v3600_v54  ;;  %3319 = vmatmul.mubr.bf16.gmra.mrb[80].mxu0 %v3601_v55 }
  0xc8   : > { %2234 = vmatprep.mubr.bf16.mxu1 %v3602_v56  ;;  %3322 = vmatprep.mubr.msk.bf16.mxu0 %vm3643_vm0, %v3642_v61 }
  0xcf   : > { %2235 = vmatmul.mubr.bf16.gmra.mrb[80].mxu1 %v3604_v57  ;;  %3323 = vmatmul.mubr.bf16.gmra.mrb[84].mxu0 %v3605_v58 }
  0xd0   : > { %2242 = vmatprep.mubr.bf16.mxu1 %v3606_v59  ;;  %3326 = vmatprep.mubr.msk.bf16.mxu0 %vm3643_vm0, %v3642_v61 }
  0xd7   : > { %2243 = vmatmul.mubr.bf16.gmra.mrb[84].mxu1 %v3608_v60  ;;  %3327 = vmatmul.mubr.bf16.gmra.mrb[88].mxu0 %v3609_v62 }
  0xd8   : > { %2250 = vmatprep.mubr.bf16.mxu1 %v3610_v63  ;;  %3330 = vmatprep.mubr.msk.bf16.mxu0 %vm3643_vm0, %v3642_v61 }
  0xdf   : > { %2251 = vmatmul.mubr.bf16.gmra.mrb[88].mxu1 %v3612_v0  ;;  %3331 = vmatmul.mubr.bf16.gmra.mrb[92].mxu0 %v3613_v1 }
  0xe0   : > { %2258 = vmatprep.mubr.bf16.mxu1 %v3614_v2  ;;  %3334 = vmatprep.mubr.msk.bf16.mxu0 %vm3643_vm0, %v3642_v61 }
  0xe7   : > { %2259 = vmatmul.mubr.bf16.gmra.mrb[92].mxu1 %v3616_v3  ;;  %3335 = vmatmul.mubr.bf16.gmra.mrb[96].mxu0 %v3617_v4 }
  0xfa   : > { %v2971_v5 = vpop.f32.mrb[0].mxu1  ;;  %v2947_v6 = vpop.f32.mrb[0].mxu0 }
  0xfb   : > { %v2972_v7 = vpop.f32.mrb[1].mxu1  ;;  %v2948_v8 = vpop.f32.mrb[1].mxu0 }
  0xfc   : > { %v4120_v9 = vadd.f32 %v2972_v7, %v2971_v5  ;;  %v2974_v10 = vpop.f32.mrb[2].mxu1  ;;  %v2949_v11 = vadd.f32 %v2948_v8, %v2947_v6  ;;  %v2950_v12 = vpop.f32.mrb[2].mxu0 }
  0xfd   : > { %v2975_v13 = vpop.f32.mrb[3].mxu1  ;;  %v2951_v14 = vpop.f32.mrb[3].mxu0 }
  0xfe   : > { %v4122_v15 = vadd.f32 %v2975_v13, %v2974_v10  ;;  %v2952_v16 = vadd.f32 %v2951_v14, %v2950_v12 }
 0x102   : > { %v2953_v17 = vpop.f32.mrb[4].mxu0  ;;  %v2977_v61 = vpop.f32.mrb[4].mxu1 }
 0x103   : > { %v2954_v18 = vpop.f32.mrb[5].mxu0  ;;  %v2978_v19 = vpop.f32.mrb[5].mxu1 }
 0x104   : > { %v2955_v20 = vadd.f32 %v2954_v18, %v2953_v17  ;;  %v2956_v21 = vpop.f32.mrb[6].mxu0  ;;  %v4124_v22 = vadd.f32 %v2978_v19, %v2977_v61  ;;  %v2980_v23 = vpop.f32.mrb[6].mxu1 }
 0x105   : > { %v2957_v24 = vpop.f32.mrb[7].mxu0  ;;  %v2981_v25 = vpop.f32.mrb[7].mxu1 }
 0x106   : > { %v2958_v26 = vadd.f32 %v2957_v24, %v2956_v21  ;;  %v4126_v27 = vadd.f32 %v2981_v25, %v2980_v23 }
 0x10a   : > { %v2959_v28 = vpop.f32.mrb[8].mxu0  ;;  %v2983_v29 = vpop.f32.mrb[8].mxu1 }
 0x10b   : > { %v2960_v30 = vpop.f32.mrb[9].mxu0  ;;  %v2984_v31 = vpop.f32.mrb[9].mxu1 }
 0x10c   : > { %v2961_v32 = vadd.f32 %v2960_v30, %v2959_v28  ;;  %v2962_v33 = vpop.f32.mrb[10].mxu0  ;;  %v4128_v34 = vadd.f32 %v2984_v31, %v2983_v29  ;;  %v2986_v35 = vpop.f32.mrb[10].mxu1 }
 0x10d   : > { %v2963_v36 = vpop.f32.mrb[11].mxu0  ;;  %v2987_v37 = vpop.f32.mrb[11].mxu1 }
 0x10e   : > { %v2964_v38 = vadd.f32 %v2963_v36, %v2962_v33  ;;  %v4130_v39 = vadd.f32 %v2987_v37, %v2986_v35 }
 0x112   : > { %v2965_v40 = vpop.f32.mrb[12].mxu0 }
 0x113   : > { %v2966_v41 = vpop.f32.mrb[13].mxu0 }
 0x114   : > { %v2967_v42 = vadd.f32 %v2966_v41, %v2965_v40  ;;  %v2968_v43 = vpop.f32.mrb[14].mxu0 }
 0x115   : > { %v2969_v44 = vpop.f32.mrb[15].mxu0 }
 0x116   : > { %v2970_v45 = vadd.f32 %v2969_v44, %v2968_v43 }
 0x11a   : > { %v3005_v46 = vpop.f32.mrb[12].mxu1  ;;  %v3063_v47 = vpop.f32.mrb[16].mxu0 }
 0x11b   : > { %v3006_v48 = vpop.f32.mrb[13].mxu1  ;;  %v3064_v49 = vpop.f32.mrb[17].mxu0 }
 0x11c   : > { %v3007_v50 = vadd.f32 %v3006_v48, %v3005_v46  ;;  %v3008_v51 = vpop.f32.mrb[14].mxu1  ;;  %v3065_v52 = vadd.f32 %v3064_v49, %v3063_v47  ;;  %v3066_v53 = vpop.f32.mrb[18].mxu0 }
 0x11d   : > { %v3009_v54 = vpop.f32.mrb[15].mxu1  ;;  %v3067_v55 = vpop.f32.mrb[19].mxu0 }
 0x11e   : > { %v1857_v56 = vadd.f32 %v3007_v50, %v2949_v11  ;;  %v3010_v57 = vadd.f32 %v3009_v54, %v3008_v51  ;;  %v3068_v58 = vadd.f32 %v3067_v55, %v3066_v53 }
 0x120   : > { %v1860_v59 = vadd.f32 %v3010_v57, %v2952_v16  ;;  %v4132_v60 = vadd.f32 %v3065_v52, %v1857_v56 }
 0x122   : > { %v4134_v62 = vadd.f32 %v3068_v58, %v1860_v59  ;;  %v3011_v63 = vpop.f32.mrb[16].mxu1  ;;  %v3069_v0 = vpop.f32.mrb[20].mxu0 }
 0x123   : > { %v3012_v1 = vpop.f32.mrb[17].mxu1  ;;  %v3070_v2 = vpop.f32.mrb[21].mxu0 }
 0x124   : > { %v3013_v3 = vadd.f32 %v3012_v1, %v3011_v63  ;;  %v3014_v4 = vpop.f32.mrb[18].mxu1  ;;  %v3071_v5 = vadd.f32 %v3070_v2, %v3069_v0  ;;  %v3072_v6 = vpop.f32.mrb[22].mxu0 }
 0x125   : > { %v3015_v7 = vpop.f32.mrb[19].mxu1  ;;  %v3073_v8 = vpop.f32.mrb[23].mxu0 }
 0x126   : > { %v1865_v10 = vadd.f32 %v3013_v3, %v2955_v20  ;;  %v3016_v12 = vadd.f32 %v3015_v7, %v3014_v4  ;;  %v3074_v11 = vadd.f32 %v3073_v8, %v3072_v6 }
 0x128   : > { %v1868_v13 = vadd.f32 %v3016_v12, %v2958_v26  ;;  %v4136_v14 = vadd.f32 %v3071_v5, %v1865_v10 }
 0x12a   : > { %v4138_v16 = vadd.f32 %v3074_v11, %v1868_v13  ;;  %v3017_v17 = vpop.f32.mrb[20].mxu1  ;;  %v3075_v61 = vpop.f32.mrb[24].mxu0 }
 0x12b   : > { %v3018_v18 = vpop.f32.mrb[21].mxu1  ;;  %v3076_v19 = vpop.f32.mrb[25].mxu0 }
 0x12c   : > { %v3019_v21 = vadd.f32 %v3018_v18, %v3017_v17  ;;  %v3020_v23 = vpop.f32.mrb[22].mxu1  ;;  %v3077_v24 = vadd.f32 %v3076_v19, %v3075_v61  ;;  %v3078_v25 = vpop.f32.mrb[26].mxu0 }
 0x12d   : > { %v3021_v28 = vpop.f32.mrb[23].mxu1  ;;  %v3079_v29 = vpop.f32.mrb[27].mxu0 }
 0x12e   : > { %v1873_v30 = vadd.f32 %v3019_v21, %v2961_v32  ;;  %v3022_v31 = vadd.f32 %v3021_v28, %v3020_v23  ;;  %v3080_v20 = vadd.f32 %v3079_v29, %v3078_v25 }
 0x130   : > { %v1876_v33 = vadd.f32 %v3022_v31, %v2964_v38  ;;  %v4140_v35 = vadd.f32 %v3077_v24, %v1873_v30 }
 0x132   : > { %v4142_v26 = vadd.f32 %v3080_v20, %v1876_v33  ;;  %v3023_v36 = vpop.f32.mrb[24].mxu1  ;;  %v3081_v37 = vpop.f32.mrb[28].mxu0 }
 0x133   : > { %v3024_v40 = vpop.f32.mrb[25].mxu1  ;;  %v3082_v41 = vpop.f32.mrb[29].mxu0 }
 0x134   : > { %v3025_v43 = vadd.f32 %v3024_v40, %v3023_v36  ;;  %v3026_v44 = vpop.f32.mrb[26].mxu1  ;;  %v3083_v46 = vadd.f32 %v3082_v41, %v3081_v37  ;;  %v3084_v47 = vpop.f32.mrb[30].mxu0 }
 0x135   : > { %v3027_v48 = vpop.f32.mrb[27].mxu1  ;;  %v3085_v49 = vpop.f32.mrb[31].mxu0 }
 0x136   : > { %v1881_v50 = vadd.f32 %v3025_v43, %v2967_v42  ;;  %v3028_v51 = vadd.f32 %v3027_v48, %v3026_v44  ;;  %v3086_v32 = vadd.f32 %v3085_v49, %v3084_v47 }
 0x138   : > { %v1884_v52 = vadd.f32 %v3028_v51, %v2970_v45  ;;  %v4144_v53 = vadd.f32 %v3083_v46, %v1881_v50 }
 0x13a   : > { %v4146_v38 = vadd.f32 %v3086_v32, %v1884_v52  ;;  %v3029_v54 = vpop.f32.mrb[28].mxu1  ;;  %v3087_v55 = vpop.f32.mrb[32].mxu0 }
 0x13b   : > { %v3030_v56 = vpop.f32.mrb[29].mxu1  ;;  %v3088_v57 = vpop.f32.mrb[33].mxu0 }
 0x13c   : > { %v3031_v58 = vadd.f32 %v3030_v56, %v3029_v54  ;;  %v3032_v59 = vpop.f32.mrb[30].mxu1  ;;  %v3089_v63 = vadd.f32 %v3088_v57, %v3087_v55  ;;  %v3090_v0 = vpop.f32.mrb[34].mxu0 }
 0x13d   : > { %v3033_v1 = vpop.f32.mrb[31].mxu1  ;;  %v3091_v2 = vpop.f32.mrb[35].mxu0 }
 0x13e   : > { %v1889_v3 = vadd.f32 %v3031_v58, %v4120_v9  ;;  %v3034_v42 = vadd.f32 %v3033_v1, %v3032_v59  ;;  %v3092_v4 = vadd.f32 %v3091_v2, %v3090_v0 }
 0x140   : > { %v1892_v45 = vadd.f32 %v3034_v42, %v4122_v15  ;;  %v4150_v5 = vadd.f32 %v3089_v63, %v1889_v3 }
 0x142   : > { %v4152_v6 = vadd.f32 %v3092_v4, %v1892_v45  ;;  %v3035_v7 = vpop.f32.mrb[32].mxu1  ;;  %v3093_v8 = vpop.f32.mrb[36].mxu0 }
 0x143   : > { %v3036_v10 = vpop.f32.mrb[33].mxu1  ;;  %v3094_v12 = vpop.f32.mrb[37].mxu0 }
 0x144   : > { %v3037_v11 = vadd.f32 %v3036_v10, %v3035_v7  ;;  %v3038_v13 = vpop.f32.mrb[34].mxu1  ;;  %v3095_v17 = vadd.f32 %v3094_v12, %v3093_v8  ;;  %v3096_v61 = vpop.f32.mrb[38].mxu0 }
 0x145   : > { %v3039_v18 = vpop.f32.mrb[35].mxu1  ;;  %v3097_v19 = vpop.f32.mrb[39].mxu0 }
 0x146   : > { %v1897_v9 = vadd.f32 %v3037_v11, %v4124_v22  ;;  %v3040_v21 = vadd.f32 %v3039_v18, %v3038_v13  ;;  %v3098_v23 = vadd.f32 %v3097_v19, %v3096_v61 }
 0x148   : > { %v1900_v15 = vadd.f32 %v3040_v21, %v4126_v27  ;;  %v4156_v24 = vadd.f32 %v3095_v17, %v1897_v9 }
 0x14a   : > { %v4158_v25 = vadd.f32 %v3098_v23, %v1900_v15  ;;  %v3041_v28 = vpop.f32.mrb[36].mxu1  ;;  %v3099_v29 = vpop.f32.mrb[40].mxu0 }
 0x14b   : > { %v3042_v30 = vpop.f32.mrb[37].mxu1  ;;  %v3100_v31 = vpop.f32.mrb[41].mxu0 }
 0x14c   : > { %v3043_v20 = vadd.f32 %v3042_v30, %v3041_v28  ;;  %v3044_v33 = vpop.f32.mrb[38].mxu1  ;;  %v3101_v36 = vadd.f32 %v3100_v31, %v3099_v29  ;;  %v3102_v37 = vpop.f32.mrb[42].mxu0 }
 0x14d   : > { %v3045_v40 = vpop.f32.mrb[39].mxu1  ;;  %v3103_v41 = vpop.f32.mrb[43].mxu0 }
 0x14e   : > { %v1905_v22 = vadd.f32 %v3043_v20, %v4128_v34  ;;  %v3046_v43 = vadd.f32 %v3045_v40, %v3044_v33  ;;  %v3104_v44 = vadd.f32 %v3103_v41, %v3102_v37 }
 0x150   : > { %v1908_v27 = vadd.f32 %v3046_v43, %v4130_v39  ;;  %v4162_v46 = vadd.f32 %v3101_v36, %v1905_v22 }
 0x152   : > { %v4164_v47 = vadd.f32 %v3104_v44, %v1908_v27  ;;  %v3121_v48 = vpop.f32.mrb[40].mxu1  ;;  %v3179_v49 = vpop.f32.mrb[44].mxu0 }
 0x153   : > { %v3122_v50 = vpop.f32.mrb[41].mxu1  ;;  %v3180_v51 = vpop.f32.mrb[45].mxu0 }
 0x154   : > { %v3123_v32 = vadd.f32 %v3122_v50, %v3121_v48  ;;  %v3124_v52 = vpop.f32.mrb[42].mxu1  ;;  %v3181_v54 = vadd.f32 %v3180_v51, %v3179_v49  ;;  %v3182_v55 = vpop.f32.mrb[46].mxu0 }
 0x155   : > { %v3125_v56 = vpop.f32.mrb[43].mxu1  ;;  %v3183_v57 = vpop.f32.mrb[47].mxu0 }
 0x156   : > { %v2035_v34 = vadd.f32 %v3123_v32, %v4132_v60  ;;  %v3126_v58 = vadd.f32 %v3125_v56, %v3124_v52  ;;  %v3184_v59 = vadd.f32 %v3183_v57, %v3182_v55 }
 0x158   : > { %v2038_v39 = vadd.f32 %v3126_v58, %v4134_v62  ;;  %v4168_v63 = vadd.f32 %v3181_v54, %v2035_v34 }
 0x15a   : > { %v4170_v0 = vadd.f32 %v3184_v59, %v2038_v39  ;;  %v3127_v1 = vpop.f32.mrb[44].mxu1  ;;  %v3185_v2 = vpop.f32.mrb[48].mxu0 }
 0x15b   : > { %v3128_v3 = vpop.f32.mrb[45].mxu1  ;;  %v3186_v42 = vpop.f32.mrb[49].mxu0 }
 0x15c   : > { %v3129_v4 = vadd.f32 %v3128_v3, %v3127_v1  ;;  %v3130_v45 = vpop.f32.mrb[46].mxu1  ;;  %v3187_v7 = vadd.f32 %v3186_v42, %v3185_v2  ;;  %v3188_v8 = vpop.f32.mrb[50].mxu0 }
 0x15d   : > { %v3131_v10 = vpop.f32.mrb[47].mxu1  ;;  %v3189_v12 = vpop.f32.mrb[51].mxu0 }
 0x15e   : > { %v2043_v60 = vadd.f32 %v3129_v4, %v4136_v14  ;;  %v3132_v11 = vadd.f32 %v3131_v10, %v3130_v45  ;;  %v3190_v13 = vadd.f32 %v3189_v12, %v3188_v8 }
 0x160   : > { %v2046_v62 = vadd.f32 %v3132_v11, %v4138_v16  ;;  %v4174_v17 = vadd.f32 %v3187_v7, %v2043_v60 }
 0x162   : > { %v4176_v61 = vadd.f32 %v3190_v13, %v2046_v62  ;;  %v3133_v18 = vpop.f32.mrb[48].mxu1  ;;  %v3191_v19 = vpop.f32.mrb[52].mxu0 }
 0x163   : > { %v3134_v9 = vpop.f32.mrb[49].mxu1  ;;  %v3192_v21 = vpop.f32.mrb[53].mxu0 }
 0x164   : > { %v3135_v23 = vadd.f32 %v3134_v9, %v3133_v18  ;;  %v3136_v15 = vpop.f32.mrb[50].mxu1  ;;  %v3193_v28 = vadd.f32 %v3192_v21, %v3191_v19  ;;  %v3194_v29 = vpop.f32.mrb[54].mxu0 }
 0x165   : > { %v3137_v30 = vpop.f32.mrb[51].mxu1  ;;  %v3195_v31 = vpop.f32.mrb[55].mxu0 }
 0x166   : > { %v2051_v14 = vadd.f32 %v3135_v23, %v4140_v35  ;;  %v3138_v20 = vadd.f32 %v3137_v30, %v3136_v15  ;;  %v3196_v33 = vadd.f32 %v3195_v31, %v3194_v29 }
 0x168   : > { %v2054_v16 = vadd.f32 %v3138_v20, %v4142_v26  ;;  %v4180_v36 = vadd.f32 %v3193_v28, %v2051_v14 }
 0x16a   : > { %v4182_v37 = vadd.f32 %v3196_v33, %v2054_v16  ;;  %v3139_v40 = vpop.f32.mrb[52].mxu1  ;;  %v3197_v41 = vpop.f32.mrb[56].mxu0 }
 0x16b   : > { %v3140_v22 = vpop.f32.mrb[53].mxu1  ;;  %v3198_v43 = vpop.f32.mrb[57].mxu0 }
 0x16c   : > { %v3141_v44 = vadd.f32 %v3140_v22, %v3139_v40  ;;  %v3142_v27 = vpop.f32.mrb[54].mxu1  ;;  %v3199_v48 = vadd.f32 %v3198_v43, %v3197_v41  ;;  %v3200_v49 = vpop.f32.mrb[58].mxu0 }
 0x16d   : > { %v3143_v50 = vpop.f32.mrb[55].mxu1  ;;  %v3201_v51 = vpop.f32.mrb[59].mxu0 }
 0x16e   : > { %v2059_v35 = vadd.f32 %v3141_v44, %v4144_v53  ;;  %v3144_v32 = vadd.f32 %v3143_v50, %v3142_v27  ;;  %v3202_v52 = vadd.f32 %v3201_v51, %v3200_v49 }
 0x170   : > { %v2062_v26 = vadd.f32 %v3144_v32, %v4146_v38  ;;  %v4186_v54 = vadd.f32 %v3199_v48, %v2059_v35 }
 0x172   : > { %v4188_v55 = vadd.f32 %v3202_v52, %v2062_v26  ;;  %v3145_v56 = vpop.f32.mrb[56].mxu1  ;;  %v3203_v57 = vpop.f32.mrb[60].mxu0 }
 0x173   : > { %v3146_v34 = vpop.f32.mrb[57].mxu1  ;;  %v3204_v58 = vpop.f32.mrb[61].mxu0 }
 0x174   : > { %v3147_v59 = vadd.f32 %v3146_v34, %v3145_v56  ;;  %v3148_v39 = vpop.f32.mrb[58].mxu1  ;;  %v3205_v1 = vadd.f32 %v3204_v58, %v3203_v57  ;;  %v3206_v2 = vpop.f32.mrb[62].mxu0 }
 0x175   : > { %v3149_v3 = vpop.f32.mrb[59].mxu1  ;;  %v3207_v42 = vpop.f32.mrb[63].mxu0 }
 0x176   : > { %v2067_v53 = vadd.f32 %v3147_v59, %v4150_v5  ;;  %v3150_v4 = vadd.f32 %v3149_v3, %v3148_v39  ;;  %v3208_v45 = vadd.f32 %v3207_v42, %v3206_v2 }
 0x178   : > { %v2070_v38 = vadd.f32 %v3150_v4, %v4152_v6  ;;  %v4192_v7 = vadd.f32 %v3205_v1, %v2067_v53  ;;  %v4218_v1 = vld [vmem:[%s4285_s3] ss:$0 sm:$0xff] }
 0x17a   : > { %v4194_v8 = vadd.f32 %v3208_v45, %v2070_v38  ;;  %v3151_v10 = vpop.f32.mrb[60].mxu1  ;;  %v3209_v12 = vpop.f32.mrb[64].mxu0 }
 0x17b   : > { %v3152_v60 = vpop.f32.mrb[61].mxu1  ;;  %v3210_v11 = vpop.f32.mrb[65].mxu0 }
 0x17c   : > { %v3153_v13 = vadd.f32 %v3152_v60, %v3151_v10  ;;  %v3154_v62 = vpop.f32.mrb[62].mxu1  ;;  %v3211_v18 = vadd.f32 %v3210_v11, %v3209_v12  ;;  %v3212_v19 = vpop.f32.mrb[66].mxu0 }
 0x17d   : > { %v3155_v9 = vpop.f32.mrb[63].mxu1  ;;  %v3213_v21 = vpop.f32.mrb[67].mxu0 }
 0x17e   : > { %v2075_v5 = vadd.f32 %v3153_v13, %v4156_v24  ;;  %v3156_v23 = vadd.f32 %v3155_v9, %v3154_v62  ;;  %v3214_v15 = vadd.f32 %v3213_v21, %v3212_v19 }
 0x180   : > { %v2078_v6 = vadd.f32 %v3156_v23, %v4158_v25  ;;  %v4198_v28 = vadd.f32 %v3211_v18, %v2075_v5 }
 0x182   : > { %v4200_v29 = vadd.f32 %v3214_v15, %v2078_v6  ;;  %v3157_v30 = vpop.f32.mrb[64].mxu1  ;;  %v3215_v31 = vpop.f32.mrb[68].mxu0 }
 0x183   : > { %v3158_v14 = vpop.f32.mrb[65].mxu1  ;;  %v3216_v20 = vpop.f32.mrb[69].mxu0 }
 0x184   : > { %v3159_v33 = vadd.f32 %v3158_v14, %v3157_v30  ;;  %v3160_v16 = vpop.f32.mrb[66].mxu1  ;;  %v3217_v40 = vadd.f32 %v3216_v20, %v3215_v31  ;;  %v3218_v41 = vpop.f32.mrb[70].mxu0 }
 0x185   : > { %v3161_v22 = vpop.f32.mrb[67].mxu1  ;;  %v3219_v43 = vpop.f32.mrb[71].mxu0 }
 0x186   : > { %v2083_v24 = vadd.f32 %v3159_v33, %v4162_v46  ;;  %v3162_v44 = vadd.f32 %v3161_v22, %v3160_v16  ;;  %v3220_v27 = vadd.f32 %v3219_v43, %v3218_v41 }
 0x188   : > { %v2086_v25 = vadd.f32 %v3162_v44, %v4164_v47  ;;  %v4204_v48 = vadd.f32 %v3217_v40, %v2083_v24  ;;  %v4212_v47 = vld [vmem:[%s4284_s2] ss:$0 sm:$0xff] }
 0x18a   : > { %v4206_v49 = vadd.f32 %v3220_v27, %v2086_v25  ;;  %v3237_v50 = vpop.f32.mrb[68].mxu1  ;;  %v2301_v51 = vpop.f32.mrb[72].mxu0 }
 0x18b   : > { %v3238_v35 = vpop.f32.mrb[69].mxu1  ;;  %v3312_v32 = vpop.f32.mrb[73].mxu0 }
 0x18c   : > { %v3239_v52 = vadd.f32 %v3238_v35, %v3237_v50  ;;  %v3240_v26 = vpop.f32.mrb[70].mxu1  ;;  %v2304_v56 = vpop.f32.mrb[74].mxu0 }
 0x18d   : > { %v3241_v57 = vpop.f32.mrb[71].mxu1  ;;  %v3313_v34 = vpop.f32.mrb[75].mxu0 }
 0x18e   : > { %v3242_v58 = vadd.f32 %v3241_v57, %v3240_v26  ;;  %v2213_v46 = vadd.f32 %v3239_v52, %v4168_v63 }
 0x190   : > { %v2302_v59 = vadd.f32 %v2301_v51, %v2213_v46  ;;  %v2216_v39 = vadd.f32 %v3242_v58, %v4170_v0 }
 0x192   : > { %v2408_v2 = vmul.f32 %v4212_v47, %v2302_v59  ;;  %v2305_v3 = vadd.f32 %v2304_v56, %v2216_v39  ;;  %v3243_v42 = vpop.f32.mrb[72].mxu1  ;;  %v2309_v53 = vpop.f32.mrb[76].mxu0 }
 0x193   : > { %v3244_v63 = vpop.f32.mrb[73].mxu1  ;;  %v3316_v4 = vpop.f32.mrb[77].mxu0 }
 0x194   : > { %v2429_v45 = vadd.f32 %v4218_v1, %v2408_v2  ;;  %v2409_v38 = vmul.f32 %v4212_v47, %v2305_v3  ;;  %v3245_v10 = vadd.f32 %v3244_v63, %v3243_v42  ;;  %v3246_v12 = vpop.f32.mrb[74].mxu1  ;;  %v2312_v60 = vpop.f32.mrb[78].mxu0 }
 0x195   : > { %v3247_v0 = vpop.f32.mrb[75].mxu1  ;;  %v3317_v11 = vpop.f32.mrb[79].mxu0 }
 0x196   : > { %v2430_v13 = vadd.f32 %v4218_v1, %v2409_v38  ;;  %v3248_v62 = vadd.f32 %v3247_v0, %v3246_v12  ;;  %v2221_v18 = vadd.f32 %v3245_v10, %v4174_v17  ;;  %v2443_v19 = vmax.f32 %v2429_v45, 0.0 }
 0x198   : > { %v2444_v9 = vmax.f32 %v2430_v13, 0.0  ;;  %v2310_v21 = vadd.f32 %v2309_v53, %v2221_v18  ;;  %v2224_v5 = vadd.f32 %v3248_v62, %v4176_v61 }
 0x19a   : > { %v2893_v23 = vpack.c.bf16 %v2444_v9, %v2443_v19  ;;  %v2410_v15 = vmul.f32 %v4212_v47, %v2310_v21  ;;  %v2313_v6 = vadd.f32 %v2312_v60, %v2224_v5  ;;  %v3249_v30 = vpop.f32.mrb[76].mxu1  ;;  %v2317_v31 = vpop.f32.mrb[80].mxu0 }
 0x19b   : > { %v3250_v14 = vpop.f32.mrb[77].mxu1  ;;  %v3320_v20 = vpop.f32.mrb[81].mxu0 }
 0x19c   : > { %2894 = vst [vmem:[%s4230_s27] sm:$0xff] %v2893_v23   ;;  %v2431_v17 = vadd.f32 %v4218_v1, %v2410_v15  ;;  %v2411_v33 = vmul.f32 %v4212_v47, %v2313_v6  ;;  %v3251_v61 = vadd.f32 %v3250_v14, %v3249_v30  ;;  %v3252_v16 = vpop.f32.mrb[78].mxu1  ;;  %v2320_v40 = vpop.f32.mrb[82].mxu0 }
 0x19d   : > { %v3253_v41 = vpop.f32.mrb[79].mxu1  ;;  %v3321_v22 = vpop.f32.mrb[83].mxu0 }
 0x19e   : > { %v2432_v43 = vadd.f32 %v4218_v1, %v2411_v33  ;;  %v3254_v24 = vadd.f32 %v3253_v41, %v3252_v16  ;;  %v2229_v44 = vadd.f32 %v3251_v61, %v4180_v36  ;;  %v2445_v27 = vmax.f32 %v2431_v17, 0.0 }
 0x1a0   : > { %v2446_v25 = vmax.f32 %v2432_v43, 0.0  ;;  %v2318_v50 = vadd.f32 %v2317_v31, %v2229_v44  ;;  %v2232_v51 = vadd.f32 %v3254_v24, %v4182_v37 }
 0x1a2   : > { %v2898_v35 = vpack.c.bf16 %v2446_v25, %v2445_v27  ;;  %v2412_v32 = vmul.f32 %v4212_v47, %v2318_v50  ;;  %v2321_v52 = vadd.f32 %v2320_v40, %v2232_v51  ;;  %v3255_v26 = vpop.f32.mrb[80].mxu1  ;;  %v2325_v56 = vpop.f32.mrb[84].mxu0 }
 0x1a3   : > { %v3256_v57 = vpop.f32.mrb[81].mxu1  ;;  %v3324_v34 = vpop.f32.mrb[85].mxu0 }
 0x1a4   : > { %2925 = vst [vmem:[%s4230_s27 + $0x8] sm:$0xff] %v2898_v35   ;;  %v2433_v58 = vadd.f32 %v4218_v1, %v2412_v32  ;;  %v2413_v46 = vmul.f32 %v4212_v47, %v2321_v52  ;;  %v3257_v59 = vadd.f32 %v3256_v57, %v3255_v26  ;;  %v3258_v36 = vpop.f32.mrb[82].mxu1  ;;  %v2328_v39 = vpop.f32.mrb[86].mxu0 }
 0x1a5   : > { %v3259_v2 = vpop.f32.mrb[83].mxu1  ;;  %v3325_v3 = vpop.f32.mrb[87].mxu0 }
 0x1a6   : > { %v2434_v37 = vadd.f32 %v4218_v1, %v2413_v46  ;;  %v3260_v42 = vadd.f32 %v3259_v2, %v3258_v36  ;;  %v2237_v53 = vadd.f32 %v3257_v59, %v4186_v54  ;;  %v2447_v63 = vmax.f32 %v2433_v58, 0.0 }
 0x1a8   : > { %v2448_v4 = vmax.f32 %v2434_v37, 0.0  ;;  %v2326_v45 = vadd.f32 %v2325_v56, %v2237_v53  ;;  %v2240_v38 = vadd.f32 %v3260_v42, %v4188_v55 }
 0x1aa   : > { %v2903_v10 = vpack.c.bf16 %v2448_v4, %v2447_v63  ;;  %v2414_v12 = vmul.f32 %v4212_v47, %v2326_v45  ;;  %v2329_v60 = vadd.f32 %v2328_v39, %v2240_v38  ;;  %v3261_v0 = vpop.f32.mrb[84].mxu1  ;;  %v2333_v11 = vpop.f32.mrb[88].mxu0 }
 0x1ab   : > { %v3262_v13 = vpop.f32.mrb[85].mxu1  ;;  %v3328_v62 = vpop.f32.mrb[89].mxu0 }
 0x1ac   : > { %2926 = vst [vmem:[%s4230_s27 + $0x10] sm:$0xff] %v2903_v10   ;;  %v2435_v18 = vadd.f32 %v4218_v1, %v2414_v12  ;;  %v2415_v19 = vmul.f32 %v4212_v47, %v2329_v60  ;;  %v3263_v9 = vadd.f32 %v3262_v13, %v3261_v0  ;;  %v3264_v54 = vpop.f32.mrb[86].mxu1  ;;  %v2336_v21 = vpop.f32.mrb[90].mxu0 }
 0x1ad   : > { %v3265_v5 = vpop.f32.mrb[87].mxu1  ;;  %v3329_v23 = vpop.f32.mrb[91].mxu0 }
 0x1ae   : > { %v2436_v55 = vadd.f32 %v4218_v1, %v2415_v19  ;;  %v3266_v15 = vadd.f32 %v3265_v5, %v3264_v54  ;;  %v2245_v6 = vadd.f32 %v3263_v9, %v4192_v7  ;;  %v2449_v30 = vmax.f32 %v2435_v18, 0.0 }
 0x1b0   : > { %v2450_v31 = vmax.f32 %v2436_v55, 0.0  ;;  %v2334_v14 = vadd.f32 %v2333_v11, %v2245_v6  ;;  %v2248_v20 = vadd.f32 %v3266_v15, %v4194_v8 }
 0x1b2   : > { %v2908_v17 = vpack.c.bf16 %v2450_v31, %v2449_v30  ;;  %v2416_v33 = vmul.f32 %v4212_v47, %v2334_v14  ;;  %v2337_v61 = vadd.f32 %v2336_v21, %v2248_v20  ;;  %v3267_v16 = vpop.f32.mrb[88].mxu1  ;;  %v2341_v40 = vpop.f32.mrb[92].mxu0 }
 0x1b3   : > { %v3268_v41 = vpop.f32.mrb[89].mxu1  ;;  %v3332_v22 = vpop.f32.mrb[93].mxu0 }
 0x1b4   : > { %2927 = vst [vmem:[%s4230_s27 + $0x18] sm:$0xff] %v2908_v17   ;;  %v2437_v43 = vadd.f32 %v4218_v1, %v2416_v33  ;;  %v2417_v24 = vmul.f32 %v4212_v47, %v2337_v61  ;;  %v3269_v44 = vadd.f32 %v3268_v41, %v3267_v16  ;;  %v3270_v7 = vpop.f32.mrb[90].mxu1  ;;  %v2344_v27 = vpop.f32.mrb[94].mxu0 }
 0x1b5   : > { %v3271_v25 = vpop.f32.mrb[91].mxu1  ;;  %v3333_v50 = vpop.f32.mrb[95].mxu0 }
 0x1b6   : > { %v2438_v8 = vadd.f32 %v4218_v1, %v2417_v24  ;;  %v3272_v51 = vadd.f32 %v3271_v25, %v3270_v7  ;;  %v2253_v35 = vadd.f32 %v3269_v44, %v4198_v28  ;;  %v2451_v32 = vmax.f32 %v2437_v43, 0.0 }
 0x1b8   : > { %v2452_v52 = vmax.f32 %v2438_v8, 0.0  ;;  %v2342_v26 = vadd.f32 %v2341_v40, %v2253_v35  ;;  %v2256_v56 = vadd.f32 %v3272_v51, %v4200_v29 }
 0x1ba   : > { %v2913_v57 = vpack.c.bf16 %v2452_v52, %v2451_v32  ;;  %v2418_v34 = vmul.f32 %v4212_v47, %v2342_v26  ;;  %v2345_v58 = vadd.f32 %v2344_v27, %v2256_v56  ;;  %v3273_v46 = vpop.f32.mrb[92].mxu1  ;;  %v2349_v59 = vpop.f32.mrb[96].mxu0 }
 0x1bb   : > { %v3274_v36 = vpop.f32.mrb[93].mxu1  ;;  %v3336_v39 = vpop.f32.mrb[97].mxu0 }
 0x1bc   : > { %2928 = vst [vmem:[%s4230_s27 + $0x20] sm:$0xff] %v2913_v57   ;;  %v2439_v2 = vadd.f32 %v4218_v1, %v2418_v34  ;;  %v2419_v3 = vmul.f32 %v4212_v47, %v2345_v58  ;;  %v3275_v28 = vadd.f32 %v3274_v36, %v3273_v46  ;;  %v3276_v37 = vpop.f32.mrb[94].mxu1  ;;  %v2352_v42 = vpop.f32.mrb[98].mxu0 }
 0x1bd   : > { %v3277_v53 = vpop.f32.mrb[95].mxu1  ;;  %v3337_v63 = vpop.f32.mrb[99].mxu0 }
 0x1be   : > { %v2440_v29 = vadd.f32 %v4218_v1, %v2419_v3  ;;  %v3278_v4 = vadd.f32 %v3277_v53, %v3276_v37  ;;  %v2261_v45 = vadd.f32 %v3275_v28, %v4204_v48  ;;  %v2453_v38 = vmax.f32 %v2439_v2, 0.0 }
 0x1c0   : > { %v2454_v10 = vmax.f32 %v2440_v29, 0.0  ;;  %v2350_v12 = vadd.f32 %v2349_v59, %v2261_v45  ;;  %v2264_v60 = vadd.f32 %v3278_v4, %v4206_v49 }
 0x1c2   : > { %v2918_v0 = vpack.c.bf16 %v2454_v10, %v2453_v38  ;;  %v2420_v11 = vmul.f32 %v4212_v47, %v2350_v12  ;;  %v2353_v13 = vadd.f32 %v2352_v42, %v2264_v60 }
 0x1c4   : > { %2929 = vst [vmem:[%s4230_s27 + $0x28] sm:$0xff] %v2918_v0   ;;  %v2441_v62 = vadd.f32 %v4218_v1, %v2420_v11  ;;  %v2421_v18 = vmul.f32 %v4212_v47, %v2353_v13 }
 0x1c6   : > { %v2442_v19 = vadd.f32 %v4218_v1, %v2421_v18  ;;  %v2455_v9 = vmax.f32 %v2441_v62, 0.0 }
 0x1c8   : > { %v2456_v54 = vmax.f32 %v2442_v19, 0.0 }
 0x1ca   : > { %v2923_v21 = vpack.c.bf16 %v2456_v54, %v2455_v9 }
 0x1cc   : > { %2930 = vst [vmem:[%s4230_s27 + $0x30] sm:$0xff] %v2923_v21  }
 0x1cd PF: > { %s14_s17 = sadd.s32 1, %s3640_s17   ;;  %s4287_s15 = smov %s3636_s16 }
 0x1ce   : > { %p11_p5 = scmp.ge.s32.totalorder %s14_s17, 4   ;;  %s4288_s16 = smov %s4290_s18 }
 0x1d0   :  { %13 = sbr.rel (!%p11_p5) target bundleno = 2 (0x2), region = 83 }

// kernel: _lambda_.13
= control target key start
LH: loop header
LB: loop body
LE: loop exit
PB: predicated region body
PF: predicated region fallthrough
CT: control target
= control target key end

     0   :  { %s2269_s15 = smov 0   ;;  %s2271_s16 = smov 0   ;;  %s2469_s0 = inlined_call_operand.vmem [shape: bf16[16,6656], index: 0, kind: input, shape index: {}]   ;;  %s2470_s1 = inlined_call_operand.vmem [shape: bf16[6656,128], index: 1, kind: input, shape index: {}]   ;;  %s2471_s2 = inlined_call_operand.vmem [shape: f32[1,128], index: 2, kind: input, shape index: {}]   ;;  %s2472_s3 = inlined_call_operand.vmem [shape: f32[1,128], index: 3, kind: input, shape index: {}]   ;;  %s2473_s4 = inlined_call_operand.vmem [shape: f32[16,128], index: 4, kind: output, shape index: {}]  }
   0x1   :  { %s2273_s17 = smov 0   ;;  %s2275_s18 = smov 0  }
   0x2   :  { %s2277_s19 = smov 0  }
   0x3 LB: > { %s26_s20 = sadd.s32 1, %s2235_s18  ;;  %p49_p1 = scmp.ne.s32.totalorder %s2227_s16, %s2223_s15  ;;  %s2239_s19 = sphi %s2277_s19, %s14_s19   ;;  %s2235_s18 = sphi %s2275_s18, %s2477_s18   ;;  %s2231_s17 = sphi %s2273_s17, %s2476_s17   ;;  %s2227_s16 = sphi %s2271_s16, %s2475_s16   ;;  %s2223_s15 = sphi %s2269_s15, %s2474_s15  }
   0x4   : > { %p27_p0 = scmp.ge.s32.totalorder %s26_s20, 4  ;;  %p50_p2 = scmp.eq.s32.totalorder %s2239_s19, 0 }
   0x5   : > { %s42_s22 = sadd.s32 1, %s2227_s16  ;;  %p1730_p5 = scmp.ge.s32.totalorder %s2239_s19, 4 }
   0x6   : > { %s2479_s20 = smov (%p27_p0, %s26_s20), 0  ;;  %p51_p3 = por %p50_p2, %p49_p1 }
   0x7   : > { %s38_s21 = ssub.s32 %s2235_s18, %s2479_s20  ;;  %195 = sbr.rel (%p1730_p5) target bundleno = 26 (0x1a), region = 24 }
   0x8   : > { %p40_p4 = scmp.eq.s32.totalorder %s38_s21, 0 }
   0xa   : > { %s2304_s23 = scalar_select %p40_p4, %s2227_s16, %s42_s22  }
   0xe   : > { %198 = sbr.rel (!%p51_p3) target bundleno = 26 (0x1a), region = 28  ;;  %s200_s24 = sand.u32 (%p51_p3), 1, %s2227_s16  }
   0xf   : > { %s1863_s25 = smul.u32 (%p51_p3), 52, %s2235_s18 }
  0x10   : > { %s2025_s26 = smul.u32 (%p51_p3), 104, %s200_s24 }
  0x11   : > { %s208_s29 = scalar_lea.vmem (%p51_p3), %s2469_s0, %s1863_s25 }
  0x12   : > { %v223_v0 = vld [vmem:[%s208_s29] sm:$0xff] (%p51_p3)  ;;  %v225_v1 = vld [vmem:[%s208_s29 + $0x8] sm:$0xff] (%p51_p3)  ;;  %v227_v2 = vld [vmem:[%s208_s29 + $0x10] sm:$0xff] (%p51_p3)  ;;  %s202_s30 = scalar_lea.vmem (%p51_p3), [#allocation3], %s2025_s26 }
  0x13   : > { %224 = vst [vmem:[%s202_s30] sm:$0xff] (%p51_p3), %v223_v0  ;;  %226 = vst [vmem:[%s202_s30 + $0x8] sm:$0xff] (%p51_p3), %v225_v1  ;;  %v229_v3 = vld [vmem:[%s208_s29 + $0x18] sm:$0xff] (%p51_p3)  ;;  %v231_v4 = vld [vmem:[%s208_s29 + $0x20] sm:$0xff] (%p51_p3) }
  0x14   : > { %228 = vst [vmem:[%s202_s30 + $0x10] sm:$0xff] (%p51_p3), %v227_v2  ;;  %v233_v5 = vld [vmem:[%s208_s29 + $0x28] sm:$0xff] (%p51_p3)  ;;  %230 = vst [vmem:[%s202_s30 + $0x18] sm:$0xff] (%p51_p3), %v229_v3  ;;  %v235_v6 = vld [vmem:[%s208_s29 + $0xd0] sm:$0xff] (%p51_p3) }
  0x15   : > { %232 = vst [vmem:[%s202_s30 + $0x20] sm:$0xff] %v231_v4  ;;  %234 = vst [vmem:[%s202_s30 + $0x28] sm:$0xff] %v233_v5  ;;  %v237_v7 = vld [vmem:[%s208_s29 + $0xd8] sm:$0xff]  ;;  %v239_v8 = vld [vmem:[%s208_s29 + $0xe0] sm:$0xff] }
  0x16   : > { %236 = vst [vmem:[%s202_s30 + $0x34] sm:$0xff] %v235_v6  ;;  %238 = vst [vmem:[%s202_s30 + $0x3c] sm:$0xff] %v237_v7  ;;  %v241_v9 = vld [vmem:[%s208_s29 + $0xe8] sm:$0xff]  ;;  %v243_v10 = vld [vmem:[%s208_s29 + $0xf0] sm:$0xff] }
  0x17   : > { %240 = vst [vmem:[%s202_s30 + $0x44] sm:$0xff] %v239_v8  ;;  %v245_v11 = vld [vmem:[%s208_s29 + $0xf8] sm:$0xff]  ;;  %242 = vst [vmem:[%s202_s30 + $0x4c] sm:$0xff] %v241_v9  ;;  %v1732_v12 = vld [vmem:[%s208_s29 + $0x30] sm:$0xf] }
  0x18   : > { %244 = vst [vmem:[%s202_s30 + $0x54] sm:$0xff] %v243_v10  ;;  %246 = vst [vmem:[%s202_s30 + $0x5c] sm:$0xff] %v245_v11  ;;  %v1734_v13 = vld [vmem:[%s208_s29 + $0x100] sm:$0xf] }
  0x19   : > { %1733 = vst [vmem:[%s202_s30 + $0x30] sm:$0xf] %v1732_v12  ;;  %1735 = vst [vmem:[%s202_s30 + $0x64] sm:$0xf] %v1734_v13 }
  0x1a PF: > { %p1736_p6 = scmp.ge.s32.totalorder %s2239_s19, 1  ;;  %p274_p7 = scmp.lt.s32.totalorder %s2239_s19, 5 }
  0x1c   : > { %p275_p8 = pnand %p1736_p6, %p274_p7 }
  0x1d   : > { %s281_s5 = sand.u32 (!%p275_p8), 1, %s2223_s15   ;;  %s325_s6 = smul.u32 (!%p275_p8), 208, %s2231_s17 }
  0x1e   : > { %278 = sbr.rel (%p275_p8) target bundleno = 433 (0x1b1), region = 58  ;;  %p1738_p10 = scmp.ne.s32.totalorder (!%p275_p8), %s2231_s17, 0 }
  0x1f   : > { %s2026_s7 = smul.u32 (!%p275_p8), 104, %s281_s5  ;;  %p326_p9 = scmp.lt.s32.totalorder (!%p275_p8), %s325_s6, 831 }
  0x21   : > { %s2321_s12 = scalar_lea.vmem (!%p275_p8), [#allocation3], %s2026_s7 }
  0x25   : > { %s2481_s6 = smov (!%p326_p9, %s325_s6), 831  ;;  %353 = sbr.rel (%p1738_p10) target bundleno = 44 (0x2c), region = 66 }
  0x26   : > { %s1737_s8 = sshll.u32 %s2481_s6, 2  ;;  %v2241_v14 = vmov (!%p1738_p10), 0.0  }
  0x27   : > { %s2319_s11 = scalar_lea.vmem %s2470_s1, %s1737_s8  ;;  %354 = vst [vmem:[#allocation2] sm:$0xff] (!%p1738_p10), %v2241_v14  ;;  %355 = vst [vmem:[#allocation2 + $0x8] sm:$0xff] (!%p1738_p10), %v2241_v14 }
  0x2c PF: > { %v2070_v15 = vld [vmem:[%s2319_s11 + $0x40] sm:$0xff]   ;;  %v2074_v19 = vld [vmem:[%s2319_s11 + $0x48] sm:$0xff]   ;;  %v2078_v23 = vld [vmem:[%s2319_s11 + $0x50] sm:$0xff]   ;;  %vm2243_vm0 = vmmov 0   ;;  %p1856_p11 = scmp.ne.s32.totalorder %s2231_s17, 3 }
  0x2d   : > { %v2071_v16 = vld [vmem:[%s2319_s11 + $0xc0] sm:$0xff]   ;;  %1864 = vmatprep.subr.bf16.mxu0 %v2070_v15  ;;  %v2075_v20 = vld [vmem:[%s2319_s11 + $0xc8] sm:$0xff]   ;;  %v2079_v24 = vld [vmem:[%s2319_s11 + $0xd0] sm:$0xff]  }
  0x2e   : > { %v2072_v17 = vld [vmem:[%s2319_s11] sm:$0xff]   ;;  %1886 = vmatprep.subr.bf16.mxu1 %v2071_v16  ;;  %v2076_v21 = vld [vmem:[%s2319_s11 + $0x8] sm:$0xff]   ;;  %v2080_v25 = vld [vmem:[%s2319_s11 + $0x10] sm:$0xff]  }
  0x2f   : > { %v2073_v18 = vld [vmem:[%s2319_s11 + $0x80] sm:$0xff]   ;;  %1865 = vmatpush3.bf16.msra.mxu0 %v2072_v17  ;;  %v2077_v22 = vld [vmem:[%s2319_s11 + $0x88] sm:$0xff]   ;;  %v2081_v26 = vld [vmem:[%s2319_s11 + $0x90] sm:$0xff]  }
  0x30   : > { %1887 = vmatpush3.bf16.msra.mxu1 %v2073_v18  ;;  %1866 = vmatprep.subr.bf16.mxu0 %v2074_v19  ;;  %v2082_v27 = vld [vmem:[%s2319_s11 + $0x58] sm:$0xff]   ;;  %v2086_v31 = vld [vmem:[%s2319_s11 + $0x60] sm:$0xff]   ;;  %v2090_v35 = vld [vmem:[%s2319_s11 + $0x68] sm:$0xff]  }
  0x31   : > { %1888 = vmatprep.subr.bf16.mxu1 %v2075_v20  ;;  %v2083_v28 = vld [vmem:[%s2319_s11 + $0xd8] sm:$0xff]   ;;  %v2087_v32 = vld [vmem:[%s2319_s11 + $0xe0] sm:$0xff]   ;;  %v2091_v36 = vld [vmem:[%s2319_s11 + $0xe8] sm:$0xff]  }
  0x32   : > { %v2084_v29 = vld [vmem:[%s2319_s11 + $0x18] sm:$0xff]   ;;  %v2088_v33 = vld [vmem:[%s2319_s11 + $0x20] sm:$0xff]   ;;  %v2092_v37 = vld [vmem:[%s2319_s11 + $0x28] sm:$0xff]  }
  0x33   : > { %1867 = vmatpush3.bf16.msra.mxu0 %v2076_v21  ;;  %v2085_v30 = vld [vmem:[%s2319_s11 + $0x98] sm:$0xff]   ;;  %v2089_v34 = vld [vmem:[%s2319_s11 + $0xa0] sm:$0xff]   ;;  %v2093_v38 = vld [vmem:[%s2319_s11 + $0xa8] sm:$0xff]  }
  0x34   : > { %1889 = vmatpush3.bf16.msra.mxu1 %v2077_v22  ;;  %1868 = vmatprep.subr.bf16.mxu0 %v2078_v23  ;;  %v2094_v39 = vld [vmem:[%s2319_s11 + $0x70] sm:$0xff]   ;;  %v2098_v43 = vld [vmem:[%s2319_s11 + $0x78] sm:$0xff]   ;;  %v2108_v51 = vld [vmem:[%s2319_s11 + $0x140] sm:$0xff]  }
  0x35   : > { %1890 = vmatprep.subr.bf16.mxu1 %v2079_v24  ;;  %v2095_v40 = vld [vmem:[%s2319_s11 + $0xf0] sm:$0xff]   ;;  %v2099_v44 = vld [vmem:[%s2319_s11 + $0xf8] sm:$0xff]   ;;  %v2109_v52 = vld [vmem:[%s2319_s11 + $0x100] sm:$0xff]  }
  0x36   : > { %v2096_v41 = vld [vmem:[%s2319_s11 + $0x30] sm:$0xff]   ;;  %v2100_v45 = vld [vmem:[%s2319_s11 + $0x38] sm:$0xff]   ;;  %v2110_v53 = vld [vmem:[%s2319_s11 + $0x1c0] sm:$0xff]  }
  0x37   : > { %1869 = vmatpush3.bf16.msra.mxu0 %v2080_v25  ;;  %v2097_v42 = vld [vmem:[%s2319_s11 + $0xb0] sm:$0xff]   ;;  %v2101_v46 = vld [vmem:[%s2319_s11 + $0xb8] sm:$0xff]   ;;  %v2111_v54 = vld [vmem:[%s2319_s11 + $0x180] sm:$0xff]  }
  0x38   : > { %1891 = vmatpush3.bf16.msra.mxu1 %v2081_v26  ;;  %1870 = vmatprep.subr.bf16.mxu0 %v2082_v27  ;;  %v2102_v47 = vld [vmem:[%s2321_s12] ss:$52 sps:$4 sm:$0xff]   ;;  %v2104_v48 = vld [vmem:[%s2321_s12 + $0x4] ss:$52 sps:$4 sm:$0xff]   ;;  %v2105_v49 = vld [vmem:[%s2321_s12 + $0x8] ss:$52 sps:$4 sm:$0xff]  }
  0x39   : > { %1892 = vmatprep.subr.bf16.mxu1 %v2083_v28  ;;  %v2107_v50 = vld [vmem:[%s2321_s12 + $0xc] ss:$52 sps:$4 sm:$0xff]   ;;  %1302 = vmatprep.mubr.bf16.mxu0 %v2104_v48  ;;  %v2112_v55 = vld [vmem:[%s2319_s11 + $0x148] sm:$0xff]  }
  0x3a   : > { %1343 = vmatprep.mubr.bf16.mxu1 %v2107_v50  ;;  %v2113_v56 = vld [vmem:[%s2319_s11 + $0x108] sm:$0xff]   ;;  %v2116_v59 = vld [vmem:[%s2319_s11 + $0x150] sm:$0xff]   ;;  %v2120_v63 = vld [vmem:[%s2319_s11 + $0x158] sm:$0xff]  }
  0x3b   : > { %1871 = vmatpush3.bf16.msra.mxu0 %v2084_v29  ;;  %v2114_v57 = vld [vmem:[%s2319_s11 + $0x1c8] sm:$0xff]   ;;  %v2117_v60 = vld [vmem:[%s2319_s11 + $0x110] sm:$0xff]   ;;  %v2121_v0 = vld [vmem:[%s2319_s11 + $0x118] sm:$0xff]  }
  0x3c   : > { %1893 = vmatpush3.bf16.msra.mxu1 %v2085_v30  ;;  %1872 = vmatprep.subr.bf16.mxu0 %v2086_v31  ;;  %v2115_v58 = vld [vmem:[%s2319_s11 + $0x188] sm:$0xff]   ;;  %v2118_v61 = vld [vmem:[%s2319_s11 + $0x1d0] sm:$0xff]   ;;  %v2122_v1 = vld [vmem:[%s2319_s11 + $0x1d8] sm:$0xff]  }
  0x3d   : > { %1894 = vmatprep.subr.bf16.mxu1 %v2087_v32  ;;  %v2119_v62 = vld [vmem:[%s2319_s11 + $0x190] sm:$0xff]   ;;  %v2123_v2 = vld [vmem:[%s2319_s11 + $0x198] sm:$0xff]   ;;  %v2124_v3 = vld [vmem:[%s2319_s11 + $0x160] sm:$0xff]  }
  0x3e   : > { %v2125_v4 = vld [vmem:[%s2319_s11 + $0x120] sm:$0xff]   ;;  %v2128_v7 = vld [vmem:[%s2319_s11 + $0x168] sm:$0xff]   ;;  %v2132_v11 = vld [vmem:[%s2319_s11 + $0x170] sm:$0xff]  }
  0x3f   : > { %1873 = vmatpush3.bf16.msra.mxu0 %v2088_v33  ;;  %v2126_v5 = vld [vmem:[%s2319_s11 + $0x1e0] sm:$0xff]   ;;  %v2129_v8 = vld [vmem:[%s2319_s11 + $0x128] sm:$0xff]   ;;  %v2133_v12 = vld [vmem:[%s2319_s11 + $0x130] sm:$0xff]  }
  0x40   : > { %1895 = vmatpush3.bf16.msra.mxu1 %v2089_v34  ;;  %1874 = vmatprep.subr.bf16.mxu0 %v2090_v35  ;;  %v2127_v6 = vld [vmem:[%s2319_s11 + $0x1a0] sm:$0xff]   ;;  %v2130_v9 = vld [vmem:[%s2319_s11 + $0x1e8] sm:$0xff]   ;;  %v2134_v13 = vld [vmem:[%s2319_s11 + $0x1f0] sm:$0xff]  }
  0x41   : > { %1896 = vmatprep.subr.bf16.mxu1 %v2091_v36  ;;  %v2131_v10 = vld [vmem:[%s2319_s11 + $0x1a8] sm:$0xff]   ;;  %v2135_v14 = vld [vmem:[%s2319_s11 + $0x1b0] sm:$0xff]   ;;  %v2136_v15 = vld [vmem:[%s2319_s11 + $0x178] sm:$0xff]  }
  0x42   : > { %v2137_v16 = vld [vmem:[%s2319_s11 + $0x138] sm:$0xff]   ;;  %v2143_v21 = vld [vmem:[%s2319_s11 + $0x240] sm:$0xff]   ;;  %v2150_v27 = vld [vmem:[%s2319_s11 + $0x248] sm:$0xff]  }
  0x43   : > { %1875 = vmatpush3.bf16.msra.mxu0 %v2092_v37  ;;  %v2138_v17 = vld [vmem:[%s2319_s11 + $0x1f8] sm:$0xff]   ;;  %v2146_v23 = vld [vmem:[%s2321_s12 + $0x1c] ss:$52 sps:$4 sm:$0xff]  }
  0x44   : > { %1897 = vmatpush3.bf16.msra.mxu1 %v2093_v38  ;;  %1876 = vmatprep.subr.bf16.mxu0 %v2094_v39  ;;  %v2139_v18 = vld [vmem:[%s2321_s12 + $0x10] ss:$52 sps:$4 sm:$0xff]   ;;  %v2141_v19 = vld [vmem:[%s2321_s12 + $0x14] ss:$52 sps:$4 sm:$0xff]   ;;  %v2144_v22 = vld [vmem:[%s2321_s12 + $0x18] ss:$52 sps:$4 sm:$0xff]  }
  0x45   : > { %1898 = vmatprep.subr.bf16.mxu1 %v2095_v40  ;;  %v2142_v20 = vld [vmem:[%s2319_s11 + $0x1b8] sm:$0xff]   ;;  %v2147_v24 = vld [vmem:[%s2319_s11 + $0x200] sm:$0xff]   ;;  %v2151_v28 = vld [vmem:[%s2319_s11 + $0x208] sm:$0xff]  }
  0x46   : > { %v2148_v25 = vld [vmem:[%s2319_s11 + $0x2c0] sm:$0xff]   ;;  %v2152_v29 = vld [vmem:[%s2319_s11 + $0x2c8] sm:$0xff]   ;;  %v2154_v31 = vld [vmem:[%s2319_s11 + $0x250] sm:$0xff]  }
  0x47   : > { %1877 = vmatpush3.bf16.msra.mxu0 %v2096_v41  ;;  %v2149_v26 = vld [vmem:[%s2319_s11 + $0x280] sm:$0xff]   ;;  %v2153_v30 = vld [vmem:[%s2319_s11 + $0x288] sm:$0xff]   ;;  %v2155_v32 = vld [vmem:[%s2319_s11 + $0x210] sm:$0xff]  }
  0x48   : > { %1899 = vmatpush3.bf16.msra.mxu1 %v2097_v42  ;;  %1878 = vmatprep.subr.bf16.mxu0 %v2098_v43  ;;  %v2156_v33 = vld [vmem:[%s2319_s11 + $0x2d0] sm:$0xff]   ;;  %v2158_v35 = vld [vmem:[%s2319_s11 + $0x258] sm:$0xff]   ;;  %v2162_v39 = vld [vmem:[%s2319_s11 + $0x260] sm:$0xff]  }
  0x49   : > { %1900 = vmatprep.subr.bf16.mxu1 %v2099_v44  ;;  %v2157_v34 = vld [vmem:[%s2319_s11 + $0x290] sm:$0xff]   ;;  %v2159_v36 = vld [vmem:[%s2319_s11 + $0x218] sm:$0xff]   ;;  %v2163_v40 = vld [vmem:[%s2319_s11 + $0x220] sm:$0xff]  }
  0x4a   : > { %v2160_v37 = vld [vmem:[%s2319_s11 + $0x2d8] sm:$0xff]   ;;  %v2164_v41 = vld [vmem:[%s2319_s11 + $0x2e0] sm:$0xff]   ;;  %v2166_v43 = vld [vmem:[%s2319_s11 + $0x268] sm:$0xff]  }
  0x4b   : > { %1879 = vmatpush3.bf16.msra.mxu0 %v2100_v45  ;;  %v2161_v38 = vld [vmem:[%s2319_s11 + $0x298] sm:$0xff]   ;;  %v2165_v42 = vld [vmem:[%s2319_s11 + $0x2a0] sm:$0xff]   ;;  %v2167_v44 = vld [vmem:[%s2319_s11 + $0x228] sm:$0xff]  }
  0x4c   : > { %1901 = vmatpush3.bf16.msra.mxu1 %v2101_v46  ;;  %1908 = vmatprep.subr.bf16.mxu0 %v2108_v51  ;;  %v2168_v45 = vld [vmem:[%s2319_s11 + $0x2e8] sm:$0xff]   ;;  %v2171_v48 = vld [vmem:[%s2319_s11 + $0x230] sm:$0xff]   ;;  %v2174_v51 = vld [vmem:[%s2319_s11 + $0x278] sm:$0xff]  }
  0x4d   : > { %1930 = vmatprep.subr.bf16.mxu1 %v2110_v53  ;;  %v2169_v46 = vld [vmem:[%s2319_s11 + $0x2a8] sm:$0xff]   ;;  %v2173_v50 = vld [vmem:[%s2319_s11 + $0x2b0] sm:$0xff]   ;;  %v2176_v53 = vld [vmem:[%s2319_s11 + $0x2f8] sm:$0xff]  }
  0x4e   : > { %1303 = vmatmul.mubr.bf16.vlgmr.msra.gmra.mrb[0].mxu0 %v2102_v47  ;;  %v2170_v47 = vld [vmem:[%s2319_s11 + $0x270] sm:$0xff]  }
  0x4f   : > { %1344 = vmatmul.mubr.bf16.vlgmr.msra.gmra.mrb[0].mxu1 %v2105_v49  ;;  %1909 = vmatpush3.bf16.msra.mxu0 %v2109_v52  ;;  %v2172_v49 = vld [vmem:[%s2319_s11 + $0x2f0] sm:$0xff]   ;;  %v2175_v52 = vld [vmem:[%s2319_s11 + $0x238] sm:$0xff]  }
  0x50   : > { %1931 = vmatpush3.bf16.msra.mxu1 %v2111_v54  ;;  %1910 = vmatprep.subr.bf16.mxu0 %v2112_v55  ;;  %v2177_v54 = vld [vmem:[%s2321_s12 + $0x20] ss:$52 sps:$4 sm:$0xff]   ;;  %v2179_v55 = vld [vmem:[%s2321_s12 + $0x24] ss:$52 sps:$4 sm:$0xff]  }
  0x51   : > { %1932 = vmatprep.subr.bf16.mxu1 %v2114_v57  ;;  %1384 = vmatprep.mubr.bf16.mxu0 %v2141_v19  ;;  %v2242_v57 = vmov 0.0  }
  0x52   : > { %1425 = vmatprep.mubr.bf16.mxu1 %v2146_v23 }
  0x53   : > { %1911 = vmatpush3.bf16.msra.mxu0 %v2113_v56  ;;  %v2180_v56 = vld [vmem:[%s2319_s11 + $0x2b8] sm:$0xff]  }
  0x54   : > { %1933 = vmatpush3.bf16.msra.mxu1 %v2115_v58  ;;  %1912 = vmatprep.subr.bf16.mxu0 %v2116_v59  ;;  %v2181_v58 = vld [vmem:[%s2321_s12 + $0x28] ss:$52 sps:$4 sm:$0xff]   ;;  %v2183_v59 = vld [vmem:[%s2321_s12 + $0x2c] ss:$52 sps:$4 sm:$0xff]  }
  0x55   : > { %1934 = vmatprep.subr.bf16.mxu1 %v2118_v61  ;;  %v2185_v61 = vld [vmem:[%s2319_s11 + $0x308] sm:$0xff]  }
  0x57   : > { %1913 = vmatpush3.bf16.msra.mxu0 %v2117_v60  ;;  %v2184_v60 = vld [vmem:[%s2319_s11 + $0x300] sm:$0xff]  }
  0x58   : > { %1935 = vmatpush3.bf16.msra.mxu1 %v2119_v62  ;;  %1914 = vmatprep.subr.bf16.mxu0 %v2120_v63  ;;  %v2186_v62 = vld [vmem:[%s2319_s11 + $0x310] sm:$0xff]   ;;  %v2187_v63 = vld [vmem:[%s2319_s11 + $0x318] sm:$0xff]  }
  0x59   : > { %1936 = vmatprep.subr.bf16.mxu1 %v2122_v1  ;;  %v2189_v1 = vld [vmem:[%s2319_s11 + $0x328] sm:$0xff]  }
  0x5b   : > { %1915 = vmatpush3.bf16.msra.mxu0 %v2121_v0  ;;  %v2188_v0 = vld [vmem:[%s2319_s11 + $0x320] sm:$0xff]  }
  0x5c   : > { %1937 = vmatpush3.bf16.msra.mxu1 %v2123_v2  ;;  %1916 = vmatprep.subr.bf16.mxu0 %v2124_v3  ;;  %v2190_v2 = vld [vmem:[%s2319_s11 + $0x330] sm:$0xff]   ;;  %v2191_v3 = vld [vmem:[%s2319_s11 + $0x338] sm:$0xff]  }
  0x5d   : > { %1938 = vmatprep.subr.bf16.mxu1 %v2126_v5 }
  0x5f   : > { %1917 = vmatpush3.bf16.msra.mxu0 %v2125_v4  ;;  %v2192_v4 = vld [vmem:[%s2321_s12 + $0x30] ss:$52 sps:$4 sm:$0xff]  }
  0x60   : > { %1939 = vmatpush3.bf16.msra.mxu1 %v2127_v6  ;;  %1918 = vmatprep.subr.bf16.mxu0 %v2128_v7 }
  0x61   : > { %1940 = vmatprep.subr.bf16.mxu1 %v2130_v9 }
  0x63   : > { %1919 = vmatpush3.bf16.msra.mxu0 %v2129_v8 }
  0x64   : > { %1941 = vmatpush3.bf16.msra.mxu1 %v2131_v10  ;;  %1920 = vmatprep.subr.bf16.mxu0 %v2132_v11 }
  0x65   : > { %1942 = vmatprep.subr.bf16.mxu1 %v2134_v13 }
  0x67   : > { %1921 = vmatpush3.bf16.msra.mxu0 %v2133_v12 }
  0x68   : > { %1943 = vmatpush3.bf16.msra.mxu1 %v2135_v14  ;;  %1922 = vmatprep.subr.bf16.mxu0 %v2136_v15 }
  0x69   : > { %1944 = vmatprep.subr.bf16.mxu1 %v2138_v17 }
  0x6b   : > { %1923 = vmatpush3.bf16.msra.mxu0 %v2137_v16 }
  0x6c   : > { %1945 = vmatpush3.bf16.msra.mxu1 %v2142_v20  ;;  %1952 = vmatprep.subr.bf16.mxu0 %v2143_v21 }
  0x6d   : > { %1974 = vmatprep.subr.bf16.mxu1 %v2148_v25 }
  0x6e   : > { %1385 = vmatmul.mubr.bf16.vlgmr.msra.gmra.mrb[4].mxu0 %v2139_v18 }
  0x6f   : > { %1953 = vmatpush3.bf16.msra.mxu0 %v2147_v24  ;;  %1426 = vmatmul.mubr.bf16.vlgmr.msra.gmra.mrb[4].mxu1 %v2144_v22 }
  0x70   : > { %1975 = vmatpush3.bf16.msra.mxu1 %v2149_v26  ;;  %1954 = vmatprep.subr.bf16.mxu0 %v2150_v27 }
  0x71   : > { %1976 = vmatprep.subr.bf16.mxu1 %v2152_v29  ;;  %1466 = vmatprep.mubr.bf16.mxu0 %v2179_v55  ;;  %v357_v55 = vld [vmem:[#allocation2 + $0x8] sm:$0xff] }
  0x72   : > { %1507 = vmatprep.mubr.bf16.mxu1 %v2183_v59 }
  0x73   : > { %1955 = vmatpush3.bf16.msra.mxu0 %v2151_v28 }
  0x74   : > { %1977 = vmatpush3.bf16.msra.mxu1 %v2153_v30  ;;  %1956 = vmatprep.subr.bf16.mxu0 %v2154_v31 }
  0x75   : > { %1978 = vmatprep.subr.bf16.mxu1 %v2156_v33 }
  0x77   : > { %1957 = vmatpush3.bf16.msra.mxu0 %v2155_v32 }
  0x78   : > { %1979 = vmatpush3.bf16.msra.mxu1 %v2157_v34  ;;  %1958 = vmatprep.subr.bf16.mxu0 %v2158_v35 }
  0x79   : > { %1980 = vmatprep.subr.bf16.mxu1 %v2160_v37 }
  0x7b   : > { %1959 = vmatpush3.bf16.msra.mxu0 %v2159_v36 }
  0x7c   : > { %1981 = vmatpush3.bf16.msra.mxu1 %v2161_v38  ;;  %1960 = vmatprep.subr.bf16.mxu0 %v2162_v39 }
  0x7d   : > { %1982 = vmatprep.subr.bf16.mxu1 %v2164_v41 }
  0x7f   : > { %1961 = vmatpush3.bf16.msra.mxu0 %v2163_v40 }
  0x80   : > { %1983 = vmatpush3.bf16.msra.mxu1 %v2165_v42  ;;  %1962 = vmatprep.subr.bf16.mxu0 %v2166_v43 }
  0x81   : > { %1984 = vmatprep.subr.bf16.mxu1 %v2168_v45 }
  0x83   : > { %1963 = vmatpush3.bf16.msra.mxu0 %v2167_v44 }
  0x84   : > { %1985 = vmatpush3.bf16.msra.mxu1 %v2169_v46  ;;  %1964 = vmatprep.subr.bf16.mxu0 %v2170_v47 }
  0x85   : > { %1986 = vmatprep.subr.bf16.mxu1 %v2172_v49 }
  0x87   : > { %1965 = vmatpush3.bf16.msra.mxu0 %v2171_v48 }
  0x88   : > { %1987 = vmatpush3.bf16.msra.mxu1 %v2173_v50  ;;  %1966 = vmatprep.subr.bf16.mxu0 %v2174_v51  ;;  %v356_v51 = vld [vmem:[#allocation2] sm:$0xff] }
  0x89   : > { %1988 = vmatprep.subr.bf16.mxu1 %v2176_v53 }
  0x8b   : > { %1967 = vmatpush3.bf16.msra.mxu0 %v2175_v52 }
  0x8c   : > { %2005 = vmatprep.subr.bf16.mxu0 %v2242_v57  ;;  %1989 = vmatpush3.bf16.msra.mxu1 %v2180_v56 }
  0x8e   : > { %1467 = vmatmul.mubr.bf16.vlgmr.msra.gmra.mrb[8].mxu0 %v2177_v54 }
  0x8f   : > { %2021 = vmatprep.mubr.msk.bf16.mxu0 %vm2243_vm0, %v2242_v57  ;;  %2006 = vmatpush3.bf16.msra.mxu0 %v2184_v60 }
  0x90   : > { %1508 = vmatmul.mubr.bf16.vlgmr.msra.gmra.mrb[8].mxu1 %v2181_v58  ;;  %2007 = vmatprep.subr.bf16.mxu0 %v2242_v57 }
  0x93   : > { %2008 = vmatpush3.bf16.msra.mxu0 %v2185_v61 }
  0x94   : > { %2009 = vmatprep.subr.bf16.mxu0 %v2242_v57 }
  0x97   : > { %2010 = vmatpush3.bf16.msra.mxu0 %v2186_v62  ;;  %v1857_v62 = vld [vmem:[%s2471_s2] ss:$0 sm:$0xff] (!%p1856_p11) }
  0x98   : > { %2011 = vmatprep.subr.bf16.mxu0 %v2242_v57 }
  0x9b   : > { %2012 = vmatpush3.bf16.msra.mxu0 %v2187_v63  ;;  %v1858_v63 = vld [vmem:[%s2472_s3] ss:$0 sm:$0xff] (!%p1856_p11) }
  0x9c   : > { %2013 = vmatprep.subr.bf16.mxu0 %v2242_v57 }
  0x9f   : > { %2014 = vmatpush3.bf16.msra.mxu0 %v2188_v0 }
  0xa0   : > { %2015 = vmatprep.subr.bf16.mxu0 %v2242_v57 }
  0xa3   : > { %2016 = vmatpush3.bf16.msra.mxu0 %v2189_v1 }
  0xa4   : > { %2017 = vmatprep.subr.bf16.mxu0 %v2242_v57 }
  0xa7   : > { %2018 = vmatpush3.bf16.msra.mxu0 %v2190_v2 }
  0xa8   : > { %2019 = vmatprep.subr.bf16.mxu0 %v2242_v57 }
  0xab   : > { %2020 = vmatpush3.bf16.msra.mxu0 %v2191_v3 }
  0xae   : > { %2022 = vmatmul.mubr.bf16.vlgmr.msra.gmra.mrb[12].mxu0 %v2192_v4 }
 0x121   : > { %v1880_v5 = vpop.f32.mrb[0].mxu0 }
 0x122   : > { %v1902_v6 = vpop.f32.mrb[0].mxu1  ;;  %v1881_v7 = vpop.f32.mrb[1].mxu0 }
 0x123   : > { %v1882_v8 = vadd.f32 %v1881_v7, %v1880_v5  ;;  %v1903_v9 = vpop.f32.mrb[1].mxu1  ;;  %v1883_v10 = vpop.f32.mrb[2].mxu0 }
 0x124   : > { %v1904_v11 = vadd.f32 %v1903_v9, %v1902_v6  ;;  %v1905_v12 = vpop.f32.mrb[2].mxu1  ;;  %v1884_v13 = vpop.f32.mrb[3].mxu0 }
 0x125   : > { %v1885_v14 = vadd.f32 %v1884_v13, %v1883_v10  ;;  %v1906_v15 = vpop.f32.mrb[3].mxu1 }
 0x126   : > { %v1346_v16 = vadd.f32 %v1904_v11, %v1882_v8  ;;  %v1907_v17 = vadd.f32 %v1906_v15, %v1905_v12 }
 0x128   : > { %v1349_v18 = vadd.f32 %v1907_v17, %v1885_v14 }
 0x141   : > { %v1924_v19 = vpop.f32.mrb[4].mxu0 }
 0x142   : > { %v1925_v20 = vpop.f32.mrb[5].mxu0  ;;  %v1946_v25 = vpop.f32.mrb[4].mxu1 }
 0x143   : > { %v1926_v21 = vadd.f32 %v1925_v20, %v1924_v19  ;;  %v1927_v22 = vpop.f32.mrb[6].mxu0  ;;  %v1947_v27 = vpop.f32.mrb[5].mxu1 }
 0x144   : > { %v1928_v23 = vpop.f32.mrb[7].mxu0  ;;  %v1948_v29 = vadd.f32 %v1947_v27, %v1946_v25  ;;  %v1949_v30 = vpop.f32.mrb[6].mxu1 }
 0x145   : > { %v1387_v24 = vadd.f32 %v1926_v21, %v1346_v16  ;;  %v1929_v26 = vadd.f32 %v1928_v23, %v1927_v22  ;;  %v1950_v31 = vpop.f32.mrb[7].mxu1 }
 0x146   : > { %v1951_v33 = vadd.f32 %v1950_v31, %v1949_v30 }
 0x147   : > { %v1390_v28 = vadd.f32 %v1929_v26, %v1349_v18  ;;  %v1428_v32 = vadd.f32 %v1948_v29, %v1387_v24 }
 0x149   : > { %v1431_v34 = vadd.f32 %v1951_v33, %v1390_v28 }
 0x161   : > { %v1968_v35 = vpop.f32.mrb[8].mxu0 }
 0x162   : > { %v1969_v36 = vpop.f32.mrb[9].mxu0 }
 0x163   : > { %v1970_v37 = vadd.f32 %v1969_v36, %v1968_v35  ;;  %v1971_v38 = vpop.f32.mrb[10].mxu0  ;;  %v1990_v39 = vpop.f32.mrb[8].mxu1 }
 0x164   : > { %v1972_v40 = vpop.f32.mrb[11].mxu0  ;;  %v1991_v43 = vpop.f32.mrb[9].mxu1 }
 0x165   : > { %v1469_v41 = vadd.f32 %v1970_v37, %v1428_v32  ;;  %v1973_v42 = vadd.f32 %v1972_v40, %v1971_v38  ;;  %v1992_v44 = vadd.f32 %v1991_v43, %v1990_v39  ;;  %v1993_v45 = vpop.f32.mrb[10].mxu1 }
 0x166   : > { %v1994_v47 = vpop.f32.mrb[11].mxu1 }
 0x167   : > { %v1472_v46 = vadd.f32 %v1973_v42, %v1431_v34  ;;  %v1995_v48 = vadd.f32 %v1994_v47, %v1993_v45  ;;  %v1510_v49 = vadd.f32 %v1992_v44, %v1469_v41 }
 0x169   : > { %v1513_v50 = vadd.f32 %v1995_v48, %v1472_v46 }
 0x181   : > { %v1550_v52 = vpop.f32.mrb[12].mxu0 }
 0x182   : > { %v1551_v53 = vadd.f32 %v1550_v52, %v1510_v49  ;;  %v2023_v54 = vpop.f32.mrb[13].mxu0  ;;  %1564 = sbr.rel (%p1856_p11) target bundleno = 433 (0x1b1), region = 70 }
 0x183   : > { %v1553_v56 = vpop.f32.mrb[14].mxu0 }
 0x184   : > { %v1557_v57 = vadd.f32 %v1551_v53, %v356_v51  ;;  %v1554_v58 = vadd.f32 %v1553_v56, %v1513_v50  ;;  %v2024_v59 = vpop.f32.mrb[15].mxu0 }
 0x186   : > { %1559 = vst [vmem:[#allocation2] sm:$0xff] %v1557_v57  ;;  %v1558_v60 = vadd.f32 %v1554_v58, %v357_v55 }
 0x188   : > { %1560 = vst [vmem:[#allocation2 + $0x8] sm:$0xff] %v1558_v60 }
 0x18d   : > { %v1565_v61 = vld [vmem:[#allocation2] sm:$0xff] }
 0x18e   : > { %v1574_v0 = vmul.f32 %v1857_v62, %v1565_v61 }
 0x18f   : > { %v1566_v1 = vld [vmem:[#allocation2 + $0x8] sm:$0xff] }
 0x190   : > { %v1575_v2 = vmul.f32 %v1857_v62, %v1566_v1  ;;  %v1583_v3 = vadd.f32 %v1858_v63, %v1574_v0 }
 0x192   : > { %v1584_v4 = vadd.f32 %v1858_v63, %v1575_v2  ;;  %v1585_v5 = vsub.f32 0.0, %v1583_v3 }
 0x194   : > { %v1586_v6 = vsub.f32 0.0, %v1584_v4  ;;  %v1587_v7 = vmul.f32 1.442695, %v1585_v5 }
 0x196   : > { %v1589_v8 = vmul.f32 1.442695, %v1586_v6  ;;  %2193 = vpow2.f32 %v1587_v7 }
 0x198   : > { %2195 = vpow2.f32 %v1589_v8 }
 0x1a0   : > { %v2194_v9 = vpop.eup %2193 }
 0x1a1   : > { %v1591_v11 = vadd.f32 1.0, %v2194_v9 }
 0x1a2   : > { %v2196_v10 = vpop.eup %2195 }
 0x1a3   : > { %v1592_v12 = vadd.f32 1.0, %v2196_v10  ;;  %2197 = vrcp.f32 %v1591_v11 }
 0x1a5   : > { %2199 = vrcp.f32 %v1592_v12 }
 0x1ad   : > { %v2198_v13 = vpop.eup %2197 }
 0x1ae   : > { %1597 = vst [vmem:[%s2473_s4] sm:$0xff] %v2198_v13 }
 0x1af   : > { %v2200_v14 = vpop.eup %2199 }
 0x1b0   : > { %1598 = vst [vmem:[%s2473_s4 + $0x8] sm:$0xff] %v2200_v14 }
 0x1b1 PF: > { %s14_s19 = sadd.s32 1, %s2239_s19   ;;  %s2474_s15 = smov %s2227_s16 }
 0x1b2   : > { %p11_p12 = scmp.ge.s32.totalorder %s14_s19, 6   ;;  %s2475_s16 = smov %s2304_s23 }
 0x1b3   : > { %s2476_s17 = smov %s2235_s18  ;;  %s2477_s18 = smov %s2479_s20 }
 0x1b4   :  { %13 = sbr.rel (!%p11_p12) target bundleno = 3 (0x3), region = 120 }

</bundles_post_ra>
